<compile_context>
chip_gen: v7x
topology: tpu7x:2x2x1
jax: 0.10.0
libtpu: 0.0.40
codegen_flags: <defaults>
</compile_context>

<pallas_src>
import math

import numpy as np
import jax
import jax.numpy as jnp
from jax.experimental import pallas as pl
from jax.experimental.pallas import tpu as pltpu

# ----------------------- small, shape-consistent config -----------------------
BATCH = 2
IN_FEATURES = 16          # feat_dim / node_n
KERNEL_SIZE = 4
D_ATT = 32                # d_att_model
D_MODEL = 64              # GCN hidden_feature
H = 2                     # attention heads
D_FF = 32
N_LAYERS = 2              # encoder / decoder depth
NUM_STAGE = 2             # GCN stages
DCT_N = 4
INPUT_N = 12
OUTPUT_N = 6
SEQ_LEN = 14              # raw src length (>= INPUT_N)
SUBSEQ_LEN = KERNEL_SIZE + OUTPUT_N               # 10
CONV_RED_K = INPUT_N - SUBSEQ_LEN + 1             # 3: first conv reduces T: INPUT_N -> SUBSEQ_LEN
LANES = 128


# ------------------------------ constants / helpers --------------------------------
def positional_encoding(T, D):
    pos = np.arange(T)[:, None].astype(np.float32)
    div = np.exp(np.arange(0, D, 2).astype(np.float32) * (-math.log(10000.0) / D))
    pe = np.zeros((T, D), dtype=np.float32)
    pe[:, 0::2] = np.sin(pos * div)
    pe[:, 1::2] = np.cos(pos * div)
    return pe


def get_dct_matrix(N):
    dct_m = np.eye(N)
    for k in range(N):
        for i in range(N):
            w = math.sqrt(2.0 / N)
            if k == 0:
                w = math.sqrt(1.0 / N)
            dct_m[k, i] = w * math.cos(math.pi * (i + 0.5) * k / N)
    idct_m = np.linalg.inv(dct_m)
    return dct_m.astype(np.float32), idct_m.astype(np.float32)


def _pad_rows(n):
    return -(-n // 8) * 8


class _SlabPacker:
    """Packs 1-D/2-D f32 arrays into one [R,128] slab; each piece 8-row aligned."""

    def __init__(self):
        self._chunks = []
        self.index = {}     # name -> (row_offset, rows, cols)
        self._off = 0

    def add(self, name, arr):
        a = np.asarray(arr, dtype=np.float32)
        if a.ndim == 1:
            a = a.reshape(1, -1)
        r, c = a.shape
        assert c <= LANES, (name, a.shape)
        rp = _pad_rows(r)
        buf = np.zeros((rp, LANES), np.float32)
        buf[:r, :c] = a
        self._chunks.append(buf)
        self.index[name] = (self._off, r, c)
        self._off += rp

    def finalize(self):
        slab = np.concatenate(self._chunks, axis=0)
        return jnp.asarray(slab), dict(self.index)


# ------------------------------ weight packing (once, at init) --------------------------------
def pack_params(params, rows):
    """Pack every weight into one (8,128)-padded f32 slab.  `rows` = batch rows per grid step."""
    pk = _SlabPacker()
    np_ = lambda x: np.asarray(x, np.float32)

    pk.add('pe', np.tile(positional_encoding(INPUT_N, D_ATT), (rows, 1)))
    pk.add('init_w', params['init_lin_encode']['w'])
    pk.add('init_b', params['init_lin_encode']['b'])
    pk.add('inter_w', params['inter_lin']['w'])
    pk.add('inter_b', params['inter_lin']['b'])

    for l, lp in enumerate(params['encoder']['layers']):
        p = f'enc{l}_'
        a = lp['self_attn']
        pk.add(p + 'ln1_g', lp['ln1_g']); pk.add(p + 'ln1_b', lp['ln1_b'])
        pk.add(p + 'wqkv', np.concatenate([np_(a['wq']), np_(a['wk']), np_(a['wv'])], axis=1))
        pk.add(p + 'bqkv', np.concatenate([np_(a['bq']), np_(a['bk']), np_(a['bv'])]))
        pk.add(p + 'wo', a['wo']); pk.add(p + 'bo', a['bo'])
        pk.add(p + 'ln2_g', lp['ln2_g']); pk.add(p + 'ln2_b', lp['ln2_b'])
        pk.add(p + 'w1', lp['ff']['w1']); pk.add(p + 'b1', lp['ff']['b1'])
        pk.add(p + 'w2', lp['ff']['w2']); pk.add(p + 'b2', lp['ff']['b2'])
    pk.add('enc_norm_g', params['encoder']['norm_g'])
    pk.add('enc_norm_b', params['encoder']['norm_b'])

    for l, lp in enumerate(params['decoder']['layers']):
        p = f'dec{l}_'
        sa, ca = lp['self_attn'], lp['src_attn']
        pk.add(p + 'ln1_g', lp['ln1_g']); pk.add(p + 'ln1_b', lp['ln1_b'])
        pk.add(p + 'wqkv', np.concatenate([np_(sa['wq']), np_(sa['wk']), np_(sa['wv'])], axis=1))
        pk.add(p + 'bqkv', np.concatenate([np_(sa['bq']), np_(sa['bk']), np_(sa['bv'])]))
        pk.add(p + 'wo_s', sa['wo']); pk.add(p + 'bo_s', sa['bo'])
        pk.add(p + 'ln2_g', lp['ln2_g']); pk.add(p + 'ln2_b', lp['ln2_b'])
        pk.add(p + 'wq_c', ca['wq']); pk.add(p + 'bq_c', ca['bq'])
        pk.add(p + 'wkv_c', np.concatenate([np_(ca['wk']), np_(ca['wv'])], axis=1))
        pk.add(p + 'bkv_c', np.concatenate([np_(ca['bk']), np_(ca['bv'])]))
        pk.add(p + 'wo_c', ca['wo']); pk.add(p + 'bo_c', ca['bo'])
        pk.add(p + 'ln3_g', lp['ln3_g']); pk.add(p + 'ln3_b', lp['ln3_b'])
        pk.add(p + 'w1', lp['ff']['w1']); pk.add(p + 'b1', lp['ff']['b1'])
        pk.add(p + 'w2', lp['ff']['w2']); pk.add(p + 'b2', lp['ff']['b2'])
    pk.add('dec_norm_g', params['decoder']['norm_g'])
    pk.add('dec_norm_b', params['decoder']['norm_b'])

    # ---- head: conv (im2col form), DCT/IDCT, identity for MXU transpose, GCN ----
    rc = params['res_conv']
    w1 = np_(rc['w1'])                                   # [Cout, Cin, K]
    pk.add('conv_w1', np.concatenate([w1[:, :, k].T for k in range(w1.shape[2])], axis=0))
    pk.add('conv_b1', rc['b1'])
    w2 = np_(rc['w2'])
    pk.add('conv_w2', np.concatenate([w2[:, :, k].T for k in range(w2.shape[2])], axis=0))
    pk.add('conv_b2', rc['b2'])

    dct_m, idct_m = get_dct_matrix(SUBSEQ_LEN)
    pk.add('dct', dct_m[:DCT_N])                         # [DCT_N, SUBSEQ_LEN]
    pk.add('idct', idct_m[:, :DCT_N])                    # [SUBSEQ_LEN, DCT_N]
    pk.add('eye2f', np.eye(2 * IN_FEATURES, dtype=np.float32))

    def blockdiag(a, n):
        a = np_(a)
        out = np.zeros((n * a.shape[0], n * a.shape[1]), np.float32)
        for i in range(n):
            out[i * a.shape[0]:(i + 1) * a.shape[0], i * a.shape[1]:(i + 1) * a.shape[1]] = a
        return out

    def add_gc(name, gp):
        pk.add(name + '_w', gp['w'])                       # [fin, fout]
        pk.add(name + '_att', blockdiag(gp['att'], rows))  # batched graph adjacency
        pk.add(name + '_b', gp['b'])                       # [fout] row bias

    g = params['gcn']
    add_gc('gc1', g['gc1'])
    for s, blk in enumerate(g['blocks']):
        add_gc(f'blk{s}a', blk['gc1'])
        add_gc(f'blk{s}b', blk['gc2'])
    add_gc('gc7', g['gc7'])

    return pk.finalize()


# ------------------------------ fused Pallas kernel --------------------------------
def build_kernel(index, rows):
    T, F, D, S = INPUT_N, IN_FEATURES, D_ATT, SUBSEQ_LEN
    dk = D // H
    scale = 1.0 / math.sqrt(dk)

    def kernel(src_ref, slab_ref, out_ref):
        def W(name):
            off, r, c = index[name]
            return slab_ref[off:off + r, :c]

        def mm(a, b):
            return jnp.dot(a, b, preferred_element_type=jnp.float32)

        def mmt(a, b):  # a @ b.T  (contraction over shared last dim)
            return jnp.einsum('xd,yd->xy', a, b, preferred_element_type=jnp.float32)

        def layer_norm(x, g, b):
            # annotated-transformer LayerNorm: unbiased std, eps added to std
            mean = jnp.mean(x, axis=-1, keepdims=True)
            var = jnp.sum((x - mean) ** 2, axis=-1, keepdims=True) / (x.shape[-1] - 1)
            inv = pl.reciprocal(jnp.sqrt(var) + 1e-6, approx=True)
            return g * (x - mean) * inv + b

        def softmax(s):
            s = s - jnp.max(s, axis=-1, keepdims=True)
            e = jnp.exp(s)
            return e * pl.reciprocal(jnp.sum(e, axis=-1, keepdims=True), approx=True)

        def mha(q_all, k_all, v_all, wo, bo):
            # scores/softmax per (batch row, head); head outputs folded directly into
            # row slices of Wo and summed (no head concatenation).
            acc = None
            for h in range(H):
                hs = slice(h * dk, (h + 1) * dk)
                o_rows = []
                for r in range(rows):
                    rs = slice(r * T, (r + 1) * T)
                    qh, kh, vh = q_all[rs, hs], k_all[rs, hs], v_all[rs, hs]
                    p = softmax(mmt(qh, kh) * scale)
                    o_rows.append(mm(p, vh))
                o_h = o_rows[0] if rows == 1 else jnp.concatenate(o_rows, axis=0)
                contrib = mm(o_h, wo[h * dk:(h + 1) * dk, :])
                acc = contrib if acc is None else acc + contrib
            return acc + bo

        # ---------------- transformer, batch rows stacked along M ----------------
        x_src = (src_ref[0, :T, :] if rows == 1 else
                 jnp.concatenate([src_ref[r, :T, :] for r in range(rows)], axis=0))   # [rows*T, F]
        # encode_in == decode_in (original applies init_lin_encode + pos_encoding to both)
        x0 = mm(x_src, W('init_w')) + W('init_b') + W('pe')                           # [rows*T, D]

        x = x0
        for l in range(N_LAYERS):
            p = f'enc{l}_'
            y = layer_norm(x, W(p + 'ln1_g'), W(p + 'ln1_b'))
            qkv = mm(y, W(p + 'wqkv')) + W(p + 'bqkv')
            x = x + mha(qkv[:, :D], qkv[:, D:2 * D], qkv[:, 2 * D:], W(p + 'wo'), W(p + 'bo'))
            y = layer_norm(x, W(p + 'ln2_g'), W(p + 'ln2_b'))
            hff = jnp.maximum(mm(y, W(p + 'w1')) + W(p + 'b1'), 0.0)
            x = x + mm(hff, W(p + 'w2')) + W(p + 'b2')
        memory = layer_norm(x, W('enc_norm_g'), W('enc_norm_b'))

        # TODO(synk): original calls self.decoder(self, ...) with a spurious extra arg; dropped.
        x = x0
        for l in range(N_LAYERS):
            p = f'dec{l}_'
            y = layer_norm(x, W(p + 'ln1_g'), W(p + 'ln1_b'))
            qkv = mm(y, W(p + 'wqkv')) + W(p + 'bqkv')
            x = x + mha(qkv[:, :D], qkv[:, D:2 * D], qkv[:, 2 * D:], W(p + 'wo_s'), W(p + 'bo_s'))
            y = layer_norm(x, W(p + 'ln2_g'), W(p + 'ln2_b'))
            q = mm(y, W(p + 'wq_c')) + W(p + 'bq_c')
            kv = mm(memory, W(p + 'wkv_c')) + W(p + 'bkv_c')
            x = x + mha(q, kv[:, :D], kv[:, D:], W(p + 'wo_c'), W(p + 'bo_c'))
            y = layer_norm(x, W(p + 'ln3_g'), W(p + 'ln3_b'))
            hff = jnp.maximum(mm(y, W(p + 'w1')) + W(p + 'b1'), 0.0)
            x = x + mm(hff, W(p + 'w2')) + W(p + 'b2')
        dec = layer_norm(x, W('dec_norm_g'), W('dec_norm_b'))
        # TODO(synk): original references undefined self.inter_lin_decode; using self.inter_lin.
        att_pre = mm(dec, W('inter_w')) + W('inter_b')                                # [rows*T, F]

        # ---------------- ResConvBlock + input_gcn + DCT (per row, node-major xg) ----------------
        w1c, b1c = W('conv_w1'), W('conv_b1')
        w2c, b2c = W('conv_w2'), W('conv_b2')
        dct4, eye2f = W('dct'), W('eye2f')
        xg_rows = []
        for r in range(rows):
            ap = att_pre[r * T:(r + 1) * T, :]                                        # [T, F]
            # TODO(synk): ResConvBlock definition not in the source; shape-consistent guess
            # (time-reducing valid conv + ReLU, then 'same' conv, residual add), im2col'ed.
            c1 = jnp.concatenate([ap[k:k + S, :] for k in range(CONV_RED_K)], axis=1)  # [S, K*F]
            y1 = jnp.maximum(mm(c1, w1c) + b1c, 0.0)                                   # [S, F]
            zrow = jnp.zeros((1, F), jnp.float32)
            yp = jnp.concatenate([zrow, y1, zrow], axis=0)                             # [S+2, F]
            c2 = jnp.concatenate([yp[k:k + S, :] for k in range(3)], axis=1)           # [S, 3F]
            att_conv = y1 + mm(c2, w2c) + b2c                                          # [S, F]
            # input_gcn = src[:, idx]: last kernel_size frames + last frame repeated
            s_r = src_ref[r, :T, :]
            ig = jnp.concatenate([s_r[T - KERNEL_SIZE:T, :],
                                  jnp.broadcast_to(s_r[T - 1:T, :], (OUTPUT_N, F))], axis=0)  # [S, F]
            att_out = att_conv + ig
            # one DCT matmul for [input_gcn | att_out]; flip to node-major on the MXU
            coef = mm(dct4, jnp.concatenate([ig, att_out], axis=1))                    # [DCT_N, 2F]
            coef_t = mmt(eye2f, coef)                                                  # [2F, DCT_N] == coef.T
            xg_rows.append(jnp.concatenate([coef_t[:F, :], coef_t[F:, :]], axis=1))    # [F, 2*DCT_N]
        xg = xg_rows[0] if rows == 1 else jnp.concatenate(xg_rows, axis=0)             # [rows*F, 2*DCT_N]

        # ---------------- GCN (node-major; BatchNorm1d / dropout identity in eval) ----------------
        # TODO(synk): BatchNorm1d assumed at default running stats (identity) for inference.
        def gc(h_in, name, act):
            sup = mm(h_in, W(name + '_w'))
            y = mm(W(name + '_att'), sup) + W(name + '_b')
            return jnp.tanh(y) if act else y

        h = gc(xg, 'gc1', True)
        for si in range(NUM_STAGE):
            h = gc(gc(h, f'blk{si}a', True), f'blk{si}b', True) + h                    # GC_Block residual
        g7 = gc(h, 'gc7', False) + xg                                                  # [rows*F, 2*DCT_N]

        # ---------------- IDCT on the first DCT_N coefficients ----------------
        idct4 = W('idct')                                                              # [S, DCT_N]
        for r in range(rows):
            ysel = g7[r * F:(r + 1) * F, :DCT_N]                                       # [F, DCT_N]
            out_ref[r] = mmt(idct4, ysel)                                              # [S, F]

    return kernel


# ------------------------------ wrapper --------------------------------
def _rows_per_grid_step(batch):
    """Multi-TensorCore chips (v4/v5p/v7x): 1 row per grid step, sharded across cores.
    Single-core chips (v5e/v6e): whole batch in one step, rows stacked along M."""
    try:
        kind = jax.devices()[0].device_kind.lower()
    except Exception:
        kind = ""
    multi_core = any(t in kind for t in ("v7", "7x", "v4", "v5p"))
    return 1 if multi_core else batch


def build_forward(index, slab_shape, rows, batch):
    grid = (batch // rows,)
    kernel = build_kernel(index, rows)
    call = pl.pallas_call(
        kernel,
        out_shape=jax.ShapeDtypeStruct((batch, SUBSEQ_LEN, IN_FEATURES), jnp.float32),
        grid=grid,
        in_specs=[
            pl.BlockSpec((rows, SEQ_LEN, IN_FEATURES), lambda i: (i, 0, 0)),
            pl.BlockSpec(slab_shape, lambda i: (0, 0)),      # one packed weight slab, fetched once
        ],
        out_specs=pl.BlockSpec((rows, SUBSEQ_LEN, IN_FEATURES), lambda i: (i, 0, 0)),
        compiler_params=pltpu.CompilerParams(
            dimension_semantics=("parallel",) if grid[0] > 1 else ("arbitrary",)),
    )

    @jax.jit
    def forward(src, slab):
        # src_reformat(substract_last_pose=False): the kernel consumes the first INPUT_N frames.
        out_gcn = call(src, slab)                            # [B, SUBSEQ_LEN, F]
        # TODO(synk): itera>1 branch depends on undefined `new_in` / `self.init_lin`; not reproduced.
        return out_gcn[:, :, None, :]                        # outputs = [out_gcn.unsqueeze(2)]; cat(dim=1)

    return forward


# ------------------------------ parameter init ---------------------------------
def init_params(key):
    keys = iter(jax.random.split(key, 512))

    def nk():
        return next(keys)

    def dense(fi, fo, scale=0.05):
        return {'w': scale * jax.random.normal(nk(), (fi, fo), jnp.float32),
                'b': jnp.zeros((fo,), jnp.float32)}

    def attn_params(d):
        p = {}
        for nm in ('q', 'k', 'v', 'o'):
            dd = dense(d, d)
            p['w' + nm] = dd['w']
            p['b' + nm] = dd['b']
        return p

    def ff_params(d, dff):
        l1, l2 = dense(d, dff), dense(dff, d)
        return {'w1': l1['w'], 'b1': l1['b'], 'w2': l2['w'], 'b2': l2['b']}

    def ln(d):
        return jnp.ones((d,), jnp.float32), jnp.zeros((d,), jnp.float32)

    enc_layers = []
    for _ in range(N_LAYERS):
        g1, b1 = ln(D_ATT)
        g2, b2 = ln(D_ATT)
        enc_layers.append({'self_attn': attn_params(D_ATT), 'ff': ff_params(D_ATT, D_FF),
                           'ln1_g': g1, 'ln1_b': b1, 'ln2_g': g2, 'ln2_b': b2})
    ng, nb = ln(D_ATT)
    encoder_p = {'layers': enc_layers, 'norm_g': ng, 'norm_b': nb}

    dec_layers = []
    for _ in range(N_LAYERS):
        g1, b1 = ln(D_ATT)
        g2, b2 = ln(D_ATT)
        g3, b3 = ln(D_ATT)
        dec_layers.append({'self_attn': attn_params(D_ATT), 'src_attn': attn_params(D_ATT),
                           'ff': ff_params(D_ATT, D_FF),
                           'ln1_g': g1, 'ln1_b': b1, 'ln2_g': g2, 'ln2_b': b2,
                           'ln3_g': g3, 'ln3_b': b3})
    ng2, nb2 = ln(D_ATT)
    decoder_p = {'layers': dec_layers, 'norm_g': ng2, 'norm_b': nb2}

    def gconv(fi, fo):
        return {'w': 0.05 * jax.random.normal(nk(), (fi, fo), jnp.float32),
                'att': 0.05 * jax.random.normal(nk(), (IN_FEATURES, IN_FEATURES), jnp.float32),
                'b': jnp.zeros((fo,), jnp.float32)}

    gcn_p = {'gc1': gconv(DCT_N * 2, D_MODEL),
             'blocks': [{'gc1': gconv(D_MODEL, D_MODEL), 'gc2': gconv(D_MODEL, D_MODEL)}
                        for _ in range(NUM_STAGE)],
             'gc7': gconv(D_MODEL, DCT_N * 2)}

    conv_p = {'w1': 0.05 * jax.random.normal(nk(), (IN_FEATURES, IN_FEATURES, CONV_RED_K), jnp.float32),
              'b1': jnp.zeros((IN_FEATURES,), jnp.float32),
              'w2': 0.05 * jax.random.normal(nk(), (IN_FEATURES, IN_FEATURES, 3), jnp.float32),
              'b2': jnp.zeros((IN_FEATURES,), jnp.float32)}

    return {'init_lin_encode': dense(IN_FEATURES, D_ATT),
            'init_lin_decode': dense(IN_FEATURES, D_ATT),   # unused by forward (as written)
            'inter_lin': dense(D_ATT, IN_FEATURES),
            'encoder': encoder_p,
            'decoder': decoder_p,
            'gcn': gcn_p,
            'res_conv': conv_p}


# ----------------------------------- main ---------------------------------------
if __name__ == "__main__":
    key = jax.random.PRNGKey(0)
    pkey, dkey = jax.random.split(key)
    params = init_params(pkey)

    rows = _rows_per_grid_step(BATCH)
    slab, index = pack_params(params, rows)      # packed ONCE, host-side (not in the call path)
    forward = build_forward(index, slab.shape, rows, BATCH)

    src = jax.random.normal(dkey, (BATCH, SEQ_LEN, IN_FEATURES), jnp.float32)
    out = jax.block_until_ready(forward(src, slab))
    assert out.shape == (BATCH, SUBSEQ_LEN, 1, IN_FEATURES), out.shape
    assert bool(jnp.all(jnp.isfinite(out)))
    print("KERNEL_OK")
</pallas_src>

<mosaic_0001>
module attributes {stable_mosaic.version = 11 : i64} {
  func.func @kernel(%arg0: i32, %arg1: memref<2x14x16xf32, #tpu.memory_space<vmem>>, %arg2: memref<1896x128xf32, #tpu.memory_space<vmem>>, %arg3: memref<2x10x16xf32, #tpu.memory_space<vmem>>) attributes {dimension_semantics = [#tpu.dimension_semantics<arbitrary>], iteration_bounds = array<i64: 1>, scalar_prefetch = 0 : i64, scratch_operands = 0 : i64, tpu.core_type = #tpu.core_type<tc>, window_params = [{transform_indices = @transform_0, window_bounds = array<i64: 2, 14, 16>}, {pipeline_mode = #tpu.pipeline_mode<synchronous>, transform_indices = @transform_1, window_bounds = array<i64: 1896, 128>}, {transform_indices = @transform_2, window_bounds = array<i64: 2, 10, 16>}]} {
    %c0 = arith.constant 0 : index
    %c0_0 = arith.constant 0 : index
    %c0_1 = arith.constant 0 : index
    %0 = vector.load %arg1[%c0, %c0_0, %c0_1] : memref<2x14x16xf32, #tpu.memory_space<vmem>>, vector<1x12x16xf32>
    %1 = vector.shape_cast %0 : vector<1x12x16xf32> to vector<12x16xf32>
    %c1 = arith.constant 1 : index
    %c0_2 = arith.constant 0 : index
    %c0_3 = arith.constant 0 : index
    %2 = vector.load %arg1[%c1, %c0_2, %c0_3] : memref<2x14x16xf32, #tpu.memory_space<vmem>>, vector<1x12x16xf32>
    %3 = vector.shape_cast %2 : vector<1x12x16xf32> to vector<12x16xf32>
    %4 = tpu.concatenate %1, %3 in 0 : vector<12x16xf32>, vector<12x16xf32> -> vector<24x16xf32>
    %c24 = arith.constant 24 : index
    %c0_4 = arith.constant 0 : index
    %5 = vector.load %arg2[%c24, %c0_4] : memref<1896x128xf32, #tpu.memory_space<vmem>>, vector<16x32xf32>
    %cst = arith.constant dense<0.000000e+00> : vector<24x32xf32>
    %6 = tpu.matmul %4, %5, %cst {dimension_numbers = #tpu.dot_dimension_numbers<[1], [0], [0], [1], [0, 0, 1, 1], [], []>} : vector<24x16xf32>, vector<16x32xf32>, vector<24x32xf32> -> vector<24x32xf32>
    %c40 = arith.constant 40 : index
    %c0_5 = arith.constant 0 : index
    %7 = vector.load %arg2[%c40, %c0_5] : memref<1896x128xf32, #tpu.memory_space<vmem>>, vector<1x32xf32>
    %8 = vector.broadcast %7 : vector<1x32xf32> to vector<24x32xf32>
    %9 = arith.addf %6, %8 : vector<24x32xf32>
    %c0_6 = arith.constant 0 : index
    %c0_7 = arith.constant 0 : index
    %10 = vector.load %arg2[%c0_6, %c0_7] : memref<1896x128xf32, #tpu.memory_space<vmem>>, vector<24x32xf32>
    %11 = arith.addf %9, %10 : vector<24x32xf32>
    %c88 = arith.constant 88 : index
    %c0_8 = arith.constant 0 : index
    %12 = vector.load %arg2[%c88, %c0_8] : memref<1896x128xf32, #tpu.memory_space<vmem>>, vector<1x32xf32>
    %c96 = arith.constant 96 : index
    %c0_9 = arith.constant 0 : index
    %13 = vector.load %arg2[%c96, %c0_9] : memref<1896x128xf32, #tpu.memory_space<vmem>>, vector<1x32xf32>
    %cst_10 = arith.constant dense<0.000000e+00> : vector<24xf32>
    %14 = vector.multi_reduction <add>, %11, %cst_10 [1] : vector<24x32xf32> to vector<24xf32>
    %15 = vector.shape_cast %14 : vector<24xf32> to vector<24x1xf32>
    %cst_11 = arith.constant 3.200000e+01 : f32
    %16 = vector.broadcast %cst_11 : f32 to vector<24x1xf32>
    %17 = arith.divf %15, %16 : vector<24x1xf32>
    %18 = vector.broadcast %17 : vector<24x1xf32> to vector<24x32xf32>
    %19 = arith.subf %11, %18 : vector<24x32xf32>
    %20 = arith.mulf %19, %19 : vector<24x32xf32>
    %cst_12 = arith.constant dense<0.000000e+00> : vector<24xf32>
    %21 = vector.multi_reduction <add>, %20, %cst_12 [1] : vector<24x32xf32> to vector<24xf32>
    %22 = vector.shape_cast %21 : vector<24xf32> to vector<24x1xf32>
    %cst_13 = arith.constant 3.100000e+01 : f32
    %23 = vector.broadcast %cst_13 : f32 to vector<24x1xf32>
    %24 = arith.divf %22, %23 : vector<24x1xf32>
    %25 = math.sqrt %24 : vector<24x1xf32>
    %cst_14 = arith.constant 9.99999997E-7 : f32
    %26 = vector.broadcast %cst_14 : f32 to vector<24x1xf32>
    %27 = arith.addf %25, %26 : vector<24x1xf32>
    %28 = tpu.reciprocal %27 {approx = true} : vector<24x1xf32> -> vector<24x1xf32>
    %29 = vector.broadcast %17 : vector<24x1xf32> to vector<24x32xf32>
    %30 = arith.subf %11, %29 : vector<24x32xf32>
    %31 = vector.broadcast %12 : vector<1x32xf32> to vector<24x32xf32>
    %32 = arith.mulf %31, %30 : vector<24x32xf32>
    %33 = vector.broadcast %28 : vector<24x1xf32> to vector<24x32xf32>
    %34 = arith.mulf %32, %33 : vector<24x32xf32>
    %35 = vector.broadcast %13 : vector<1x32xf32> to vector<24x32xf32>
    %36 = arith.addf %34, %35 : vector<24x32xf32>
    %c104 = arith.constant 104 : index
    %c0_15 = arith.constant 0 : index
    %37 = vector.load %arg2[%c104, %c0_15] : memref<1896x128xf32, #tpu.memory_space<vmem>>, vector<32x96xf32>
    %cst_16 = arith.constant dense<0.000000e+00> : vector<24x96xf32>
    %38 = tpu.matmul %36, %37, %cst_16 {dimension_numbers = #tpu.dot_dimension_numbers<[1], [0], [0], [1], [0, 0, 1, 1], [], []>} : vector<24x32xf32>, vector<32x96xf32>, vector<24x96xf32> -> vector<24x96xf32>
    %c136 = arith.constant 136 : index
    %c0_17 = arith.constant 0 : index
    %39 = vector.load %arg2[%c136, %c0_17] : memref<1896x128xf32, #tpu.memory_space<vmem>>, vector<1x96xf32>
    %40 = vector.broadcast %39 : vector<1x96xf32> to vector<24x96xf32>
    %41 = arith.addf %38, %40 : vector<24x96xf32>
    %42 = vector.extract_strided_slice %41 {offsets = [0, 0], sizes = [24, 32], strides = [1, 1]} : vector<24x96xf32> to vector<24x32xf32>
    %43 = vector.extract_strided_slice %41 {offsets = [0, 32], sizes = [24, 32], strides = [1, 1]} : vector<24x96xf32> to vector<24x32xf32>
    %44 = vector.extract_strided_slice %41 {offsets = [0, 64], sizes = [24, 32], strides = [1, 1]} : vector<24x96xf32> to vector<24x32xf32>
    %c144 = arith.constant 144 : index
    %c0_18 = arith.constant 0 : index
    %45 = vector.load %arg2[%c144, %c0_18] : memref<1896x128xf32, #tpu.memory_space<vmem>>, vector<32x32xf32>
    %c176 = arith.constant 176 : index
    %c0_19 = arith.constant 0 : index
    %46 = vector.load %arg2[%c176, %c0_19] : memref<1896x128xf32, #tpu.memory_space<vmem>>, vector<1x32xf32>
    %47 = vector.extract_strided_slice %42 {offsets = [0, 0], sizes = [12, 16], strides = [1, 1]} : vector<24x32xf32> to vector<12x16xf32>
    %48 = vector.extract_strided_slice %43 {offsets = [0, 0], sizes = [12, 16], strides = [1, 1]} : vector<24x32xf32> to vector<12x16xf32>
    %49 = vector.extract_strided_slice %44 {offsets = [0, 0], sizes = [12, 16], strides = [1, 1]} : vector<24x32xf32> to vector<12x16xf32>
    "tpu.trace_start"() <{level = 10 : i32, message = "xd,yd->xy"}> : () -> ()
    %cst_20 = arith.constant dense<0.000000e+00> : vector<12x12xf32>
    %50 = tpu.matmul %47, %48, %cst_20 {dimension_numbers = #tpu.dot_dimension_numbers<[1], [1], [0], [0], [0, 0, 1, 0], [], []>} : vector<12x16xf32>, vector<12x16xf32>, vector<12x12xf32> -> vector<12x12xf32>
    "tpu.trace_stop"() : () -> ()
    %cst_21 = arith.constant 2.500000e-01 : f32
    %51 = vector.broadcast %cst_21 : f32 to vector<12x12xf32>
    %52 = arith.mulf %50, %51 : vector<12x12xf32>
    %cst_22 = arith.constant dense<0xFF800000> : vector<12xf32>
    %53 = vector.multi_reduction <maximumf>, %52, %cst_22 [1] : vector<12x12xf32> to vector<12xf32>
    %54 = vector.shape_cast %53 : vector<12xf32> to vector<12x1xf32>
    %55 = vector.broadcast %54 : vector<12x1xf32> to vector<12x12xf32>
    %56 = arith.subf %52, %55 : vector<12x12xf32>
    %57 = math.exp %56 : vector<12x12xf32>
    %cst_23 = arith.constant dense<0.000000e+00> : vector<12xf32>
    %58 = vector.multi_reduction <add>, %57, %cst_23 [1] : vector<12x12xf32> to vector<12xf32>
    %59 = vector.shape_cast %58 : vector<12xf32> to vector<12x1xf32>
    %60 = tpu.reciprocal %59 {approx = true} : vector<12x1xf32> -> vector<12x1xf32>
    %61 = vector.broadcast %60 : vector<12x1xf32> to vector<12x12xf32>
    %62 = arith.mulf %57, %61 : vector<12x12xf32>
    %cst_24 = arith.constant dense<0.000000e+00> : vector<12x16xf32>
    %63 = tpu.matmul %62, %49, %cst_24 {dimension_numbers = #tpu.dot_dimension_numbers<[1], [0], [0], [1], [0, 0, 1, 1], [], []>} : vector<12x12xf32>, vector<12x16xf32>, vector<12x16xf32> -> vector<12x16xf32>
    %64 = vector.extract_strided_slice %42 {offsets = [12, 0], sizes = [12, 16], strides = [1, 1]} : vector<24x32xf32> to vector<12x16xf32>
    %65 = vector.extract_strided_slice %43 {offsets = [12, 0], sizes = [12, 16], strides = [1, 1]} : vector<24x32xf32> to vector<12x16xf32>
    %66 = vector.extract_strided_slice %44 {offsets = [12, 0], sizes = [12, 16], strides = [1, 1]} : vector<24x32xf32> to vector<12x16xf32>
    "tpu.trace_start"() <{level = 10 : i32, message = "xd,yd->xy"}> : () -> ()
    %cst_25 = arith.constant dense<0.000000e+00> : vector<12x12xf32>
    %67 = tpu.matmul %64, %65, %cst_25 {dimension_numbers = #tpu.dot_dimension_numbers<[1], [1], [0], [0], [0, 0, 1, 0], [], []>} : vector<12x16xf32>, vector<12x16xf32>, vector<12x12xf32> -> vector<12x12xf32>
    "tpu.trace_stop"() : () -> ()
    %cst_26 = arith.constant 2.500000e-01 : f32
    %68 = vector.broadcast %cst_26 : f32 to vector<12x12xf32>
    %69 = arith.mulf %67, %68 : vector<12x12xf32>
    %cst_27 = arith.constant dense<0xFF800000> : vector<12xf32>
    %70 = vector.multi_reduction <maximumf>, %69, %cst_27 [1] : vector<12x12xf32> to vector<12xf32>
    %71 = vector.shape_cast %70 : vector<12xf32> to vector<12x1xf32>
    %72 = vector.broadcast %71 : vector<12x1xf32> to vector<12x12xf32>
    %73 = arith.subf %69, %72 : vector<12x12xf32>
    %74 = math.exp %73 : vector<12x12xf32>
    %cst_28 = arith.constant dense<0.000000e+00> : vector<12xf32>
    %75 = vector.multi_reduction <add>, %74, %cst_28 [1] : vector<12x12xf32> to vector<12xf32>
    %76 = vector.shape_cast %75 : vector<12xf32> to vector<12x1xf32>
    %77 = tpu.reciprocal %76 {approx = true} : vector<12x1xf32> -> vector<12x1xf32>
    %78 = vector.broadcast %77 : vector<12x1xf32> to vector<12x12xf32>
    %79 = arith.mulf %74, %78 : vector<12x12xf32>
    %cst_29 = arith.constant dense<0.000000e+00> : vector<12x16xf32>
    %80 = tpu.matmul %79, %66, %cst_29 {dimension_numbers = #tpu.dot_dimension_numbers<[1], [0], [0], [1], [0, 0, 1, 1], [], []>} : vector<12x12xf32>, vector<12x16xf32>, vector<12x16xf32> -> vector<12x16xf32>
    %81 = tpu.concatenate %63, %80 in 0 : vector<12x16xf32>, vector<12x16xf32> -> vector<24x16xf32>
    %82 = vector.extract_strided_slice %45 {offsets = [0, 0], sizes = [16, 32], strides = [1, 1]} : vector<32x32xf32> to vector<16x32xf32>
    %cst_30 = arith.constant dense<0.000000e+00> : vector<24x32xf32>
    %83 = tpu.matmul %81, %82, %cst_30 {dimension_numbers = #tpu.dot_dimension_numbers<[1], [0], [0], [1], [0, 0, 1, 1], [], []>} : vector<24x16xf32>, vector<16x32xf32>, vector<24x32xf32> -> vector<24x32xf32>
    %84 = vector.extract_strided_slice %42 {offsets = [0, 16], sizes = [12, 16], strides = [1, 1]} : vector<24x32xf32> to vector<12x16xf32>
    %85 = vector.extract_strided_slice %43 {offsets = [0, 16], sizes = [12, 16], strides = [1, 1]} : vector<24x32xf32> to vector<12x16xf32>
    %86 = vector.extract_strided_slice %44 {offsets = [0, 16], sizes = [12, 16], strides = [1, 1]} : vector<24x32xf32> to vector<12x16xf32>
    "tpu.trace_start"() <{level = 10 : i32, message = "xd,yd->xy"}> : () -> ()
    %cst_31 = arith.constant dense<0.000000e+00> : vector<12x12xf32>
    %87 = tpu.matmul %84, %85, %cst_31 {dimension_numbers = #tpu.dot_dimension_numbers<[1], [1], [0], [0], [0, 0, 1, 0], [], []>} : vector<12x16xf32>, vector<12x16xf32>, vector<12x12xf32> -> vector<12x12xf32>
    "tpu.trace_stop"() : () -> ()
    %cst_32 = arith.constant 2.500000e-01 : f32
    %88 = vector.broadcast %cst_32 : f32 to vector<12x12xf32>
    %89 = arith.mulf %87, %88 : vector<12x12xf32>
    %cst_33 = arith.constant dense<0xFF800000> : vector<12xf32>
    %90 = vector.multi_reduction <maximumf>, %89, %cst_33 [1] : vector<12x12xf32> to vector<12xf32>
    %91 = vector.shape_cast %90 : vector<12xf32> to vector<12x1xf32>
    %92 = vector.broadcast %91 : vector<12x1xf32> to vector<12x12xf32>
    %93 = arith.subf %89, %92 : vector<12x12xf32>
    %94 = math.exp %93 : vector<12x12xf32>
    %cst_34 = arith.constant dense<0.000000e+00> : vector<12xf32>
    %95 = vector.multi_reduction <add>, %94, %cst_34 [1] : vector<12x12xf32> to vector<12xf32>
    %96 = vector.shape_cast %95 : vector<12xf32> to vector<12x1xf32>
    %97 = tpu.reciprocal %96 {approx = true} : vector<12x1xf32> -> vector<12x1xf32>
    %98 = vector.broadcast %97 : vector<12x1xf32> to vector<12x12xf32>
    %99 = arith.mulf %94, %98 : vector<12x12xf32>
    %cst_35 = arith.constant dense<0.000000e+00> : vector<12x16xf32>
    %100 = tpu.matmul %99, %86, %cst_35 {dimension_numbers = #tpu.dot_dimension_numbers<[1], [0], [0], [1], [0, 0, 1, 1], [], []>} : vector<12x12xf32>, vector<12x16xf32>, vector<12x16xf32> -> vector<12x16xf32>
    %101 = vector.extract_strided_slice %42 {offsets = [12, 16], sizes = [12, 16], strides = [1, 1]} : vector<24x32xf32> to vector<12x16xf32>
    %102 = vector.extract_strided_slice %43 {offsets = [12, 16], sizes = [12, 16], strides = [1, 1]} : vector<24x32xf32> to vector<12x16xf32>
    %103 = vector.extract_strided_slice %44 {offsets = [12, 16], sizes = [12, 16], strides = [1, 1]} : vector<24x32xf32> to vector<12x16xf32>
    "tpu.trace_start"() <{level = 10 : i32, message = "xd,yd->xy"}> : () -> ()
    %cst_36 = arith.constant dense<0.000000e+00> : vector<12x12xf32>
    %104 = tpu.matmul %101, %102, %cst_36 {dimension_numbers = #tpu.dot_dimension_numbers<[1], [1], [0], [0], [0, 0, 1, 0], [], []>} : vector<12x16xf32>, vector<12x16xf32>, vector<12x12xf32> -> vector<12x12xf32>
    "tpu.trace_stop"() : () -> ()
    %cst_37 = arith.constant 2.500000e-01 : f32
    %105 = vector.broadcast %cst_37 : f32 to vector<12x12xf32>
    %106 = arith.mulf %104, %105 : vector<12x12xf32>
    %cst_38 = arith.constant dense<0xFF800000> : vector<12xf32>
    %107 = vector.multi_reduction <maximumf>, %106, %cst_38 [1] : vector<12x12xf32> to vector<12xf32>
    %108 = vector.shape_cast %107 : vector<12xf32> to vector<12x1xf32>
    %109 = vector.broadcast %108 : vector<12x1xf32> to vector<12x12xf32>
    %110 = arith.subf %106, %109 : vector<12x12xf32>
    %111 = math.exp %110 : vector<12x12xf32>
    %cst_39 = arith.constant dense<0.000000e+00> : vector<12xf32>
    %112 = vector.multi_reduction <add>, %111, %cst_39 [1] : vector<12x12xf32> to vector<12xf32>
    %113 = vector.shape_cast %112 : vector<12xf32> to vector<12x1xf32>
    %114 = tpu.reciprocal %113 {approx = true} : vector<12x1xf32> -> vector<12x1xf32>
    %115 = vector.broadcast %114 : vector<12x1xf32> to vector<12x12xf32>
    %116 = arith.mulf %111, %115 : vector<12x12xf32>
    %cst_40 = arith.constant dense<0.000000e+00> : vector<12x16xf32>
    %117 = tpu.matmul %116, %103, %cst_40 {dimension_numbers = #tpu.dot_dimension_numbers<[1], [0], [0], [1], [0, 0, 1, 1], [], []>} : vector<12x12xf32>, vector<12x16xf32>, vector<12x16xf32> -> vector<12x16xf32>
    %118 = tpu.concatenate %100, %117 in 0 : vector<12x16xf32>, vector<12x16xf32> -> vector<24x16xf32>
    %119 = vector.extract_strided_slice %45 {offsets = [16, 0], sizes = [16, 32], strides = [1, 1]} : vector<32x32xf32> to vector<16x32xf32>
    %cst_41 = arith.constant dense<0.000000e+00> : vector<24x32xf32>
    %120 = tpu.matmul %118, %119, %cst_41 {dimension_numbers = #tpu.dot_dimension_numbers<[1], [0], [0], [1], [0, 0, 1, 1], [], []>} : vector<24x16xf32>, vector<16x32xf32>, vector<24x32xf32> -> vector<24x32xf32>
    %121 = arith.addf %83, %120 : vector<24x32xf32>
    %122 = vector.broadcast %46 : vector<1x32xf32> to vector<24x32xf32>
    %123 = arith.addf %121, %122 : vector<24x32xf32>
    %124 = arith.addf %11, %123 : vector<24x32xf32>
    %c184 = arith.constant 184 : index
    %c0_42 = arith.constant 0 : index
    %125 = vector.load %arg2[%c184, %c0_42] : memref<1896x128xf32, #tpu.memory_space<vmem>>, vector<1x32xf32>
    %c192 = arith.constant 192 : index
    %c0_43 = arith.constant 0 : index
    %126 = vector.load %arg2[%c192, %c0_43] : memref<1896x128xf32, #tpu.memory_space<vmem>>, vector<1x32xf32>
    %cst_44 = arith.constant dense<0.000000e+00> : vector<24xf32>
    %127 = vector.multi_reduction <add>, %124, %cst_44 [1] : vector<24x32xf32> to vector<24xf32>
    %128 = vector.shape_cast %127 : vector<24xf32> to vector<24x1xf32>
    %cst_45 = arith.constant 3.200000e+01 : f32
    %129 = vector.broadcast %cst_45 : f32 to vector<24x1xf32>
    %130 = arith.divf %128, %129 : vector<24x1xf32>
    %131 = vector.broadcast %130 : vector<24x1xf32> to vector<24x32xf32>
    %132 = arith.subf %124, %131 : vector<24x32xf32>
    %133 = arith.mulf %132, %132 : vector<24x32xf32>
    %cst_46 = arith.constant dense<0.000000e+00> : vector<24xf32>
    %134 = vector.multi_reduction <add>, %133, %cst_46 [1] : vector<24x32xf32> to vector<24xf32>
    %135 = vector.shape_cast %134 : vector<24xf32> to vector<24x1xf32>
    %cst_47 = arith.constant 3.100000e+01 : f32
    %136 = vector.broadcast %cst_47 : f32 to vector<24x1xf32>
    %137 = arith.divf %135, %136 : vector<24x1xf32>
    %138 = math.sqrt %137 : vector<24x1xf32>
    %cst_48 = arith.constant 9.99999997E-7 : f32
    %139 = vector.broadcast %cst_48 : f32 to vector<24x1xf32>
    %140 = arith.addf %138, %139 : vector<24x1xf32>
    %141 = tpu.reciprocal %140 {approx = true} : vector<24x1xf32> -> vector<24x1xf32>
    %142 = vector.broadcast %130 : vector<24x1xf32> to vector<24x32xf32>
    %143 = arith.subf %124, %142 : vector<24x32xf32>
    %144 = vector.broadcast %125 : vector<1x32xf32> to vector<24x32xf32>
    %145 = arith.mulf %144, %143 : vector<24x32xf32>
    %146 = vector.broadcast %141 : vector<24x1xf32> to vector<24x32xf32>
    %147 = arith.mulf %145, %146 : vector<24x32xf32>
    %148 = vector.broadcast %126 : vector<1x32xf32> to vector<24x32xf32>
    %149 = arith.addf %147, %148 : vector<24x32xf32>
    %c200 = arith.constant 200 : index
    %c0_49 = arith.constant 0 : index
    %150 = vector.load %arg2[%c200, %c0_49] : memref<1896x128xf32, #tpu.memory_space<vmem>>, vector<32x32xf32>
    %cst_50 = arith.constant dense<0.000000e+00> : vector<24x32xf32>
    %151 = tpu.matmul %149, %150, %cst_50 {dimension_numbers = #tpu.dot_dimension_numbers<[1], [0], [0], [1], [0, 0, 1, 1], [], []>} : vector<24x32xf32>, vector<32x32xf32>, vector<24x32xf32> -> vector<24x32xf32>
    %c232 = arith.constant 232 : index
    %c0_51 = arith.constant 0 : index
    %152 = vector.load %arg2[%c232, %c0_51] : memref<1896x128xf32, #tpu.memory_space<vmem>>, vector<1x32xf32>
    %153 = vector.broadcast %152 : vector<1x32xf32> to vector<24x32xf32>
    %154 = arith.addf %151, %153 : vector<24x32xf32>
    %cst_52 = arith.constant 0.000000e+00 : f32
    %155 = vector.broadcast %cst_52 : f32 to vector<24x32xf32>
    %156 = arith.maximumf %154, %155 : vector<24x32xf32>
    %c240 = arith.constant 240 : index
    %c0_53 = arith.constant 0 : index
    %157 = vector.load %arg2[%c240, %c0_53] : memref<1896x128xf32, #tpu.memory_space<vmem>>, vector<32x32xf32>
    %cst_54 = arith.constant dense<0.000000e+00> : vector<24x32xf32>
    %158 = tpu.matmul %156, %157, %cst_54 {dimension_numbers = #tpu.dot_dimension_numbers<[1], [0], [0], [1], [0, 0, 1, 1], [], []>} : vector<24x32xf32>, vector<32x32xf32>, vector<24x32xf32> -> vector<24x32xf32>
    %159 = arith.addf %124, %158 : vector<24x32xf32>
    %c272 = arith.constant 272 : index
    %c0_55 = arith.constant 0 : index
    %160 = vector.load %arg2[%c272, %c0_55] : memref<1896x128xf32, #tpu.memory_space<vmem>>, vector<1x32xf32>
    %161 = vector.broadcast %160 : vector<1x32xf32> to vector<24x32xf32>
    %162 = arith.addf %159, %161 : vector<24x32xf32>
    %c280 = arith.constant 280 : index
    %c0_56 = arith.constant 0 : index
    %163 = vector.load %arg2[%c280, %c0_56] : memref<1896x128xf32, #tpu.memory_space<vmem>>, vector<1x32xf32>
    %c288 = arith.constant 288 : index
    %c0_57 = arith.constant 0 : index
    %164 = vector.load %arg2[%c288, %c0_57] : memref<1896x128xf32, #tpu.memory_space<vmem>>, vector<1x32xf32>
    %cst_58 = arith.constant dense<0.000000e+00> : vector<24xf32>
    %165 = vector.multi_reduction <add>, %162, %cst_58 [1] : vector<24x32xf32> to vector<24xf32>
    %166 = vector.shape_cast %165 : vector<24xf32> to vector<24x1xf32>
    %cst_59 = arith.constant 3.200000e+01 : f32
    %167 = vector.broadcast %cst_59 : f32 to vector<24x1xf32>
    %168 = arith.divf %166, %167 : vector<24x1xf32>
    %169 = vector.broadcast %168 : vector<24x1xf32> to vector<24x32xf32>
    %170 = arith.subf %162, %169 : vector<24x32xf32>
    %171 = arith.mulf %170, %170 : vector<24x32xf32>
    %cst_60 = arith.constant dense<0.000000e+00> : vector<24xf32>
    %172 = vector.multi_reduction <add>, %171, %cst_60 [1] : vector<24x32xf32> to vector<24xf32>
    %173 = vector.shape_cast %172 : vector<24xf32> to vector<24x1xf32>
    %cst_61 = arith.constant 3.100000e+01 : f32
    %174 = vector.broadcast %cst_61 : f32 to vector<24x1xf32>
    %175 = arith.divf %173, %174 : vector<24x1xf32>
    %176 = math.sqrt %175 : vector<24x1xf32>
    %cst_62 = arith.constant 9.99999997E-7 : f32
    %177 = vector.broadcast %cst_62 : f32 to vector<24x1xf32>
    %178 = arith.addf %176, %177 : vector<24x1xf32>
    %179 = tpu.reciprocal %178 {approx = true} : vector<24x1xf32> -> vector<24x1xf32>
    %180 = vector.broadcast %168 : vector<24x1xf32> to vector<24x32xf32>
    %181 = arith.subf %162, %180 : vector<24x32xf32>
    %182 = vector.broadcast %163 : vector<1x32xf32> to vector<24x32xf32>
    %183 = arith.mulf %182, %181 : vector<24x32xf32>
    %184 = vector.broadcast %179 : vector<24x1xf32> to vector<24x32xf32>
    %185 = arith.mulf %183, %184 : vector<24x32xf32>
    %186 = vector.broadcast %164 : vector<1x32xf32> to vector<24x32xf32>
    %187 = arith.addf %185, %186 : vector<24x32xf32>
    %c296 = arith.constant 296 : index
    %c0_63 = arith.constant 0 : index
    %188 = vector.load %arg2[%c296, %c0_63] : memref<1896x128xf32, #tpu.memory_space<vmem>>, vector<32x96xf32>
    %cst_64 = arith.constant dense<0.000000e+00> : vector<24x96xf32>
    %189 = tpu.matmul %187, %188, %cst_64 {dimension_numbers = #tpu.dot_dimension_numbers<[1], [0], [0], [1], [0, 0, 1, 1], [], []>} : vector<24x32xf32>, vector<32x96xf32>, vector<24x96xf32> -> vector<24x96xf32>
    %c328 = arith.constant 328 : index
    %c0_65 = arith.constant 0 : index
    %190 = vector.load %arg2[%c328, %c0_65] : memref<1896x128xf32, #tpu.memory_space<vmem>>, vector<1x96xf32>
    %191 = vector.broadcast %190 : vector<1x96xf32> to vector<24x96xf32>
    %192 = arith.addf %189, %191 : vector<24x96xf32>
    %193 = vector.extract_strided_slice %192 {offsets = [0, 0], sizes = [24, 32], strides = [1, 1]} : vector<24x96xf32> to vector<24x32xf32>
    %194 = vector.extract_strided_slice %192 {offsets = [0, 32], sizes = [24, 32], strides = [1, 1]} : vector<24x96xf32> to vector<24x32xf32>
    %195 = vector.extract_strided_slice %192 {offsets = [0, 64], sizes = [24, 32], strides = [1, 1]} : vector<24x96xf32> to vector<24x32xf32>
    %c336 = arith.constant 336 : index
    %c0_66 = arith.constant 0 : index
    %196 = vector.load %arg2[%c336, %c0_66] : memref<1896x128xf32, #tpu.memory_space<vmem>>, vector<32x32xf32>
    %c368 = arith.constant 368 : index
    %c0_67 = arith.constant 0 : index
    %197 = vector.load %arg2[%c368, %c0_67] : memref<1896x128xf32, #tpu.memory_space<vmem>>, vector<1x32xf32>
    %198 = vector.extract_strided_slice %193 {offsets = [0, 0], sizes = [12, 16], strides = [1, 1]} : vector<24x32xf32> to vector<12x16xf32>
    %199 = vector.extract_strided_slice %194 {offsets = [0, 0], sizes = [12, 16], strides = [1, 1]} : vector<24x32xf32> to vector<12x16xf32>
    %200 = vector.extract_strided_slice %195 {offsets = [0, 0], sizes = [12, 16], strides = [1, 1]} : vector<24x32xf32> to vector<12x16xf32>
    "tpu.trace_start"() <{level = 10 : i32, message = "xd,yd->xy"}> : () -> ()
    %cst_68 = arith.constant dense<0.000000e+00> : vector<12x12xf32>
    %201 = tpu.matmul %198, %199, %cst_68 {dimension_numbers = #tpu.dot_dimension_numbers<[1], [1], [0], [0], [0, 0, 1, 0], [], []>} : vector<12x16xf32>, vector<12x16xf32>, vector<12x12xf32> -> vector<12x12xf32>
    "tpu.trace_stop"() : () -> ()
    %cst_69 = arith.constant 2.500000e-01 : f32
    %202 = vector.broadcast %cst_69 : f32 to vector<12x12xf32>
    %203 = arith.mulf %201, %202 : vector<12x12xf32>
    %cst_70 = arith.constant dense<0xFF800000> : vector<12xf32>
    %204 = vector.multi_reduction <maximumf>, %203, %cst_70 [1] : vector<12x12xf32> to vector<12xf32>
    %205 = vector.shape_cast %204 : vector<12xf32> to vector<12x1xf32>
    %206 = vector.broadcast %205 : vector<12x1xf32> to vector<12x12xf32>
    %207 = arith.subf %203, %206 : vector<12x12xf32>
    %208 = math.exp %207 : vector<12x12xf32>
    %cst_71 = arith.constant dense<0.000000e+00> : vector<12xf32>
    %209 = vector.multi_reduction <add>, %208, %cst_71 [1] : vector<12x12xf32> to vector<12xf32>
    %210 = vector.shape_cast %209 : vector<12xf32> to vector<12x1xf32>
    %211 = tpu.reciprocal %210 {approx = true} : vector<12x1xf32> -> vector<12x1xf32>
    %212 = vector.broadcast %211 : vector<12x1xf32> to vector<12x12xf32>
    %213 = arith.mulf %208, %212 : vector<12x12xf32>
    %cst_72 = arith.constant dense<0.000000e+00> : vector<12x16xf32>
    %214 = tpu.matmul %213, %200, %cst_72 {dimension_numbers = #tpu.dot_dimension_numbers<[1], [0], [0], [1], [0, 0, 1, 1], [], []>} : vector<12x12xf32>, vector<12x16xf32>, vector<12x16xf32> -> vector<12x16xf32>
    %215 = vector.extract_strided_slice %193 {offsets = [12, 0], sizes = [12, 16], strides = [1, 1]} : vector<24x32xf32> to vector<12x16xf32>
    %216 = vector.extract_strided_slice %194 {offsets = [12, 0], sizes = [12, 16], strides = [1, 1]} : vector<24x32xf32> to vector<12x16xf32>
    %217 = vector.extract_strided_slice %195 {offsets = [12, 0], sizes = [12, 16], strides = [1, 1]} : vector<24x32xf32> to vector<12x16xf32>
    "tpu.trace_start"() <{level = 10 : i32, message = "xd,yd->xy"}> : () -> ()
    %cst_73 = arith.constant dense<0.000000e+00> : vector<12x12xf32>
    %218 = tpu.matmul %215, %216, %cst_73 {dimension_numbers = #tpu.dot_dimension_numbers<[1], [1], [0], [0], [0, 0, 1, 0], [], []>} : vector<12x16xf32>, vector<12x16xf32>, vector<12x12xf32> -> vector<12x12xf32>
    "tpu.trace_stop"() : () -> ()
    %cst_74 = arith.constant 2.500000e-01 : f32
    %219 = vector.broadcast %cst_74 : f32 to vector<12x12xf32>
    %220 = arith.mulf %218, %219 : vector<12x12xf32>
    %cst_75 = arith.constant dense<0xFF800000> : vector<12xf32>
    %221 = vector.multi_reduction <maximumf>, %220, %cst_75 [1] : vector<12x12xf32> to vector<12xf32>
    %222 = vector.shape_cast %221 : vector<12xf32> to vector<12x1xf32>
    %223 = vector.broadcast %222 : vector<12x1xf32> to vector<12x12xf32>
    %224 = arith.subf %220, %223 : vector<12x12xf32>
    %225 = math.exp %224 : vector<12x12xf32>
    %cst_76 = arith.constant dense<0.000000e+00> : vector<12xf32>
    %226 = vector.multi_reduction <add>, %225, %cst_76 [1] : vector<12x12xf32> to vector<12xf32>
    %227 = vector.shape_cast %226 : vector<12xf32> to vector<12x1xf32>
    %228 = tpu.reciprocal %227 {approx = true} : vector<12x1xf32> -> vector<12x1xf32>
    %229 = vector.broadcast %228 : vector<12x1xf32> to vector<12x12xf32>
    %230 = arith.mulf %225, %229 : vector<12x12xf32>
    %cst_77 = arith.constant dense<0.000000e+00> : vector<12x16xf32>
    %231 = tpu.matmul %230, %217, %cst_77 {dimension_numbers = #tpu.dot_dimension_numbers<[1], [0], [0], [1], [0, 0, 1, 1], [], []>} : vector<12x12xf32>, vector<12x16xf32>, vector<12x16xf32> -> vector<12x16xf32>
    %232 = tpu.concatenate %214, %231 in 0 : vector<12x16xf32>, vector<12x16xf32> -> vector<24x16xf32>
    %233 = vector.extract_strided_slice %196 {offsets = [0, 0], sizes = [16, 32], strides = [1, 1]} : vector<32x32xf32> to vector<16x32xf32>
    %cst_78 = arith.constant dense<0.000000e+00> : vector<24x32xf32>
    %234 = tpu.matmul %232, %233, %cst_78 {dimension_numbers = #tpu.dot_dimension_numbers<[1], [0], [0], [1], [0, 0, 1, 1], [], []>} : vector<24x16xf32>, vector<16x32xf32>, vector<24x32xf32> -> vector<24x32xf32>
    %235 = vector.extract_strided_slice %193 {offsets = [0, 16], sizes = [12, 16], strides = [1, 1]} : vector<24x32xf32> to vector<12x16xf32>
    %236 = vector.extract_strided_slice %194 {offsets = [0, 16], sizes = [12, 16], strides = [1, 1]} : vector<24x32xf32> to vector<12x16xf32>
    %237 = vector.extract_strided_slice %195 {offsets = [0, 16], sizes = [12, 16], strides = [1, 1]} : vector<24x32xf32> to vector<12x16xf32>
    "tpu.trace_start"() <{level = 10 : i32, message = "xd,yd->xy"}> : () -> ()
    %cst_79 = arith.constant dense<0.000000e+00> : vector<12x12xf32>
    %238 = tpu.matmul %235, %236, %cst_79 {dimension_numbers = #tpu.dot_dimension_numbers<[1], [1], [0], [0], [0, 0, 1, 0], [], []>} : vector<12x16xf32>, vector<12x16xf32>, vector<12x12xf32> -> vector<12x12xf32>
    "tpu.trace_stop"() : () -> ()
    %cst_80 = arith.constant 2.500000e-01 : f32
    %239 = vector.broadcast %cst_80 : f32 to vector<12x12xf32>
    %240 = arith.mulf %238, %239 : vector<12x12xf32>
    %cst_81 = arith.constant dense<0xFF800000> : vector<12xf32>
    %241 = vector.multi_reduction <maximumf>, %240, %cst_81 [1] : vector<12x12xf32> to vector<12xf32>
    %242 = vector.shape_cast %241 : vector<12xf32> to vector<12x1xf32>
    %243 = vector.broadcast %242 : vector<12x1xf32> to vector<12x12xf32>
    %244 = arith.subf %240, %243 : vector<12x12xf32>
    %245 = math.exp %244 : vector<12x12xf32>
    %cst_82 = arith.constant dense<0.000000e+00> : vector<12xf32>
    %246 = vector.multi_reduction <add>, %245, %cst_82 [1] : vector<12x12xf32> to vector<12xf32>
    %247 = vector.shape_cast %246 : vector<12xf32> to vector<12x1xf32>
    %248 = tpu.reciprocal %247 {approx = true} : vector<12x1xf32> -> vector<12x1xf32>
    %249 = vector.broadcast %248 : vector<12x1xf32> to vector<12x12xf32>
    %250 = arith.mulf %245, %249 : vector<12x12xf32>
    %cst_83 = arith.constant dense<0.000000e+00> : vector<12x16xf32>
    %251 = tpu.matmul %250, %237, %cst_83 {dimension_numbers = #tpu.dot_dimension_numbers<[1], [0], [0], [1], [0, 0, 1, 1], [], []>} : vector<12x12xf32>, vector<12x16xf32>, vector<12x16xf32> -> vector<12x16xf32>
    %252 = vector.extract_strided_slice %193 {offsets = [12, 16], sizes = [12, 16], strides = [1, 1]} : vector<24x32xf32> to vector<12x16xf32>
    %253 = vector.extract_strided_slice %194 {offsets = [12, 16], sizes = [12, 16], strides = [1, 1]} : vector<24x32xf32> to vector<12x16xf32>
    %254 = vector.extract_strided_slice %195 {offsets = [12, 16], sizes = [12, 16], strides = [1, 1]} : vector<24x32xf32> to vector<12x16xf32>
    "tpu.trace_start"() <{level = 10 : i32, message = "xd,yd->xy"}> : () -> ()
    %cst_84 = arith.constant dense<0.000000e+00> : vector<12x12xf32>
    %255 = tpu.matmul %252, %253, %cst_84 {dimension_numbers = #tpu.dot_dimension_numbers<[1], [1], [0], [0], [0, 0, 1, 0], [], []>} : vector<12x16xf32>, vector<12x16xf32>, vector<12x12xf32> -> vector<12x12xf32>
    "tpu.trace_stop"() : () -> ()
    %cst_85 = arith.constant 2.500000e-01 : f32
    %256 = vector.broadcast %cst_85 : f32 to vector<12x12xf32>
    %257 = arith.mulf %255, %256 : vector<12x12xf32>
    %cst_86 = arith.constant dense<0xFF800000> : vector<12xf32>
    %258 = vector.multi_reduction <maximumf>, %257, %cst_86 [1] : vector<12x12xf32> to vector<12xf32>
    %259 = vector.shape_cast %258 : vector<12xf32> to vector<12x1xf32>
    %260 = vector.broadcast %259 : vector<12x1xf32> to vector<12x12xf32>
    %261 = arith.subf %257, %260 : vector<12x12xf32>
    %262 = math.exp %261 : vector<12x12xf32>
    %cst_87 = arith.constant dense<0.000000e+00> : vector<12xf32>
    %263 = vector.multi_reduction <add>, %262, %cst_87 [1] : vector<12x12xf32> to vector<12xf32>
    %264 = vector.shape_cast %263 : vector<12xf32> to vector<12x1xf32>
    %265 = tpu.reciprocal %264 {approx = true} : vector<12x1xf32> -> vector<12x1xf32>
    %266 = vector.broadcast %265 : vector<12x1xf32> to vector<12x12xf32>
    %267 = arith.mulf %262, %266 : vector<12x12xf32>
    %cst_88 = arith.constant dense<0.000000e+00> : vector<12x16xf32>
    %268 = tpu.matmul %267, %254, %cst_88 {dimension_numbers = #tpu.dot_dimension_numbers<[1], [0], [0], [1], [0, 0, 1, 1], [], []>} : vector<12x12xf32>, vector<12x16xf32>, vector<12x16xf32> -> vector<12x16xf32>
    %269 = tpu.concatenate %251, %268 in 0 : vector<12x16xf32>, vector<12x16xf32> -> vector<24x16xf32>
    %270 = vector.extract_strided_slice %196 {offsets = [16, 0], sizes = [16, 32], strides = [1, 1]} : vector<32x32xf32> to vector<16x32xf32>
    %cst_89 = arith.constant dense<0.000000e+00> : vector<24x32xf32>
    %271 = tpu.matmul %269, %270, %cst_89 {dimension_numbers = #tpu.dot_dimension_numbers<[1], [0], [0], [1], [0, 0, 1, 1], [], []>} : vector<24x16xf32>, vector<16x32xf32>, vector<24x32xf32> -> vector<24x32xf32>
    %272 = arith.addf %234, %271 : vector<24x32xf32>
    %273 = vector.broadcast %197 : vector<1x32xf32> to vector<24x32xf32>
    %274 = arith.addf %272, %273 : vector<24x32xf32>
    %275 = arith.addf %162, %274 : vector<24x32xf32>
    %c376 = arith.constant 376 : index
    %c0_90 = arith.constant 0 : index
    %276 = vector.load %arg2[%c376, %c0_90] : memref<1896x128xf32, #tpu.memory_space<vmem>>, vector<1x32xf32>
    %c384 = arith.constant 384 : index
    %c0_91 = arith.constant 0 : index
    %277 = vector.load %arg2[%c384, %c0_91] : memref<1896x128xf32, #tpu.memory_space<vmem>>, vector<1x32xf32>
    %cst_92 = arith.constant dense<0.000000e+00> : vector<24xf32>
    %278 = vector.multi_reduction <add>, %275, %cst_92 [1] : vector<24x32xf32> to vector<24xf32>
    %279 = vector.shape_cast %278 : vector<24xf32> to vector<24x1xf32>
    %cst_93 = arith.constant 3.200000e+01 : f32
    %280 = vector.broadcast %cst_93 : f32 to vector<24x1xf32>
    %281 = arith.divf %279, %280 : vector<24x1xf32>
    %282 = vector.broadcast %281 : vector<24x1xf32> to vector<24x32xf32>
    %283 = arith.subf %275, %282 : vector<24x32xf32>
    %284 = arith.mulf %283, %283 : vector<24x32xf32>
    %cst_94 = arith.constant dense<0.000000e+00> : vector<24xf32>
    %285 = vector.multi_reduction <add>, %284, %cst_94 [1] : vector<24x32xf32> to vector<24xf32>
    %286 = vector.shape_cast %285 : vector<24xf32> to vector<24x1xf32>
    %cst_95 = arith.constant 3.100000e+01 : f32
    %287 = vector.broadcast %cst_95 : f32 to vector<24x1xf32>
    %288 = arith.divf %286, %287 : vector<24x1xf32>
    %289 = math.sqrt %288 : vector<24x1xf32>
    %cst_96 = arith.constant 9.99999997E-7 : f32
    %290 = vector.broadcast %cst_96 : f32 to vector<24x1xf32>
    %291 = arith.addf %289, %290 : vector<24x1xf32>
    %292 = tpu.reciprocal %291 {approx = true} : vector<24x1xf32> -> vector<24x1xf32>
    %293 = vector.broadcast %281 : vector<24x1xf32> to vector<24x32xf32>
    %294 = arith.subf %275, %293 : vector<24x32xf32>
    %295 = vector.broadcast %276 : vector<1x32xf32> to vector<24x32xf32>
    %296 = arith.mulf %295, %294 : vector<24x32xf32>
    %297 = vector.broadcast %292 : vector<24x1xf32> to vector<24x32xf32>
    %298 = arith.mulf %296, %297 : vector<24x32xf32>
    %299 = vector.broadcast %277 : vector<1x32xf32> to vector<24x32xf32>
    %300 = arith.addf %298, %299 : vector<24x32xf32>
    %c392 = arith.constant 392 : index
    %c0_97 = arith.constant 0 : index
    %301 = vector.load %arg2[%c392, %c0_97] : memref<1896x128xf32, #tpu.memory_space<vmem>>, vector<32x32xf32>
    %cst_98 = arith.constant dense<0.000000e+00> : vector<24x32xf32>
    %302 = tpu.matmul %300, %301, %cst_98 {dimension_numbers = #tpu.dot_dimension_numbers<[1], [0], [0], [1], [0, 0, 1, 1], [], []>} : vector<24x32xf32>, vector<32x32xf32>, vector<24x32xf32> -> vector<24x32xf32>
    %c424 = arith.constant 424 : index
    %c0_99 = arith.constant 0 : index
    %303 = vector.load %arg2[%c424, %c0_99] : memref<1896x128xf32, #tpu.memory_space<vmem>>, vector<1x32xf32>
    %304 = vector.broadcast %303 : vector<1x32xf32> to vector<24x32xf32>
    %305 = arith.addf %302, %304 : vector<24x32xf32>
    %cst_100 = arith.constant 0.000000e+00 : f32
    %306 = vector.broadcast %cst_100 : f32 to vector<24x32xf32>
    %307 = arith.maximumf %305, %306 : vector<24x32xf32>
    %c432 = arith.constant 432 : index
    %c0_101 = arith.constant 0 : index
    %308 = vector.load %arg2[%c432, %c0_101] : memref<1896x128xf32, #tpu.memory_space<vmem>>, vector<32x32xf32>
    %cst_102 = arith.constant dense<0.000000e+00> : vector<24x32xf32>
    %309 = tpu.matmul %307, %308, %cst_102 {dimension_numbers = #tpu.dot_dimension_numbers<[1], [0], [0], [1], [0, 0, 1, 1], [], []>} : vector<24x32xf32>, vector<32x32xf32>, vector<24x32xf32> -> vector<24x32xf32>
    %310 = arith.addf %275, %309 : vector<24x32xf32>
    %c464 = arith.constant 464 : index
    %c0_103 = arith.constant 0 : index
    %311 = vector.load %arg2[%c464, %c0_103] : memref<1896x128xf32, #tpu.memory_space<vmem>>, vector<1x32xf32>
    %312 = vector.broadcast %311 : vector<1x32xf32> to vector<24x32xf32>
    %313 = arith.addf %310, %312 : vector<24x32xf32>
    %c472 = arith.constant 472 : index
    %c0_104 = arith.constant 0 : index
    %314 = vector.load %arg2[%c472, %c0_104] : memref<1896x128xf32, #tpu.memory_space<vmem>>, vector<1x32xf32>
    %c480 = arith.constant 480 : index
    %c0_105 = arith.constant 0 : index
    %315 = vector.load %arg2[%c480, %c0_105] : memref<1896x128xf32, #tpu.memory_space<vmem>>, vector<1x32xf32>
    %cst_106 = arith.constant dense<0.000000e+00> : vector<24xf32>
    %316 = vector.multi_reduction <add>, %313, %cst_106 [1] : vector<24x32xf32> to vector<24xf32>
    %317 = vector.shape_cast %316 : vector<24xf32> to vector<24x1xf32>
    %cst_107 = arith.constant 3.200000e+01 : f32
    %318 = vector.broadcast %cst_107 : f32 to vector<24x1xf32>
    %319 = arith.divf %317, %318 : vector<24x1xf32>
    %320 = vector.broadcast %319 : vector<24x1xf32> to vector<24x32xf32>
    %321 = arith.subf %313, %320 : vector<24x32xf32>
    %322 = arith.mulf %321, %321 : vector<24x32xf32>
    %cst_108 = arith.constant dense<0.000000e+00> : vector<24xf32>
    %323 = vector.multi_reduction <add>, %322, %cst_108 [1] : vector<24x32xf32> to vector<24xf32>
    %324 = vector.shape_cast %323 : vector<24xf32> to vector<24x1xf32>
    %cst_109 = arith.constant 3.100000e+01 : f32
    %325 = vector.broadcast %cst_109 : f32 to vector<24x1xf32>
    %326 = arith.divf %324, %325 : vector<24x1xf32>
    %327 = math.sqrt %326 : vector<24x1xf32>
    %cst_110 = arith.constant 9.99999997E-7 : f32
    %328 = vector.broadcast %cst_110 : f32 to vector<24x1xf32>
    %329 = arith.addf %327, %328 : vector<24x1xf32>
    %330 = tpu.reciprocal %329 {approx = true} : vector<24x1xf32> -> vector<24x1xf32>
    %331 = vector.broadcast %319 : vector<24x1xf32> to vector<24x32xf32>
    %332 = arith.subf %313, %331 : vector<24x32xf32>
    %333 = vector.broadcast %314 : vector<1x32xf32> to vector<24x32xf32>
    %334 = arith.mulf %333, %332 : vector<24x32xf32>
    %335 = vector.broadcast %330 : vector<24x1xf32> to vector<24x32xf32>
    %336 = arith.mulf %334, %335 : vector<24x32xf32>
    %337 = vector.broadcast %315 : vector<1x32xf32> to vector<24x32xf32>
    %338 = arith.addf %336, %337 : vector<24x32xf32>
    %c488 = arith.constant 488 : index
    %c0_111 = arith.constant 0 : index
    %339 = vector.load %arg2[%c488, %c0_111] : memref<1896x128xf32, #tpu.memory_space<vmem>>, vector<1x32xf32>
    %c496 = arith.constant 496 : index
    %c0_112 = arith.constant 0 : index
    %340 = vector.load %arg2[%c496, %c0_112] : memref<1896x128xf32, #tpu.memory_space<vmem>>, vector<1x32xf32>
    %cst_113 = arith.constant dense<0.000000e+00> : vector<24xf32>
    %341 = vector.multi_reduction <add>, %11, %cst_113 [1] : vector<24x32xf32> to vector<24xf32>
    %342 = vector.shape_cast %341 : vector<24xf32> to vector<24x1xf32>
    %cst_114 = arith.constant 3.200000e+01 : f32
    %343 = vector.broadcast %cst_114 : f32 to vector<24x1xf32>
    %344 = arith.divf %342, %343 : vector<24x1xf32>
    %345 = vector.broadcast %344 : vector<24x1xf32> to vector<24x32xf32>
    %346 = arith.subf %11, %345 : vector<24x32xf32>
    %347 = arith.mulf %346, %346 : vector<24x32xf32>
    %cst_115 = arith.constant dense<0.000000e+00> : vector<24xf32>
    %348 = vector.multi_reduction <add>, %347, %cst_115 [1] : vector<24x32xf32> to vector<24xf32>
    %349 = vector.shape_cast %348 : vector<24xf32> to vector<24x1xf32>
    %cst_116 = arith.constant 3.100000e+01 : f32
    %350 = vector.broadcast %cst_116 : f32 to vector<24x1xf32>
    %351 = arith.divf %349, %350 : vector<24x1xf32>
    %352 = math.sqrt %351 : vector<24x1xf32>
    %cst_117 = arith.constant 9.99999997E-7 : f32
    %353 = vector.broadcast %cst_117 : f32 to vector<24x1xf32>
    %354 = arith.addf %352, %353 : vector<24x1xf32>
    %355 = tpu.reciprocal %354 {approx = true} : vector<24x1xf32> -> vector<24x1xf32>
    %356 = vector.broadcast %344 : vector<24x1xf32> to vector<24x32xf32>
    %357 = arith.subf %11, %356 : vector<24x32xf32>
    %358 = vector.broadcast %339 : vector<1x32xf32> to vector<24x32xf32>
    %359 = arith.mulf %358, %357 : vector<24x32xf32>
    %360 = vector.broadcast %355 : vector<24x1xf32> to vector<24x32xf32>
    %361 = arith.mulf %359, %360 : vector<24x32xf32>
    %362 = vector.broadcast %340 : vector<1x32xf32> to vector<24x32xf32>
    %363 = arith.addf %361, %362 : vector<24x32xf32>
    %c504 = arith.constant 504 : index
    %c0_118 = arith.constant 0 : index
    %364 = vector.load %arg2[%c504, %c0_118] : memref<1896x128xf32, #tpu.memory_space<vmem>>, vector<32x96xf32>
    %cst_119 = arith.constant dense<0.000000e+00> : vector<24x96xf32>
    %365 = tpu.matmul %363, %364, %cst_119 {dimension_numbers = #tpu.dot_dimension_numbers<[1], [0], [0], [1], [0, 0, 1, 1], [], []>} : vector<24x32xf32>, vector<32x96xf32>, vector<24x96xf32> -> vector<24x96xf32>
    %c536 = arith.constant 536 : index
    %c0_120 = arith.constant 0 : index
    %366 = vector.load %arg2[%c536, %c0_120] : memref<1896x128xf32, #tpu.memory_space<vmem>>, vector<1x96xf32>
    %367 = vector.broadcast %366 : vector<1x96xf32> to vector<24x96xf32>
    %368 = arith.addf %365, %367 : vector<24x96xf32>
    %369 = vector.extract_strided_slice %368 {offsets = [0, 0], sizes = [24, 32], strides = [1, 1]} : vector<24x96xf32> to vector<24x32xf32>
    %370 = vector.extract_strided_slice %368 {offsets = [0, 32], sizes = [24, 32], strides = [1, 1]} : vector<24x96xf32> to vector<24x32xf32>
    %371 = vector.extract_strided_slice %368 {offsets = [0, 64], sizes = [24, 32], strides = [1, 1]} : vector<24x96xf32> to vector<24x32xf32>
    %c544 = arith.constant 544 : index
    %c0_121 = arith.constant 0 : index
    %372 = vector.load %arg2[%c544, %c0_121] : memref<1896x128xf32, #tpu.memory_space<vmem>>, vector<32x32xf32>
    %c576 = arith.constant 576 : index
    %c0_122 = arith.constant 0 : index
    %373 = vector.load %arg2[%c576, %c0_122] : memref<1896x128xf32, #tpu.memory_space<vmem>>, vector<1x32xf32>
    %374 = vector.extract_strided_slice %369 {offsets = [0, 0], sizes = [12, 16], strides = [1, 1]} : vector<24x32xf32> to vector<12x16xf32>
    %375 = vector.extract_strided_slice %370 {offsets = [0, 0], sizes = [12, 16], strides = [1, 1]} : vector<24x32xf32> to vector<12x16xf32>
    %376 = vector.extract_strided_slice %371 {offsets = [0, 0], sizes = [12, 16], strides = [1, 1]} : vector<24x32xf32> to vector<12x16xf32>
    "tpu.trace_start"() <{level = 10 : i32, message = "xd,yd->xy"}> : () -> ()
    %cst_123 = arith.constant dense<0.000000e+00> : vector<12x12xf32>
    %377 = tpu.matmul %374, %375, %cst_123 {dimension_numbers = #tpu.dot_dimension_numbers<[1], [1], [0], [0], [0, 0, 1, 0], [], []>} : vector<12x16xf32>, vector<12x16xf32>, vector<12x12xf32> -> vector<12x12xf32>
    "tpu.trace_stop"() : () -> ()
    %cst_124 = arith.constant 2.500000e-01 : f32
    %378 = vector.broadcast %cst_124 : f32 to vector<12x12xf32>
    %379 = arith.mulf %377, %378 : vector<12x12xf32>
    %cst_125 = arith.constant dense<0xFF800000> : vector<12xf32>
    %380 = vector.multi_reduction <maximumf>, %379, %cst_125 [1] : vector<12x12xf32> to vector<12xf32>
    %381 = vector.shape_cast %380 : vector<12xf32> to vector<12x1xf32>
    %382 = vector.broadcast %381 : vector<12x1xf32> to vector<12x12xf32>
    %383 = arith.subf %379, %382 : vector<12x12xf32>
    %384 = math.exp %383 : vector<12x12xf32>
    %cst_126 = arith.constant dense<0.000000e+00> : vector<12xf32>
    %385 = vector.multi_reduction <add>, %384, %cst_126 [1] : vector<12x12xf32> to vector<12xf32>
    %386 = vector.shape_cast %385 : vector<12xf32> to vector<12x1xf32>
    %387 = tpu.reciprocal %386 {approx = true} : vector<12x1xf32> -> vector<12x1xf32>
    %388 = vector.broadcast %387 : vector<12x1xf32> to vector<12x12xf32>
    %389 = arith.mulf %384, %388 : vector<12x12xf32>
    %cst_127 = arith.constant dense<0.000000e+00> : vector<12x16xf32>
    %390 = tpu.matmul %389, %376, %cst_127 {dimension_numbers = #tpu.dot_dimension_numbers<[1], [0], [0], [1], [0, 0, 1, 1], [], []>} : vector<12x12xf32>, vector<12x16xf32>, vector<12x16xf32> -> vector<12x16xf32>
    %391 = vector.extract_strided_slice %369 {offsets = [12, 0], sizes = [12, 16], strides = [1, 1]} : vector<24x32xf32> to vector<12x16xf32>
    %392 = vector.extract_strided_slice %370 {offsets = [12, 0], sizes = [12, 16], strides = [1, 1]} : vector<24x32xf32> to vector<12x16xf32>
    %393 = vector.extract_strided_slice %371 {offsets = [12, 0], sizes = [12, 16], strides = [1, 1]} : vector<24x32xf32> to vector<12x16xf32>
    "tpu.trace_start"() <{level = 10 : i32, message = "xd,yd->xy"}> : () -> ()
    %cst_128 = arith.constant dense<0.000000e+00> : vector<12x12xf32>
    %394 = tpu.matmul %391, %392, %cst_128 {dimension_numbers = #tpu.dot_dimension_numbers<[1], [1], [0], [0], [0, 0, 1, 0], [], []>} : vector<12x16xf32>, vector<12x16xf32>, vector<12x12xf32> -> vector<12x12xf32>
    "tpu.trace_stop"() : () -> ()
    %cst_129 = arith.constant 2.500000e-01 : f32
    %395 = vector.broadcast %cst_129 : f32 to vector<12x12xf32>
    %396 = arith.mulf %394, %395 : vector<12x12xf32>
    %cst_130 = arith.constant dense<0xFF800000> : vector<12xf32>
    %397 = vector.multi_reduction <maximumf>, %396, %cst_130 [1] : vector<12x12xf32> to vector<12xf32>
    %398 = vector.shape_cast %397 : vector<12xf32> to vector<12x1xf32>
    %399 = vector.broadcast %398 : vector<12x1xf32> to vector<12x12xf32>
    %400 = arith.subf %396, %399 : vector<12x12xf32>
    %401 = math.exp %400 : vector<12x12xf32>
    %cst_131 = arith.constant dense<0.000000e+00> : vector<12xf32>
    %402 = vector.multi_reduction <add>, %401, %cst_131 [1] : vector<12x12xf32> to vector<12xf32>
    %403 = vector.shape_cast %402 : vector<12xf32> to vector<12x1xf32>
    %404 = tpu.reciprocal %403 {approx = true} : vector<12x1xf32> -> vector<12x1xf32>
    %405 = vector.broadcast %404 : vector<12x1xf32> to vector<12x12xf32>
    %406 = arith.mulf %401, %405 : vector<12x12xf32>
    %cst_132 = arith.constant dense<0.000000e+00> : vector<12x16xf32>
    %407 = tpu.matmul %406, %393, %cst_132 {dimension_numbers = #tpu.dot_dimension_numbers<[1], [0], [0], [1], [0, 0, 1, 1], [], []>} : vector<12x12xf32>, vector<12x16xf32>, vector<12x16xf32> -> vector<12x16xf32>
    %408 = tpu.concatenate %390, %407 in 0 : vector<12x16xf32>, vector<12x16xf32> -> vector<24x16xf32>
    %409 = vector.extract_strided_slice %372 {offsets = [0, 0], sizes = [16, 32], strides = [1, 1]} : vector<32x32xf32> to vector<16x32xf32>
    %cst_133 = arith.constant dense<0.000000e+00> : vector<24x32xf32>
    %410 = tpu.matmul %408, %409, %cst_133 {dimension_numbers = #tpu.dot_dimension_numbers<[1], [0], [0], [1], [0, 0, 1, 1], [], []>} : vector<24x16xf32>, vector<16x32xf32>, vector<24x32xf32> -> vector<24x32xf32>
    %411 = vector.extract_strided_slice %369 {offsets = [0, 16], sizes = [12, 16], strides = [1, 1]} : vector<24x32xf32> to vector<12x16xf32>
    %412 = vector.extract_strided_slice %370 {offsets = [0, 16], sizes = [12, 16], strides = [1, 1]} : vector<24x32xf32> to vector<12x16xf32>
    %413 = vector.extract_strided_slice %371 {offsets = [0, 16], sizes = [12, 16], strides = [1, 1]} : vector<24x32xf32> to vector<12x16xf32>
    "tpu.trace_start"() <{level = 10 : i32, message = "xd,yd->xy"}> : () -> ()
    %cst_134 = arith.constant dense<0.000000e+00> : vector<12x12xf32>
    %414 = tpu.matmul %411, %412, %cst_134 {dimension_numbers = #tpu.dot_dimension_numbers<[1], [1], [0], [0], [0, 0, 1, 0], [], []>} : vector<12x16xf32>, vector<12x16xf32>, vector<12x12xf32> -> vector<12x12xf32>
    "tpu.trace_stop"() : () -> ()
    %cst_135 = arith.constant 2.500000e-01 : f32
    %415 = vector.broadcast %cst_135 : f32 to vector<12x12xf32>
    %416 = arith.mulf %414, %415 : vector<12x12xf32>
    %cst_136 = arith.constant dense<0xFF800000> : vector<12xf32>
    %417 = vector.multi_reduction <maximumf>, %416, %cst_136 [1] : vector<12x12xf32> to vector<12xf32>
    %418 = vector.shape_cast %417 : vector<12xf32> to vector<12x1xf32>
    %419 = vector.broadcast %418 : vector<12x1xf32> to vector<12x12xf32>
    %420 = arith.subf %416, %419 : vector<12x12xf32>
    %421 = math.exp %420 : vector<12x12xf32>
    %cst_137 = arith.constant dense<0.000000e+00> : vector<12xf32>
    %422 = vector.multi_reduction <add>, %421, %cst_137 [1] : vector<12x12xf32> to vector<12xf32>
    %423 = vector.shape_cast %422 : vector<12xf32> to vector<12x1xf32>
    %424 = tpu.reciprocal %423 {approx = true} : vector<12x1xf32> -> vector<12x1xf32>
    %425 = vector.broadcast %424 : vector<12x1xf32> to vector<12x12xf32>
    %426 = arith.mulf %421, %425 : vector<12x12xf32>
    %cst_138 = arith.constant dense<0.000000e+00> : vector<12x16xf32>
    %427 = tpu.matmul %426, %413, %cst_138 {dimension_numbers = #tpu.dot_dimension_numbers<[1], [0], [0], [1], [0, 0, 1, 1], [], []>} : vector<12x12xf32>, vector<12x16xf32>, vector<12x16xf32> -> vector<12x16xf32>
    %428 = vector.extract_strided_slice %369 {offsets = [12, 16], sizes = [12, 16], strides = [1, 1]} : vector<24x32xf32> to vector<12x16xf32>
    %429 = vector.extract_strided_slice %370 {offsets = [12, 16], sizes = [12, 16], strides = [1, 1]} : vector<24x32xf32> to vector<12x16xf32>
    %430 = vector.extract_strided_slice %371 {offsets = [12, 16], sizes = [12, 16], strides = [1, 1]} : vector<24x32xf32> to vector<12x16xf32>
    "tpu.trace_start"() <{level = 10 : i32, message = "xd,yd->xy"}> : () -> ()
    %cst_139 = arith.constant dense<0.000000e+00> : vector<12x12xf32>
    %431 = tpu.matmul %428, %429, %cst_139 {dimension_numbers = #tpu.dot_dimension_numbers<[1], [1], [0], [0], [0, 0, 1, 0], [], []>} : vector<12x16xf32>, vector<12x16xf32>, vector<12x12xf32> -> vector<12x12xf32>
    "tpu.trace_stop"() : () -> ()
    %cst_140 = arith.constant 2.500000e-01 : f32
    %432 = vector.broadcast %cst_140 : f32 to vector<12x12xf32>
    %433 = arith.mulf %431, %432 : vector<12x12xf32>
    %cst_141 = arith.constant dense<0xFF800000> : vector<12xf32>
    %434 = vector.multi_reduction <maximumf>, %433, %cst_141 [1] : vector<12x12xf32> to vector<12xf32>
    %435 = vector.shape_cast %434 : vector<12xf32> to vector<12x1xf32>
    %436 = vector.broadcast %435 : vector<12x1xf32> to vector<12x12xf32>
    %437 = arith.subf %433, %436 : vector<12x12xf32>
    %438 = math.exp %437 : vector<12x12xf32>
    %cst_142 = arith.constant dense<0.000000e+00> : vector<12xf32>
    %439 = vector.multi_reduction <add>, %438, %cst_142 [1] : vector<12x12xf32> to vector<12xf32>
    %440 = vector.shape_cast %439 : vector<12xf32> to vector<12x1xf32>
    %441 = tpu.reciprocal %440 {approx = true} : vector<12x1xf32> -> vector<12x1xf32>
    %442 = vector.broadcast %441 : vector<12x1xf32> to vector<12x12xf32>
    %443 = arith.mulf %438, %442 : vector<12x12xf32>
    %cst_143 = arith.constant dense<0.000000e+00> : vector<12x16xf32>
    %444 = tpu.matmul %443, %430, %cst_143 {dimension_numbers = #tpu.dot_dimension_numbers<[1], [0], [0], [1], [0, 0, 1, 1], [], []>} : vector<12x12xf32>, vector<12x16xf32>, vector<12x16xf32> -> vector<12x16xf32>
    %445 = tpu.concatenate %427, %444 in 0 : vector<12x16xf32>, vector<12x16xf32> -> vector<24x16xf32>
    %446 = vector.extract_strided_slice %372 {offsets = [16, 0], sizes = [16, 32], strides = [1, 1]} : vector<32x32xf32> to vector<16x32xf32>
    %cst_144 = arith.constant dense<0.000000e+00> : vector<24x32xf32>
    %447 = tpu.matmul %445, %446, %cst_144 {dimension_numbers = #tpu.dot_dimension_numbers<[1], [0], [0], [1], [0, 0, 1, 1], [], []>} : vector<24x16xf32>, vector<16x32xf32>, vector<24x32xf32> -> vector<24x32xf32>
    %448 = arith.addf %410, %447 : vector<24x32xf32>
    %449 = vector.broadcast %373 : vector<1x32xf32> to vector<24x32xf32>
    %450 = arith.addf %448, %449 : vector<24x32xf32>
    %451 = arith.addf %11, %450 : vector<24x32xf32>
    %c584 = arith.constant 584 : index
    %c0_145 = arith.constant 0 : index
    %452 = vector.load %arg2[%c584, %c0_145] : memref<1896x128xf32, #tpu.memory_space<vmem>>, vector<1x32xf32>
    %c592 = arith.constant 592 : index
    %c0_146 = arith.constant 0 : index
    %453 = vector.load %arg2[%c592, %c0_146] : memref<1896x128xf32, #tpu.memory_space<vmem>>, vector<1x32xf32>
    %cst_147 = arith.constant dense<0.000000e+00> : vector<24xf32>
    %454 = vector.multi_reduction <add>, %451, %cst_147 [1] : vector<24x32xf32> to vector<24xf32>
    %455 = vector.shape_cast %454 : vector<24xf32> to vector<24x1xf32>
    %cst_148 = arith.constant 3.200000e+01 : f32
    %456 = vector.broadcast %cst_148 : f32 to vector<24x1xf32>
    %457 = arith.divf %455, %456 : vector<24x1xf32>
    %458 = vector.broadcast %457 : vector<24x1xf32> to vector<24x32xf32>
    %459 = arith.subf %451, %458 : vector<24x32xf32>
    %460 = arith.mulf %459, %459 : vector<24x32xf32>
    %cst_149 = arith.constant dense<0.000000e+00> : vector<24xf32>
    %461 = vector.multi_reduction <add>, %460, %cst_149 [1] : vector<24x32xf32> to vector<24xf32>
    %462 = vector.shape_cast %461 : vector<24xf32> to vector<24x1xf32>
    %cst_150 = arith.constant 3.100000e+01 : f32
    %463 = vector.broadcast %cst_150 : f32 to vector<24x1xf32>
    %464 = arith.divf %462, %463 : vector<24x1xf32>
    %465 = math.sqrt %464 : vector<24x1xf32>
    %cst_151 = arith.constant 9.99999997E-7 : f32
    %466 = vector.broadcast %cst_151 : f32 to vector<24x1xf32>
    %467 = arith.addf %465, %466 : vector<24x1xf32>
    %468 = tpu.reciprocal %467 {approx = true} : vector<24x1xf32> -> vector<24x1xf32>
    %469 = vector.broadcast %457 : vector<24x1xf32> to vector<24x32xf32>
    %470 = arith.subf %451, %469 : vector<24x32xf32>
    %471 = vector.broadcast %452 : vector<1x32xf32> to vector<24x32xf32>
    %472 = arith.mulf %471, %470 : vector<24x32xf32>
    %473 = vector.broadcast %468 : vector<24x1xf32> to vector<24x32xf32>
    %474 = arith.mulf %472, %473 : vector<24x32xf32>
    %475 = vector.broadcast %453 : vector<1x32xf32> to vector<24x32xf32>
    %476 = arith.addf %474, %475 : vector<24x32xf32>
    %c600 = arith.constant 600 : index
    %c0_152 = arith.constant 0 : index
    %477 = vector.load %arg2[%c600, %c0_152] : memref<1896x128xf32, #tpu.memory_space<vmem>>, vector<32x32xf32>
    %cst_153 = arith.constant dense<0.000000e+00> : vector<24x32xf32>
    %478 = tpu.matmul %476, %477, %cst_153 {dimension_numbers = #tpu.dot_dimension_numbers<[1], [0], [0], [1], [0, 0, 1, 1], [], []>} : vector<24x32xf32>, vector<32x32xf32>, vector<24x32xf32> -> vector<24x32xf32>
    %c632 = arith.constant 632 : index
    %c0_154 = arith.constant 0 : index
    %479 = vector.load %arg2[%c632, %c0_154] : memref<1896x128xf32, #tpu.memory_space<vmem>>, vector<1x32xf32>
    %480 = vector.broadcast %479 : vector<1x32xf32> to vector<24x32xf32>
    %481 = arith.addf %478, %480 : vector<24x32xf32>
    %c640 = arith.constant 640 : index
    %c0_155 = arith.constant 0 : index
    %482 = vector.load %arg2[%c640, %c0_155] : memref<1896x128xf32, #tpu.memory_space<vmem>>, vector<32x64xf32>
    %cst_156 = arith.constant dense<0.000000e+00> : vector<24x64xf32>
    %483 = tpu.matmul %338, %482, %cst_156 {dimension_numbers = #tpu.dot_dimension_numbers<[1], [0], [0], [1], [0, 0, 1, 1], [], []>} : vector<24x32xf32>, vector<32x64xf32>, vector<24x64xf32> -> vector<24x64xf32>
    %c672 = arith.constant 672 : index
    %c0_157 = arith.constant 0 : index
    %484 = vector.load %arg2[%c672, %c0_157] : memref<1896x128xf32, #tpu.memory_space<vmem>>, vector<1x64xf32>
    %485 = vector.broadcast %484 : vector<1x64xf32> to vector<24x64xf32>
    %486 = arith.addf %483, %485 : vector<24x64xf32>
    %487 = vector.extract_strided_slice %486 {offsets = [0, 0], sizes = [24, 32], strides = [1, 1]} : vector<24x64xf32> to vector<24x32xf32>
    %488 = vector.extract_strided_slice %486 {offsets = [0, 32], sizes = [24, 32], strides = [1, 1]} : vector<24x64xf32> to vector<24x32xf32>
    %c680 = arith.constant 680 : index
    %c0_158 = arith.constant 0 : index
    %489 = vector.load %arg2[%c680, %c0_158] : memref<1896x128xf32, #tpu.memory_space<vmem>>, vector<32x32xf32>
    %c712 = arith.constant 712 : index
    %c0_159 = arith.constant 0 : index
    %490 = vector.load %arg2[%c712, %c0_159] : memref<1896x128xf32, #tpu.memory_space<vmem>>, vector<1x32xf32>
    %491 = vector.extract_strided_slice %481 {offsets = [0, 0], sizes = [12, 16], strides = [1, 1]} : vector<24x32xf32> to vector<12x16xf32>
    %492 = vector.extract_strided_slice %487 {offsets = [0, 0], sizes = [12, 16], strides = [1, 1]} : vector<24x32xf32> to vector<12x16xf32>
    %493 = vector.extract_strided_slice %488 {offsets = [0, 0], sizes = [12, 16], strides = [1, 1]} : vector<24x32xf32> to vector<12x16xf32>
    "tpu.trace_start"() <{level = 10 : i32, message = "xd,yd->xy"}> : () -> ()
    %cst_160 = arith.constant dense<0.000000e+00> : vector<12x12xf32>
    %494 = tpu.matmul %491, %492, %cst_160 {dimension_numbers = #tpu.dot_dimension_numbers<[1], [1], [0], [0], [0, 0, 1, 0], [], []>} : vector<12x16xf32>, vector<12x16xf32>, vector<12x12xf32> -> vector<12x12xf32>
    "tpu.trace_stop"() : () -> ()
    %cst_161 = arith.constant 2.500000e-01 : f32
    %495 = vector.broadcast %cst_161 : f32 to vector<12x12xf32>
    %496 = arith.mulf %494, %495 : vector<12x12xf32>
    %cst_162 = arith.constant dense<0xFF800000> : vector<12xf32>
    %497 = vector.multi_reduction <maximumf>, %496, %cst_162 [1] : vector<12x12xf32> to vector<12xf32>
    %498 = vector.shape_cast %497 : vector<12xf32> to vector<12x1xf32>
    %499 = vector.broadcast %498 : vector<12x1xf32> to vector<12x12xf32>
    %500 = arith.subf %496, %499 : vector<12x12xf32>
    %501 = math.exp %500 : vector<12x12xf32>
    %cst_163 = arith.constant dense<0.000000e+00> : vector<12xf32>
    %502 = vector.multi_reduction <add>, %501, %cst_163 [1] : vector<12x12xf32> to vector<12xf32>
    %503 = vector.shape_cast %502 : vector<12xf32> to vector<12x1xf32>
    %504 = tpu.reciprocal %503 {approx = true} : vector<12x1xf32> -> vector<12x1xf32>
    %505 = vector.broadcast %504 : vector<12x1xf32> to vector<12x12xf32>
    %506 = arith.mulf %501, %505 : vector<12x12xf32>
    %cst_164 = arith.constant dense<0.000000e+00> : vector<12x16xf32>
    %507 = tpu.matmul %506, %493, %cst_164 {dimension_numbers = #tpu.dot_dimension_numbers<[1], [0], [0], [1], [0, 0, 1, 1], [], []>} : vector<12x12xf32>, vector<12x16xf32>, vector<12x16xf32> -> vector<12x16xf32>
    %508 = vector.extract_strided_slice %481 {offsets = [12, 0], sizes = [12, 16], strides = [1, 1]} : vector<24x32xf32> to vector<12x16xf32>
    %509 = vector.extract_strided_slice %487 {offsets = [12, 0], sizes = [12, 16], strides = [1, 1]} : vector<24x32xf32> to vector<12x16xf32>
    %510 = vector.extract_strided_slice %488 {offsets = [12, 0], sizes = [12, 16], strides = [1, 1]} : vector<24x32xf32> to vector<12x16xf32>
    "tpu.trace_start"() <{level = 10 : i32, message = "xd,yd->xy"}> : () -> ()
    %cst_165 = arith.constant dense<0.000000e+00> : vector<12x12xf32>
    %511 = tpu.matmul %508, %509, %cst_165 {dimension_numbers = #tpu.dot_dimension_numbers<[1], [1], [0], [0], [0, 0, 1, 0], [], []>} : vector<12x16xf32>, vector<12x16xf32>, vector<12x12xf32> -> vector<12x12xf32>
    "tpu.trace_stop"() : () -> ()
    %cst_166 = arith.constant 2.500000e-01 : f32
    %512 = vector.broadcast %cst_166 : f32 to vector<12x12xf32>
    %513 = arith.mulf %511, %512 : vector<12x12xf32>
    %cst_167 = arith.constant dense<0xFF800000> : vector<12xf32>
    %514 = vector.multi_reduction <maximumf>, %513, %cst_167 [1] : vector<12x12xf32> to vector<12xf32>
    %515 = vector.shape_cast %514 : vector<12xf32> to vector<12x1xf32>
    %516 = vector.broadcast %515 : vector<12x1xf32> to vector<12x12xf32>
    %517 = arith.subf %513, %516 : vector<12x12xf32>
    %518 = math.exp %517 : vector<12x12xf32>
    %cst_168 = arith.constant dense<0.000000e+00> : vector<12xf32>
    %519 = vector.multi_reduction <add>, %518, %cst_168 [1] : vector<12x12xf32> to vector<12xf32>
    %520 = vector.shape_cast %519 : vector<12xf32> to vector<12x1xf32>
    %521 = tpu.reciprocal %520 {approx = true} : vector<12x1xf32> -> vector<12x1xf32>
    %522 = vector.broadcast %521 : vector<12x1xf32> to vector<12x12xf32>
    %523 = arith.mulf %518, %522 : vector<12x12xf32>
    %cst_169 = arith.constant dense<0.000000e+00> : vector<12x16xf32>
    %524 = tpu.matmul %523, %510, %cst_169 {dimension_numbers = #tpu.dot_dimension_numbers<[1], [0], [0], [1], [0, 0, 1, 1], [], []>} : vector<12x12xf32>, vector<12x16xf32>, vector<12x16xf32> -> vector<12x16xf32>
    %525 = tpu.concatenate %507, %524 in 0 : vector<12x16xf32>, vector<12x16xf32> -> vector<24x16xf32>
    %526 = vector.extract_strided_slice %489 {offsets = [0, 0], sizes = [16, 32], strides = [1, 1]} : vector<32x32xf32> to vector<16x32xf32>
    %cst_170 = arith.constant dense<0.000000e+00> : vector<24x32xf32>
    %527 = tpu.matmul %525, %526, %cst_170 {dimension_numbers = #tpu.dot_dimension_numbers<[1], [0], [0], [1], [0, 0, 1, 1], [], []>} : vector<24x16xf32>, vector<16x32xf32>, vector<24x32xf32> -> vector<24x32xf32>
    %528 = vector.extract_strided_slice %481 {offsets = [0, 16], sizes = [12, 16], strides = [1, 1]} : vector<24x32xf32> to vector<12x16xf32>
    %529 = vector.extract_strided_slice %487 {offsets = [0, 16], sizes = [12, 16], strides = [1, 1]} : vector<24x32xf32> to vector<12x16xf32>
    %530 = vector.extract_strided_slice %488 {offsets = [0, 16], sizes = [12, 16], strides = [1, 1]} : vector<24x32xf32> to vector<12x16xf32>
    "tpu.trace_start"() <{level = 10 : i32, message = "xd,yd->xy"}> : () -> ()
    %cst_171 = arith.constant dense<0.000000e+00> : vector<12x12xf32>
    %531 = tpu.matmul %528, %529, %cst_171 {dimension_numbers = #tpu.dot_dimension_numbers<[1], [1], [0], [0], [0, 0, 1, 0], [], []>} : vector<12x16xf32>, vector<12x16xf32>, vector<12x12xf32> -> vector<12x12xf32>
    "tpu.trace_stop"() : () -> ()
    %cst_172 = arith.constant 2.500000e-01 : f32
    %532 = vector.broadcast %cst_172 : f32 to vector<12x12xf32>
    %533 = arith.mulf %531, %532 : vector<12x12xf32>
    %cst_173 = arith.constant dense<0xFF800000> : vector<12xf32>
    %534 = vector.multi_reduction <maximumf>, %533, %cst_173 [1] : vector<12x12xf32> to vector<12xf32>
    %535 = vector.shape_cast %534 : vector<12xf32> to vector<12x1xf32>
    %536 = vector.broadcast %535 : vector<12x1xf32> to vector<12x12xf32>
    %537 = arith.subf %533, %536 : vector<12x12xf32>
    %538 = math.exp %537 : vector<12x12xf32>
    %cst_174 = arith.constant dense<0.000000e+00> : vector<12xf32>
    %539 = vector.multi_reduction <add>, %538, %cst_174 [1] : vector<12x12xf32> to vector<12xf32>
    %540 = vector.shape_cast %539 : vector<12xf32> to vector<12x1xf32>
    %541 = tpu.reciprocal %540 {approx = true} : vector<12x1xf32> -> vector<12x1xf32>
    %542 = vector.broadcast %541 : vector<12x1xf32> to vector<12x12xf32>
    %543 = arith.mulf %538, %542 : vector<12x12xf32>
    %cst_175 = arith.constant dense<0.000000e+00> : vector<12x16xf32>
    %544 = tpu.matmul %543, %530, %cst_175 {dimension_numbers = #tpu.dot_dimension_numbers<[1], [0], [0], [1], [0, 0, 1, 1], [], []>} : vector<12x12xf32>, vector<12x16xf32>, vector<12x16xf32> -> vector<12x16xf32>
    %545 = vector.extract_strided_slice %481 {offsets = [12, 16], sizes = [12, 16], strides = [1, 1]} : vector<24x32xf32> to vector<12x16xf32>
    %546 = vector.extract_strided_slice %487 {offsets = [12, 16], sizes = [12, 16], strides = [1, 1]} : vector<24x32xf32> to vector<12x16xf32>
    %547 = vector.extract_strided_slice %488 {offsets = [12, 16], sizes = [12, 16], strides = [1, 1]} : vector<24x32xf32> to vector<12x16xf32>
    "tpu.trace_start"() <{level = 10 : i32, message = "xd,yd->xy"}> : () -> ()
    %cst_176 = arith.constant dense<0.000000e+00> : vector<12x12xf32>
    %548 = tpu.matmul %545, %546, %cst_176 {dimension_numbers = #tpu.dot_dimension_numbers<[1], [1], [0], [0], [0, 0, 1, 0], [], []>} : vector<12x16xf32>, vector<12x16xf32>, vector<12x12xf32> -> vector<12x12xf32>
    "tpu.trace_stop"() : () -> ()
    %cst_177 = arith.constant 2.500000e-01 : f32
    %549 = vector.broadcast %cst_177 : f32 to vector<12x12xf32>
    %550 = arith.mulf %548, %549 : vector<12x12xf32>
    %cst_178 = arith.constant dense<0xFF800000> : vector<12xf32>
    %551 = vector.multi_reduction <maximumf>, %550, %cst_178 [1] : vector<12x12xf32> to vector<12xf32>
    %552 = vector.shape_cast %551 : vector<12xf32> to vector<12x1xf32>
    %553 = vector.broadcast %552 : vector<12x1xf32> to vector<12x12xf32>
    %554 = arith.subf %550, %553 : vector<12x12xf32>
    %555 = math.exp %554 : vector<12x12xf32>
    %cst_179 = arith.constant dense<0.000000e+00> : vector<12xf32>
    %556 = vector.multi_reduction <add>, %555, %cst_179 [1] : vector<12x12xf32> to vector<12xf32>
    %557 = vector.shape_cast %556 : vector<12xf32> to vector<12x1xf32>
    %558 = tpu.reciprocal %557 {approx = true} : vector<12x1xf32> -> vector<12x1xf32>
    %559 = vector.broadcast %558 : vector<12x1xf32> to vector<12x12xf32>
    %560 = arith.mulf %555, %559 : vector<12x12xf32>
    %cst_180 = arith.constant dense<0.000000e+00> : vector<12x16xf32>
    %561 = tpu.matmul %560, %547, %cst_180 {dimension_numbers = #tpu.dot_dimension_numbers<[1], [0], [0], [1], [0, 0, 1, 1], [], []>} : vector<12x12xf32>, vector<12x16xf32>, vector<12x16xf32> -> vector<12x16xf32>
    %562 = tpu.concatenate %544, %561 in 0 : vector<12x16xf32>, vector<12x16xf32> -> vector<24x16xf32>
    %563 = vector.extract_strided_slice %489 {offsets = [16, 0], sizes = [16, 32], strides = [1, 1]} : vector<32x32xf32> to vector<16x32xf32>
    %cst_181 = arith.constant dense<0.000000e+00> : vector<24x32xf32>
    %564 = tpu.matmul %562, %563, %cst_181 {dimension_numbers = #tpu.dot_dimension_numbers<[1], [0], [0], [1], [0, 0, 1, 1], [], []>} : vector<24x16xf32>, vector<16x32xf32>, vector<24x32xf32> -> vector<24x32xf32>
    %565 = arith.addf %527, %564 : vector<24x32xf32>
    %566 = vector.broadcast %490 : vector<1x32xf32> to vector<24x32xf32>
    %567 = arith.addf %565, %566 : vector<24x32xf32>
    %568 = arith.addf %451, %567 : vector<24x32xf32>
    %c720 = arith.constant 720 : index
    %c0_182 = arith.constant 0 : index
    %569 = vector.load %arg2[%c720, %c0_182] : memref<1896x128xf32, #tpu.memory_space<vmem>>, vector<1x32xf32>
    %c728 = arith.constant 728 : index
    %c0_183 = arith.constant 0 : index
    %570 = vector.load %arg2[%c728, %c0_183] : memref<1896x128xf32, #tpu.memory_space<vmem>>, vector<1x32xf32>
    %cst_184 = arith.constant dense<0.000000e+00> : vector<24xf32>
    %571 = vector.multi_reduction <add>, %568, %cst_184 [1] : vector<24x32xf32> to vector<24xf32>
    %572 = vector.shape_cast %571 : vector<24xf32> to vector<24x1xf32>
    %cst_185 = arith.constant 3.200000e+01 : f32
    %573 = vector.broadcast %cst_185 : f32 to vector<24x1xf32>
    %574 = arith.divf %572, %573 : vector<24x1xf32>
    %575 = vector.broadcast %574 : vector<24x1xf32> to vector<24x32xf32>
    %576 = arith.subf %568, %575 : vector<24x32xf32>
    %577 = arith.mulf %576, %576 : vector<24x32xf32>
    %cst_186 = arith.constant dense<0.000000e+00> : vector<24xf32>
    %578 = vector.multi_reduction <add>, %577, %cst_186 [1] : vector<24x32xf32> to vector<24xf32>
    %579 = vector.shape_cast %578 : vector<24xf32> to vector<24x1xf32>
    %cst_187 = arith.constant 3.100000e+01 : f32
    %580 = vector.broadcast %cst_187 : f32 to vector<24x1xf32>
    %581 = arith.divf %579, %580 : vector<24x1xf32>
    %582 = math.sqrt %581 : vector<24x1xf32>
    %cst_188 = arith.constant 9.99999997E-7 : f32
    %583 = vector.broadcast %cst_188 : f32 to vector<24x1xf32>
    %584 = arith.addf %582, %583 : vector<24x1xf32>
    %585 = tpu.reciprocal %584 {approx = true} : vector<24x1xf32> -> vector<24x1xf32>
    %586 = vector.broadcast %574 : vector<24x1xf32> to vector<24x32xf32>
    %587 = arith.subf %568, %586 : vector<24x32xf32>
    %588 = vector.broadcast %569 : vector<1x32xf32> to vector<24x32xf32>
    %589 = arith.mulf %588, %587 : vector<24x32xf32>
    %590 = vector.broadcast %585 : vector<24x1xf32> to vector<24x32xf32>
    %591 = arith.mulf %589, %590 : vector<24x32xf32>
    %592 = vector.broadcast %570 : vector<1x32xf32> to vector<24x32xf32>
    %593 = arith.addf %591, %592 : vector<24x32xf32>
    %c736 = arith.constant 736 : index
    %c0_189 = arith.constant 0 : index
    %594 = vector.load %arg2[%c736, %c0_189] : memref<1896x128xf32, #tpu.memory_space<vmem>>, vector<32x32xf32>
    %cst_190 = arith.constant dense<0.000000e+00> : vector<24x32xf32>
    %595 = tpu.matmul %593, %594, %cst_190 {dimension_numbers = #tpu.dot_dimension_numbers<[1], [0], [0], [1], [0, 0, 1, 1], [], []>} : vector<24x32xf32>, vector<32x32xf32>, vector<24x32xf32> -> vector<24x32xf32>
    %c768 = arith.constant 768 : index
    %c0_191 = arith.constant 0 : index
    %596 = vector.load %arg2[%c768, %c0_191] : memref<1896x128xf32, #tpu.memory_space<vmem>>, vector<1x32xf32>
    %597 = vector.broadcast %596 : vector<1x32xf32> to vector<24x32xf32>
    %598 = arith.addf %595, %597 : vector<24x32xf32>
    %cst_192 = arith.constant 0.000000e+00 : f32
    %599 = vector.broadcast %cst_192 : f32 to vector<24x32xf32>
    %600 = arith.maximumf %598, %599 : vector<24x32xf32>
    %c776 = arith.constant 776 : index
    %c0_193 = arith.constant 0 : index
    %601 = vector.load %arg2[%c776, %c0_193] : memref<1896x128xf32, #tpu.memory_space<vmem>>, vector<32x32xf32>
    %cst_194 = arith.constant dense<0.000000e+00> : vector<24x32xf32>
    %602 = tpu.matmul %600, %601, %cst_194 {dimension_numbers = #tpu.dot_dimension_numbers<[1], [0], [0], [1], [0, 0, 1, 1], [], []>} : vector<24x32xf32>, vector<32x32xf32>, vector<24x32xf32> -> vector<24x32xf32>
    %603 = arith.addf %568, %602 : vector<24x32xf32>
    %c808 = arith.constant 808 : index
    %c0_195 = arith.constant 0 : index
    %604 = vector.load %arg2[%c808, %c0_195] : memref<1896x128xf32, #tpu.memory_space<vmem>>, vector<1x32xf32>
    %605 = vector.broadcast %604 : vector<1x32xf32> to vector<24x32xf32>
    %606 = arith.addf %603, %605 : vector<24x32xf32>
    %c816 = arith.constant 816 : index
    %c0_196 = arith.constant 0 : index
    %607 = vector.load %arg2[%c816, %c0_196] : memref<1896x128xf32, #tpu.memory_space<vmem>>, vector<1x32xf32>
    %c824 = arith.constant 824 : index
    %c0_197 = arith.constant 0 : index
    %608 = vector.load %arg2[%c824, %c0_197] : memref<1896x128xf32, #tpu.memory_space<vmem>>, vector<1x32xf32>
    %cst_198 = arith.constant dense<0.000000e+00> : vector<24xf32>
    %609 = vector.multi_reduction <add>, %606, %cst_198 [1] : vector<24x32xf32> to vector<24xf32>
    %610 = vector.shape_cast %609 : vector<24xf32> to vector<24x1xf32>
    %cst_199 = arith.constant 3.200000e+01 : f32
    %611 = vector.broadcast %cst_199 : f32 to vector<24x1xf32>
    %612 = arith.divf %610, %611 : vector<24x1xf32>
    %613 = vector.broadcast %612 : vector<24x1xf32> to vector<24x32xf32>
    %614 = arith.subf %606, %613 : vector<24x32xf32>
    %615 = arith.mulf %614, %614 : vector<24x32xf32>
    %cst_200 = arith.constant dense<0.000000e+00> : vector<24xf32>
    %616 = vector.multi_reduction <add>, %615, %cst_200 [1] : vector<24x32xf32> to vector<24xf32>
    %617 = vector.shape_cast %616 : vector<24xf32> to vector<24x1xf32>
    %cst_201 = arith.constant 3.100000e+01 : f32
    %618 = vector.broadcast %cst_201 : f32 to vector<24x1xf32>
    %619 = arith.divf %617, %618 : vector<24x1xf32>
    %620 = math.sqrt %619 : vector<24x1xf32>
    %cst_202 = arith.constant 9.99999997E-7 : f32
    %621 = vector.broadcast %cst_202 : f32 to vector<24x1xf32>
    %622 = arith.addf %620, %621 : vector<24x1xf32>
    %623 = tpu.reciprocal %622 {approx = true} : vector<24x1xf32> -> vector<24x1xf32>
    %624 = vector.broadcast %612 : vector<24x1xf32> to vector<24x32xf32>
    %625 = arith.subf %606, %624 : vector<24x32xf32>
    %626 = vector.broadcast %607 : vector<1x32xf32> to vector<24x32xf32>
    %627 = arith.mulf %626, %625 : vector<24x32xf32>
    %628 = vector.broadcast %623 : vector<24x1xf32> to vector<24x32xf32>
    %629 = arith.mulf %627, %628 : vector<24x32xf32>
    %630 = vector.broadcast %608 : vector<1x32xf32> to vector<24x32xf32>
    %631 = arith.addf %629, %630 : vector<24x32xf32>
    %c832 = arith.constant 832 : index
    %c0_203 = arith.constant 0 : index
    %632 = vector.load %arg2[%c832, %c0_203] : memref<1896x128xf32, #tpu.memory_space<vmem>>, vector<32x96xf32>
    %cst_204 = arith.constant dense<0.000000e+00> : vector<24x96xf32>
    %633 = tpu.matmul %631, %632, %cst_204 {dimension_numbers = #tpu.dot_dimension_numbers<[1], [0], [0], [1], [0, 0, 1, 1], [], []>} : vector<24x32xf32>, vector<32x96xf32>, vector<24x96xf32> -> vector<24x96xf32>
    %c864 = arith.constant 864 : index
    %c0_205 = arith.constant 0 : index
    %634 = vector.load %arg2[%c864, %c0_205] : memref<1896x128xf32, #tpu.memory_space<vmem>>, vector<1x96xf32>
    %635 = vector.broadcast %634 : vector<1x96xf32> to vector<24x96xf32>
    %636 = arith.addf %633, %635 : vector<24x96xf32>
    %637 = vector.extract_strided_slice %636 {offsets = [0, 0], sizes = [24, 32], strides = [1, 1]} : vector<24x96xf32> to vector<24x32xf32>
    %638 = vector.extract_strided_slice %636 {offsets = [0, 32], sizes = [24, 32], strides = [1, 1]} : vector<24x96xf32> to vector<24x32xf32>
    %639 = vector.extract_strided_slice %636 {offsets = [0, 64], sizes = [24, 32], strides = [1, 1]} : vector<24x96xf32> to vector<24x32xf32>
    %c872 = arith.constant 872 : index
    %c0_206 = arith.constant 0 : index
    %640 = vector.load %arg2[%c872, %c0_206] : memref<1896x128xf32, #tpu.memory_space<vmem>>, vector<32x32xf32>
    %c904 = arith.constant 904 : index
    %c0_207 = arith.constant 0 : index
    %641 = vector.load %arg2[%c904, %c0_207] : memref<1896x128xf32, #tpu.memory_space<vmem>>, vector<1x32xf32>
    %642 = vector.extract_strided_slice %637 {offsets = [0, 0], sizes = [12, 16], strides = [1, 1]} : vector<24x32xf32> to vector<12x16xf32>
    %643 = vector.extract_strided_slice %638 {offsets = [0, 0], sizes = [12, 16], strides = [1, 1]} : vector<24x32xf32> to vector<12x16xf32>
    %644 = vector.extract_strided_slice %639 {offsets = [0, 0], sizes = [12, 16], strides = [1, 1]} : vector<24x32xf32> to vector<12x16xf32>
    "tpu.trace_start"() <{level = 10 : i32, message = "xd,yd->xy"}> : () -> ()
    %cst_208 = arith.constant dense<0.000000e+00> : vector<12x12xf32>
    %645 = tpu.matmul %642, %643, %cst_208 {dimension_numbers = #tpu.dot_dimension_numbers<[1], [1], [0], [0], [0, 0, 1, 0], [], []>} : vector<12x16xf32>, vector<12x16xf32>, vector<12x12xf32> -> vector<12x12xf32>
    "tpu.trace_stop"() : () -> ()
    %cst_209 = arith.constant 2.500000e-01 : f32
    %646 = vector.broadcast %cst_209 : f32 to vector<12x12xf32>
    %647 = arith.mulf %645, %646 : vector<12x12xf32>
    %cst_210 = arith.constant dense<0xFF800000> : vector<12xf32>
    %648 = vector.multi_reduction <maximumf>, %647, %cst_210 [1] : vector<12x12xf32> to vector<12xf32>
    %649 = vector.shape_cast %648 : vector<12xf32> to vector<12x1xf32>
    %650 = vector.broadcast %649 : vector<12x1xf32> to vector<12x12xf32>
    %651 = arith.subf %647, %650 : vector<12x12xf32>
    %652 = math.exp %651 : vector<12x12xf32>
    %cst_211 = arith.constant dense<0.000000e+00> : vector<12xf32>
    %653 = vector.multi_reduction <add>, %652, %cst_211 [1] : vector<12x12xf32> to vector<12xf32>
    %654 = vector.shape_cast %653 : vector<12xf32> to vector<12x1xf32>
    %655 = tpu.reciprocal %654 {approx = true} : vector<12x1xf32> -> vector<12x1xf32>
    %656 = vector.broadcast %655 : vector<12x1xf32> to vector<12x12xf32>
    %657 = arith.mulf %652, %656 : vector<12x12xf32>
    %cst_212 = arith.constant dense<0.000000e+00> : vector<12x16xf32>
    %658 = tpu.matmul %657, %644, %cst_212 {dimension_numbers = #tpu.dot_dimension_numbers<[1], [0], [0], [1], [0, 0, 1, 1], [], []>} : vector<12x12xf32>, vector<12x16xf32>, vector<12x16xf32> -> vector<12x16xf32>
    %659 = vector.extract_strided_slice %637 {offsets = [12, 0], sizes = [12, 16], strides = [1, 1]} : vector<24x32xf32> to vector<12x16xf32>
    %660 = vector.extract_strided_slice %638 {offsets = [12, 0], sizes = [12, 16], strides = [1, 1]} : vector<24x32xf32> to vector<12x16xf32>
    %661 = vector.extract_strided_slice %639 {offsets = [12, 0], sizes = [12, 16], strides = [1, 1]} : vector<24x32xf32> to vector<12x16xf32>
    "tpu.trace_start"() <{level = 10 : i32, message = "xd,yd->xy"}> : () -> ()
    %cst_213 = arith.constant dense<0.000000e+00> : vector<12x12xf32>
    %662 = tpu.matmul %659, %660, %cst_213 {dimension_numbers = #tpu.dot_dimension_numbers<[1], [1], [0], [0], [0, 0, 1, 0], [], []>} : vector<12x16xf32>, vector<12x16xf32>, vector<12x12xf32> -> vector<12x12xf32>
    "tpu.trace_stop"() : () -> ()
    %cst_214 = arith.constant 2.500000e-01 : f32
    %663 = vector.broadcast %cst_214 : f32 to vector<12x12xf32>
    %664 = arith.mulf %662, %663 : vector<12x12xf32>
    %cst_215 = arith.constant dense<0xFF800000> : vector<12xf32>
    %665 = vector.multi_reduction <maximumf>, %664, %cst_215 [1] : vector<12x12xf32> to vector<12xf32>
    %666 = vector.shape_cast %665 : vector<12xf32> to vector<12x1xf32>
    %667 = vector.broadcast %666 : vector<12x1xf32> to vector<12x12xf32>
    %668 = arith.subf %664, %667 : vector<12x12xf32>
    %669 = math.exp %668 : vector<12x12xf32>
    %cst_216 = arith.constant dense<0.000000e+00> : vector<12xf32>
    %670 = vector.multi_reduction <add>, %669, %cst_216 [1] : vector<12x12xf32> to vector<12xf32>
    %671 = vector.shape_cast %670 : vector<12xf32> to vector<12x1xf32>
    %672 = tpu.reciprocal %671 {approx = true} : vector<12x1xf32> -> vector<12x1xf32>
    %673 = vector.broadcast %672 : vector<12x1xf32> to vector<12x12xf32>
    %674 = arith.mulf %669, %673 : vector<12x12xf32>
    %cst_217 = arith.constant dense<0.000000e+00> : vector<12x16xf32>
    %675 = tpu.matmul %674, %661, %cst_217 {dimension_numbers = #tpu.dot_dimension_numbers<[1], [0], [0], [1], [0, 0, 1, 1], [], []>} : vector<12x12xf32>, vector<12x16xf32>, vector<12x16xf32> -> vector<12x16xf32>
    %676 = tpu.concatenate %658, %675 in 0 : vector<12x16xf32>, vector<12x16xf32> -> vector<24x16xf32>
    %677 = vector.extract_strided_slice %640 {offsets = [0, 0], sizes = [16, 32], strides = [1, 1]} : vector<32x32xf32> to vector<16x32xf32>
    %cst_218 = arith.constant dense<0.000000e+00> : vector<24x32xf32>
    %678 = tpu.matmul %676, %677, %cst_218 {dimension_numbers = #tpu.dot_dimension_numbers<[1], [0], [0], [1], [0, 0, 1, 1], [], []>} : vector<24x16xf32>, vector<16x32xf32>, vector<24x32xf32> -> vector<24x32xf32>
    %679 = vector.extract_strided_slice %637 {offsets = [0, 16], sizes = [12, 16], strides = [1, 1]} : vector<24x32xf32> to vector<12x16xf32>
    %680 = vector.extract_strided_slice %638 {offsets = [0, 16], sizes = [12, 16], strides = [1, 1]} : vector<24x32xf32> to vector<12x16xf32>
    %681 = vector.extract_strided_slice %639 {offsets = [0, 16], sizes = [12, 16], strides = [1, 1]} : vector<24x32xf32> to vector<12x16xf32>
    "tpu.trace_start"() <{level = 10 : i32, message = "xd,yd->xy"}> : () -> ()
    %cst_219 = arith.constant dense<0.000000e+00> : vector<12x12xf32>
    %682 = tpu.matmul %679, %680, %cst_219 {dimension_numbers = #tpu.dot_dimension_numbers<[1], [1], [0], [0], [0, 0, 1, 0], [], []>} : vector<12x16xf32>, vector<12x16xf32>, vector<12x12xf32> -> vector<12x12xf32>
    "tpu.trace_stop"() : () -> ()
    %cst_220 = arith.constant 2.500000e-01 : f32
    %683 = vector.broadcast %cst_220 : f32 to vector<12x12xf32>
    %684 = arith.mulf %682, %683 : vector<12x12xf32>
    %cst_221 = arith.constant dense<0xFF800000> : vector<12xf32>
    %685 = vector.multi_reduction <maximumf>, %684, %cst_221 [1] : vector<12x12xf32> to vector<12xf32>
    %686 = vector.shape_cast %685 : vector<12xf32> to vector<12x1xf32>
    %687 = vector.broadcast %686 : vector<12x1xf32> to vector<12x12xf32>
    %688 = arith.subf %684, %687 : vector<12x12xf32>
    %689 = math.exp %688 : vector<12x12xf32>
    %cst_222 = arith.constant dense<0.000000e+00> : vector<12xf32>
    %690 = vector.multi_reduction <add>, %689, %cst_222 [1] : vector<12x12xf32> to vector<12xf32>
    %691 = vector.shape_cast %690 : vector<12xf32> to vector<12x1xf32>
    %692 = tpu.reciprocal %691 {approx = true} : vector<12x1xf32> -> vector<12x1xf32>
    %693 = vector.broadcast %692 : vector<12x1xf32> to vector<12x12xf32>
    %694 = arith.mulf %689, %693 : vector<12x12xf32>
    %cst_223 = arith.constant dense<0.000000e+00> : vector<12x16xf32>
    %695 = tpu.matmul %694, %681, %cst_223 {dimension_numbers = #tpu.dot_dimension_numbers<[1], [0], [0], [1], [0, 0, 1, 1], [], []>} : vector<12x12xf32>, vector<12x16xf32>, vector<12x16xf32> -> vector<12x16xf32>
    %696 = vector.extract_strided_slice %637 {offsets = [12, 16], sizes = [12, 16], strides = [1, 1]} : vector<24x32xf32> to vector<12x16xf32>
    %697 = vector.extract_strided_slice %638 {offsets = [12, 16], sizes = [12, 16], strides = [1, 1]} : vector<24x32xf32> to vector<12x16xf32>
    %698 = vector.extract_strided_slice %639 {offsets = [12, 16], sizes = [12, 16], strides = [1, 1]} : vector<24x32xf32> to vector<12x16xf32>
    "tpu.trace_start"() <{level = 10 : i32, message = "xd,yd->xy"}> : () -> ()
    %cst_224 = arith.constant dense<0.000000e+00> : vector<12x12xf32>
    %699 = tpu.matmul %696, %697, %cst_224 {dimension_numbers = #tpu.dot_dimension_numbers<[1], [1], [0], [0], [0, 0, 1, 0], [], []>} : vector<12x16xf32>, vector<12x16xf32>, vector<12x12xf32> -> vector<12x12xf32>
    "tpu.trace_stop"() : () -> ()
    %cst_225 = arith.constant 2.500000e-01 : f32
    %700 = vector.broadcast %cst_225 : f32 to vector<12x12xf32>
    %701 = arith.mulf %699, %700 : vector<12x12xf32>
    %cst_226 = arith.constant dense<0xFF800000> : vector<12xf32>
    %702 = vector.multi_reduction <maximumf>, %701, %cst_226 [1] : vector<12x12xf32> to vector<12xf32>
    %703 = vector.shape_cast %702 : vector<12xf32> to vector<12x1xf32>
    %704 = vector.broadcast %703 : vector<12x1xf32> to vector<12x12xf32>
    %705 = arith.subf %701, %704 : vector<12x12xf32>
    %706 = math.exp %705 : vector<12x12xf32>
    %cst_227 = arith.constant dense<0.000000e+00> : vector<12xf32>
    %707 = vector.multi_reduction <add>, %706, %cst_227 [1] : vector<12x12xf32> to vector<12xf32>
    %708 = vector.shape_cast %707 : vector<12xf32> to vector<12x1xf32>
    %709 = tpu.reciprocal %708 {approx = true} : vector<12x1xf32> -> vector<12x1xf32>
    %710 = vector.broadcast %709 : vector<12x1xf32> to vector<12x12xf32>
    %711 = arith.mulf %706, %710 : vector<12x12xf32>
    %cst_228 = arith.constant dense<0.000000e+00> : vector<12x16xf32>
    %712 = tpu.matmul %711, %698, %cst_228 {dimension_numbers = #tpu.dot_dimension_numbers<[1], [0], [0], [1], [0, 0, 1, 1], [], []>} : vector<12x12xf32>, vector<12x16xf32>, vector<12x16xf32> -> vector<12x16xf32>
    %713 = tpu.concatenate %695, %712 in 0 : vector<12x16xf32>, vector<12x16xf32> -> vector<24x16xf32>
    %714 = vector.extract_strided_slice %640 {offsets = [16, 0], sizes = [16, 32], strides = [1, 1]} : vector<32x32xf32> to vector<16x32xf32>
    %cst_229 = arith.constant dense<0.000000e+00> : vector<24x32xf32>
    %715 = tpu.matmul %713, %714, %cst_229 {dimension_numbers = #tpu.dot_dimension_numbers<[1], [0], [0], [1], [0, 0, 1, 1], [], []>} : vector<24x16xf32>, vector<16x32xf32>, vector<24x32xf32> -> vector<24x32xf32>
    %716 = arith.addf %678, %715 : vector<24x32xf32>
    %717 = vector.broadcast %641 : vector<1x32xf32> to vector<24x32xf32>
    %718 = arith.addf %716, %717 : vector<24x32xf32>
    %719 = arith.addf %606, %718 : vector<24x32xf32>
    %c912 = arith.constant 912 : index
    %c0_230 = arith.constant 0 : index
    %720 = vector.load %arg2[%c912, %c0_230] : memref<1896x128xf32, #tpu.memory_space<vmem>>, vector<1x32xf32>
    %c920 = arith.constant 920 : index
    %c0_231 = arith.constant 0 : index
    %721 = vector.load %arg2[%c920, %c0_231] : memref<1896x128xf32, #tpu.memory_space<vmem>>, vector<1x32xf32>
    %cst_232 = arith.constant dense<0.000000e+00> : vector<24xf32>
    %722 = vector.multi_reduction <add>, %719, %cst_232 [1] : vector<24x32xf32> to vector<24xf32>
    %723 = vector.shape_cast %722 : vector<24xf32> to vector<24x1xf32>
    %cst_233 = arith.constant 3.200000e+01 : f32
    %724 = vector.broadcast %cst_233 : f32 to vector<24x1xf32>
    %725 = arith.divf %723, %724 : vector<24x1xf32>
    %726 = vector.broadcast %725 : vector<24x1xf32> to vector<24x32xf32>
    %727 = arith.subf %719, %726 : vector<24x32xf32>
    %728 = arith.mulf %727, %727 : vector<24x32xf32>
    %cst_234 = arith.constant dense<0.000000e+00> : vector<24xf32>
    %729 = vector.multi_reduction <add>, %728, %cst_234 [1] : vector<24x32xf32> to vector<24xf32>
    %730 = vector.shape_cast %729 : vector<24xf32> to vector<24x1xf32>
    %cst_235 = arith.constant 3.100000e+01 : f32
    %731 = vector.broadcast %cst_235 : f32 to vector<24x1xf32>
    %732 = arith.divf %730, %731 : vector<24x1xf32>
    %733 = math.sqrt %732 : vector<24x1xf32>
    %cst_236 = arith.constant 9.99999997E-7 : f32
    %734 = vector.broadcast %cst_236 : f32 to vector<24x1xf32>
    %735 = arith.addf %733, %734 : vector<24x1xf32>
    %736 = tpu.reciprocal %735 {approx = true} : vector<24x1xf32> -> vector<24x1xf32>
    %737 = vector.broadcast %725 : vector<24x1xf32> to vector<24x32xf32>
    %738 = arith.subf %719, %737 : vector<24x32xf32>
    %739 = vector.broadcast %720 : vector<1x32xf32> to vector<24x32xf32>
    %740 = arith.mulf %739, %738 : vector<24x32xf32>
    %741 = vector.broadcast %736 : vector<24x1xf32> to vector<24x32xf32>
    %742 = arith.mulf %740, %741 : vector<24x32xf32>
    %743 = vector.broadcast %721 : vector<1x32xf32> to vector<24x32xf32>
    %744 = arith.addf %742, %743 : vector<24x32xf32>
    %c928 = arith.constant 928 : index
    %c0_237 = arith.constant 0 : index
    %745 = vector.load %arg2[%c928, %c0_237] : memref<1896x128xf32, #tpu.memory_space<vmem>>, vector<32x32xf32>
    %cst_238 = arith.constant dense<0.000000e+00> : vector<24x32xf32>
    %746 = tpu.matmul %744, %745, %cst_238 {dimension_numbers = #tpu.dot_dimension_numbers<[1], [0], [0], [1], [0, 0, 1, 1], [], []>} : vector<24x32xf32>, vector<32x32xf32>, vector<24x32xf32> -> vector<24x32xf32>
    %c960 = arith.constant 960 : index
    %c0_239 = arith.constant 0 : index
    %747 = vector.load %arg2[%c960, %c0_239] : memref<1896x128xf32, #tpu.memory_space<vmem>>, vector<1x32xf32>
    %748 = vector.broadcast %747 : vector<1x32xf32> to vector<24x32xf32>
    %749 = arith.addf %746, %748 : vector<24x32xf32>
    %c968 = arith.constant 968 : index
    %c0_240 = arith.constant 0 : index
    %750 = vector.load %arg2[%c968, %c0_240] : memref<1896x128xf32, #tpu.memory_space<vmem>>, vector<32x64xf32>
    %cst_241 = arith.constant dense<0.000000e+00> : vector<24x64xf32>
    %751 = tpu.matmul %338, %750, %cst_241 {dimension_numbers = #tpu.dot_dimension_numbers<[1], [0], [0], [1], [0, 0, 1, 1], [], []>} : vector<24x32xf32>, vector<32x64xf32>, vector<24x64xf32> -> vector<24x64xf32>
    %c1000 = arith.constant 1000 : index
    %c0_242 = arith.constant 0 : index
    %752 = vector.load %arg2[%c1000, %c0_242] : memref<1896x128xf32, #tpu.memory_space<vmem>>, vector<1x64xf32>
    %753 = vector.broadcast %752 : vector<1x64xf32> to vector<24x64xf32>
    %754 = arith.addf %751, %753 : vector<24x64xf32>
    %755 = vector.extract_strided_slice %754 {offsets = [0, 0], sizes = [24, 32], strides = [1, 1]} : vector<24x64xf32> to vector<24x32xf32>
    %756 = vector.extract_strided_slice %754 {offsets = [0, 32], sizes = [24, 32], strides = [1, 1]} : vector<24x64xf32> to vector<24x32xf32>
    %c1008 = arith.constant 1008 : index
    %c0_243 = arith.constant 0 : index
    %757 = vector.load %arg2[%c1008, %c0_243] : memref<1896x128xf32, #tpu.memory_space<vmem>>, vector<32x32xf32>
    %c1040 = arith.constant 1040 : index
    %c0_244 = arith.constant 0 : index
    %758 = vector.load %arg2[%c1040, %c0_244] : memref<1896x128xf32, #tpu.memory_space<vmem>>, vector<1x32xf32>
    %759 = vector.extract_strided_slice %749 {offsets = [0, 0], sizes = [12, 16], strides = [1, 1]} : vector<24x32xf32> to vector<12x16xf32>
    %760 = vector.extract_strided_slice %755 {offsets = [0, 0], sizes = [12, 16], strides = [1, 1]} : vector<24x32xf32> to vector<12x16xf32>
    %761 = vector.extract_strided_slice %756 {offsets = [0, 0], sizes = [12, 16], strides = [1, 1]} : vector<24x32xf32> to vector<12x16xf32>
    "tpu.trace_start"() <{level = 10 : i32, message = "xd,yd->xy"}> : () -> ()
    %cst_245 = arith.constant dense<0.000000e+00> : vector<12x12xf32>
    %762 = tpu.matmul %759, %760, %cst_245 {dimension_numbers = #tpu.dot_dimension_numbers<[1], [1], [0], [0], [0, 0, 1, 0], [], []>} : vector<12x16xf32>, vector<12x16xf32>, vector<12x12xf32> -> vector<12x12xf32>
    "tpu.trace_stop"() : () -> ()
    %cst_246 = arith.constant 2.500000e-01 : f32
    %763 = vector.broadcast %cst_246 : f32 to vector<12x12xf32>
    %764 = arith.mulf %762, %763 : vector<12x12xf32>
    %cst_247 = arith.constant dense<0xFF800000> : vector<12xf32>
    %765 = vector.multi_reduction <maximumf>, %764, %cst_247 [1] : vector<12x12xf32> to vector<12xf32>
    %766 = vector.shape_cast %765 : vector<12xf32> to vector<12x1xf32>
    %767 = vector.broadcast %766 : vector<12x1xf32> to vector<12x12xf32>
    %768 = arith.subf %764, %767 : vector<12x12xf32>
    %769 = math.exp %768 : vector<12x12xf32>
    %cst_248 = arith.constant dense<0.000000e+00> : vector<12xf32>
    %770 = vector.multi_reduction <add>, %769, %cst_248 [1] : vector<12x12xf32> to vector<12xf32>
    %771 = vector.shape_cast %770 : vector<12xf32> to vector<12x1xf32>
    %772 = tpu.reciprocal %771 {approx = true} : vector<12x1xf32> -> vector<12x1xf32>
    %773 = vector.broadcast %772 : vector<12x1xf32> to vector<12x12xf32>
    %774 = arith.mulf %769, %773 : vector<12x12xf32>
    %cst_249 = arith.constant dense<0.000000e+00> : vector<12x16xf32>
    %775 = tpu.matmul %774, %761, %cst_249 {dimension_numbers = #tpu.dot_dimension_numbers<[1], [0], [0], [1], [0, 0, 1, 1], [], []>} : vector<12x12xf32>, vector<12x16xf32>, vector<12x16xf32> -> vector<12x16xf32>
    %776 = vector.extract_strided_slice %749 {offsets = [12, 0], sizes = [12, 16], strides = [1, 1]} : vector<24x32xf32> to vector<12x16xf32>
    %777 = vector.extract_strided_slice %755 {offsets = [12, 0], sizes = [12, 16], strides = [1, 1]} : vector<24x32xf32> to vector<12x16xf32>
    %778 = vector.extract_strided_slice %756 {offsets = [12, 0], sizes = [12, 16], strides = [1, 1]} : vector<24x32xf32> to vector<12x16xf32>
    "tpu.trace_start"() <{level = 10 : i32, message = "xd,yd->xy"}> : () -> ()
    %cst_250 = arith.constant dense<0.000000e+00> : vector<12x12xf32>
    %779 = tpu.matmul %776, %777, %cst_250 {dimension_numbers = #tpu.dot_dimension_numbers<[1], [1], [0], [0], [0, 0, 1, 0], [], []>} : vector<12x16xf32>, vector<12x16xf32>, vector<12x12xf32> -> vector<12x12xf32>
    "tpu.trace_stop"() : () -> ()
    %cst_251 = arith.constant 2.500000e-01 : f32
    %780 = vector.broadcast %cst_251 : f32 to vector<12x12xf32>
    %781 = arith.mulf %779, %780 : vector<12x12xf32>
    %cst_252 = arith.constant dense<0xFF800000> : vector<12xf32>
    %782 = vector.multi_reduction <maximumf>, %781, %cst_252 [1] : vector<12x12xf32> to vector<12xf32>
    %783 = vector.shape_cast %782 : vector<12xf32> to vector<12x1xf32>
    %784 = vector.broadcast %783 : vector<12x1xf32> to vector<12x12xf32>
    %785 = arith.subf %781, %784 : vector<12x12xf32>
    %786 = math.exp %785 : vector<12x12xf32>
    %cst_253 = arith.constant dense<0.000000e+00> : vector<12xf32>
    %787 = vector.multi_reduction <add>, %786, %cst_253 [1] : vector<12x12xf32> to vector<12xf32>
    %788 = vector.shape_cast %787 : vector<12xf32> to vector<12x1xf32>
    %789 = tpu.reciprocal %788 {approx = true} : vector<12x1xf32> -> vector<12x1xf32>
    %790 = vector.broadcast %789 : vector<12x1xf32> to vector<12x12xf32>
    %791 = arith.mulf %786, %790 : vector<12x12xf32>
    %cst_254 = arith.constant dense<0.000000e+00> : vector<12x16xf32>
    %792 = tpu.matmul %791, %778, %cst_254 {dimension_numbers = #tpu.dot_dimension_numbers<[1], [0], [0], [1], [0, 0, 1, 1], [], []>} : vector<12x12xf32>, vector<12x16xf32>, vector<12x16xf32> -> vector<12x16xf32>
    %793 = tpu.concatenate %775, %792 in 0 : vector<12x16xf32>, vector<12x16xf32> -> vector<24x16xf32>
    %794 = vector.extract_strided_slice %757 {offsets = [0, 0], sizes = [16, 32], strides = [1, 1]} : vector<32x32xf32> to vector<16x32xf32>
    %cst_255 = arith.constant dense<0.000000e+00> : vector<24x32xf32>
    %795 = tpu.matmul %793, %794, %cst_255 {dimension_numbers = #tpu.dot_dimension_numbers<[1], [0], [0], [1], [0, 0, 1, 1], [], []>} : vector<24x16xf32>, vector<16x32xf32>, vector<24x32xf32> -> vector<24x32xf32>
    %796 = vector.extract_strided_slice %749 {offsets = [0, 16], sizes = [12, 16], strides = [1, 1]} : vector<24x32xf32> to vector<12x16xf32>
    %797 = vector.extract_strided_slice %755 {offsets = [0, 16], sizes = [12, 16], strides = [1, 1]} : vector<24x32xf32> to vector<12x16xf32>
    %798 = vector.extract_strided_slice %756 {offsets = [0, 16], sizes = [12, 16], strides = [1, 1]} : vector<24x32xf32> to vector<12x16xf32>
    "tpu.trace_start"() <{level = 10 : i32, message = "xd,yd->xy"}> : () -> ()
    %cst_256 = arith.constant dense<0.000000e+00> : vector<12x12xf32>
    %799 = tpu.matmul %796, %797, %cst_256 {dimension_numbers = #tpu.dot_dimension_numbers<[1], [1], [0], [0], [0, 0, 1, 0], [], []>} : vector<12x16xf32>, vector<12x16xf32>, vector<12x12xf32> -> vector<12x12xf32>
    "tpu.trace_stop"() : () -> ()
    %cst_257 = arith.constant 2.500000e-01 : f32
    %800 = vector.broadcast %cst_257 : f32 to vector<12x12xf32>
    %801 = arith.mulf %799, %800 : vector<12x12xf32>
    %cst_258 = arith.constant dense<0xFF800000> : vector<12xf32>
    %802 = vector.multi_reduction <maximumf>, %801, %cst_258 [1] : vector<12x12xf32> to vector<12xf32>
    %803 = vector.shape_cast %802 : vector<12xf32> to vector<12x1xf32>
    %804 = vector.broadcast %803 : vector<12x1xf32> to vector<12x12xf32>
    %805 = arith.subf %801, %804 : vector<12x12xf32>
    %806 = math.exp %805 : vector<12x12xf32>
    %cst_259 = arith.constant dense<0.000000e+00> : vector<12xf32>
    %807 = vector.multi_reduction <add>, %806, %cst_259 [1] : vector<12x12xf32> to vector<12xf32>
    %808 = vector.shape_cast %807 : vector<12xf32> to vector<12x1xf32>
    %809 = tpu.reciprocal %808 {approx = true} : vector<12x1xf32> -> vector<12x1xf32>
    %810 = vector.broadcast %809 : vector<12x1xf32> to vector<12x12xf32>
    %811 = arith.mulf %806, %810 : vector<12x12xf32>
    %cst_260 = arith.constant dense<0.000000e+00> : vector<12x16xf32>
    %812 = tpu.matmul %811, %798, %cst_260 {dimension_numbers = #tpu.dot_dimension_numbers<[1], [0], [0], [1], [0, 0, 1, 1], [], []>} : vector<12x12xf32>, vector<12x16xf32>, vector<12x16xf32> -> vector<12x16xf32>
    %813 = vector.extract_strided_slice %749 {offsets = [12, 16], sizes = [12, 16], strides = [1, 1]} : vector<24x32xf32> to vector<12x16xf32>
    %814 = vector.extract_strided_slice %755 {offsets = [12, 16], sizes = [12, 16], strides = [1, 1]} : vector<24x32xf32> to vector<12x16xf32>
    %815 = vector.extract_strided_slice %756 {offsets = [12, 16], sizes = [12, 16], strides = [1, 1]} : vector<24x32xf32> to vector<12x16xf32>
    "tpu.trace_start"() <{level = 10 : i32, message = "xd,yd->xy"}> : () -> ()
    %cst_261 = arith.constant dense<0.000000e+00> : vector<12x12xf32>
    %816 = tpu.matmul %813, %814, %cst_261 {dimension_numbers = #tpu.dot_dimension_numbers<[1], [1], [0], [0], [0, 0, 1, 0], [], []>} : vector<12x16xf32>, vector<12x16xf32>, vector<12x12xf32> -> vector<12x12xf32>
    "tpu.trace_stop"() : () -> ()
    %cst_262 = arith.constant 2.500000e-01 : f32
    %817 = vector.broadcast %cst_262 : f32 to vector<12x12xf32>
    %818 = arith.mulf %816, %817 : vector<12x12xf32>
    %cst_263 = arith.constant dense<0xFF800000> : vector<12xf32>
    %819 = vector.multi_reduction <maximumf>, %818, %cst_263 [1] : vector<12x12xf32> to vector<12xf32>
    %820 = vector.shape_cast %819 : vector<12xf32> to vector<12x1xf32>
    %821 = vector.broadcast %820 : vector<12x1xf32> to vector<12x12xf32>
    %822 = arith.subf %818, %821 : vector<12x12xf32>
    %823 = math.exp %822 : vector<12x12xf32>
    %cst_264 = arith.constant dense<0.000000e+00> : vector<12xf32>
    %824 = vector.multi_reduction <add>, %823, %cst_264 [1] : vector<12x12xf32> to vector<12xf32>
    %825 = vector.shape_cast %824 : vector<12xf32> to vector<12x1xf32>
    %826 = tpu.reciprocal %825 {approx = true} : vector<12x1xf32> -> vector<12x1xf32>
    %827 = vector.broadcast %826 : vector<12x1xf32> to vector<12x12xf32>
    %828 = arith.mulf %823, %827 : vector<12x12xf32>
    %cst_265 = arith.constant dense<0.000000e+00> : vector<12x16xf32>
    %829 = tpu.matmul %828, %815, %cst_265 {dimension_numbers = #tpu.dot_dimension_numbers<[1], [0], [0], [1], [0, 0, 1, 1], [], []>} : vector<12x12xf32>, vector<12x16xf32>, vector<12x16xf32> -> vector<12x16xf32>
    %830 = tpu.concatenate %812, %829 in 0 : vector<12x16xf32>, vector<12x16xf32> -> vector<24x16xf32>
    %831 = vector.extract_strided_slice %757 {offsets = [16, 0], sizes = [16, 32], strides = [1, 1]} : vector<32x32xf32> to vector<16x32xf32>
    %cst_266 = arith.constant dense<0.000000e+00> : vector<24x32xf32>
    %832 = tpu.matmul %830, %831, %cst_266 {dimension_numbers = #tpu.dot_dimension_numbers<[1], [0], [0], [1], [0, 0, 1, 1], [], []>} : vector<24x16xf32>, vector<16x32xf32>, vector<24x32xf32> -> vector<24x32xf32>
    %833 = arith.addf %795, %832 : vector<24x32xf32>
    %834 = vector.broadcast %758 : vector<1x32xf32> to vector<24x32xf32>
    %835 = arith.addf %833, %834 : vector<24x32xf32>
    %836 = arith.addf %719, %835 : vector<24x32xf32>
    %c1048 = arith.constant 1048 : index
    %c0_267 = arith.constant 0 : index
    %837 = vector.load %arg2[%c1048, %c0_267] : memref<1896x128xf32, #tpu.memory_space<vmem>>, vector<1x32xf32>
    %c1056 = arith.constant 1056 : index
    %c0_268 = arith.constant 0 : index
    %838 = vector.load %arg2[%c1056, %c0_268] : memref<1896x128xf32, #tpu.memory_space<vmem>>, vector<1x32xf32>
    %cst_269 = arith.constant dense<0.000000e+00> : vector<24xf32>
    %839 = vector.multi_reduction <add>, %836, %cst_269 [1] : vector<24x32xf32> to vector<24xf32>
    %840 = vector.shape_cast %839 : vector<24xf32> to vector<24x1xf32>
    %cst_270 = arith.constant 3.200000e+01 : f32
    %841 = vector.broadcast %cst_270 : f32 to vector<24x1xf32>
    %842 = arith.divf %840, %841 : vector<24x1xf32>
    %843 = vector.broadcast %842 : vector<24x1xf32> to vector<24x32xf32>
    %844 = arith.subf %836, %843 : vector<24x32xf32>
    %845 = arith.mulf %844, %844 : vector<24x32xf32>
    %cst_271 = arith.constant dense<0.000000e+00> : vector<24xf32>
    %846 = vector.multi_reduction <add>, %845, %cst_271 [1] : vector<24x32xf32> to vector<24xf32>
    %847 = vector.shape_cast %846 : vector<24xf32> to vector<24x1xf32>
    %cst_272 = arith.constant 3.100000e+01 : f32
    %848 = vector.broadcast %cst_272 : f32 to vector<24x1xf32>
    %849 = arith.divf %847, %848 : vector<24x1xf32>
    %850 = math.sqrt %849 : vector<24x1xf32>
    %cst_273 = arith.constant 9.99999997E-7 : f32
    %851 = vector.broadcast %cst_273 : f32 to vector<24x1xf32>
    %852 = arith.addf %850, %851 : vector<24x1xf32>
    %853 = tpu.reciprocal %852 {approx = true} : vector<24x1xf32> -> vector<24x1xf32>
    %854 = vector.broadcast %842 : vector<24x1xf32> to vector<24x32xf32>
    %855 = arith.subf %836, %854 : vector<24x32xf32>
    %856 = vector.broadcast %837 : vector<1x32xf32> to vector<24x32xf32>
    %857 = arith.mulf %856, %855 : vector<24x32xf32>
    %858 = vector.broadcast %853 : vector<24x1xf32> to vector<24x32xf32>
    %859 = arith.mulf %857, %858 : vector<24x32xf32>
    %860 = vector.broadcast %838 : vector<1x32xf32> to vector<24x32xf32>
    %861 = arith.addf %859, %860 : vector<24x32xf32>
    %c1064 = arith.constant 1064 : index
    %c0_274 = arith.constant 0 : index
    %862 = vector.load %arg2[%c1064, %c0_274] : memref<1896x128xf32, #tpu.memory_space<vmem>>, vector<32x32xf32>
    %cst_275 = arith.constant dense<0.000000e+00> : vector<24x32xf32>
    %863 = tpu.matmul %861, %862, %cst_275 {dimension_numbers = #tpu.dot_dimension_numbers<[1], [0], [0], [1], [0, 0, 1, 1], [], []>} : vector<24x32xf32>, vector<32x32xf32>, vector<24x32xf32> -> vector<24x32xf32>
    %c1096 = arith.constant 1096 : index
    %c0_276 = arith.constant 0 : index
    %864 = vector.load %arg2[%c1096, %c0_276] : memref<1896x128xf32, #tpu.memory_space<vmem>>, vector<1x32xf32>
    %865 = vector.broadcast %864 : vector<1x32xf32> to vector<24x32xf32>
    %866 = arith.addf %863, %865 : vector<24x32xf32>
    %cst_277 = arith.constant 0.000000e+00 : f32
    %867 = vector.broadcast %cst_277 : f32 to vector<24x32xf32>
    %868 = arith.maximumf %866, %867 : vector<24x32xf32>
    %c1104 = arith.constant 1104 : index
    %c0_278 = arith.constant 0 : index
    %869 = vector.load %arg2[%c1104, %c0_278] : memref<1896x128xf32, #tpu.memory_space<vmem>>, vector<32x32xf32>
    %cst_279 = arith.constant dense<0.000000e+00> : vector<24x32xf32>
    %870 = tpu.matmul %868, %869, %cst_279 {dimension_numbers = #tpu.dot_dimension_numbers<[1], [0], [0], [1], [0, 0, 1, 1], [], []>} : vector<24x32xf32>, vector<32x32xf32>, vector<24x32xf32> -> vector<24x32xf32>
    %871 = arith.addf %836, %870 : vector<24x32xf32>
    %c1136 = arith.constant 1136 : index
    %c0_280 = arith.constant 0 : index
    %872 = vector.load %arg2[%c1136, %c0_280] : memref<1896x128xf32, #tpu.memory_space<vmem>>, vector<1x32xf32>
    %873 = vector.broadcast %872 : vector<1x32xf32> to vector<24x32xf32>
    %874 = arith.addf %871, %873 : vector<24x32xf32>
    %c1144 = arith.constant 1144 : index
    %c0_281 = arith.constant 0 : index
    %875 = vector.load %arg2[%c1144, %c0_281] : memref<1896x128xf32, #tpu.memory_space<vmem>>, vector<1x32xf32>
    %c1152 = arith.constant 1152 : index
    %c0_282 = arith.constant 0 : index
    %876 = vector.load %arg2[%c1152, %c0_282] : memref<1896x128xf32, #tpu.memory_space<vmem>>, vector<1x32xf32>
    %cst_283 = arith.constant dense<0.000000e+00> : vector<24xf32>
    %877 = vector.multi_reduction <add>, %874, %cst_283 [1] : vector<24x32xf32> to vector<24xf32>
    %878 = vector.shape_cast %877 : vector<24xf32> to vector<24x1xf32>
    %cst_284 = arith.constant 3.200000e+01 : f32
    %879 = vector.broadcast %cst_284 : f32 to vector<24x1xf32>
    %880 = arith.divf %878, %879 : vector<24x1xf32>
    %881 = vector.broadcast %880 : vector<24x1xf32> to vector<24x32xf32>
    %882 = arith.subf %874, %881 : vector<24x32xf32>
    %883 = arith.mulf %882, %882 : vector<24x32xf32>
    %cst_285 = arith.constant dense<0.000000e+00> : vector<24xf32>
    %884 = vector.multi_reduction <add>, %883, %cst_285 [1] : vector<24x32xf32> to vector<24xf32>
    %885 = vector.shape_cast %884 : vector<24xf32> to vector<24x1xf32>
    %cst_286 = arith.constant 3.100000e+01 : f32
    %886 = vector.broadcast %cst_286 : f32 to vector<24x1xf32>
    %887 = arith.divf %885, %886 : vector<24x1xf32>
    %888 = math.sqrt %887 : vector<24x1xf32>
    %cst_287 = arith.constant 9.99999997E-7 : f32
    %889 = vector.broadcast %cst_287 : f32 to vector<24x1xf32>
    %890 = arith.addf %888, %889 : vector<24x1xf32>
    %891 = tpu.reciprocal %890 {approx = true} : vector<24x1xf32> -> vector<24x1xf32>
    %892 = vector.broadcast %880 : vector<24x1xf32> to vector<24x32xf32>
    %893 = arith.subf %874, %892 : vector<24x32xf32>
    %894 = vector.broadcast %875 : vector<1x32xf32> to vector<24x32xf32>
    %895 = arith.mulf %894, %893 : vector<24x32xf32>
    %896 = vector.broadcast %891 : vector<24x1xf32> to vector<24x32xf32>
    %897 = arith.mulf %895, %896 : vector<24x32xf32>
    %898 = vector.broadcast %876 : vector<1x32xf32> to vector<24x32xf32>
    %899 = arith.addf %897, %898 : vector<24x32xf32>
    %c48 = arith.constant 48 : index
    %c0_288 = arith.constant 0 : index
    %900 = vector.load %arg2[%c48, %c0_288] : memref<1896x128xf32, #tpu.memory_space<vmem>>, vector<32x16xf32>
    %cst_289 = arith.constant dense<0.000000e+00> : vector<24x16xf32>
    %901 = tpu.matmul %899, %900, %cst_289 {dimension_numbers = #tpu.dot_dimension_numbers<[1], [0], [0], [1], [0, 0, 1, 1], [], []>} : vector<24x32xf32>, vector<32x16xf32>, vector<24x16xf32> -> vector<24x16xf32>
    %c80 = arith.constant 80 : index
    %c0_290 = arith.constant 0 : index
    %902 = vector.load %arg2[%c80, %c0_290] : memref<1896x128xf32, #tpu.memory_space<vmem>>, vector<1x16xf32>
    %903 = vector.broadcast %902 : vector<1x16xf32> to vector<24x16xf32>
    %904 = arith.addf %901, %903 : vector<24x16xf32>
    %c1160 = arith.constant 1160 : index
    %c0_291 = arith.constant 0 : index
    %905 = vector.load %arg2[%c1160, %c0_291] : memref<1896x128xf32, #tpu.memory_space<vmem>>, vector<48x16xf32>
    %c1208 = arith.constant 1208 : index
    %c0_292 = arith.constant 0 : index
    %906 = vector.load %arg2[%c1208, %c0_292] : memref<1896x128xf32, #tpu.memory_space<vmem>>, vector<1x16xf32>
    %c1216 = arith.constant 1216 : index
    %c0_293 = arith.constant 0 : index
    %907 = vector.load %arg2[%c1216, %c0_293] : memref<1896x128xf32, #tpu.memory_space<vmem>>, vector<48x16xf32>
    %c1264 = arith.constant 1264 : index
    %c0_294 = arith.constant 0 : index
    %908 = vector.load %arg2[%c1264, %c0_294] : memref<1896x128xf32, #tpu.memory_space<vmem>>, vector<1x16xf32>
    %c1272 = arith.constant 1272 : index
    %c0_295 = arith.constant 0 : index
    %909 = vector.load %arg2[%c1272, %c0_295] : memref<1896x128xf32, #tpu.memory_space<vmem>>, vector<4x10xf32>
    %c1296 = arith.constant 1296 : index
    %c0_296 = arith.constant 0 : index
    %910 = vector.load %arg2[%c1296, %c0_296] : memref<1896x128xf32, #tpu.memory_space<vmem>>, vector<32x32xf32>
    %911 = vector.extract_strided_slice %904 {offsets = [0, 0], sizes = [12, 16], strides = [1, 1]} : vector<24x16xf32> to vector<12x16xf32>
    %912 = vector.extract_strided_slice %911 {offsets = [0, 0], sizes = [10, 16], strides = [1, 1]} : vector<12x16xf32> to vector<10x16xf32>
    %913 = vector.extract_strided_slice %911 {offsets = [1, 0], sizes = [10, 16], strides = [1, 1]} : vector<12x16xf32> to vector<10x16xf32>
    %914 = vector.extract_strided_slice %911 {offsets = [2, 0], sizes = [10, 16], strides = [1, 1]} : vector<12x16xf32> to vector<10x16xf32>
    %915 = tpu.concatenate %912, %913, %914 in 1 : vector<10x16xf32>, vector<10x16xf32>, vector<10x16xf32> -> vector<10x48xf32>
    %cst_297 = arith.constant dense<0.000000e+00> : vector<10x16xf32>
    %916 = tpu.matmul %915, %905, %cst_297 {dimension_numbers = #tpu.dot_dimension_numbers<[1], [0], [0], [1], [0, 0, 1, 1], [], []>} : vector<10x48xf32>, vector<48x16xf32>, vector<10x16xf32> -> vector<10x16xf32>
    %917 = vector.broadcast %906 : vector<1x16xf32> to vector<10x16xf32>
    %918 = arith.addf %916, %917 : vector<10x16xf32>
    %cst_298 = arith.constant 0.000000e+00 : f32
    %919 = vector.broadcast %cst_298 : f32 to vector<10x16xf32>
    %920 = arith.maximumf %918, %919 : vector<10x16xf32>
    %cst_299 = arith.constant 0.000000e+00 : f32
    %921 = vector.broadcast %cst_299 : f32 to vector<1x16xf32>
    %922 = tpu.concatenate %921, %920, %921 in 0 : vector<1x16xf32>, vector<10x16xf32>, vector<1x16xf32> -> vector<12x16xf32>
    %923 = vector.extract_strided_slice %922 {offsets = [0, 0], sizes = [10, 16], strides = [1, 1]} : vector<12x16xf32> to vector<10x16xf32>
    %924 = vector.extract_strided_slice %922 {offsets = [1, 0], sizes = [10, 16], strides = [1, 1]} : vector<12x16xf32> to vector<10x16xf32>
    %925 = vector.extract_strided_slice %922 {offsets = [2, 0], sizes = [10, 16], strides = [1, 1]} : vector<12x16xf32> to vector<10x16xf32>
    %926 = tpu.concatenate %923, %924, %925 in 1 : vector<10x16xf32>, vector<10x16xf32>, vector<10x16xf32> -> vector<10x48xf32>
    %cst_300 = arith.constant dense<0.000000e+00> : vector<10x16xf32>
    %927 = tpu.matmul %926, %907, %cst_300 {dimension_numbers = #tpu.dot_dimension_numbers<[1], [0], [0], [1], [0, 0, 1, 1], [], []>} : vector<10x48xf32>, vector<48x16xf32>, vector<10x16xf32> -> vector<10x16xf32>
    %928 = arith.addf %920, %927 : vector<10x16xf32>
    %929 = vector.broadcast %908 : vector<1x16xf32> to vector<10x16xf32>
    %930 = arith.addf %928, %929 : vector<10x16xf32>
    %c0_301 = arith.constant 0 : index
    %c0_302 = arith.constant 0 : index
    %c0_303 = arith.constant 0 : index
    %931 = vector.load %arg1[%c0_301, %c0_302, %c0_303] : memref<2x14x16xf32, #tpu.memory_space<vmem>>, vector<1x12x16xf32>
    %932 = vector.shape_cast %931 : vector<1x12x16xf32> to vector<12x16xf32>
    %933 = vector.extract_strided_slice %932 {offsets = [8, 0], sizes = [4, 16], strides = [1, 1]} : vector<12x16xf32> to vector<4x16xf32>
    %934 = vector.extract_strided_slice %932 {offsets = [11, 0], sizes = [1, 16], strides = [1, 1]} : vector<12x16xf32> to vector<1x16xf32>
    %935 = vector.shape_cast %934 : vector<1x16xf32> to vector<1x16xf32>
    %936 = vector.broadcast %935 : vector<1x16xf32> to vector<6x16xf32>
    %937 = tpu.concatenate %933, %936 in 0 : vector<4x16xf32>, vector<6x16xf32> -> vector<10x16xf32>
    %938 = arith.addf %930, %937 : vector<10x16xf32>
    %939 = tpu.concatenate %937, %938 in 1 : vector<10x16xf32>, vector<10x16xf32> -> vector<10x32xf32>
    %cst_304 = arith.constant dense<0.000000e+00> : vector<4x32xf32>
    %940 = tpu.matmul %909, %939, %cst_304 {dimension_numbers = #tpu.dot_dimension_numbers<[1], [0], [0], [1], [0, 0, 1, 1], [], []>} : vector<4x10xf32>, vector<10x32xf32>, vector<4x32xf32> -> vector<4x32xf32>
    "tpu.trace_start"() <{level = 10 : i32, message = "xd,yd->xy"}> : () -> ()
    %cst_305 = arith.constant dense<0.000000e+00> : vector<32x4xf32>
    %941 = tpu.matmul %910, %940, %cst_305 {dimension_numbers = #tpu.dot_dimension_numbers<[1], [1], [0], [0], [0, 0, 1, 0], [], []>} : vector<32x32xf32>, vector<4x32xf32>, vector<32x4xf32> -> vector<32x4xf32>
    "tpu.trace_stop"() : () -> ()
    %942 = vector.extract_strided_slice %941 {offsets = [0, 0], sizes = [16, 4], strides = [1, 1]} : vector<32x4xf32> to vector<16x4xf32>
    %943 = vector.extract_strided_slice %941 {offsets = [16, 0], sizes = [16, 4], strides = [1, 1]} : vector<32x4xf32> to vector<16x4xf32>
    %944 = tpu.concatenate %942, %943 in 1 : vector<16x4xf32>, vector<16x4xf32> -> vector<16x8xf32>
    %945 = vector.extract_strided_slice %904 {offsets = [12, 0], sizes = [12, 16], strides = [1, 1]} : vector<24x16xf32> to vector<12x16xf32>
    %946 = vector.extract_strided_slice %945 {offsets = [0, 0], sizes = [10, 16], strides = [1, 1]} : vector<12x16xf32> to vector<10x16xf32>
    %947 = vector.extract_strided_slice %945 {offsets = [1, 0], sizes = [10, 16], strides = [1, 1]} : vector<12x16xf32> to vector<10x16xf32>
    %948 = vector.extract_strided_slice %945 {offsets = [2, 0], sizes = [10, 16], strides = [1, 1]} : vector<12x16xf32> to vector<10x16xf32>
    %949 = tpu.concatenate %946, %947, %948 in 1 : vector<10x16xf32>, vector<10x16xf32>, vector<10x16xf32> -> vector<10x48xf32>
    %cst_306 = arith.constant dense<0.000000e+00> : vector<10x16xf32>
    %950 = tpu.matmul %949, %905, %cst_306 {dimension_numbers = #tpu.dot_dimension_numbers<[1], [0], [0], [1], [0, 0, 1, 1], [], []>} : vector<10x48xf32>, vector<48x16xf32>, vector<10x16xf32> -> vector<10x16xf32>
    %951 = vector.broadcast %906 : vector<1x16xf32> to vector<10x16xf32>
    %952 = arith.addf %950, %951 : vector<10x16xf32>
    %cst_307 = arith.constant 0.000000e+00 : f32
    %953 = vector.broadcast %cst_307 : f32 to vector<10x16xf32>
    %954 = arith.maximumf %952, %953 : vector<10x16xf32>
    %cst_308 = arith.constant 0.000000e+00 : f32
    %955 = vector.broadcast %cst_308 : f32 to vector<1x16xf32>
    %956 = tpu.concatenate %955, %954, %955 in 0 : vector<1x16xf32>, vector<10x16xf32>, vector<1x16xf32> -> vector<12x16xf32>
    %957 = vector.extract_strided_slice %956 {offsets = [0, 0], sizes = [10, 16], strides = [1, 1]} : vector<12x16xf32> to vector<10x16xf32>
    %958 = vector.extract_strided_slice %956 {offsets = [1, 0], sizes = [10, 16], strides = [1, 1]} : vector<12x16xf32> to vector<10x16xf32>
    %959 = vector.extract_strided_slice %956 {offsets = [2, 0], sizes = [10, 16], strides = [1, 1]} : vector<12x16xf32> to vector<10x16xf32>
    %960 = tpu.concatenate %957, %958, %959 in 1 : vector<10x16xf32>, vector<10x16xf32>, vector<10x16xf32> -> vector<10x48xf32>
    %cst_309 = arith.constant dense<0.000000e+00> : vector<10x16xf32>
    %961 = tpu.matmul %960, %907, %cst_309 {dimension_numbers = #tpu.dot_dimension_numbers<[1], [0], [0], [1], [0, 0, 1, 1], [], []>} : vector<10x48xf32>, vector<48x16xf32>, vector<10x16xf32> -> vector<10x16xf32>
    %962 = arith.addf %954, %961 : vector<10x16xf32>
    %963 = vector.broadcast %908 : vector<1x16xf32> to vector<10x16xf32>
    %964 = arith.addf %962, %963 : vector<10x16xf32>
    %c1_310 = arith.constant 1 : index
    %c0_311 = arith.constant 0 : index
    %c0_312 = arith.constant 0 : index
    %965 = vector.load %arg1[%c1_310, %c0_311, %c0_312] : memref<2x14x16xf32, #tpu.memory_space<vmem>>, vector<1x12x16xf32>
    %966 = vector.shape_cast %965 : vector<1x12x16xf32> to vector<12x16xf32>
    %967 = vector.extract_strided_slice %966 {offsets = [8, 0], sizes = [4, 16], strides = [1, 1]} : vector<12x16xf32> to vector<4x16xf32>
    %968 = vector.extract_strided_slice %966 {offsets = [11, 0], sizes = [1, 16], strides = [1, 1]} : vector<12x16xf32> to vector<1x16xf32>
    %969 = vector.shape_cast %968 : vector<1x16xf32> to vector<1x16xf32>
    %970 = vector.broadcast %969 : vector<1x16xf32> to vector<6x16xf32>
    %971 = tpu.concatenate %967, %970 in 0 : vector<4x16xf32>, vector<6x16xf32> -> vector<10x16xf32>
    %972 = arith.addf %964, %971 : vector<10x16xf32>
    %973 = tpu.concatenate %971, %972 in 1 : vector<10x16xf32>, vector<10x16xf32> -> vector<10x32xf32>
    %cst_313 = arith.constant dense<0.000000e+00> : vector<4x32xf32>
    %974 = tpu.matmul %909, %973, %cst_313 {dimension_numbers = #tpu.dot_dimension_numbers<[1], [0], [0], [1], [0, 0, 1, 1], [], []>} : vector<4x10xf32>, vector<10x32xf32>, vector<4x32xf32> -> vector<4x32xf32>
    "tpu.trace_start"() <{level = 10 : i32, message = "xd,yd->xy"}> : () -> ()
    %cst_314 = arith.constant dense<0.000000e+00> : vector<32x4xf32>
    %975 = tpu.matmul %910, %974, %cst_314 {dimension_numbers = #tpu.dot_dimension_numbers<[1], [1], [0], [0], [0, 0, 1, 0], [], []>} : vector<32x32xf32>, vector<4x32xf32>, vector<32x4xf32> -> vector<32x4xf32>
    "tpu.trace_stop"() : () -> ()
    %976 = vector.extract_strided_slice %975 {offsets = [0, 0], sizes = [16, 4], strides = [1, 1]} : vector<32x4xf32> to vector<16x4xf32>
    %977 = vector.extract_strided_slice %975 {offsets = [16, 0], sizes = [16, 4], strides = [1, 1]} : vector<32x4xf32> to vector<16x4xf32>
    %978 = tpu.concatenate %976, %977 in 1 : vector<16x4xf32>, vector<16x4xf32> -> vector<16x8xf32>
    %979 = tpu.concatenate %944, %978 in 0 : vector<16x8xf32>, vector<16x8xf32> -> vector<32x8xf32>
    %c1328 = arith.constant 1328 : index
    %c0_315 = arith.constant 0 : index
    %980 = vector.load %arg2[%c1328, %c0_315] : memref<1896x128xf32, #tpu.memory_space<vmem>>, vector<8x64xf32>
    %cst_316 = arith.constant dense<0.000000e+00> : vector<32x64xf32>
    %981 = tpu.matmul %979, %980, %cst_316 {dimension_numbers = #tpu.dot_dimension_numbers<[1], [0], [0], [1], [0, 0, 1, 1], [], []>} : vector<32x8xf32>, vector<8x64xf32>, vector<32x64xf32> -> vector<32x64xf32>
    %c1336 = arith.constant 1336 : index
    %c0_317 = arith.constant 0 : index
    %982 = vector.load %arg2[%c1336, %c0_317] : memref<1896x128xf32, #tpu.memory_space<vmem>>, vector<32x32xf32>
    %cst_318 = arith.constant dense<0.000000e+00> : vector<32x64xf32>
    %983 = tpu.matmul %982, %981, %cst_318 {dimension_numbers = #tpu.dot_dimension_numbers<[1], [0], [0], [1], [0, 0, 1, 1], [], []>} : vector<32x32xf32>, vector<32x64xf32>, vector<32x64xf32> -> vector<32x64xf32>
    %c1368 = arith.constant 1368 : index
    %c0_319 = arith.constant 0 : index
    %984 = vector.load %arg2[%c1368, %c0_319] : memref<1896x128xf32, #tpu.memory_space<vmem>>, vector<1x64xf32>
    %985 = vector.broadcast %984 : vector<1x64xf32> to vector<32x64xf32>
    %986 = arith.addf %983, %985 : vector<32x64xf32>
    %987 = math.tanh %986 : vector<32x64xf32>
    %c1376 = arith.constant 1376 : index
    %c0_320 = arith.constant 0 : index
    %988 = vector.load %arg2[%c1376, %c0_320] : memref<1896x128xf32, #tpu.memory_space<vmem>>, vector<64x64xf32>
    %cst_321 = arith.constant dense<0.000000e+00> : vector<32x64xf32>
    %989 = tpu.matmul %987, %988, %cst_321 {dimension_numbers = #tpu.dot_dimension_numbers<[1], [0], [0], [1], [0, 0, 1, 1], [], []>} : vector<32x64xf32>, vector<64x64xf32>, vector<32x64xf32> -> vector<32x64xf32>
    %c1440 = arith.constant 1440 : index
    %c0_322 = arith.constant 0 : index
    %990 = vector.load %arg2[%c1440, %c0_322] : memref<1896x128xf32, #tpu.memory_space<vmem>>, vector<32x32xf32>
    %cst_323 = arith.constant dense<0.000000e+00> : vector<32x64xf32>
    %991 = tpu.matmul %990, %989, %cst_323 {dimension_numbers = #tpu.dot_dimension_numbers<[1], [0], [0], [1], [0, 0, 1, 1], [], []>} : vector<32x32xf32>, vector<32x64xf32>, vector<32x64xf32> -> vector<32x64xf32>
    %c1472 = arith.constant 1472 : index
    %c0_324 = arith.constant 0 : index
    %992 = vector.load %arg2[%c1472, %c0_324] : memref<1896x128xf32, #tpu.memory_space<vmem>>, vector<1x64xf32>
    %993 = vector.broadcast %992 : vector<1x64xf32> to vector<32x64xf32>
    %994 = arith.addf %991, %993 : vector<32x64xf32>
    %995 = math.tanh %994 : vector<32x64xf32>
    %c1480 = arith.constant 1480 : index
    %c0_325 = arith.constant 0 : index
    %996 = vector.load %arg2[%c1480, %c0_325] : memref<1896x128xf32, #tpu.memory_space<vmem>>, vector<64x64xf32>
    %cst_326 = arith.constant dense<0.000000e+00> : vector<32x64xf32>
    %997 = tpu.matmul %995, %996, %cst_326 {dimension_numbers = #tpu.dot_dimension_numbers<[1], [0], [0], [1], [0, 0, 1, 1], [], []>} : vector<32x64xf32>, vector<64x64xf32>, vector<32x64xf32> -> vector<32x64xf32>
    %c1544 = arith.constant 1544 : index
    %c0_327 = arith.constant 0 : index
    %998 = vector.load %arg2[%c1544, %c0_327] : memref<1896x128xf32, #tpu.memory_space<vmem>>, vector<32x32xf32>
    %cst_328 = arith.constant dense<0.000000e+00> : vector<32x64xf32>
    %999 = tpu.matmul %998, %997, %cst_328 {dimension_numbers = #tpu.dot_dimension_numbers<[1], [0], [0], [1], [0, 0, 1, 1], [], []>} : vector<32x32xf32>, vector<32x64xf32>, vector<32x64xf32> -> vector<32x64xf32>
    %c1576 = arith.constant 1576 : index
    %c0_329 = arith.constant 0 : index
    %1000 = vector.load %arg2[%c1576, %c0_329] : memref<1896x128xf32, #tpu.memory_space<vmem>>, vector<1x64xf32>
    %1001 = vector.broadcast %1000 : vector<1x64xf32> to vector<32x64xf32>
    %1002 = arith.addf %999, %1001 : vector<32x64xf32>
    %1003 = math.tanh %1002 : vector<32x64xf32>
    %1004 = arith.addf %1003, %987 : vector<32x64xf32>
    %c1584 = arith.constant 1584 : index
    %c0_330 = arith.constant 0 : index
    %1005 = vector.load %arg2[%c1584, %c0_330] : memref<1896x128xf32, #tpu.memory_space<vmem>>, vector<64x64xf32>
    %cst_331 = arith.constant dense<0.000000e+00> : vector<32x64xf32>
    %1006 = tpu.matmul %1004, %1005, %cst_331 {dimension_numbers = #tpu.dot_dimension_numbers<[1], [0], [0], [1], [0, 0, 1, 1], [], []>} : vector<32x64xf32>, vector<64x64xf32>, vector<32x64xf32> -> vector<32x64xf32>
    %c1648 = arith.constant 1648 : index
    %c0_332 = arith.constant 0 : index
    %1007 = vector.load %arg2[%c1648, %c0_332] : memref<1896x128xf32, #tpu.memory_space<vmem>>, vector<32x32xf32>
    %cst_333 = arith.constant dense<0.000000e+00> : vector<32x64xf32>
    %1008 = tpu.matmul %1007, %1006, %cst_333 {dimension_numbers = #tpu.dot_dimension_numbers<[1], [0], [0], [1], [0, 0, 1, 1], [], []>} : vector<32x32xf32>, vector<32x64xf32>, vector<32x64xf32> -> vector<32x64xf32>
    %c1680 = arith.constant 1680 : index
    %c0_334 = arith.constant 0 : index
    %1009 = vector.load %arg2[%c1680, %c0_334] : memref<1896x128xf32, #tpu.memory_space<vmem>>, vector<1x64xf32>
    %1010 = vector.broadcast %1009 : vector<1x64xf32> to vector<32x64xf32>
    %1011 = arith.addf %1008, %1010 : vector<32x64xf32>
    %1012 = math.tanh %1011 : vector<32x64xf32>
    %c1688 = arith.constant 1688 : index
    %c0_335 = arith.constant 0 : index
    %1013 = vector.load %arg2[%c1688, %c0_335] : memref<1896x128xf32, #tpu.memory_space<vmem>>, vector<64x64xf32>
    %cst_336 = arith.constant dense<0.000000e+00> : vector<32x64xf32>
    %1014 = tpu.matmul %1012, %1013, %cst_336 {dimension_numbers = #tpu.dot_dimension_numbers<[1], [0], [0], [1], [0, 0, 1, 1], [], []>} : vector<32x64xf32>, vector<64x64xf32>, vector<32x64xf32> -> vector<32x64xf32>
    %c1752 = arith.constant 1752 : index
    %c0_337 = arith.constant 0 : index
    %1015 = vector.load %arg2[%c1752, %c0_337] : memref<1896x128xf32, #tpu.memory_space<vmem>>, vector<32x32xf32>
    %cst_338 = arith.constant dense<0.000000e+00> : vector<32x64xf32>
    %1016 = tpu.matmul %1015, %1014, %cst_338 {dimension_numbers = #tpu.dot_dimension_numbers<[1], [0], [0], [1], [0, 0, 1, 1], [], []>} : vector<32x32xf32>, vector<32x64xf32>, vector<32x64xf32> -> vector<32x64xf32>
    %c1784 = arith.constant 1784 : index
    %c0_339 = arith.constant 0 : index
    %1017 = vector.load %arg2[%c1784, %c0_339] : memref<1896x128xf32, #tpu.memory_space<vmem>>, vector<1x64xf32>
    %1018 = vector.broadcast %1017 : vector<1x64xf32> to vector<32x64xf32>
    %1019 = arith.addf %1016, %1018 : vector<32x64xf32>
    %1020 = math.tanh %1019 : vector<32x64xf32>
    %1021 = arith.addf %1020, %1004 : vector<32x64xf32>
    %c1792 = arith.constant 1792 : index
    %c0_340 = arith.constant 0 : index
    %1022 = vector.load %arg2[%c1792, %c0_340] : memref<1896x128xf32, #tpu.memory_space<vmem>>, vector<64x8xf32>
    %cst_341 = arith.constant dense<0.000000e+00> : vector<32x8xf32>
    %1023 = tpu.matmul %1021, %1022, %cst_341 {dimension_numbers = #tpu.dot_dimension_numbers<[1], [0], [0], [1], [0, 0, 1, 1], [], []>} : vector<32x64xf32>, vector<64x8xf32>, vector<32x8xf32> -> vector<32x8xf32>
    %c1856 = arith.constant 1856 : index
    %c0_342 = arith.constant 0 : index
    %1024 = vector.load %arg2[%c1856, %c0_342] : memref<1896x128xf32, #tpu.memory_space<vmem>>, vector<32x32xf32>
    %cst_343 = arith.constant dense<0.000000e+00> : vector<32x8xf32>
    %1025 = tpu.matmul %1024, %1023, %cst_343 {dimension_numbers = #tpu.dot_dimension_numbers<[1], [0], [0], [1], [0, 0, 1, 1], [], []>} : vector<32x32xf32>, vector<32x8xf32>, vector<32x8xf32> -> vector<32x8xf32>
    %c1888 = arith.constant 1888 : index
    %c0_344 = arith.constant 0 : index
    %1026 = vector.load %arg2[%c1888, %c0_344] : memref<1896x128xf32, #tpu.memory_space<vmem>>, vector<1x8xf32>
    %1027 = vector.broadcast %1026 : vector<1x8xf32> to vector<32x8xf32>
    %1028 = arith.addf %1025, %1027 : vector<32x8xf32>
    %1029 = arith.addf %1028, %979 : vector<32x8xf32>
    %c1280 = arith.constant 1280 : index
    %c0_345 = arith.constant 0 : index
    %1030 = vector.load %arg2[%c1280, %c0_345] : memref<1896x128xf32, #tpu.memory_space<vmem>>, vector<10x4xf32>
    %1031 = vector.extract_strided_slice %1029 {offsets = [0, 0], sizes = [16, 4], strides = [1, 1]} : vector<32x8xf32> to vector<16x4xf32>
    "tpu.trace_start"() <{level = 10 : i32, message = "xd,yd->xy"}> : () -> ()
    %cst_346 = arith.constant dense<0.000000e+00> : vector<10x16xf32>
    %1032 = tpu.matmul %1030, %1031, %cst_346 {dimension_numbers = #tpu.dot_dimension_numbers<[1], [1], [0], [0], [0, 0, 1, 0], [], []>} : vector<10x4xf32>, vector<16x4xf32>, vector<10x16xf32> -> vector<10x16xf32>
    "tpu.trace_stop"() : () -> ()
    %c0_347 = arith.constant 0 : index
    %c0_348 = arith.constant 0 : index
    %c0_349 = arith.constant 0 : index
    %1033 = vector.load %arg3[%c0_347, %c0_348, %c0_349] : memref<2x10x16xf32, #tpu.memory_space<vmem>>, vector<1x10x16xf32>
    %1034 = vector.shape_cast %1033 : vector<1x10x16xf32> to vector<10x16xf32>
    %1035 = vector.shape_cast %1032 : vector<10x16xf32> to vector<1x10x16xf32>
    tpu.vector_store %arg3[%c0_347, %c0_348, %c0_349], %1035 {strides = array<i32>} : memref<2x10x16xf32, #tpu.memory_space<vmem>>, vector<1x10x16xf32>,
    %1036 = vector.extract_strided_slice %1029 {offsets = [16, 0], sizes = [16, 4], strides = [1, 1]} : vector<32x8xf32> to vector<16x4xf32>
    "tpu.trace_start"() <{level = 10 : i32, message = "xd,yd->xy"}> : () -> ()
    %cst_350 = arith.constant dense<0.000000e+00> : vector<10x16xf32>
    %1037 = tpu.matmul %1030, %1036, %cst_350 {dimension_numbers = #tpu.dot_dimension_numbers<[1], [1], [0], [0], [0, 0, 1, 0], [], []>} : vector<10x4xf32>, vector<16x4xf32>, vector<10x16xf32> -> vector<10x16xf32>
    "tpu.trace_stop"() : () -> ()
    %c1_351 = arith.constant 1 : index
    %c0_352 = arith.constant 0 : index
    %c0_353 = arith.constant 0 : index
    %1038 = vector.load %arg3[%c1_351, %c0_352, %c0_353] : memref<2x10x16xf32, #tpu.memory_space<vmem>>, vector<1x10x16xf32>
    %1039 = vector.shape_cast %1038 : vector<1x10x16xf32> to vector<10x16xf32>
    %1040 = vector.shape_cast %1037 : vector<10x16xf32> to vector<1x10x16xf32>
    tpu.vector_store %arg3[%c1_351, %c0_352, %c0_353], %1040 {strides = array<i32>} : memref<2x10x16xf32, #tpu.memory_space<vmem>>, vector<1x10x16xf32>,
    return
  }
  func.func @transform_0(%arg0: i32) -> (i32, i32, i32) {
    %c0_i32 = arith.constant 0 : i32
    %c0_i32_0 = arith.constant 0 : i32
    %c0_i32_1 = arith.constant 0 : i32
    return %arg0, %c0_i32, %c0_i32_0 : i32, i32, i32
  }
  func.func @transform_1(%arg0: i32) -> (i32, i32) {
    %c0_i32 = arith.constant 0 : i32
    %c0_i32_0 = arith.constant 0 : i32
    %c0_i32_1 = arith.constant 0 : i32
    return %c0_i32, %c0_i32_0 : i32, i32
  }
  func.func @transform_2(%arg0: i32) -> (i32, i32, i32) {
    %c0_i32 = arith.constant 0 : i32
    %c0_i32_0 = arith.constant 0 : i32
    %c0_i32_1 = arith.constant 0 : i32
    return %arg0, %c0_i32, %c0_i32_0 : i32, i32, i32
  }
}

</mosaic_0001>

<bundles_post_ra>
// kernel: forward.1
= control target key start
LH: loop header
LB: loop body
LE: loop exit
PB: predicated region body
PF: predicated region fallthrough
CT: control target
= control target key end

     0   :  { %7 = vsyncpa [#allocation3], 0  ;;  %s14431_s9 = smov [#allocation2]   ;;  %s16262_s0 = inlined_call_operand.vmem [shape: f32[2,14,16], index: 0, kind: input, shape index: {}]   ;;  %s16263_s1 = inlined_call_operand.hbm [shape: f32[1896,128], index: 1, kind: input, shape index: {}]   ;;  %s16264_s2 = inlined_call_operand.vmem [shape: f32[2,10,16], index: 2, kind: output, shape index: {}]  }
   0x1   :  { %s15_s10 = sshll.u32 %s14431_s9, 4  ;;  %s14407_s13 = scalar_lea.hbm %s16263_s1, 30336  ;;  %s16_s10 = int_to_ptr.vmem [resolvable:$true] %s15_s10 }
   0x2   :  { %p14408_p0 = scmp.ne.s32.totalorder %s16263_s1, %s14407_s13  ;;  %p14411_p1 = scmp.lt.u32.totalorder %s14407_s13, %s16263_s1 }
   0x4   :  { %p14413_p2 = pnand %p14411_p1, %p14408_p0 }
   0x6   :  { %14416 = shalt.err (!%p14413_p2)
}
   0x7   :  { %s14417_s18 = scalar_lea.vmem %s16_s10, 30336  ;;  %p14422_p4 = scmp.lt.s32.totalorder %s16_s10, %s16_s10 }
   0x8   :  { %p14418_p3 = scmp.ne.s32.totalorder %s16_s10, %s14417_s18  ;;  %p14423_p5 = scmp.lt.s32.totalorder %s14417_s18, %s14417_s18 }
   0xa   :  { %p14424_p6 = por %p14423_p5, %p14422_p4 }
   0xc   :  { %p14425_p7 = pnand %p14424_p6, %p14418_p3 }
   0xe   :  { %14428 = shalt.err (!%p14425_p7)
}
   0xf   :  { %s14432_s19 = smov 128   ;;  %s14433_s20 = smov 8  }
  0x10   :  { %21 = dma.hbm_to_vmem [thread:$0]  %s16263_s1, 30336, %s16_s10, [#allocation3], %s14432_s19, %s14432_s19, %s14433_s20  }
  0x11   :  { %14429 = dma.done.wait [#allocation3], 30336  }
  0x12   :  { %14430 = vsyncadd [#allocation3], 4294936960  ;;  %v14434_v0 = vmov 0.0|0.0   ;;  %vm14435_vm0 = vmmov 0   ;;  %v14436_v1 = vmov 0.0   ;;  %v38_v2 = vld [vmem:[#allocation2 + $0x18] sm:$0xff] }
  0x13   :  { %13173 = vmatprep.subr.bf16.mxu0 %v14434_v0  ;;  %12077 = vmatprep.mubr.msk.f32.mxu0 %vm14435_vm0, %v14436_v1  ;;  %v39_v3 = vld [vmem:[#allocation2 + $0x20] sm:$0xff]  ;;  %v11131_v5 = vld [vmem:[%s16262_s0 + $0x10] sm:$0xff]  ;;  %vm45_vm1 = vcmask 130048   ;;  %v26_v8 = vld [vmem:[%s16262_s0 + $0x8] sm:$0xf]  ;;  %vm32_vm2 = vcmask 1043456  }
  0x14   :  { %13176 = vmatprep.subr.bf16.mxu1 %v14434_v0  ;;  %12094 = vmatprep.mubr.msk.f32.mxu1 %vm14435_vm0, %v14436_v1  ;;  %v13174_v4 = vpack.c.bf16 %v39_v3, %v38_v2  ;;  %v25_v6 = vld [vmem:[%s16262_s0] sm:$0xff]  ;;  %v33_v7 = vrot.slane %v11131_v5, 4  ;;  %v11132_v9 = vld [vmem:[%s16262_s0 + $0x18] sm:$0xf]  ;;  %v11133_v13 = vld [vmem:[#allocation2 + $0x28] ss:$0 sm:$0xff] }
  0x15   :  { %v34_v11 = vrot.slane %v11132_v9, 4  ;;  %v134_v15 = vld [vmem:[#allocation2] sm:$0xff]  ;;  %vm142_vm3 = vcmask 261120   ;;  %v135_v20 = vld [vmem:[#allocation2 + $0x8] sm:$0xff]  ;;  %v136_v26 = vld [vmem:[#allocation2 + $0x10] sm:$0xff]  ;;  %s14437_s30 = smov 96  }
  0x16   :  { %13175 = vmatpush3.bf16.msra.mxu0 %v13174_v4  ;;  %v37_v10 = vsel %vm32_vm2, %v26_v8, %v33_v7  ;;  %v219_v47 = vld [vmem:[#allocation2 + $0x68] sm:$0xff]  ;;  %v220_v48 = vld [vmem:[#allocation2 + $0x70] sm:$0xff]  ;;  %v221_v49 = vld [vmem:[#allocation2 + $0x78] sm:$0xff]  ;;  %s14438_s3 = smov 112   ;;  %s14439_s4 = smov 80   ;;  %vm417_vm11 = vcmask 93184  }
  0x17   :  { %v35_v12 = vsel %vm32_vm2, %v33_v7, %v34_v11  ;;  %v13177_v50 = vpack.c.bf16 %v220_v48, %v219_v47  ;;  %v222_v51 = vld [vmem:[#allocation2 + $0x80] sm:$0xff]  ;;  %vm14575_vm10 = vmpackc.low %vm45_vm1, %vm45_vm1  ;;  %vm413_vm12 = vcmask 97280   ;;  %s14440_s5 = smov 64   ;;  %vm14441_vm13 = vmmov 1   ;;  %s14442_s6 = smov 48  }
  0x18   :  { %v13180_v52 = vpack.c.bf16 %v222_v51, %v221_v49  ;;  %vm14608_vm14 = vmpackc.low %vm32_vm2, %vm14441_vm13  ;;  %s14443_s7 = smov 16   ;;  %s14444_s8 = smov 32  }
  0x19   :  { %12078 = vmatmul.mubr.msk.f32.vlgmr.msra.gmra.mrb[0].mxu0 %vm45_vm1, %v25_v6  ;;  %13178 = vmatpush3.bf16.msra.mxu1 %v13177_v50  ;;  %s14445_s11 = smov 4  }
  0x1a   :  { %12080 = vmatprep.mubr.msk.f32.mxu0 %vm14435_vm0, %v14436_v1  ;;  %13179 = vmatprep.subr.bf16.mxu1 %v14434_v0 }
  0x1d   :  { %12081 = vmatmul.mubr.msk.f32.gmra.mrb[2].mxu0 %vm45_vm1, %v37_v10  ;;  %13181 = vmatpush3.bf16.msra.mxu1 %v13180_v52 }
  0x1e   :  { %12083 = vmatprep.mubr.msk.f32.mxu0 %vm14435_vm0, %v14436_v1 }
  0x21   :  { %12084 = vmatmul.mubr.msk.f32.gmra.mrb[4].mxu0 %vm45_vm1, %v35_v12 }
  0xec   :  { %v120_v14 = vpop.f32.mrb[0].mxu0 }
  0xed   :  { %v121_v16 = vadd.f32 %v11133_v13, %v120_v14  ;;  %v12079_v17 = vpop.f32.mrb[1].mxu0  ;;  %v11137_v14 = vld [vmem:[#allocation2 + $0x58] ss:$0 sm:$0xff] }
  0xef   :  { %v14500_v18 = vadd.f32 %v134_v15, %v121_v16  ;;  %v11241_v15 = vld [vmem:[#allocation2 + $0x1e8] ss:$0 sm:$0xff] }
  0xf0   :  { %v125_v19 = vpop.f32.mrb[2].mxu0 }
  0xf1   :  { %v126_v21 = vadd.f32 %v11133_v13, %v125_v19  ;;  %v12082_v22 = vpop.f32.mrb[3].mxu0  ;;  %v143_v23 = vsel %vm142_vm3, %v14500_v18, 0.0 }
  0xf2   :  { %144 = vadd.xlane.f32.xlu0 %v143_v23 }
  0xf3   :  { %v14504_v24 = vadd.f32 %v135_v20, %v126_v21  ;;  %v11138_v21 = vld [vmem:[#allocation2 + $0x60] ss:$0 sm:$0xff] }
  0xf4   :  { %v130_v25 = vpop.f32.mrb[4].mxu0 }
  0xf5   :  { %v131_v27 = vadd.f32 %v11133_v13, %v130_v25  ;;  %v12085_v28 = vpop.f32.mrb[5].mxu0  ;;  %v146_v29 = vsel %vm142_vm3, %v14504_v24, 0.0 }
  0xf6   :  { %147 = vadd.xlane.f32.xlu0 %v146_v29 }
  0xf7   :  { %v14508_v30 = vadd.f32 %v136_v26, %v131_v27 }
  0xf9   :  { %v149_v31 = vsel %vm142_vm3, %v14508_v30, 0.0 }
  0xfa   :  { %150 = vadd.xlane.f32.xlu1 %v149_v31 }
 0x17f   :  { %v145_v32 = vpop.xlane.xlu0 %144 }
 0x180   :  { %v153_v33 = vmul.f32 0.03125, %v145_v32 }
 0x182   :  { %v14513_v34 = vsub.f32 %v14500_v18, %v153_v33 }
 0x183   :  { %v148_v35 = vpop.xlane.xlu0 %147 }
 0x184   :  { %v154_v36 = vmul.f32 0.03125, %v148_v35  ;;  %v159_v37 = vmul.f32 %v14513_v34, %v14513_v34  ;;  %v206_v17 = vmul.f32 %v11137_v14, %v14513_v34  ;;  %v3167_v19 = vmul.f32 %v11241_v15, %v14513_v34 }
 0x186   :  { %v14518_v38 = vsub.f32 %v14504_v24, %v154_v36  ;;  %v162_v39 = vsel %vm142_vm3, %v159_v37, 0.0 }
 0x187   :  { %163 = vadd.xlane.f32.xlu1 %v162_v39  ;;  %v151_v40 = vpop.xlane.xlu1 %150  ;;  %v11139_v39 = vld [vmem:[#allocation2 + $0x88] ss:$0 sm:$0xff] }
 0x188   :  { %v155_v41 = vmul.f32 0.03125, %v151_v40  ;;  %v160_v42 = vmul.f32 %v14518_v38, %v14518_v38  ;;  %v207_v25 = vmul.f32 %v11137_v14, %v14518_v38  ;;  %v3168_v26 = vmul.f32 %v11241_v15, %v14518_v38 }
 0x18a   :  { %v14524_v43 = vsub.f32 %v14508_v30, %v155_v41  ;;  %v165_v44 = vsel %vm142_vm3, %v160_v42, 0.0 }
 0x18b   :  { %166 = vadd.xlane.f32.xlu0 %v165_v44 }
 0x18c   :  { %v161_v45 = vmul.f32 %v14524_v43, %v14524_v43  ;;  %v208_v32 = vmul.f32 %v11137_v14, %v14524_v43  ;;  %v3169_v33 = vmul.f32 %v11241_v15, %v14524_v43 }
 0x18e   :  { %v168_v46 = vsel %vm142_vm3, %v161_v45, 0.0 }
 0x18f   :  { %169 = vadd.xlane.f32.xlu1 %v168_v46 }
 0x214   :  { %v164_v53 = vpop.xlane.xlu1 %163 }
 0x215   :  { %v172_v54 = vmul.f32 0.032258064, %v164_v53 }
 0x217   :  { %14043 = vrsqrt.f32 %v172_v54  ;;  %vm177_vm4 = vcmp.eq.f32.partialorder %v172_v54, inf  ;;  %v180_v61 = vand.u32 2147483648, %v172_v54  ;;  %vm179_vm5 = vcmp.eq.f32.partialorder %v172_v54, 0.0 }
 0x218   :  { %v167_v55 = vpop.xlane.xlu0 %166 }
 0x219   :  { %v173_v56 = vmul.f32 0.032258064, %v167_v55 }
 0x21b   :  { %14045 = vrsqrt.f32 %v173_v56  ;;  %vm184_vm6 = vcmp.eq.f32.partialorder %v173_v56, inf  ;;  %v187_v5 = vand.u32 2147483648, %v173_v56  ;;  %vm186_vm7 = vcmp.eq.f32.partialorder %v173_v56, 0.0 }
 0x21c   :  { %v170_v57 = vpop.xlane.xlu1 %169 }
 0x21d   :  { %v174_v58 = vmul.f32 0.032258064, %v170_v57 }
 0x21f   :  { %14047 = vrsqrt.f32 %v174_v58  ;;  %vm191_vm8 = vcmp.eq.f32.partialorder %v174_v58, inf  ;;  %v194_v11 = vand.u32 2147483648, %v174_v58  ;;  %vm193_vm9 = vcmp.eq.f32.partialorder %v174_v58, 0.0 }
 0x221   :  { %v14044_v59 = vpop.eup %14043 }
 0x222   :  { %v176_v60 = vmul.f32 %v14044_v59, %v172_v54 }
 0x224   :  { %v178_v62 = vsel %vm177_vm4, %v172_v54, %v176_v60 }
 0x225   :  { %v14046_v63 = vpop.eup %14045  ;;  %v181_v2 = vsel %vm179_vm5, %v180_v61, %v178_v62 }
 0x226   :  { %v183_v3 = vmul.f32 %v14046_v63, %v173_v56  ;;  %v196_v4 = vadd.f32 1e-06, %v181_v2 }
 0x228   :  { %v185_v6 = vsel %vm184_vm6, %v173_v56, %v183_v3  ;;  %14049 = vrcp.f32 %v196_v4 }
 0x229   :  { %v14048_v7 = vpop.eup %14047  ;;  %v188_v8 = vsel %vm186_vm7, %v187_v5, %v185_v6 }
 0x22a   :  { %v190_v9 = vmul.f32 %v14048_v7, %v174_v58  ;;  %v197_v10 = vadd.f32 1e-06, %v188_v8 }
 0x22c   :  { %v192_v12 = vsel %vm191_vm8, %v174_v58, %v190_v9  ;;  %14051 = vrcp.f32 %v197_v10 }
 0x22d   :  { %v195_v13 = vsel %vm193_vm9, %v194_v11, %v192_v12 }
 0x22e   :  { %v198_v16 = vadd.f32 1e-06, %v195_v13 }
 0x230   :  { %14053 = vrcp.f32 %v198_v16 }
 0x232   :  { %v14050_v20 = vpop.eup %14049 }
 0x233   :  { %v209_v22 = vmul.f32 %v14050_v20, %v206_v17  ;;  %v14533_v23 = vmul.f32 %v14050_v20, %v3167_v19 }
 0x235   :  { %v216_v27 = vadd.f32 %v11138_v21, %v209_v22 }
 0x236   :  { %v14052_v28 = vpop.eup %14051 }
 0x237   :  { %12095 = vmatmul.mubr.msk.f32.vlgmr.msra.gmra.mrb[0].mxu1 %vm142_vm3, %v216_v27  ;;  %v210_v29 = vmul.f32 %v14052_v28, %v207_v25  ;;  %v14538_v31 = vmul.f32 %v14052_v28, %v3168_v26 }
 0x238   :  { %12097 = vmatprep.mubr.msk.f32.mxu1 %vm14435_vm0, %v14436_v1 }
 0x239   :  { %v217_v34 = vadd.f32 %v11138_v21, %v210_v29 }
 0x23a   :  { %v14054_v35 = vpop.eup %14053 }
 0x23b   :  { %12098 = vmatmul.mubr.msk.f32.gmra.mrb[2].mxu1 %vm142_vm3, %v217_v34  ;;  %v211_v36 = vmul.f32 %v14054_v35, %v208_v32  ;;  %v14545_v37 = vmul.f32 %v14054_v35, %v3169_v33 }
 0x23c   :  { %12100 = vmatprep.mubr.msk.f32.mxu1 %vm14435_vm0, %v14436_v1 }
 0x23d   :  { %v218_v38 = vadd.f32 %v11138_v21, %v211_v36 }
 0x23f   :  { %12101 = vmatmul.mubr.msk.f32.gmra.mrb[4].mxu1 %vm142_vm3, %v218_v38 }
 0x30a   :  { %v303_v40 = vpop.f32.mrb[0].mxu1 }
 0x30b   :  { %v304_v41 = vadd.f32 %v11139_v39, %v303_v40  ;;  %v12096_v42 = vpop.f32.mrb[1].mxu1 }
 0x30d   :  { %12107 = vmatprep.mubr.msk.f32.mxu0 %vm45_vm1, %v304_v41 }
 0x30e   :  { %v308_v43 = vpop.f32.mrb[2].mxu1 }
 0x30f   :  { %v309_v44 = vadd.f32 %v11139_v39, %v308_v43  ;;  %v12099_v45 = vpop.f32.mrb[3].mxu1 }
 0x311   :  { %v14551_v46 = vpack.i.bf16 %v309_v44, %v304_v41  ;;  %v526_v51 = vrot.slane %v309_v44, 4 }
 0x312   :  { %v313_v47 = vpop.f32.mrb[4].mxu1 }
 0x313   :  { %v314_v48 = vadd.f32 %v11139_v39, %v313_v47  ;;  %13814 = vrot.lane.b32.xlu0 %v14551_v46, %s14437_s30  ;;  %v12102_v49 = vpop.f32.mrb[5].mxu1 }
 0x315   :  { %v14555_v50 = vrot.slane %v314_v48, 4 }
 0x317   :  { %737 = vrot.lane.b32.xlu0 %v309_v44, %s14438_s3  ;;  %v14560_v52 = vsel %vm32_vm2, %v526_v51, %v14555_v50 }
 0x318   :  { %12121 = vmatprep.mubr.msk.f32.mxu1 %vm45_vm1, %v14560_v52  ;;  %v14566_v53 = vpack.i.bf16 %v14555_v50, %v14560_v52 }
 0x31a   :  { %13819 = vrot.lane.b32.xlu1 %v14566_v53, %s14437_s30 }
 0x31e   :  { %13824 = vrot.lane.b32.xlu1 %v14551_v46, %s14439_s4 }
 0x322   :  { %735 = vrot.lane.b32.xlu1 %v304_v41, %s14438_s3 }
 0x385   :  { %v13815_v54 = vpop.permute.xlu0 %13814 }
 0x386   :  { %v13817_v55 = vunpack.i.h.bf16 %v13815_v54  ;;  %v13816_v56 = vunpack.i.l.bf16 %v13815_v54 }
 0x388   :  { %v13182_v58 = vpack.c.bf16 %v13817_v55, %v13816_v56 }
 0x389   :  { %v738_v6 = vpop.permute.xlu0 %737 }
 0x38a   :  { %13184 = vmatprep.subr.msk.bf16.mxu0 %vm14575_vm10, %v13182_v58 }
 0x38b   :  { %13187 = vmatpush3.bf16.xpose.msk.msra.mxu0 %vm14575_vm10, %v13182_v58 }
 0x38c   :  { %v13820_v59 = vpop.permute.xlu1 %13819 }
 0x38d   :  { %v13822_v60 = vunpack.i.h.bf16 %v13820_v59  ;;  %v13821_v61 = vunpack.i.l.bf16 %v13820_v59 }
 0x38f   :  { %v13194_v62 = vpack.c.bf16 %v13822_v60, %v13821_v61 }
 0x390   :  { %v13825_v63 = vpop.permute.xlu1 %13824 }
 0x391   :  { %v13827_v2 = vunpack.i.h.bf16 %v13825_v63  ;;  %v13826_v3 = vunpack.i.l.bf16 %v13825_v63  ;;  %13196 = vmatprep.subr.msk.bf16.mxu1 %vm14575_vm10, %v13194_v62 }
 0x392   :  { %12108 = vmatmul.mubr.msk.f32.vlgmr.msra.gmra.mrb[6].mxu0 %vm45_vm1, %v309_v44  ;;  %13199 = vmatpush3.bf16.xpose.msk.msra.mxu1 %vm14575_vm10, %v13194_v62 }
 0x393   :  { %v13206_v4 = vpack.c.bf16 %v13827_v2, %v13826_v3 }
 0x394   :  { %v736_v5 = vpop.permute.xlu1 %735 }
 0x395   :  { %13208 = vmatprep.subr.msk.bf16.mxu1 %vm14575_vm10, %v13206_v4 }
 0x399   :  { %12122 = vmatmul.mubr.msk.f32.vlgmr.msra.gmra.mrb[6].mxu1 %vm45_vm1, %v14555_v50 }
 0x39a   :  { %13211 = vmatpush3.bf16.xpose.msk.msra.mxu1 %vm14575_vm10, %v13206_v4  ;;  %12135 = vmatprep.mubr.msk.f32.mxu1 %vm45_vm1, %v736_v5 }
 0x3a1   :  { %12136 = vmatmul.mubr.msk.f32.vlgmr.msra.gmra.mrb[8].mxu1 %vm45_vm1, %v738_v6 }
 0x465   :  { %v12109_v7 = vpop.f32.mrb[6].mxu0 }
 0x466   :  { %v412_v8 = vmul.f32 0.25, %v12109_v7  ;;  %v402_v9 = vpop.f32.mrb[7].mxu0 }
 0x467   :  { %v411_v10 = vmul.f32 0.25, %v402_v9 }
 0x468   :  { %v418_v11 = vsel %vm417_vm11, %v412_v8, -inf }
 0x469   :  { %419 = vmax.xlane.f32.xlu0 %v418_v11  ;;  %v414_v12 = vsel %vm413_vm12, %v411_v10, -inf }
 0x46a   :  { %415 = vmax.xlane.f32.xlu1 %v414_v12 }
 0x46c   :  { %v12123_v13 = vpop.f32.mrb[6].mxu1 }
 0x46d   :  { %v607_v14 = vpop.f32.mrb[7].mxu1  ;;  %v617_v16 = vmul.f32 0.25, %v12123_v13 }
 0x46e   :  { %v616_v15 = vmul.f32 0.25, %v607_v14 }
 0x46f   :  { %v621_v20 = vsel %vm417_vm11, %v617_v16, -inf }
 0x470   :  { %v618_v17 = vsel %vm413_vm12, %v616_v15, -inf }
 0x471   :  { %619 = vmax.xlane.f32.xlu0 %v618_v17 }
 0x474   :  { %v12137_v19 = vpop.f32.mrb[8].mxu1 }
 0x475   :  { %v827_v21 = vmul.f32 0.25, %v12137_v19  ;;  %v817_v22 = vpop.f32.mrb[9].mxu1  ;;  %622 = vmax.xlane.f32.xlu0 %v621_v20 }
 0x476   :  { %v826_v25 = vmul.f32 0.25, %v817_v22 }
 0x477   :  { %v831_v26 = vsel %vm417_vm11, %v827_v21, -inf }
 0x478   :  { %v828_v27 = vsel %vm413_vm12, %v826_v25, -inf }
 0x479   :  { %832 = vmax.xlane.f32.xlu0 %v831_v26  ;;  %829 = vmax.xlane.f32.xlu1 %v828_v27 }
 0x48a   :  { %13829 = vrot.lane.b32.xlu1 %v14551_v46, %s14440_s5 }
 0x4f6   :  { %v420_v28 = vpop.xlane.xlu0 %419 }
 0x4f7   :  { %v422_v29 = vsub.f32 %v412_v8, %v420_v28  ;;  %v416_v32 = vpop.xlane.xlu1 %415 }
 0x4f8   :  { %v421_v33 = vsub.f32 %v411_v10, %v416_v32 }
 0x4f9   :  { %v425_v34 = vmul.f32 1.442695, %v422_v29 }
 0x4fa   :  { %v423_v35 = vmul.f32 1.442695, %v421_v33 }
 0x4fb   :  { %14055 = vpow2.f32 %v425_v34 }
 0x4fc   :  { %14057 = vpow2.f32 %v423_v35 }
 0x4fe   :  { %v620_v36 = vpop.xlane.xlu0 %619 }
 0x4ff   :  { %v624_v38 = vsub.f32 %v616_v15, %v620_v36 }
 0x501   :  { %v626_v39 = vmul.f32 1.442695, %v624_v38 }
 0x502   :  { %v623_v40 = vpop.xlane.xlu0 %622 }
 0x503   :  { %14059 = vpow2.f32 %v626_v39  ;;  %v625_v41 = vsub.f32 %v617_v16, %v623_v40 }
 0x505   :  { %v14056_v42 = vpop.eup %14055  ;;  %v628_v43 = vmul.f32 1.442695, %v625_v41 }
 0x506   :  { %v14058_v44 = vpop.eup %14057  ;;  %v833_v45 = vpop.xlane.xlu0 %832  ;;  %v430_v48 = vsel %vm417_vm11, %v14056_v42, 0.0 }
 0x507   :  { %v830_v47 = vpop.xlane.xlu1 %829  ;;  %14061 = vpow2.f32 %v628_v43  ;;  %v835_v49 = vsub.f32 %v827_v21, %v833_v45  ;;  %431 = vadd.xlane.f32.xlu0 %v430_v48  ;;  %v427_v51 = vsel %vm413_vm12, %v14058_v44, 0.0  ;;  %v317_v43 = vld [vmem:[#allocation2 + $0x90] sm:$0xff] }
 0x508   :  { %428 = vadd.xlane.f32.xlu1 %v427_v51  ;;  %v834_v5 = vsub.f32 %v826_v25, %v830_v47 }
 0x509   :  { %v838_v54 = vmul.f32 1.442695, %v835_v49 }
 0x50a   :  { %v836_v6 = vmul.f32 1.442695, %v834_v5 }
 0x50b   :  { %v13830_v55 = vpop.permute.xlu1 %13829  ;;  %14063 = vpow2.f32 %v838_v54 }
 0x50c   :  { %v13832_v56 = vunpack.i.h.bf16 %v13830_v55  ;;  %v13831_v58 = vunpack.i.l.bf16 %v13830_v55  ;;  %14065 = vpow2.f32 %v836_v6 }
 0x50d   :  { %v14060_v60 = vpop.eup %14059 }
 0x50e   :  { %v13188_v61 = vpack.c.bf16 %v13832_v56, %v13831_v58  ;;  %v630_v62 = vsel %vm413_vm12, %v14060_v60, 0.0 }
 0x50f   :  { %631 = vadd.xlane.f32.xlu1 %v630_v62 }
 0x510   :  { %13190 = vmatprep.subr.msk.bf16.mxu0 %vm14608_vm14, %v13188_v61 }
 0x511   :  { %13193 = vmatpush3.bf16.msk.msra.mxu0 %vm14608_vm14, %v13188_v61  ;;  %v14062_v63 = vpop.eup %14061 }
 0x512   :  { %v633_v2 = vsel %vm417_vm11, %v14062_v63, 0.0 }
 0x513   :  { %634 = vadd.xlane.f32.xlu0 %v633_v2 }
 0x515   :  { %v14064_v3 = vpop.eup %14063 }
 0x516   :  { %v843_v4 = vsel %vm417_vm11, %v14064_v3, 0.0  ;;  %v14066_v7 = vpop.eup %14065 }
 0x517   :  { %844 = vadd.xlane.f32.xlu0 %v843_v4  ;;  %v840_v8 = vsel %vm413_vm12, %v14066_v7, 0.0 }
 0x520   :  { %13839 = vrot.lane.b32.xlu1 %v14551_v46, %s14442_s6 }
 0x524   :  { %13844 = vrot.lane.b32.xlu1 %v14566_v53, %s14439_s4 }
 0x52d   :  { %13834 = vrot.lane.b32.xlu0 %v14566_v53, %s14440_s5 }
 0x531   :  { %940 = vrot.lane.b32.xlu0 %v14555_v50, %s14438_s3 }
 0x548   :  { %841 = vadd.xlane.f32.xlu1 %v840_v8 }
 0x559   :  { %938 = vrot.lane.b32.xlu1 %v14560_v52, %s14438_s3 }
 0x594   :  { %v432_v46 = vpop.xlane.xlu0 %431 }
 0x595   :  { %14067 = vrcp.f32 %v432_v46  ;;  %v429_v9 = vpop.xlane.xlu1 %428 }
 0x596   :  { %14069 = vrcp.f32 %v429_v9 }
 0x59c   :  { %v632_v10 = vpop.xlane.xlu1 %631 }
 0x59d   :  { %14071 = vrcp.f32 %v632_v10 }
 0x59f   :  { %v14068_v11 = vpop.eup %14067 }
 0x5a0   :  { %v14070_v12 = vpop.eup %14069  ;;  %v635_v13 = vpop.xlane.xlu0 %634  ;;  %v436_v14 = vmul.f32 %v14068_v11, %v14056_v42 }
 0x5a1   :  { %v435_v50 = vmul.f32 %v14070_v12, %v14058_v44  ;;  %14073 = vrcp.f32 %v635_v13  ;;  %v13840_v15 = vpop.permute.xlu1 %13839  ;;  %v318_v44 = vld [vmem:[#allocation2 + $0x98] sm:$0xff] }
 0x5a2   :  { %v13842_v20 = vunpack.i.h.bf16 %v13840_v15  ;;  %v13841_v21 = vunpack.i.l.bf16 %v13840_v15  ;;  %v13234_v45 = vpack.c.bf16 %v318_v44, %v317_v43 }
 0x5a3   :  { %12114 = vmatprep.mubr.msk.f32.mxu0 %vm413_vm12, %v435_v50 }
 0x5a4   :  { %v845_v16 = vpop.xlane.xlu0 %844  ;;  %12115 = vmatmul.mubr.msk.f32.vlgmr.msra.gmra.mrb[8].mxu0 %vm413_vm12, %v436_v14  ;;  %v13212_v29 = vpack.c.bf16 %v13842_v20, %v13841_v21 }
 0x5a5   :  { %v13845_v26 = vpop.permute.xlu1 %13844  ;;  %14075 = vrcp.f32 %v845_v16 }
 0x5a6   :  { %v13847_v32 = vunpack.i.h.bf16 %v13845_v26  ;;  %v13846_v33 = vunpack.i.l.bf16 %v13845_v26 }
 0x5a7   :  { %v14072_v17 = vpop.eup %14071 }
 0x5a8   :  { %v13835_v52 = vpop.permute.xlu0 %13834  ;;  %v638_v19 = vmul.f32 %v14072_v17, %v14060_v60  ;;  %v13218_v35 = vpack.c.bf16 %v13847_v32, %v13846_v33  ;;  %v319_v32 = vld [vmem:[#allocation2 + $0xa0] sm:$0xff]  ;;  %v320_v33 = vld [vmem:[#allocation2 + $0xa8] sm:$0xff] }
 0x5a9   :  { %v13837_v22 = vunpack.i.h.bf16 %v13835_v52  ;;  %v13836_v25 = vunpack.i.l.bf16 %v13835_v52 }
 0x5aa   :  { %12128 = vmatprep.mubr.msk.f32.mxu0 %vm413_vm12, %v638_v19 }
 0x5ab   :  { %v13200_v27 = vpack.c.bf16 %v13837_v22, %v13836_v25  ;;  %v14074_v28 = vpop.eup %14073 }
 0x5ac   :  { %v639_v34 = vmul.f32 %v14074_v28, %v14062_v63  ;;  %v941_v47 = vpop.permute.xlu0 %940 }
 0x5ad   :  { %13202 = vmatprep.subr.msk.bf16.mxu0 %vm14608_vm14, %v13200_v27 }
 0x5ae   :  { %13205 = vmatpush3.bf16.msk.msra.mxu0 %vm14608_vm14, %v13200_v27 }
 0x5af   :  { %13214 = vmatprep.subr.msk.bf16.mxu0 %vm14608_vm14, %v13212_v29  ;;  %v14076_v38 = vpop.eup %14075 }
 0x5b0   :  { %v849_v41 = vmul.f32 %v14076_v38, %v14064_v3 }
 0x5b1   :  { %12129 = vmatmul.mubr.msk.f32.vlgmr.msra.gmra.mrb[10].mxu0 %vm413_vm12, %v639_v34 }
 0x5b2   :  { %13217 = vmatpush3.bf16.msk.msra.mxu0 %vm14608_vm14, %v13212_v29 }
 0x5b3   :  { %13220 = vmatprep.subr.msk.bf16.mxu0 %vm14575_vm10, %v13218_v35 }
 0x5d5   :  { %v842_v36 = vpop.xlane.xlu1 %841 }
 0x5d6   :  { %14077 = vrcp.f32 %v842_v36 }
 0x5d9   :  { %v939_v42 = vpop.permute.xlu1 %938 }
 0x5e0   :  { %v14078_v39 = vpop.eup %14077 }
 0x5e1   :  { %v848_v40 = vmul.f32 %v14078_v39, %v14066_v7 }
 0x5e3   :  { %12142 = vmatprep.mubr.msk.f32.mxu0 %vm413_vm12, %v848_v40 }
 0x5e4   :  { %12143 = vmatmul.mubr.msk.f32.vlgmr.msra.gmra.mrb[12].mxu0 %vm413_vm12, %v849_v41 }
 0x5e5   :  { %13223 = vmatpush3.bf16.xpose.msk.msra.mxu0 %vm14575_vm10, %v13218_v35  ;;  %12149 = vmatprep.mubr.msk.f32.mxu0 %vm45_vm1, %v939_v42  ;;  %v13231_v35 = vpack.c.bf16 %v320_v33, %v319_v32  ;;  %v11177_v42 = vld [vmem:[#allocation2 + $0xb0] ss:$0 sm:$0xff] }
 0x5e6   :  { %13233 = vmatprep.subr.bf16.mxu0 %v14434_v0 }
 0x5ec   :  { %12150 = vmatmul.mubr.msk.f32.vlgmr.msra.gmra.mrb[14].mxu0 %vm45_vm1, %v941_v47 }
 0x5ed   :  { %13235 = vmatpush3.bf16.msra.mxu0 %v13234_v45  ;;  %12176 = vmatprep.mubr.msk.f32.mxu0 %vm14435_vm0, %v14436_v1 }
 0x5ee   :  { %13242 = vmatprep.subr.bf16.mxu0 %v14434_v0 }
 0x677   :  { %v12116_v48 = vpop.f32.mrb[8].mxu0 }
 0x678   :  { %v516_v49 = vpop.f32.mrb[9].mxu0 }
 0x679   :  { %12177 = vmatmul.mubr.msk.f32.vlgmr.msra.gmra.mrb[16].mxu0 %vm45_vm1, %v516_v49 }
 0x67a   :  { %12179 = vmatprep.mubr.msk.f32.mxu0 %vm14435_vm0, %v14436_v1 }
 0x684   :  { %v12130_v51 = vpop.f32.mrb[10].mxu0 }
 0x685   :  { %v731_v54 = vrot.slane %v12130_v51, 4  ;;  %v719_v55 = vpop.f32.mrb[11].mxu0 }
 0x686   :  { %v730_v56 = vrot.slane %v719_v55, 4 }
 0x688   :  { %v734_v58 = vsel %vm32_vm2, %v12116_v48, %v730_v56  ;;  %v732_v60 = vsel %vm32_vm2, %v730_v56, %v731_v54 }
 0x689   :  { %12180 = vmatmul.mubr.msk.f32.gmra.mrb[18].mxu0 %vm45_vm1, %v734_v58 }
 0x68a   :  { %12182 = vmatprep.mubr.msk.f32.mxu0 %vm14435_vm0, %v14436_v1 }
 0x68d   :  { %12183 = vmatmul.mubr.msk.f32.gmra.mrb[20].mxu0 %vm45_vm1, %v732_v60 }
 0x68e   :  { %12210 = vmatprep.mubr.msk.f32.mxu0 %vm14435_vm0, %v14436_v1 }
 0x6b7   :  { %v14665_v61 = vpop.f32.mrb[12].mxu0 }
 0x6b8   :  { %v929_v62 = vpop.f32.mrb[13].mxu0 }
 0x6bf   :  { %v12151_v63 = vpop.f32.mrb[14].mxu0 }
 0x6c0   :  { %v1030_v2 = vmul.f32 0.25, %v12151_v63  ;;  %v1020_v3 = vpop.f32.mrb[15].mxu0 }
 0x6c1   :  { %v1029_v4 = vmul.f32 0.25, %v1020_v3 }
 0x6c2   :  { %v1034_v5 = vsel %vm417_vm11, %v1030_v2, -inf }
 0x6c3   :  { %1035 = vmax.xlane.f32.xlu0 %v1034_v5  ;;  %v1031_v6 = vsel %vm413_vm12, %v1029_v4, -inf }
 0x6c4   :  { %1032 = vmax.xlane.f32.xlu1 %v1031_v6 }
 0x6d5   :  { %13849 = vrot.lane.b32.xlu1 %v14566_v53, %s14442_s6 }
 0x74c   :  { %v1310_v7 = vpop.f32.mrb[16].mxu0 }
 0x74d   :  { %v12178_v8 = vpop.f32.mrb[17].mxu0 }
 0x750   :  { %v1036_v46 = vpop.xlane.xlu0 %1035 }
 0x751   :  { %v1038_v9 = vsub.f32 %v1030_v2, %v1036_v46  ;;  %v1033_v10 = vpop.xlane.xlu1 %1032 }
 0x752   :  { %v1037_v11 = vsub.f32 %v1029_v4, %v1033_v10 }
 0x753   :  { %v1041_v12 = vmul.f32 1.442695, %v1038_v9 }
 0x754   :  { %v1039_v13 = vmul.f32 1.442695, %v1037_v11  ;;  %v1410_v11 = vld [vmem:[#allocation2 + $0xc8] sm:$0xff] }
 0x755   :  { %v13850_v50 = vpop.permute.xlu1 %13849 }
 0x756   :  { %14079 = vpow2.f32 %v1039_v13  ;;  %v13852_v14 = vunpack.i.h.bf16 %v13850_v50  ;;  %v13851_v15 = vunpack.i.l.bf16 %v13850_v50  ;;  %v1412_v13 = vld [vmem:[#allocation2 + $0xd8] sm:$0xff] }
 0x757   :  { %14081 = vpow2.f32 %v1041_v12  ;;  %v1411_v12 = vld [vmem:[#allocation2 + $0xd0] sm:$0xff] }
 0x758   :  { %v13224_v16 = vpack.c.bf16 %v13852_v14, %v13851_v15  ;;  %v13237_v50 = vpack.c.bf16 %v1411_v12, %v1410_v11  ;;  %v1413_v14 = vld [vmem:[#allocation2 + $0xe0] sm:$0xff] }
 0x759   :  { %v13240_v15 = vpack.c.bf16 %v1413_v14, %v1412_v13 }
 0x75a   :  { %13226 = vmatprep.subr.msk.bf16.mxu1 %vm14608_vm14, %v13224_v16 }
 0x75b   :  { %13229 = vmatpush3.bf16.msk.msra.mxu1 %vm14608_vm14, %v13224_v16 }
 0x75c   :  { %v1315_v53 = vpop.f32.mrb[18].mxu0  ;;  %13230 = vmatprep.subr.bf16.mxu1 %v14434_v0 }
 0x75d   :  { %v12181_v17 = vpop.f32.mrb[19].mxu0 }
 0x760   :  { %v14080_v52 = vpop.eup %14079  ;;  %v1320_v19 = vpop.f32.mrb[20].mxu0 }
 0x761   :  { %v1043_v20 = vsel %vm413_vm12, %v14080_v52, 0.0  ;;  %v12184_v21 = vpop.f32.mrb[21].mxu0  ;;  %v14082_v22 = vpop.eup %14081 }
 0x762   :  { %1044 = vadd.xlane.f32.xlu0 %v1043_v20  ;;  %v1046_v25 = vsel %vm417_vm11, %v14082_v22, 0.0 }
 0x766   :  { %1047 = vadd.xlane.f32.xlu0 %v1046_v25 }
 0x7ef   :  { %v1045_v26 = vpop.xlane.xlu0 %1044 }
 0x7f0   :  { %14083 = vrcp.f32 %v1045_v26 }
 0x7f3   :  { %v1048_v27 = vpop.xlane.xlu0 %1047 }
 0x7f4   :  { %14085 = vrcp.f32 %v1048_v27 }
 0x7fa   :  { %v14084_v28 = vpop.eup %14083 }
 0x7fb   :  { %v1051_v29 = vmul.f32 %v14084_v28, %v14080_v52 }
 0x7fd   :  { %12156 = vmatprep.mubr.msk.f32.mxu1 %vm413_vm12, %v1051_v29 }
 0x7fe   :  { %v14086_v34 = vpop.eup %14085 }
 0x7ff   :  { %v1052_v36 = vmul.f32 %v14086_v34, %v14082_v22 }
 0x801   :  { %12157 = vmatmul.mubr.msk.f32.vlgmr.msra.gmra.mrb[10].mxu1 %vm413_vm12, %v1052_v36 }
 0x802   :  { %13232 = vmatpush3.bf16.msra.mxu1 %v13231_v35  ;;  %12163 = vmatprep.mubr.msk.f32.mxu1 %vm14435_vm0, %v14436_v1 }
 0x803   :  { %13236 = vmatprep.subr.bf16.mxu1 %v14434_v0 }
 0x805   :  { %12164 = vmatmul.mubr.msk.f32.vlgmr.msra.gmra.mrb[12].mxu1 %vm45_vm1, %v929_v62 }
 0x806   :  { %12166 = vmatprep.mubr.msk.f32.mxu1 %vm14435_vm0, %v14436_v1  ;;  %13238 = vmatpush3.bf16.msra.mxu1 %v13237_v50 }
 0x807   :  { %13239 = vmatprep.subr.bf16.mxu1 %v14434_v0 }
 0x80a   :  { %13241 = vmatpush3.bf16.msra.mxu1 %v13240_v15 }
 0x80b   :  { %13248 = vmatprep.subr.bf16.mxu1 %v14434_v0 }
 0x8d4   :  { %v12158_v38 = vpop.f32.mrb[10].mxu1 }
 0x8d5   :  { %v1144_v39 = vrot.slane %v12158_v38, 4  ;;  %v1132_v40 = vpop.f32.mrb[11].mxu1  ;;  %v11178_v38 = vld [vmem:[#allocation2 + $0xb8] ss:$0 sm:$0xff] }
 0x8d6   :  { %v1143_v41 = vrot.slane %v1132_v40, 4 }
 0x8d8   :  { %v1222_v43 = vpop.f32.mrb[12].mxu1  ;;  %v1147_v44 = vsel %vm32_vm2, %v14665_v61, %v1143_v41  ;;  %v1145_v45 = vsel %vm32_vm2, %v1143_v41, %v1144_v39  ;;  %v11179_v41 = vld [vmem:[#allocation2 + $0xc0] ss:$0 sm:$0xff] }
 0x8d9   :  { %v1311_v47 = vadd.f32 %v1310_v7, %v1222_v43  ;;  %v12165_v48 = vpop.f32.mrb[13].mxu1  ;;  %12167 = vmatmul.mubr.msk.f32.gmra.mrb[14].mxu1 %vm45_vm1, %v1147_v44  ;;  %v1511_v44 = vld [vmem:[#allocation2 + $0xf0] sm:$0xff] }
 0x8da   :  { %12169 = vmatprep.mubr.msk.f32.mxu1 %vm14435_vm0, %v14436_v1  ;;  %v1513_v48 = vld [vmem:[#allocation2 + $0x100] sm:$0xff] }
 0x8db   :  { %v1328_v49 = vadd.f32 %v11177_v42, %v1311_v47 }
 0x8dd   :  { %v14693_v51 = vadd.f32 %v1328_v49, %v14500_v18  ;;  %12170 = vmatmul.mubr.msk.f32.gmra.mrb[16].mxu1 %vm45_vm1, %v1145_v45  ;;  %v1512_v45 = vld [vmem:[#allocation2 + $0xf8] sm:$0xff]  ;;  %v1514_v49 = vld [vmem:[#allocation2 + $0x108] sm:$0xff] }
 0x8de   :  { %12193 = vmatprep.mubr.msk.f32.mxu1 %vm14435_vm0, %v14436_v1  ;;  %v13243_v47 = vpack.c.bf16 %v1512_v45, %v1511_v44 }
 0x8df   :  { %v1336_v54 = vsel %vm142_vm3, %v14693_v51, 0.0 }
 0x8e0   :  { %1337 = vadd.xlane.f32.xlu0 %v1336_v54  ;;  %13244 = vmatpush3.bf16.msra.mxu0 %v13243_v47  ;;  %v13246_v54 = vpack.c.bf16 %v1514_v49, %v1513_v48 }
 0x8e1   :  { %13245 = vmatprep.subr.bf16.mxu0 %v14434_v0 }
 0x8e4   :  { %13247 = vmatpush3.bf16.msra.mxu0 %v13246_v54 }
 0x96d   :  { %v1338_v55 = vpop.xlane.xlu0 %1337 }
 0x96e   :  { %v1345_v61 = vmul.f32 0.03125, %v1338_v55 }
 0x970   :  { %v1348_v5 = vsub.f32 %v14693_v51, %v1345_v61 }
 0x972   :  { %v1351_v9 = vmul.f32 %v1348_v5, %v1348_v5  ;;  %v1397_v39 = vmul.f32 %v11178_v38, %v1348_v5 }
 0x974   :  { %v1354_v10 = vsel %vm142_vm3, %v1351_v9, 0.0 }
 0x9ac   :  { %v1227_v56 = vpop.f32.mrb[14].mxu1 }
 0x9ad   :  { %v1316_v58 = vadd.f32 %v1315_v53, %v1227_v56  ;;  %v12168_v60 = vpop.f32.mrb[15].mxu1 }
 0x9af   :  { %v1329_v62 = vadd.f32 %v11177_v42, %v1316_v58 }
 0x9b0   :  { %v1232_v63 = vpop.f32.mrb[16].mxu1 }
 0x9b1   :  { %v14701_v2 = vadd.f32 %v1329_v62, %v14504_v24  ;;  %v1321_v3 = vadd.f32 %v1320_v19, %v1232_v63  ;;  %v12171_v4 = vpop.f32.mrb[17].mxu1 }
 0x9b3   :  { %v1330_v6 = vadd.f32 %v11177_v42, %v1321_v3  ;;  %v1339_v7 = vsel %vm142_vm3, %v14701_v2, 0.0 }
 0x9b4   :  { %1340 = vadd.xlane.f32.xlu0 %v1339_v7 }
 0x9b5   :  { %v14707_v8 = vadd.f32 %v1330_v6, %v14508_v30 }
 0x9b7   :  { %v1342_v46 = vsel %vm142_vm3, %v14707_v8, 0.0 }
 0x9b8   :  { %1343 = vadd.xlane.f32.xlu0 %v1342_v46 }
 0x9bc   :  { %1355 = vadd.xlane.f32.xlu0 %v1354_v10 }
 0xa41   :  { %v1341_v16 = vpop.xlane.xlu0 %1340 }
 0xa42   :  { %v1346_v53 = vmul.f32 0.03125, %v1341_v16 }
 0xa44   :  { %v14715_v17 = vsub.f32 %v14701_v2, %v1346_v53 }
 0xa45   :  { %v1344_v52 = vpop.xlane.xlu0 %1343 }
 0xa46   :  { %v1347_v19 = vmul.f32 0.03125, %v1344_v52  ;;  %v1352_v20 = vmul.f32 %v14715_v17, %v14715_v17  ;;  %v1398_v12 = vmul.f32 %v11178_v38, %v14715_v17 }
 0xa48   :  { %v14720_v21 = vsub.f32 %v14707_v8, %v1347_v19  ;;  %v1357_v22 = vsel %vm142_vm3, %v1352_v20, 0.0  ;;  %v11180_v19 = vld [vmem:[#allocation2 + $0xe8] ss:$0 sm:$0xff] }
 0xa49   :  { %1358 = vadd.xlane.f32.xlu1 %v1357_v22  ;;  %v1356_v25 = vpop.xlane.xlu0 %1355 }
 0xa4a   :  { %v1363_v26 = vmul.f32 0.032258064, %v1356_v25  ;;  %v1353_v27 = vmul.f32 %v14720_v21, %v14720_v21  ;;  %v1399_v15 = vmul.f32 %v11178_v38, %v14720_v21 }
 0xa4c   :  { %14087 = vrsqrt.f32 %v1363_v26  ;;  %v1360_v28 = vsel %vm142_vm3, %v1353_v27, 0.0  ;;  %vm1368_vm15 = vcmp.eq.f32.partialorder %v1363_v26, inf  ;;  %v1371_v33 = vand.u32 2147483648, %v1363_v26 }
 0xa4d   :  { %1361 = vadd.xlane.f32.xlu0 %v1360_v28  ;;  %vm1370_vm4 = vcmp.eq.f32.partialorder %v1363_v26, 0.0 }
 0xa56   :  { %v14088_v29 = vpop.eup %14087 }
 0xa57   :  { %v1367_v32 = vmul.f32 %v14088_v29, %v1363_v26 }
 0xa59   :  { %v1369_v34 = vsel %vm1368_vm15, %v1363_v26, %v1367_v32 }
 0xa5a   :  { %v1372_v35 = vsel %vm1370_vm4, %v1371_v33, %v1369_v34 }
 0xa5b   :  { %v1387_v36 = vadd.f32 1e-06, %v1372_v35 }
 0xa5d   :  { %14089 = vrcp.f32 %v1387_v36  ;;  %v11187_v36 = vld [vmem:[#allocation2 + $0x110] ss:$0 sm:$0xff] }
 0xa67   :  { %v14090_v40 = vpop.eup %14089 }
 0xa68   :  { %v1400_v42 = vmul.f32 %v14090_v40, %v1397_v39 }
 0xa6a   :  { %v1407_v43 = vadd.f32 %v11179_v41, %v1400_v42 }
 0xa6c   :  { %12194 = vmatmul.mubr.msk.f32.vlgmr.msra.gmra.mrb[18].mxu1 %vm142_vm3, %v1407_v43 }
 0xa6d   :  { %12196 = vmatprep.mubr.msk.f32.mxu1 %vm14435_vm0, %v14436_v1 }
 0xad6   :  { %v1359_v55 = vpop.xlane.xlu1 %1358 }
 0xad7   :  { %v1364_v56 = vmul.f32 0.032258064, %v1359_v55 }
 0xad9   :  { %14091 = vrsqrt.f32 %v1364_v56  ;;  %vm1375_vm5 = vcmp.eq.f32.partialorder %v1364_v56, inf  ;;  %v1378_v63 = vand.u32 2147483648, %v1364_v56  ;;  %vm1377_vm6 = vcmp.eq.f32.partialorder %v1364_v56, 0.0 }
 0xada   :  { %v1362_v58 = vpop.xlane.xlu0 %1361 }
 0xadb   :  { %v1365_v60 = vmul.f32 0.032258064, %v1362_v58 }
 0xadd   :  { %14093 = vrsqrt.f32 %v1365_v60  ;;  %vm1382_vm7 = vcmp.eq.f32.partialorder %v1365_v60, inf  ;;  %v1385_v46 = vand.u32 2147483648, %v1365_v60  ;;  %vm1384_vm8 = vcmp.eq.f32.partialorder %v1365_v60, 0.0 }
 0xae3   :  { %v14092_v61 = vpop.eup %14091 }
 0xae4   :  { %v1374_v62 = vmul.f32 %v14092_v61, %v1364_v56 }
 0xae6   :  { %v1376_v3 = vsel %vm1375_vm5, %v1364_v56, %v1374_v62  ;;  %v1691_v62 = vld [vmem:[#allocation2 + $0x128] sm:$0xff] }
 0xae7   :  { %v1379_v4 = vsel %vm1377_vm6, %v1378_v63, %v1376_v3  ;;  %v14094_v5 = vpop.eup %14093  ;;  %v1692_v63 = vld [vmem:[#allocation2 + $0x130] sm:$0xff]  ;;  %v1693_v3 = vld [vmem:[#allocation2 + $0x138] sm:$0xff] }
 0xae8   :  { %v1388_v6 = vadd.f32 1e-06, %v1379_v4  ;;  %v1381_v7 = vmul.f32 %v14094_v5, %v1365_v60  ;;  %v1694_v4 = vld [vmem:[#allocation2 + $0x140] sm:$0xff] }
 0xae9   :  { %v13252_v5 = vpack.c.bf16 %v1694_v4, %v1693_v3 }
 0xaea   :  { %14095 = vrcp.f32 %v1388_v6  ;;  %v1383_v9 = vsel %vm1382_vm7, %v1365_v60, %v1381_v7 }
 0xaeb   :  { %v1386_v10 = vsel %vm1384_vm8, %v1385_v46, %v1383_v9 }
 0xaec   :  { %v1389_v11 = vadd.f32 1e-06, %v1386_v10 }
 0xaee   :  { %14097 = vrcp.f32 %v1389_v11 }
 0xaf4   :  { %v14096_v13 = vpop.eup %14095 }
 0xaf5   :  { %v1401_v50 = vmul.f32 %v14096_v13, %v1398_v12 }
 0xaf7   :  { %v1408_v14 = vadd.f32 %v11179_v41, %v1401_v50 }
 0xaf8   :  { %v14098_v16 = vpop.eup %14097 }
 0xaf9   :  { %12197 = vmatmul.mubr.msk.f32.gmra.mrb[20].mxu1 %vm142_vm3, %v1408_v14  ;;  %v1402_v53 = vmul.f32 %v14098_v16, %v1399_v15 }
 0xafa   :  { %12199 = vmatprep.mubr.msk.f32.mxu1 %vm14435_vm0, %v14436_v1 }
 0xafb   :  { %v1409_v52 = vadd.f32 %v11179_v41, %v1402_v53 }
 0xafd   :  { %12200 = vmatmul.mubr.msk.f32.gmra.mrb[22].mxu1 %vm142_vm3, %v1409_v52 }
 0xafe   :  { %12227 = vmatprep.mubr.msk.f32.mxu1 %vm14435_vm0, %v14436_v1 }
 0xb3f   :  { %v1494_v17 = vpop.f32.mrb[18].mxu1 }
 0xb40   :  { %v1495_v20 = vadd.f32 %v11180_v19, %v1494_v17  ;;  %v12195_v22 = vpop.f32.mrb[19].mxu1 }
 0xb42   :  { %v1508_v25 = vmax.f32 %v1495_v20, 0.0 }
 0xb44   :  { %12211 = vmatmul.mubr.msk.f32.vlgmr.msra.gmra.mrb[22].mxu0 %vm142_vm3, %v1508_v25  ;;  %v11188_v25 = vld [vmem:[#allocation2 + $0x118] ss:$0 sm:$0xff] }
 0xb45   :  { %12213 = vmatprep.mubr.msk.f32.mxu0 %vm14435_vm0, %v14436_v1 }
 0xbcc   :  { %v1499_v21 = vpop.f32.mrb[20].mxu1 }
 0xbcd   :  { %v1500_v26 = vadd.f32 %v11180_v19, %v1499_v21  ;;  %v12198_v27 = vpop.f32.mrb[21].mxu1 }
 0xbce   :  { %v11189_v27 = vld [vmem:[#allocation2 + $0x120] ss:$0 sm:$0xff] }
 0xbcf   :  { %v1509_v28 = vmax.f32 %v1500_v26, 0.0 }
 0xbd0   :  { %v1504_v29 = vpop.f32.mrb[22].mxu1 }
 0xbd1   :  { %12214 = vmatmul.mubr.msk.f32.gmra.mrb[24].mxu0 %vm142_vm3, %v1509_v28  ;;  %v1505_v32 = vadd.f32 %v11180_v19, %v1504_v29  ;;  %v12201_v33 = vpop.f32.mrb[23].mxu1 }
 0xbd2   :  { %12216 = vmatprep.mubr.msk.f32.mxu0 %vm14435_vm0, %v14436_v1 }
 0xbd3   :  { %v1510_v34 = vmax.f32 %v1505_v32, 0.0 }
 0xbd5   :  { %12217 = vmatmul.mubr.msk.f32.gmra.mrb[26].mxu0 %vm142_vm3, %v1510_v34 }
 0xc17   :  { %v1590_v35 = vpop.f32.mrb[22].mxu0 }
 0xc18   :  { %v1604_v38 = vadd.f32 %v1590_v35, %v14693_v51  ;;  %v12212_v39 = vpop.f32.mrb[23].mxu0 }
 0xc1a   :  { %v14746_v40 = vadd.f32 %v11187_v36, %v1604_v38 }
 0xc1c   :  { %v1617_v41 = vsel %vm142_vm3, %v14746_v40, 0.0 }
 0xc1d   :  { %1618 = vadd.xlane.f32.xlu0 %v1617_v41 }
 0xca4   :  { %v1595_v42 = vpop.f32.mrb[24].mxu0 }
 0xca5   :  { %v1605_v43 = vadd.f32 %v1595_v42, %v14701_v2  ;;  %v12215_v44 = vpop.f32.mrb[25].mxu0 }
 0xca7   :  { %v14751_v45 = vadd.f32 %v11187_v36, %v1605_v43 }
 0xca8   :  { %v1600_v47 = vpop.f32.mrb[26].mxu0 }
 0xca9   :  { %v1620_v48 = vsel %vm142_vm3, %v14751_v45, 0.0  ;;  %v1606_v49 = vadd.f32 %v1600_v47, %v14707_v8  ;;  %v12218_v51 = vpop.f32.mrb[27].mxu0  ;;  %v13249_v8 = vpack.c.bf16 %v1692_v63, %v1691_v62 }
 0xcaa   :  { %v1619_v54 = vpop.xlane.xlu0 %1618  ;;  %1621 = vadd.xlane.f32.xlu0 %v1620_v48 }
 0xcab   :  { %v1626_v55 = vmul.f32 0.03125, %v1619_v54  ;;  %v14756_v56 = vadd.f32 %v11187_v36, %v1606_v49  ;;  %13250 = vmatpush3.bf16.msra.mxu1 %v13249_v8  ;;  %v11190_v8 = vld [vmem:[#allocation2 + $0x148] ss:$0 sm:$0xff] }
 0xcac   :  { %13251 = vmatprep.subr.bf16.mxu1 %v14434_v0 }
 0xcad   :  { %v1629_v58 = vsub.f32 %v14746_v40, %v1626_v55  ;;  %v1623_v2 = vsel %vm142_vm3, %v14756_v56, 0.0 }
 0xcae   :  { %1624 = vadd.xlane.f32.xlu0 %v1623_v2 }
 0xcaf   :  { %v1632_v60 = vmul.f32 %v1629_v58, %v1629_v58  ;;  %13253 = vmatpush3.bf16.msra.mxu1 %v13252_v5  ;;  %v1678_v21 = vmul.f32 %v11188_v25, %v1629_v58 }
 0xcb1   :  { %v1635_v61 = vsel %vm142_vm3, %v1632_v60, 0.0 }
 0xcb2   :  { %1636 = vadd.xlane.f32.xlu0 %v1635_v61 }
 0xd37   :  { %v1622_v6 = vpop.xlane.xlu0 %1621 }
 0xd38   :  { %v1627_v7 = vmul.f32 0.03125, %v1622_v6 }
 0xd3a   :  { %v1630_v46 = vsub.f32 %v14751_v45, %v1627_v7 }
 0xd3b   :  { %v1625_v9 = vpop.xlane.xlu0 %1624 }
 0xd3c   :  { %v1633_v10 = vmul.f32 %v1630_v46, %v1630_v46  ;;  %v1628_v11 = vmul.f32 0.03125, %v1625_v9  ;;  %v1679_v55 = vmul.f32 %v11188_v25, %v1630_v46 }
 0xd3e   :  { %v1638_v12 = vsel %vm142_vm3, %v1633_v10, 0.0  ;;  %v1631_v13 = vsub.f32 %v14756_v56, %v1628_v11 }
 0xd3f   :  { %1639 = vadd.xlane.f32.xlu0 %v1638_v12  ;;  %v1637_v50 = vpop.xlane.xlu0 %1636 }
 0xd40   :  { %v1644_v14 = vmul.f32 0.032258064, %v1637_v50  ;;  %v1634_v15 = vmul.f32 %v1631_v13, %v1631_v13  ;;  %v1680_v61 = vmul.f32 %v11188_v25, %v1631_v13 }
 0xd42   :  { %14099 = vrsqrt.f32 %v1644_v14  ;;  %v1641_v16 = vsel %vm142_vm3, %v1634_v15, 0.0  ;;  %vm1649_vm9 = vcmp.eq.f32.partialorder %v1644_v14, inf  ;;  %v1652_v19 = vand.u32 2147483648, %v1644_v14 }
 0xd43   :  { %1642 = vadd.xlane.f32.xlu0 %v1641_v16  ;;  %vm1651_vm15 = vcmp.eq.f32.partialorder %v1644_v14, 0.0 }
 0xd4c   :  { %v14100_v53 = vpop.eup %14099 }
 0xd4d   :  { %v1648_v52 = vmul.f32 %v14100_v53, %v1644_v14 }
 0xd4f   :  { %v1650_v17 = vsel %vm1649_vm9, %v1644_v14, %v1648_v52 }
 0xd50   :  { %v1653_v20 = vsel %vm1651_vm15, %v1652_v19, %v1650_v17 }
 0xd51   :  { %v1668_v22 = vadd.f32 1e-06, %v1653_v20 }
 0xd53   :  { %14101 = vrcp.f32 %v1668_v22 }
 0xd5d   :  { %v14102_v26 = vpop.eup %14101 }
 0xd5e   :  { %v1681_v28 = vmul.f32 %v14102_v26, %v1678_v21 }
 0xd60   :  { %v1688_v29 = vadd.f32 %v11189_v27, %v1681_v28 }
 0xd62   :  { %12228 = vmatmul.mubr.msk.f32.vlgmr.msra.gmra.mrb[24].mxu1 %vm142_vm3, %v1688_v29 }
 0xd63   :  { %12230 = vmatprep.mubr.msk.f32.mxu1 %vm14435_vm0, %v14436_v1 }
 0xdcc   :  { %v1640_v32 = vpop.xlane.xlu0 %1639 }
 0xdcd   :  { %v1645_v33 = vmul.f32 0.032258064, %v1640_v32 }
 0xdcf   :  { %14103 = vrsqrt.f32 %v1645_v33  ;;  %vm1656_vm4 = vcmp.eq.f32.partialorder %v1645_v33, inf  ;;  %v1659_v39 = vand.u32 2147483648, %v1645_v33  ;;  %vm1658_vm5 = vcmp.eq.f32.partialorder %v1645_v33, 0.0 }
 0xdd0   :  { %v1643_v34 = vpop.xlane.xlu0 %1642 }
 0xdd1   :  { %v1646_v35 = vmul.f32 0.032258064, %v1643_v34 }
 0xdd3   :  { %14105 = vrsqrt.f32 %v1646_v35  ;;  %vm1663_vm6 = vcmp.eq.f32.partialorder %v1646_v35, inf  ;;  %v1666_v48 = vand.u32 2147483648, %v1646_v35  ;;  %vm1665_vm7 = vcmp.eq.f32.partialorder %v1646_v35, 0.0 }
 0xdd9   :  { %v14104_v36 = vpop.eup %14103 }
 0xdda   :  { %v1655_v38 = vmul.f32 %v14104_v36, %v1645_v33 }
 0xddc   :  { %v1657_v41 = vsel %vm1656_vm4, %v1645_v33, %v1655_v38 }
 0xddd   :  { %v1660_v42 = vsel %vm1658_vm5, %v1659_v39, %v1657_v41  ;;  %v14106_v44 = vpop.eup %14105 }
 0xdde   :  { %v1669_v43 = vadd.f32 1e-06, %v1660_v42  ;;  %v1662_v47 = vmul.f32 %v14106_v44, %v1646_v35 }
 0xde0   :  { %14107 = vrcp.f32 %v1669_v43  ;;  %v1664_v49 = vsel %vm1663_vm6, %v1646_v35, %v1662_v47 }
 0xde1   :  { %v1667_v51 = vsel %vm1665_vm7, %v1666_v48, %v1664_v49 }
 0xde2   :  { %v1670_v54 = vadd.f32 1e-06, %v1667_v51 }
 0xde4   :  { %14109 = vrcp.f32 %v1670_v54 }
 0xdea   :  { %v14108_v58 = vpop.eup %14107 }
 0xdeb   :  { %v1682_v2 = vmul.f32 %v14108_v58, %v1679_v55 }
 0xded   :  { %v1689_v60 = vadd.f32 %v11189_v27, %v1682_v2 }
 0xdee   :  { %v14110_v62 = vpop.eup %14109 }
 0xdef   :  { %12231 = vmatmul.mubr.msk.f32.gmra.mrb[26].mxu1 %vm142_vm3, %v1689_v60  ;;  %v1683_v63 = vmul.f32 %v14110_v62, %v1680_v61 }
 0xdf0   :  { %12233 = vmatprep.mubr.msk.f32.mxu1 %vm14435_vm0, %v14436_v1 }
 0xdf1   :  { %v1690_v3 = vadd.f32 %v11189_v27, %v1683_v63 }
 0xdf3   :  { %12234 = vmatmul.mubr.msk.f32.gmra.mrb[28].mxu1 %vm142_vm3, %v1690_v3 }
 0xe35   :  { %v1775_v4 = vpop.f32.mrb[24].mxu1 }
 0xe36   :  { %v14774_v5 = vadd.f32 %v11190_v8, %v1775_v4  ;;  %v12229_v6 = vpop.f32.mrb[25].mxu1 }
 0xe38   :  { %12240 = vmatprep.mubr.msk.f32.mxu0 %vm45_vm1, %v14774_v5 }
 0xec2   :  { %v1780_v7 = vpop.f32.mrb[26].mxu1 }
 0xec3   :  { %v14778_v46 = vadd.f32 %v11190_v8, %v1780_v7  ;;  %v12232_v9 = vpop.f32.mrb[27].mxu1 }
 0xec5   :  { %v14782_v10 = vpack.i.bf16 %v14778_v46, %v14774_v5  ;;  %v1996_v14 = vrot.slane %v14778_v46, 4 }
 0xec6   :  { %v1785_v11 = vpop.f32.mrb[28].mxu1 }
 0xec7   :  { %13854 = vrot.lane.b32.xlu0 %v14782_v10, %s14437_s30  ;;  %v1786_v12 = vadd.f32 %v11190_v8, %v1785_v11  ;;  %v12235_v13 = vpop.f32.mrb[29].mxu1 }
 0xec9   :  { %v14786_v50 = vrot.slane %v1786_v12, 4 }
 0xecb   :  { %v14791_v15 = vsel %vm32_vm2, %v1996_v14, %v14786_v50 }
 0xecc   :  { %12254 = vmatprep.mubr.msk.f32.mxu1 %vm45_vm1, %v14791_v15  ;;  %v14797_v16 = vpack.i.bf16 %v14786_v50, %v14791_v15 }
 0xece   :  { %13859 = vrot.lane.b32.xlu1 %v14797_v16, %s14437_s30 }
 0xf39   :  { %v13855_v53 = vpop.permute.xlu0 %13854 }
 0xf3a   :  { %v13857_v52 = vunpack.i.h.bf16 %v13855_v53  ;;  %v13856_v19 = vunpack.i.l.bf16 %v13855_v53 }
 0xf3c   :  { %v13254_v17 = vpack.c.bf16 %v13857_v52, %v13856_v19 }
 0xf3e   :  { %13256 = vmatprep.subr.msk.bf16.mxu0 %vm14575_vm10, %v13254_v17 }
 0xf3f   :  { %13259 = vmatpush3.bf16.xpose.msk.msra.mxu0 %vm14575_vm10, %v13254_v17 }
 0xf40   :  { %v13860_v20 = vpop.permute.xlu1 %13859 }
 0xf41   :  { %v13862_v22 = vunpack.i.h.bf16 %v13860_v20  ;;  %v13861_v25 = vunpack.i.l.bf16 %v13860_v20 }
 0xf43   :  { %v13266_v21 = vpack.c.bf16 %v13862_v22, %v13861_v25 }
 0xf45   :  { %13268 = vmatprep.subr.msk.bf16.mxu1 %vm14575_vm10, %v13266_v21 }
 0xf46   :  { %12241 = vmatmul.mubr.msk.f32.vlgmr.msra.gmra.mrb[28].mxu0 %vm45_vm1, %v14778_v46  ;;  %13271 = vmatpush3.bf16.xpose.msk.msra.mxu1 %vm14575_vm10, %v13266_v21 }
 0xf4d   :  { %12255 = vmatmul.mubr.msk.f32.vlgmr.msra.gmra.mrb[30].mxu1 %vm45_vm1, %v14786_v50 }
0x1019   :  { %v12242_v26 = vpop.f32.mrb[28].mxu0 }
0x101a   :  { %v1884_v27 = vmul.f32 0.25, %v12242_v26  ;;  %v1874_v28 = vpop.f32.mrb[29].mxu0 }
0x101b   :  { %v1883_v29 = vmul.f32 0.25, %v1874_v28 }
0x101c   :  { %v1888_v32 = vsel %vm417_vm11, %v1884_v27, -inf }
0x101d   :  { %1889 = vmax.xlane.f32.xlu1 %v1888_v32  ;;  %v1885_v33 = vsel %vm413_vm12, %v1883_v29, -inf }
0x101e   :  { %1886 = vmax.xlane.f32.xlu0 %v1885_v33 }
0x1020   :  { %v12256_v34 = vpop.f32.mrb[30].mxu1 }
0x1021   :  { %v2077_v35 = vpop.f32.mrb[31].mxu1  ;;  %v2087_v38 = vmul.f32 0.25, %v12256_v34 }
0x1022   :  { %v2086_v36 = vmul.f32 0.25, %v2077_v35 }
0x1023   :  { %v2091_v41 = vsel %vm417_vm11, %v2087_v38, -inf }
0x1024   :  { %v2088_v39 = vsel %vm413_vm12, %v2086_v36, -inf }
0x1025   :  { %2089 = vmax.xlane.f32.xlu0 %v2088_v39 }
0x1029   :  { %2092 = vmax.xlane.f32.xlu0 %v2091_v41 }
0x102e   :  { %13864 = vrot.lane.b32.xlu1 %v14782_v10, %s14440_s5 }
0x10aa   :  { %v1890_v42 = vpop.xlane.xlu1 %1889 }
0x10ab   :  { %v1892_v43 = vsub.f32 %v1884_v27, %v1890_v42  ;;  %v1887_v44 = vpop.xlane.xlu0 %1886 }
0x10ac   :  { %v1891_v47 = vsub.f32 %v1883_v29, %v1887_v44 }
0x10ad   :  { %v1895_v48 = vmul.f32 1.442695, %v1892_v43 }
0x10ae   :  { %v1893_v49 = vmul.f32 1.442695, %v1891_v47  ;;  %v13865_v51 = vpop.permute.xlu1 %13864 }
0x10af   :  { %14111 = vpow2.f32 %v1895_v48  ;;  %v13867_v54 = vunpack.i.h.bf16 %v13865_v51  ;;  %v13866_v55 = vunpack.i.l.bf16 %v13865_v51 }
0x10b0   :  { %14113 = vpow2.f32 %v1893_v49 }
0x10b1   :  { %v13260_v58 = vpack.c.bf16 %v13867_v54, %v13866_v55 }
0x10b2   :  { %v2090_v2 = vpop.xlane.xlu0 %2089 }
0x10b3   :  { %13262 = vmatprep.subr.msk.bf16.mxu0 %vm14608_vm14, %v13260_v58  ;;  %v2094_v9 = vsub.f32 %v2086_v36, %v2090_v2 }
0x10b4   :  { %13265 = vmatpush3.bf16.msk.msra.mxu0 %vm14608_vm14, %v13260_v58 }
0x10b5   :  { %v2096_v11 = vmul.f32 1.442695, %v2094_v9 }
0x10b6   :  { %v2093_v60 = vpop.xlane.xlu0 %2092 }
0x10b7   :  { %v2095_v62 = vsub.f32 %v2087_v38, %v2093_v60 }
0x10b9   :  { %v14112_v61 = vpop.eup %14111  ;;  %v2098_v8 = vmul.f32 1.442695, %v2095_v62 }
0x10ba   :  { %v14114_v63 = vpop.eup %14113  ;;  %v1900_v3 = vsel %vm417_vm11, %v14112_v61, 0.0 }
0x10bb   :  { %1901 = vadd.xlane.f32.xlu0 %v1900_v3  ;;  %v1897_v4 = vsel %vm413_vm12, %v14114_v63, 0.0  ;;  %14115 = vpow2.f32 %v2098_v8 }
0x10bc   :  { %1898 = vadd.xlane.f32.xlu1 %v1897_v4  ;;  %14117 = vpow2.f32 %v2096_v11 }
0x10c5   :  { %v14116_v6 = vpop.eup %14115 }
0x10c6   :  { %v2103_v7 = vsel %vm417_vm11, %v14116_v6, 0.0  ;;  %v14118_v12 = vpop.eup %14117 }
0x10c7   :  { %2104 = vadd.xlane.f32.xlu0 %v2103_v7  ;;  %v2100_v13 = vsel %vm413_vm12, %v14118_v12, 0.0 }
0x10cd   :  { %13874 = vrot.lane.b32.xlu1 %v14782_v10, %s14439_s4 }
0x10dd   :  { %13869 = vrot.lane.b32.xlu0 %v14797_v16, %s14440_s5 }
0x10e1   :  { %2207 = vrot.lane.b32.xlu0 %v14778_v46, %s14438_s3 }
0x10f1   :  { %2101 = vadd.xlane.f32.xlu1 %v2100_v13 }
0x1102   :  { %2205 = vrot.lane.b32.xlu1 %v14774_v5, %s14438_s3 }
0x1148   :  { %v1902_v14 = vpop.xlane.xlu0 %1901 }
0x1149   :  { %14119 = vrcp.f32 %v1902_v14  ;;  %v1899_v53 = vpop.xlane.xlu1 %1898 }
0x114a   :  { %14121 = vrcp.f32 %v1899_v53 }
0x114d   :  { %v13875_v25 = vpop.permute.xlu1 %13874 }
0x114e   :  { %v13877_v21 = vunpack.i.h.bf16 %v13875_v25  ;;  %v13876_v26 = vunpack.i.l.bf16 %v13875_v25 }
0x1150   :  { %v13278_v29 = vpack.c.bf16 %v13877_v21, %v13876_v26 }
0x1153   :  { %v14120_v52 = vpop.eup %14119 }
0x1154   :  { %v14122_v19 = vpop.eup %14121  ;;  %v2105_v20 = vpop.xlane.xlu0 %2104  ;;  %v1906_v22 = vmul.f32 %v14120_v52, %v14112_v61 }
0x1155   :  { %v1905_v17 = vmul.f32 %v14122_v19, %v14114_v63  ;;  %14123 = vrcp.f32 %v2105_v20 }
0x1157   :  { %12247 = vmatprep.mubr.msk.f32.mxu0 %vm413_vm12, %v1905_v17 }
0x1158   :  { %12248 = vmatmul.mubr.msk.f32.vlgmr.msra.gmra.mrb[30].mxu0 %vm413_vm12, %v1906_v22  ;;  %v13870_v46 = vpop.permute.xlu0 %13869 }
0x1159   :  { %v13872_v27 = vunpack.i.h.bf16 %v13870_v46  ;;  %v13871_v28 = vunpack.i.l.bf16 %v13870_v46 }
0x115b   :  { %v13272_v5 = vpack.c.bf16 %v13872_v27, %v13871_v28  ;;  %v1789_v27 = vld [vmem:[#allocation2 + $0x150] sm:$0xff]  ;;  %v1790_v28 = vld [vmem:[#allocation2 + $0x158] sm:$0xff] }
0x115c   :  { %v2208_v39 = vpop.permute.xlu0 %2207 }
0x115d   :  { %13274 = vmatprep.subr.msk.bf16.mxu0 %vm14608_vm14, %v13272_v5 }
0x115e   :  { %13277 = vmatpush3.bf16.msk.msra.mxu0 %vm14608_vm14, %v13272_v5  ;;  %v13306_v5 = vpack.c.bf16 %v1790_v28, %v1789_v27 }
0x115f   :  { %13280 = vmatprep.subr.msk.bf16.mxu0 %vm14575_vm10, %v13278_v29  ;;  %v14124_v33 = vpop.eup %14123 }
0x1160   :  { %v2109_v36 = vmul.f32 %v14124_v33, %v14116_v6 }
0x117e   :  { %v2102_v32 = vpop.xlane.xlu1 %2101 }
0x117f   :  { %14125 = vrcp.f32 %v2102_v32 }
0x1182   :  { %v2206_v38 = vpop.permute.xlu1 %2205 }
0x1189   :  { %v14126_v34 = vpop.eup %14125 }
0x118a   :  { %v2108_v35 = vmul.f32 %v14126_v34, %v14118_v12 }
0x118c   :  { %12261 = vmatprep.mubr.msk.f32.mxu0 %vm413_vm12, %v2108_v35 }
0x118d   :  { %12262 = vmatmul.mubr.msk.f32.vlgmr.msra.gmra.mrb[32].mxu0 %vm413_vm12, %v2109_v36 }
0x118e   :  { %13283 = vmatpush3.bf16.xpose.msk.msra.mxu0 %vm14575_vm10, %v13278_v29  ;;  %12268 = vmatprep.mubr.msk.f32.mxu0 %vm45_vm1, %v2206_v38 }
0x1195   :  { %12269 = vmatmul.mubr.msk.f32.vlgmr.msra.gmra.mrb[34].mxu0 %vm45_vm1, %v2208_v39 }
0x122b   :  { %v12249_v41 = vpop.f32.mrb[30].mxu0 }
0x122c   :  { %v14849_v42 = vpop.f32.mrb[31].mxu0 }
0x1260   :  { %v12263_v43 = vpop.f32.mrb[32].mxu0 }
0x1261   :  { %v2201_v44 = vrot.slane %v12263_v43, 4  ;;  %v2189_v47 = vpop.f32.mrb[33].mxu0 }
0x1262   :  { %v2200_v48 = vrot.slane %v2189_v47, 4 }
0x1264   :  { %v14852_v49 = vsel %vm32_vm2, %v12249_v41, %v2200_v48  ;;  %v14855_v51 = vsel %vm32_vm2, %v2200_v48, %v2201_v44 }
0x1268   :  { %v12270_v54 = vpop.f32.mrb[34].mxu0 }
0x1269   :  { %v2297_v55 = vmul.f32 0.25, %v12270_v54  ;;  %v2287_v58 = vpop.f32.mrb[35].mxu0 }
0x126a   :  { %v2296_v2 = vmul.f32 0.25, %v2287_v58 }
0x126b   :  { %v2301_v60 = vsel %vm417_vm11, %v2297_v55, -inf }
0x126c   :  { %2302 = vmax.xlane.f32.xlu0 %v2301_v60  ;;  %v2298_v61 = vsel %vm413_vm12, %v2296_v2, -inf }
0x126d   :  { %2299 = vmax.xlane.f32.xlu1 %v2298_v61 }
0x12f9   :  { %v2303_v62 = vpop.xlane.xlu0 %2302 }
0x12fa   :  { %v2305_v63 = vsub.f32 %v2297_v55, %v2303_v62  ;;  %v2300_v3 = vpop.xlane.xlu1 %2299 }
0x12fb   :  { %v2304_v8 = vsub.f32 %v2296_v2, %v2300_v3 }
0x12fc   :  { %v2308_v4 = vmul.f32 1.442695, %v2305_v63 }
0x12fd   :  { %v2306_v6 = vmul.f32 1.442695, %v2304_v8 }
0x12fe   :  { %14127 = vpow2.f32 %v2308_v4 }
0x12ff   :  { %14129 = vpow2.f32 %v2306_v6 }
0x1308   :  { %v14128_v7 = vpop.eup %14127 }
0x1309   :  { %v14130_v9 = vpop.eup %14129  ;;  %v2313_v11 = vsel %vm417_vm11, %v14128_v7, 0.0 }
0x130a   :  { %2314 = vadd.xlane.f32.xlu1 %v2313_v11  ;;  %v2310_v12 = vsel %vm413_vm12, %v14130_v9, 0.0 }
0x130b   :  { %2311 = vadd.xlane.f32.xlu0 %v2310_v12  ;;  %v1791_v12 = vld [vmem:[#allocation2 + $0x160] sm:$0xff] }
0x131b   :  { %13884 = vrot.lane.b32.xlu1 %v14797_v16, %s14439_s4 }
0x131f   :  { %2408 = vrot.lane.b32.xlu1 %v14791_v15, %s14438_s3 }
0x1321   :  { %13879 = vrot.lane.b32.xlu0 %v14782_v10, %s14442_s6 }
0x1325   :  { %2410 = vrot.lane.b32.xlu0 %v14786_v50, %s14438_s3 }
0x1397   :  { %v2315_v13 = vpop.xlane.xlu1 %2314 }
0x1398   :  { %14131 = vrcp.f32 %v2315_v13  ;;  %v2312_v14 = vpop.xlane.xlu0 %2311  ;;  %v1792_v13 = vld [vmem:[#allocation2 + $0x168] sm:$0xff] }
0x1399   :  { %14133 = vrcp.f32 %v2312_v14 }
0x139b   :  { %v13885_v53 = vpop.permute.xlu1 %13884 }
0x139c   :  { %v13880_v52 = vpop.permute.xlu0 %13879  ;;  %v13887_v19 = vunpack.i.h.bf16 %v13885_v53  ;;  %v13886_v17 = vunpack.i.l.bf16 %v13885_v53 }
0x139d   :  { %v13882_v20 = vunpack.i.h.bf16 %v13880_v52  ;;  %v13881_v22 = vunpack.i.l.bf16 %v13880_v52  ;;  %v13303_v52 = vpack.c.bf16 %v1792_v13, %v1791_v12 }
0x139e   :  { %v13290_v46 = vpack.c.bf16 %v13887_v19, %v13886_v17 }
0x139f   :  { %v13284_v25 = vpack.c.bf16 %v13882_v20, %v13881_v22  ;;  %v2409_v26 = vpop.permute.xlu1 %2408 }
0x13a0   :  { %v2411_v29 = vpop.permute.xlu0 %2410 }
0x13a1   :  { %13286 = vmatprep.subr.msk.bf16.mxu1 %vm14608_vm14, %v13284_v25 }
0x13a2   :  { %v14132_v15 = vpop.eup %14131  ;;  %13289 = vmatpush3.bf16.msk.msra.mxu1 %vm14608_vm14, %v13284_v25 }
0x13a3   :  { %v14134_v10 = vpop.eup %14133  ;;  %13292 = vmatprep.subr.msk.bf16.mxu1 %vm14575_vm10, %v13290_v46  ;;  %v2319_v21 = vmul.f32 %v14132_v15, %v14128_v7 }
0x13a4   :  { %v2318_v50 = vmul.f32 %v14134_v10, %v14130_v9 }
0x13a6   :  { %12275 = vmatprep.mubr.msk.f32.mxu1 %vm413_vm12, %v2318_v50 }
0x13a7   :  { %12276 = vmatmul.mubr.msk.f32.vlgmr.msra.gmra.mrb[32].mxu1 %vm413_vm12, %v2319_v21 }
0x13a8   :  { %12282 = vmatprep.mubr.msk.f32.mxu1 %vm45_vm1, %v2409_v26 }
0x13ab   :  { %13295 = vmatpush3.bf16.xpose.msk.msra.mxu1 %vm14575_vm10, %v13290_v46  ;;  %v11228_v46 = vld [vmem:[#allocation2 + $0x170] ss:$0 sm:$0xff] }
0x13ac   :  { %13305 = vmatprep.subr.bf16.mxu1 %v14434_v0 }
0x13b2   :  { %12283 = vmatmul.mubr.msk.f32.vlgmr.msra.gmra.mrb[34].mxu1 %vm45_vm1, %v2411_v29 }
0x13b3   :  { %13307 = vmatpush3.bf16.msra.mxu1 %v13306_v5  ;;  %12309 = vmatprep.mubr.msk.f32.mxu1 %vm14435_vm0, %v14436_v1 }
0x13b4   :  { %13314 = vmatprep.subr.bf16.mxu1 %v14434_v0 }
0x13b6   :  { %12310 = vmatmul.mubr.msk.f32.vlgmr.msra.gmra.mrb[36].mxu1 %vm45_vm1, %v14849_v42 }
0x13b7   :  { %12312 = vmatprep.mubr.msk.f32.mxu1 %vm14435_vm0, %v14436_v1 }
0x13ba   :  { %12313 = vmatmul.mubr.msk.f32.gmra.mrb[38].mxu1 %vm45_vm1, %v14852_v49 }
0x13bb   :  { %12315 = vmatprep.mubr.msk.f32.mxu1 %vm14435_vm0, %v14436_v1 }
0x13be   :  { %12316 = vmatmul.mubr.msk.f32.gmra.mrb[40].mxu1 %vm45_vm1, %v14855_v51 }
0x13bf   :  { %12343 = vmatprep.mubr.msk.f32.mxu1 %vm14435_vm0, %v14436_v1 }
0x147a   :  { %v14897_v32 = vpop.f32.mrb[32].mxu1 }
0x147b   :  { %v2399_v33 = vpop.f32.mrb[33].mxu1 }
0x1485   :  { %v12284_v34 = vpop.f32.mrb[34].mxu1 }
0x1486   :  { %v2500_v35 = vmul.f32 0.25, %v12284_v34  ;;  %v2490_v36 = vpop.f32.mrb[35].mxu1 }
0x1487   :  { %v2499_v38 = vmul.f32 0.25, %v2490_v36 }
0x1488   :  { %v2504_v39 = vsel %vm417_vm11, %v2500_v35, -inf }
0x1489   :  { %2505 = vmax.xlane.f32.xlu0 %v2504_v39  ;;  %v2780_v41 = vpop.f32.mrb[36].mxu1  ;;  %v2501_v42 = vsel %vm413_vm12, %v2499_v38, -inf }
0x148a   :  { %v12311_v43 = vpop.f32.mrb[37].mxu1  ;;  %2502 = vmax.xlane.f32.xlu1 %v2501_v42 }
0x148d   :  { %v14901_v44 = vpop.f32.mrb[38].mxu1 }
0x148e   :  { %v12314_v47 = vpop.f32.mrb[39].mxu1 }
0x1491   :  { %v14903_v48 = vpop.f32.mrb[40].mxu1 }
0x1492   :  { %v12317_v49 = vpop.f32.mrb[41].mxu1 }
0x1516   :  { %v2506_v51 = vpop.xlane.xlu0 %2505 }
0x1517   :  { %v2508_v54 = vsub.f32 %v2500_v35, %v2506_v51  ;;  %v2503_v55 = vpop.xlane.xlu1 %2502 }
0x1518   :  { %v2507_v58 = vsub.f32 %v2499_v38, %v2503_v55  ;;  %v2882_v55 = vld [vmem:[#allocation2 + $0x198] sm:$0xff] }
0x1519   :  { %v2511_v2 = vmul.f32 1.442695, %v2508_v54  ;;  %v2881_v54 = vld [vmem:[#allocation2 + $0x190] sm:$0xff] }
0x151a   :  { %v2509_v60 = vmul.f32 1.442695, %v2507_v58 }
0x151b   :  { %14135 = vpow2.f32 %v2511_v2  ;;  %v2883_v2 = vld [vmem:[#allocation2 + $0x1a0] sm:$0xff] }
0x151c   :  { %14137 = vpow2.f32 %v2509_v60  ;;  %v13312_v60 = vpack.c.bf16 %v2883_v2, %v2882_v55 }
0x1525   :  { %v14136_v61 = vpop.eup %14135 }
0x1526   :  { %v14138_v62 = vpop.eup %14137  ;;  %v2516_v63 = vsel %vm417_vm11, %v14136_v61, 0.0 }
0x1527   :  { %2517 = vadd.xlane.f32.xlu1 %v2516_v63  ;;  %v2513_v3 = vsel %vm413_vm12, %v14138_v62, 0.0 }
0x1528   :  { %2514 = vadd.xlane.f32.xlu0 %v2513_v3 }
0x153e   :  { %13889 = vrot.lane.b32.xlu0 %v14797_v16, %s14442_s6 }
0x15b4   :  { %v2518_v8 = vpop.xlane.xlu1 %2517 }
0x15b5   :  { %14139 = vrcp.f32 %v2518_v8  ;;  %v2515_v4 = vpop.xlane.xlu0 %2514 }
0x15b6   :  { %14141 = vrcp.f32 %v2515_v4 }
0x15b9   :  { %v13890_v6 = vpop.permute.xlu0 %13889 }
0x15ba   :  { %v13892_v7 = vunpack.i.h.bf16 %v13890_v6  ;;  %v13891_v9 = vunpack.i.l.bf16 %v13890_v6 }
0x15bc   :  { %v13296_v11 = vpack.c.bf16 %v13892_v7, %v13891_v9 }
0x15be   :  { %13298 = vmatprep.subr.msk.bf16.mxu0 %vm14608_vm14, %v13296_v11 }
0x15bf   :  { %v14140_v14 = vpop.eup %14139  ;;  %13301 = vmatpush3.bf16.msk.msra.mxu0 %vm14608_vm14, %v13296_v11 }
0x15c0   :  { %v14142_v53 = vpop.eup %14141  ;;  %13302 = vmatprep.subr.bf16.mxu0 %v14434_v0  ;;  %v2522_v19 = vmul.f32 %v14140_v14, %v14136_v61 }
0x15c1   :  { %v2521_v16 = vmul.f32 %v14142_v53, %v14138_v62 }
0x15c3   :  { %12289 = vmatprep.mubr.msk.f32.mxu0 %vm413_vm12, %v2521_v16 }
0x15c4   :  { %12290 = vmatmul.mubr.msk.f32.vlgmr.msra.gmra.mrb[36].mxu0 %vm413_vm12, %v2522_v19 }
0x15c5   :  { %13304 = vmatpush3.bf16.msra.mxu0 %v13303_v52  ;;  %12296 = vmatprep.mubr.msk.f32.mxu0 %vm14435_vm0, %v14436_v1 }
0x15c6   :  { %13308 = vmatprep.subr.bf16.mxu0 %v14434_v0 }
0x15c8   :  { %12297 = vmatmul.mubr.msk.f32.vlgmr.msra.gmra.mrb[38].mxu0 %vm45_vm1, %v2399_v33 }
0x15c9   :  { %12299 = vmatprep.mubr.msk.f32.mxu0 %vm14435_vm0, %v14436_v1 }
0x1697   :  { %v12291_v17 = vpop.f32.mrb[36].mxu0 }
0x1698   :  { %v2614_v20 = vrot.slane %v12291_v17, 4  ;;  %v2602_v22 = vpop.f32.mrb[37].mxu0  ;;  %v11229_v17 = vld [vmem:[#allocation2 + $0x178] ss:$0 sm:$0xff] }
0x1699   :  { %v2613_v25 = vrot.slane %v2602_v22, 4 }
0x169b   :  { %v2692_v15 = vpop.f32.mrb[38].mxu0  ;;  %v2617_v10 = vsel %vm32_vm2, %v14897_v32, %v2613_v25  ;;  %v2615_v50 = vsel %vm32_vm2, %v2613_v25, %v2614_v20  ;;  %v11230_v25 = vld [vmem:[#allocation2 + $0x180] ss:$0 sm:$0xff] }
0x169c   :  { %v2781_v21 = vadd.f32 %v2780_v41, %v2692_v15  ;;  %v12298_v26 = vpop.f32.mrb[39].mxu0  ;;  %12300 = vmatmul.mubr.msk.f32.gmra.mrb[40].mxu0 %vm45_vm1, %v2617_v10  ;;  %v3180_v10 = vld [vmem:[#allocation2 + $0x1f8] sm:$0xff] }
0x169d   :  { %12302 = vmatprep.mubr.msk.f32.mxu0 %vm14435_vm0, %v14436_v1  ;;  %v3182_v26 = vld [vmem:[#allocation2 + $0x208] sm:$0xff] }
0x169e   :  { %v2798_v27 = vadd.f32 %v11228_v46, %v2781_v21 }
0x16a0   :  { %v14929_v28 = vadd.f32 %v2798_v27, %v14746_v40  ;;  %12303 = vmatmul.mubr.msk.f32.gmra.mrb[42].mxu0 %vm45_vm1, %v2615_v50  ;;  %v3181_v50 = vld [vmem:[#allocation2 + $0x200] sm:$0xff]  ;;  %v3183_v27 = vld [vmem:[#allocation2 + $0x210] sm:$0xff] }
0x16a1   :  { %12326 = vmatprep.mubr.msk.f32.mxu0 %vm14435_vm0, %v14436_v1  ;;  %v13321_v21 = vpack.c.bf16 %v3181_v50, %v3180_v10 }
0x16a2   :  { %v2806_v5 = vsel %vm142_vm3, %v14929_v28, 0.0 }
0x16a3   :  { %2807 = vadd.xlane.f32.xlu1 %v2806_v5  ;;  %v13324_v5 = vpack.c.bf16 %v3183_v27, %v3182_v26 }
0x1730   :  { %v2808_v29 = vpop.xlane.xlu1 %2807 }
0x1731   :  { %v2815_v35 = vmul.f32 0.03125, %v2808_v29  ;;  %v2981_v29 = vld [vmem:[#allocation2 + $0x1b0] sm:$0xff] }
0x1733   :  { %v2818_v42 = vsub.f32 %v14929_v28, %v2815_v35  ;;  %v2984_v35 = vld [vmem:[#allocation2 + $0x1c8] sm:$0xff] }
0x1735   :  { %v2821_v51 = vmul.f32 %v2818_v42, %v2818_v42  ;;  %v2867_v20 = vmul.f32 %v11229_v17, %v2818_v42 }
0x176f   :  { %v2697_v32 = vpop.f32.mrb[40].mxu0 }
0x1770   :  { %v2786_v33 = vadd.f32 %v14901_v44, %v2697_v32  ;;  %v12301_v34 = vpop.f32.mrb[41].mxu0  ;;  %v2982_v32 = vld [vmem:[#allocation2 + $0x1b8] sm:$0xff] }
0x1771   :  { %v2983_v34 = vld [vmem:[#allocation2 + $0x1c0] sm:$0xff] }
0x1772   :  { %v2799_v36 = vadd.f32 %v11228_v46, %v2786_v33  ;;  %v13315_v33 = vpack.c.bf16 %v2982_v32, %v2981_v29 }
0x1773   :  { %v2702_v38 = vpop.f32.mrb[42].mxu0 }
0x1774   :  { %v14938_v40 = vadd.f32 %v2799_v36, %v14751_v45  ;;  %v2791_v39 = vadd.f32 %v14903_v48, %v2702_v38  ;;  %v12304_v41 = vpop.f32.mrb[43].mxu0  ;;  %v2824_v45 = vsel %vm142_vm3, %v2821_v51, 0.0  ;;  %v2880_v48 = vld [vmem:[#allocation2 + $0x188] sm:$0xff]  ;;  %13316 = vmatpush3.bf16.msra.mxu1 %v13315_v33  ;;  %v13318_v36 = vpack.c.bf16 %v2984_v35, %v2983_v34 }
0x1775   :  { %v13309_v58 = vpack.c.bf16 %v2881_v54, %v2880_v48  ;;  %13317 = vmatprep.subr.bf16.mxu1 %v14434_v0 }
0x1776   :  { %v2800_v43 = vadd.f32 %v11228_v46, %v2791_v39  ;;  %v2809_v47 = vsel %vm142_vm3, %v14938_v40, 0.0 }
0x1777   :  { %2810 = vadd.xlane.f32.xlu1 %v2809_v47  ;;  %13310 = vmatpush3.bf16.msra.mxu0 %v13309_v58 }
0x1778   :  { %v14945_v49 = vadd.f32 %v2800_v43, %v14756_v56  ;;  %13311 = vmatprep.subr.bf16.mxu0 %v14434_v0  ;;  %13319 = vmatpush3.bf16.msra.mxu1 %v13318_v36 }
0x177a   :  { %v2812_v44 = vsel %vm142_vm3, %v14945_v49, 0.0 }
0x177b   :  { %2813 = vadd.xlane.f32.xlu1 %v2812_v44  ;;  %13313 = vmatpush3.bf16.msra.mxu0 %v13312_v60 }
0x177c   :  { %13320 = vmatprep.subr.bf16.mxu0 %v14434_v0 }
0x177f   :  { %2825 = vadd.xlane.f32.xlu1 %v2824_v45 }
0x1804   :  { %v2811_v56 = vpop.xlane.xlu1 %2810 }
0x1805   :  { %v2816_v61 = vmul.f32 0.03125, %v2811_v56 }
0x1807   :  { %v14953_v62 = vsub.f32 %v14938_v40, %v2816_v61 }
0x1808   :  { %v2814_v63 = vpop.xlane.xlu1 %2813 }
0x1809   :  { %v2817_v3 = vmul.f32 0.03125, %v2814_v63  ;;  %v2822_v8 = vmul.f32 %v14953_v62, %v14953_v62  ;;  %v2868_v61 = vmul.f32 %v11229_v17, %v14953_v62 }
0x180b   :  { %v14958_v4 = vsub.f32 %v14945_v49, %v2817_v3  ;;  %v2827_v6 = vsel %vm142_vm3, %v2822_v8, 0.0 }
0x180c   :  { %2828 = vadd.xlane.f32.xlu1 %v2827_v6  ;;  %v2826_v7 = vpop.xlane.xlu1 %2825 }
0x180d   :  { %v2833_v9 = vmul.f32 0.032258064, %v2826_v7  ;;  %v2823_v11 = vmul.f32 %v14958_v4, %v14958_v4  ;;  %v2869_v6 = vmul.f32 %v11229_v17, %v14958_v4 }
0x180f   :  { %14143 = vrsqrt.f32 %v2833_v9  ;;  %v2830_v12 = vsel %vm142_vm3, %v2823_v11, 0.0  ;;  %vm2838_vm8 = vcmp.eq.f32.partialorder %v2833_v9, inf  ;;  %v2841_v53 = vand.u32 2147483648, %v2833_v9 }
0x1810   :  { %2831 = vadd.xlane.f32.xlu1 %v2830_v12  ;;  %vm2840_vm9 = vcmp.eq.f32.partialorder %v2833_v9, 0.0  ;;  %v11242_v12 = vld [vmem:[#allocation2 + $0x1f0] ss:$0 sm:$0xff] }
0x1811   :  { %v3177_v62 = vadd.f32 %v11242_v12, %v14533_v23  ;;  %v3178_v4 = vadd.f32 %v11242_v12, %v14538_v31 }
0x1819   :  { %v14144_v13 = vpop.eup %14143 }
0x181a   :  { %v2837_v14 = vmul.f32 %v14144_v13, %v2833_v9  ;;  %v3179_v13 = vadd.f32 %v11242_v12, %v14545_v37 }
0x181c   :  { %v2839_v16 = vsel %vm2838_vm8, %v2833_v9, %v2837_v14  ;;  %v11231_v14 = vld [vmem:[#allocation2 + $0x1a8] ss:$0 sm:$0xff] }
0x181d   :  { %v2842_v52 = vsel %vm2840_vm9, %v2841_v53, %v2839_v16 }
0x181e   :  { %v2857_v19 = vadd.f32 1e-06, %v2842_v52 }
0x1820   :  { %14145 = vrcp.f32 %v2857_v19 }
0x182a   :  { %v14146_v22 = vpop.eup %14145 }
0x182b   :  { %v2870_v46 = vmul.f32 %v14146_v22, %v2867_v20 }
0x182d   :  { %v2877_v15 = vadd.f32 %v11230_v25, %v2870_v46  ;;  %v11243_v46 = vld [vmem:[#allocation2 + $0x218] ss:$0 sm:$0xff] }
0x182f   :  { %12327 = vmatmul.mubr.msk.f32.vlgmr.msra.gmra.mrb[44].mxu0 %vm142_vm3, %v2877_v15 }
0x1830   :  { %12329 = vmatprep.mubr.msk.f32.mxu0 %vm14435_vm0, %v14436_v1  ;;  %13322 = vmatpush3.bf16.msra.mxu0 %v13321_v21 }
0x1831   :  { %13323 = vmatprep.subr.bf16.mxu0 %v14434_v0 }
0x1834   :  { %13325 = vmatpush3.bf16.msra.mxu0 %v13324_v5 }
0x1899   :  { %v2829_v38 = vpop.xlane.xlu1 %2828 }
0x189a   :  { %v2834_v39 = vmul.f32 0.032258064, %v2829_v38 }
0x189c   :  { %14147 = vrsqrt.f32 %v2834_v39  ;;  %vm2845_vm15 = vcmp.eq.f32.partialorder %v2834_v39, inf  ;;  %v2848_v44 = vand.u32 2147483648, %v2834_v39  ;;  %vm2847_vm4 = vcmp.eq.f32.partialorder %v2834_v39, 0.0 }
0x189d   :  { %v2832_v41 = vpop.xlane.xlu1 %2831 }
0x189e   :  { %v2835_v42 = vmul.f32 0.032258064, %v2832_v41 }
0x18a0   :  { %14149 = vrsqrt.f32 %v2835_v42  ;;  %vm2852_vm5 = vcmp.eq.f32.partialorder %v2835_v42, inf  ;;  %v2855_v58 = vand.u32 2147483648, %v2835_v42  ;;  %vm2854_vm6 = vcmp.eq.f32.partialorder %v2835_v42, 0.0 }
0x18a6   :  { %v14148_v43 = vpop.eup %14147 }
0x18a7   :  { %v2844_v47 = vmul.f32 %v14148_v43, %v2834_v39 }
0x18a9   :  { %v2846_v51 = vsel %vm2845_vm15, %v2834_v39, %v2844_v47 }
0x18aa   :  { %v2849_v45 = vsel %vm2847_vm4, %v2848_v44, %v2846_v51  ;;  %v14150_v48 = vpop.eup %14149 }
0x18ab   :  { %v2858_v54 = vadd.f32 1e-06, %v2849_v45  ;;  %v2851_v55 = vmul.f32 %v14150_v48, %v2835_v42 }
0x18ad   :  { %14151 = vrcp.f32 %v2858_v54  ;;  %v2853_v2 = vsel %vm2852_vm5, %v2835_v42, %v2851_v55 }
0x18ae   :  { %v2856_v60 = vsel %vm2854_vm6, %v2855_v58, %v2853_v2 }
0x18af   :  { %v2859_v56 = vadd.f32 1e-06, %v2856_v60 }
0x18b1   :  { %14153 = vrcp.f32 %v2859_v56 }
0x18b7   :  { %v14152_v63 = vpop.eup %14151 }
0x18b8   :  { %v2871_v3 = vmul.f32 %v14152_v63, %v2868_v61 }
0x18ba   :  { %v2878_v8 = vadd.f32 %v11230_v25, %v2871_v3 }
0x18bb   :  { %v14154_v7 = vpop.eup %14153 }
0x18bc   :  { %12330 = vmatmul.mubr.msk.f32.gmra.mrb[46].mxu0 %vm142_vm3, %v2878_v8  ;;  %v2872_v9 = vmul.f32 %v14154_v7, %v2869_v6 }
0x18bd   :  { %12332 = vmatprep.mubr.msk.f32.mxu0 %vm14435_vm0, %v14436_v1 }
0x18be   :  { %v2879_v11 = vadd.f32 %v11230_v25, %v2872_v9 }
0x18c0   :  { %12333 = vmatmul.mubr.msk.f32.gmra.mrb[48].mxu0 %vm142_vm3, %v2879_v11 }
0x18c1   :  { %12360 = vmatprep.mubr.msk.f32.mxu0 %vm14435_vm0, %v14436_v1 }
0x18c4   :  { %12361 = vmatmul.mubr.msk.f32.vlgmr.msra.gmra.mrb[50].mxu0 %vm142_vm3, %v3177_v62 }
0x18c5   :  { %12363 = vmatprep.mubr.msk.f32.mxu0 %vm14435_vm0, %v14436_v1 }
0x18c8   :  { %12364 = vmatmul.mubr.msk.f32.gmra.mrb[52].mxu0 %vm142_vm3, %v3178_v4 }
0x18c9   :  { %12366 = vmatprep.mubr.msk.f32.mxu0 %vm14435_vm0, %v14436_v1 }
0x18cc   :  { %12367 = vmatmul.mubr.msk.f32.gmra.mrb[54].mxu0 %vm142_vm3, %v3179_v13 }
0x1902   :  { %v2964_v53 = vpop.f32.mrb[44].mxu0 }
0x1903   :  { %v2965_v16 = vadd.f32 %v11231_v14, %v2964_v53  ;;  %v12328_v23 = vpop.f32.mrb[45].mxu0 }
0x1905   :  { %v2978_v52 = vmax.f32 %v2965_v16, 0.0 }
0x1907   :  { %12344 = vmatmul.mubr.msk.f32.vlgmr.msra.gmra.mrb[42].mxu1 %vm142_vm3, %v2978_v52 }
0x1908   :  { %12346 = vmatprep.mubr.msk.f32.mxu1 %vm14435_vm0, %v14436_v1 }
0x198f   :  { %v2969_v31 = vpop.f32.mrb[46].mxu0 }
0x1990   :  { %v2970_v19 = vadd.f32 %v11231_v14, %v2969_v31  ;;  %v12331_v17 = vpop.f32.mrb[47].mxu0 }
0x1992   :  { %v2979_v20 = vmax.f32 %v2970_v19, 0.0 }
0x1993   :  { %v2974_v22 = vpop.f32.mrb[48].mxu0 }
0x1994   :  { %12347 = vmatmul.mubr.msk.f32.gmra.mrb[44].mxu1 %vm142_vm3, %v2979_v20  ;;  %v2975_v37 = vadd.f32 %v11231_v14, %v2974_v22  ;;  %v12334_v25 = vpop.f32.mrb[49].mxu0 }
0x1995   :  { %12349 = vmatprep.mubr.msk.f32.mxu1 %vm14435_vm0, %v14436_v1 }
0x1996   :  { %v2980_v15 = vmax.f32 %v2975_v37, 0.0 }
0x1997   :  { %v3264_v10 = vpop.f32.mrb[50].mxu0 }
0x1998   :  { %v3265_v50 = vadd.f32 %v11243_v46, %v3264_v10  ;;  %12350 = vmatmul.mubr.msk.f32.gmra.mrb[46].mxu1 %vm142_vm3, %v2980_v15  ;;  %v12362_v21 = vpop.f32.mrb[51].mxu0 }
0x199a   :  { %12373 = vmatprep.mubr.msk.f32.mxu1 %vm45_vm1, %v3265_v50 }
0x199b   :  { %v3269_v26 = vpop.f32.mrb[52].mxu0 }
0x199c   :  { %v14995_v27 = vadd.f32 %v11243_v46, %v3269_v26  ;;  %v12365_v5 = vpop.f32.mrb[53].mxu0 }
0x199e   :  { %v14998_v29 = vpack.i.bf16 %v14995_v27, %v3265_v50  ;;  %v3485_v36 = vrot.slane %v14995_v27, 4 }
0x199f   :  { %v3274_v32 = vpop.f32.mrb[54].mxu0 }
0x19a0   :  { %v3275_v33 = vadd.f32 %v11243_v46, %v3274_v32  ;;  %13894 = vrot.lane.b32.xlu0 %v14998_v29, %s14437_s30  ;;  %v12368_v34 = vpop.f32.mrb[55].mxu0 }
0x19a2   :  { %v15002_v35 = vrot.slane %v3275_v33, 4 }
0x19a4   :  { %v15007_v38 = vsel %vm32_vm2, %v3485_v36, %v15002_v35 }
0x19a5   :  { %12387 = vmatprep.mubr.msk.f32.mxu0 %vm45_vm1, %v15007_v38  ;;  %v15013_v39 = vpack.i.bf16 %v15002_v35, %v15007_v38 }
0x19a7   :  { %13899 = vrot.lane.b32.xlu1 %v15013_v39, %s14437_s30 }
0x19da   :  { %v15017_v41 = vpop.f32.mrb[42].mxu1 }
0x19db   :  { %v12345_v42 = vpop.f32.mrb[43].mxu1 }
0x1a12   :  { %v13895_v43 = vpop.permute.xlu0 %13894 }
0x1a13   :  { %v13897_v47 = vunpack.i.h.bf16 %v13895_v43  ;;  %v13896_v44 = vunpack.i.l.bf16 %v13895_v43 }
0x1a15   :  { %v13326_v51 = vpack.c.bf16 %v13897_v47, %v13896_v44 }
0x1a17   :  { %13328 = vmatprep.subr.msk.bf16.mxu1 %vm14575_vm10, %v13326_v51 }
0x1a18   :  { %13331 = vmatpush3.bf16.xpose.msk.msra.mxu1 %vm14575_vm10, %v13326_v51 }
0x1a19   :  { %v13900_v45 = vpop.permute.xlu1 %13899 }
0x1a1a   :  { %v13902_v48 = vunpack.i.h.bf16 %v13900_v45  ;;  %v13901_v54 = vunpack.i.l.bf16 %v13900_v45 }
0x1a1c   :  { %v13338_v55 = vpack.c.bf16 %v13902_v48, %v13901_v54 }
0x1a1e   :  { %13340 = vmatprep.subr.msk.bf16.mxu0 %vm14575_vm10, %v13338_v55 }
0x1a1f   :  { %12374 = vmatmul.mubr.msk.f32.vlgmr.msra.gmra.mrb[48].mxu1 %vm45_vm1, %v14995_v27  ;;  %13343 = vmatpush3.bf16.xpose.msk.msra.mxu0 %vm14575_vm10, %v13338_v55 }
0x1a26   :  { %12388 = vmatmul.mubr.msk.f32.vlgmr.msra.gmra.mrb[56].mxu0 %vm45_vm1, %v15002_v35 }
0x1a67   :  { %v15031_v58 = vpop.f32.mrb[44].mxu1 }
0x1a68   :  { %v12348_v2 = vpop.f32.mrb[45].mxu1 }
0x1a6b   :  { %v15033_v60 = vpop.f32.mrb[46].mxu1 }
0x1a6c   :  { %v12351_v56 = vpop.f32.mrb[47].mxu1 }
0x1af2   :  { %v12375_v61 = vpop.f32.mrb[48].mxu1 }
0x1af3   :  { %v3373_v63 = vmul.f32 0.25, %v12375_v61  ;;  %v3363_v3 = vpop.f32.mrb[49].mxu1 }
0x1af4   :  { %v3372_v8 = vmul.f32 0.25, %v3363_v3 }
0x1af5   :  { %v3377_v6 = vsel %vm417_vm11, %v3373_v63, -inf }
0x1af6   :  { %3378 = vmax.xlane.f32.xlu1 %v3377_v6  ;;  %v3374_v7 = vsel %vm413_vm12, %v3372_v8, -inf }
0x1af7   :  { %3375 = vmax.xlane.f32.xlu0 %v3374_v7 }
0x1af9   :  { %v12389_v9 = vpop.f32.mrb[56].mxu0 }
0x1afa   :  { %v3566_v11 = vpop.f32.mrb[57].mxu0  ;;  %v3576_v62 = vmul.f32 0.25, %v12389_v9 }
0x1afb   :  { %v3575_v12 = vmul.f32 0.25, %v3566_v11 }
0x1afc   :  { %v3580_v13 = vsel %vm417_vm11, %v3576_v62, -inf }
0x1afd   :  { %v3577_v4 = vsel %vm413_vm12, %v3575_v12, -inf }
0x1afe   :  { %3578 = vmax.xlane.f32.xlu0 %v3577_v4 }
0x1b02   :  { %3581 = vmax.xlane.f32.xlu0 %v3580_v13 }
0x1b07   :  { %13904 = vrot.lane.b32.xlu1 %v14998_v29, %s14440_s5 }
0x1b0b   :  { %13914 = vrot.lane.b32.xlu1 %v14998_v29, %s14439_s4 }
0x1b0f   :  { %3694 = vrot.lane.b32.xlu1 %v3265_v50, %s14438_s3 }
0x1b83   :  { %v3379_v14 = vpop.xlane.xlu1 %3378 }
0x1b84   :  { %v3381_v53 = vsub.f32 %v3373_v63, %v3379_v14  ;;  %v3376_v16 = vpop.xlane.xlu0 %3375 }
0x1b85   :  { %v3380_v23 = vsub.f32 %v3372_v8, %v3376_v16 }
0x1b86   :  { %v3384_v52 = vmul.f32 1.442695, %v3381_v53 }
0x1b87   :  { %v3382_v31 = vmul.f32 1.442695, %v3380_v23  ;;  %v13905_v19 = vpop.permute.xlu1 %13904 }
0x1b88   :  { %14155 = vpow2.f32 %v3384_v52  ;;  %v13907_v17 = vunpack.i.h.bf16 %v13905_v19  ;;  %v13906_v20 = vunpack.i.l.bf16 %v13905_v19 }
0x1b89   :  { %14157 = vpow2.f32 %v3382_v31 }
0x1b8a   :  { %v13332_v22 = vpack.c.bf16 %v13907_v17, %v13906_v20 }
0x1b8b   :  { %v3579_v37 = vpop.xlane.xlu0 %3578  ;;  %v13915_v2 = vpop.permute.xlu1 %13914 }
0x1b8c   :  { %13334 = vmatprep.subr.msk.bf16.mxu1 %vm14608_vm14, %v13332_v22  ;;  %v3583_v25 = vsub.f32 %v3575_v12, %v3579_v37  ;;  %v13917_v61 = vunpack.i.h.bf16 %v13915_v2 }
0x1b8d   :  { %13337 = vmatpush3.bf16.msk.msra.mxu1 %vm14608_vm14, %v13332_v22 }
0x1b8e   :  { %v3585_v50 = vmul.f32 1.442695, %v3583_v25 }
0x1b8f   :  { %v3582_v46 = vpop.xlane.xlu0 %3581 }
0x1b90   :  { %v3584_v15 = vsub.f32 %v3576_v62, %v3582_v46  ;;  %v3695_v62 = vpop.permute.xlu1 %3694 }
0x1b92   :  { %v14156_v10 = vpop.eup %14155  ;;  %v3587_v21 = vmul.f32 1.442695, %v3584_v15 }
0x1b93   :  { %v3389_v26 = vsel %vm417_vm11, %v14156_v10, 0.0  ;;  %v14158_v5 = vpop.eup %14157 }
0x1b94   :  { %14159 = vpow2.f32 %v3587_v21  ;;  %3390 = vadd.xlane.f32.xlu0 %v3389_v26  ;;  %v3386_v32 = vsel %vm413_vm12, %v14158_v5, 0.0 }
0x1b95   :  { %14161 = vpow2.f32 %v3585_v50 }
0x1b98   :  { %3387 = vadd.xlane.f32.xlu0 %v3386_v32 }
0x1b9e   :  { %v14160_v33 = vpop.eup %14159 }
0x1b9f   :  { %v3592_v34 = vsel %vm417_vm11, %v14160_v33, 0.0  ;;  %v14162_v36 = vpop.eup %14161 }
0x1ba0   :  { %3593 = vadd.xlane.f32.xlu0 %v3592_v34  ;;  %v3589_v42 = vsel %vm413_vm12, %v14162_v36, 0.0 }
0x1ba4   :  { %3590 = vadd.xlane.f32.xlu0 %v3589_v42 }
0x1bba   :  { %13909 = vrot.lane.b32.xlu0 %v15013_v39, %s14440_s5 }
0x1bbe   :  { %3696 = vrot.lane.b32.xlu0 %v14995_v27, %s14438_s3  ;;  %v13916_v27 = vunpack.i.l.bf16 %v13915_v2 }
0x1bc0   :  { %v13350_v6 = vpack.c.bf16 %v13917_v61, %v13916_v27  ;;  %v3278_v27 = vld [vmem:[#allocation2 + $0x220] sm:$0xff] }
0x1c21   :  { %v3391_v43 = vpop.xlane.xlu0 %3390 }
0x1c22   :  { %14163 = vrcp.f32 %v3391_v43 }
0x1c25   :  { %v3388_v47 = vpop.xlane.xlu0 %3387 }
0x1c26   :  { %14165 = vrcp.f32 %v3388_v47 }
0x1c2c   :  { %v14164_v51 = vpop.eup %14163 }
0x1c2d   :  { %v3594_v44 = vpop.xlane.xlu0 %3593  ;;  %v3395_v55 = vmul.f32 %v14164_v51, %v14156_v10 }
0x1c2e   :  { %14167 = vrcp.f32 %v3594_v44 }
0x1c30   :  { %v14166_v45 = vpop.eup %14165 }
0x1c31   :  { %v3591_v48 = vpop.xlane.xlu0 %3590  ;;  %v3394_v54 = vmul.f32 %v14166_v45, %v14158_v5 }
0x1c32   :  { %14169 = vrcp.f32 %v3591_v48 }
0x1c33   :  { %12380 = vmatprep.mubr.msk.f32.mxu1 %vm413_vm12, %v3394_v54 }
0x1c34   :  { %12381 = vmatmul.mubr.msk.f32.vlgmr.msra.gmra.mrb[50].mxu1 %vm413_vm12, %v3395_v55 }
0x1c35   :  { %v13910_v56 = vpop.permute.xlu0 %13909 }
0x1c36   :  { %v13912_v63 = vunpack.i.h.bf16 %v13910_v56  ;;  %v13911_v3 = vunpack.i.l.bf16 %v13910_v56 }
0x1c38   :  { %v13344_v8 = vpack.c.bf16 %v13912_v63, %v13911_v3  ;;  %v14168_v7 = vpop.eup %14167  ;;  %v3279_v63 = vld [vmem:[#allocation2 + $0x228] sm:$0xff] }
0x1c39   :  { %v3598_v12 = vmul.f32 %v14168_v7, %v14160_v33  ;;  %v3697_v4 = vpop.permute.xlu0 %3696  ;;  %v13378_v3 = vpack.c.bf16 %v3279_v63, %v3278_v27 }
0x1c3a   :  { %13346 = vmatprep.subr.msk.bf16.mxu1 %vm14608_vm14, %v13344_v8 }
0x1c3b   :  { %13349 = vmatpush3.bf16.msk.msra.mxu1 %vm14608_vm14, %v13344_v8 }
0x1c3c   :  { %v14170_v9 = vpop.eup %14169  ;;  %13352 = vmatprep.subr.msk.bf16.mxu1 %vm14575_vm10, %v13350_v6 }
0x1c3d   :  { %v3597_v11 = vmul.f32 %v14170_v9, %v14162_v36 }
0x1c3f   :  { %12394 = vmatprep.mubr.msk.f32.mxu1 %vm413_vm12, %v3597_v11 }
0x1c40   :  { %12395 = vmatmul.mubr.msk.f32.vlgmr.msra.gmra.mrb[52].mxu1 %vm413_vm12, %v3598_v12 }
0x1c41   :  { %12401 = vmatprep.mubr.msk.f32.mxu1 %vm45_vm1, %v3695_v62 }
0x1c44   :  { %13355 = vmatpush3.bf16.xpose.msk.msra.mxu1 %vm14575_vm10, %v13350_v6 }
0x1c4b   :  { %12402 = vmatmul.mubr.msk.f32.vlgmr.msra.gmra.mrb[54].mxu1 %vm45_vm1, %v3697_v4 }
0x1d07   :  { %v12382_v13 = vpop.f32.mrb[50].mxu1 }
0x1d08   :  { %v15070_v14 = vpop.f32.mrb[51].mxu1 }
0x1d13   :  { %v12396_v53 = vpop.f32.mrb[52].mxu1 }
0x1d14   :  { %v3690_v16 = vrot.slane %v12396_v53, 4  ;;  %v3678_v23 = vpop.f32.mrb[53].mxu1 }
0x1d15   :  { %v3689_v52 = vrot.slane %v3678_v23, 4 }
0x1d17   :  { %v15073_v31 = vsel %vm32_vm2, %v12382_v13, %v3689_v52  ;;  %v15076_v19 = vsel %vm32_vm2, %v3689_v52, %v3690_v16 }
0x1d1e   :  { %v12403_v17 = vpop.f32.mrb[54].mxu1 }
0x1d1f   :  { %v3786_v20 = vmul.f32 0.25, %v12403_v17  ;;  %v3776_v22 = vpop.f32.mrb[55].mxu1 }
0x1d20   :  { %v3785_v37 = vmul.f32 0.25, %v3776_v22 }
0x1d21   :  { %v3790_v25 = vsel %vm417_vm11, %v3786_v20, -inf }
0x1d22   :  { %3791 = vmax.xlane.f32.xlu0 %v3790_v25  ;;  %v3787_v46 = vsel %vm413_vm12, %v3785_v37, -inf }
0x1d23   :  { %3788 = vmax.xlane.f32.xlu1 %v3787_v46  ;;  %v3074_v46 = vadd.f32 %v15017_v41, %v14929_v28 }
0x1daf   :  { %v3792_v15 = vpop.xlane.xlu0 %3791 }
0x1db0   :  { %v3794_v10 = vsub.f32 %v3786_v20, %v3792_v15  ;;  %v3789_v50 = vpop.xlane.xlu1 %3788  ;;  %v11238_v15 = vld [vmem:[#allocation2 + $0x1d0] ss:$0 sm:$0xff] }
0x1db1   :  { %v3793_v21 = vsub.f32 %v3785_v37, %v3789_v50 }
0x1db2   :  { %v3797_v26 = vmul.f32 1.442695, %v3794_v10 }
0x1db3   :  { %v3795_v5 = vmul.f32 1.442695, %v3793_v21  ;;  %v3075_v21 = vadd.f32 %v15031_v58, %v14938_v40 }
0x1db4   :  { %14171 = vpow2.f32 %v3797_v26 }
0x1db5   :  { %14173 = vpow2.f32 %v3795_v5  ;;  %v3082_v5 = vadd.f32 %v11238_v15, %v3074_v46 }
0x1dbe   :  { %v14172_v32 = vpop.eup %14171 }
0x1dbf   :  { %v14174_v33 = vpop.eup %14173  ;;  %v3802_v34 = vsel %vm417_vm11, %v14172_v32, 0.0 }
0x1dc0   :  { %3803 = vadd.xlane.f32.xlu1 %v3802_v34  ;;  %v3799_v36 = vsel %vm413_vm12, %v14174_v33, 0.0  ;;  %v3076_v34 = vadd.f32 %v15033_v60, %v14945_v49 }
0x1dc1   :  { %3800 = vadd.xlane.f32.xlu0 %v3799_v36  ;;  %v3087_v36 = vsel %vm142_vm3, %v3082_v5, 0.0 }
0x1dc2   :  { %v3084_v28 = vadd.f32 %v11238_v15, %v3076_v34 }
0x1dc4   :  { %v3093_v40 = vsel %vm142_vm3, %v3084_v28, 0.0 }
0x1dd1   :  { %13924 = vrot.lane.b32.xlu1 %v15013_v39, %s14439_s4 }
0x1dd5   :  { %3897 = vrot.lane.b32.xlu1 %v15007_v38, %s14438_s3 }
0x1dd7   :  { %13919 = vrot.lane.b32.xlu0 %v14998_v29, %s14442_s6 }
0x1ddb   :  { %3899 = vrot.lane.b32.xlu0 %v15002_v35, %s14438_s3 }
0x1e4d   :  { %v3804_v42 = vpop.xlane.xlu1 %3803 }
0x1e4e   :  { %14175 = vrcp.f32 %v3804_v42  ;;  %v3801_v43 = vpop.xlane.xlu0 %3800 }
0x1e4f   :  { %14177 = vrcp.f32 %v3801_v43 }
0x1e51   :  { %v13925_v47 = vpop.permute.xlu1 %13924 }
0x1e52   :  { %v13920_v44 = vpop.permute.xlu0 %13919  ;;  %v13927_v51 = vunpack.i.h.bf16 %v13925_v47  ;;  %v13926_v45 = vunpack.i.l.bf16 %v13925_v47 }
0x1e53   :  { %v13922_v48 = vunpack.i.h.bf16 %v13920_v44  ;;  %v13921_v54 = vunpack.i.l.bf16 %v13920_v44 }
0x1e54   :  { %v13362_v2 = vpack.c.bf16 %v13927_v51, %v13926_v45 }
0x1e55   :  { %v13356_v55 = vpack.c.bf16 %v13922_v48, %v13921_v54  ;;  %v3898_v61 = vpop.permute.xlu1 %3897 }
0x1e56   :  { %v3900_v8 = vpop.permute.xlu0 %3899 }
0x1e57   :  { %13358 = vmatprep.subr.msk.bf16.mxu0 %vm14608_vm14, %v13356_v55 }
0x1e58   :  { %v14176_v38 = vpop.eup %14175  ;;  %13361 = vmatpush3.bf16.msk.msra.mxu0 %vm14608_vm14, %v13356_v55 }
0x1e59   :  { %v14178_v29 = vpop.eup %14177  ;;  %13364 = vmatprep.subr.msk.bf16.mxu0 %vm14575_vm10, %v13362_v2  ;;  %v3808_v56 = vmul.f32 %v14176_v38, %v14172_v32  ;;  %v3281_v38 = vld [vmem:[#allocation2 + $0x238] sm:$0xff] }
0x1e5a   :  { %v3807_v35 = vmul.f32 %v14178_v29, %v14174_v33  ;;  %v3083_v33 = vadd.f32 %v11238_v15, %v3075_v21  ;;  %v15169_v21 = vld [vmem:[#allocation2 + $0x1e0] ss:$0 sm:$0xff] }
0x1e5c   :  { %12408 = vmatprep.mubr.msk.f32.mxu0 %vm413_vm12, %v3807_v35  ;;  %v3090_v41 = vsel %vm142_vm3, %v3083_v33, 0.0 }
0x1e5d   :  { %12409 = vmatmul.mubr.msk.f32.vlgmr.msra.gmra.mrb[58].mxu0 %vm413_vm12, %v3808_v56 }
0x1e5e   :  { %12415 = vmatprep.mubr.msk.f32.mxu0 %vm45_vm1, %v3898_v61  ;;  %v11239_v61 = vld [vmem:[#allocation2 + $0x1d8] ss:$0 sm:$0xff] }
0x1e61   :  { %13367 = vmatpush3.bf16.xpose.msk.msra.mxu0 %vm14575_vm10, %v13362_v2  ;;  %v3280_v2 = vld [vmem:[#allocation2 + $0x230] sm:$0xff] }
0x1e62   :  { %13377 = vmatprep.subr.bf16.mxu0 %v14434_v0 }
0x1e68   :  { %12416 = vmatmul.mubr.msk.f32.vlgmr.msra.gmra.mrb[60].mxu0 %vm45_vm1, %v3900_v8 }
0x1e69   :  { %13379 = vmatpush3.bf16.msra.mxu0 %v13378_v3  ;;  %12442 = vmatprep.mubr.msk.f32.mxu0 %vm14435_vm0, %v14436_v1 }
0x1e6a   :  { %13386 = vmatprep.subr.bf16.mxu0 %v14434_v0 }
0x1e6c   :  { %12443 = vmatmul.mubr.msk.f32.vlgmr.msra.gmra.mrb[62].mxu0 %vm45_vm1, %v15070_v14 }
0x1e6d   :  { %12445 = vmatprep.mubr.msk.f32.mxu0 %vm14435_vm0, %v14436_v1 }
0x1e70   :  { %12446 = vmatmul.mubr.msk.f32.gmra.mrb[64].mxu0 %vm45_vm1, %v15073_v31 }
0x1e71   :  { %12448 = vmatprep.mubr.msk.f32.mxu0 %vm14435_vm0, %v14436_v1 }
0x1e74   :  { %12449 = vmatmul.mubr.msk.f32.gmra.mrb[66].mxu0 %vm45_vm1, %v15076_v19 }
0x1e75   :  { %12476 = vmatprep.mubr.msk.f32.mxu0 %vm14435_vm0, %v14436_v1 }
0x1f30   :  { %v15118_v6 = vpop.f32.mrb[58].mxu0 }
0x1f31   :  { %v15120_v7 = vpop.f32.mrb[59].mxu0 }
0x1f3b   :  { %v12417_v9 = vpop.f32.mrb[60].mxu0 }
0x1f3c   :  { %v3989_v11 = vmul.f32 0.25, %v12417_v9  ;;  %v3979_v12 = vpop.f32.mrb[61].mxu0  ;;  %v13375_v9 = vpack.c.bf16 %v3281_v38, %v3280_v2 }
0x1f3d   :  { %v3988_v62 = vmul.f32 0.25, %v3979_v12 }
0x1f3e   :  { %v3993_v4 = vsel %vm417_vm11, %v3989_v11, -inf }
0x1f3f   :  { %3994 = vmax.xlane.f32.xlu0 %v3993_v4  ;;  %v15123_v13 = vpop.f32.mrb[62].mxu0  ;;  %v3990_v14 = vsel %vm413_vm12, %v3988_v62, -inf  ;;  %v4467_v4 = vld [vmem:[#allocation2 + $0x280] sm:$0xff] }
0x1f40   :  { %v12444_v53 = vpop.f32.mrb[63].mxu0  ;;  %3991 = vmax.xlane.f32.xlu1 %v3990_v14  ;;  %v4468_v14 = vld [vmem:[#allocation2 + $0x288] sm:$0xff] }
0x1f41   :  { %v4469_v53 = vld [vmem:[#allocation2 + $0x290] sm:$0xff] }
0x1f43   :  { %v15126_v16 = vpop.f32.mrb[64].mxu0 }
0x1f44   :  { %v12447_v23 = vpop.f32.mrb[65].mxu0 }
0x1f45   :  { %v13387_v23 = vpack.c.bf16 %v4468_v14, %v4467_v4  ;;  %v4371_v14 = vld [vmem:[#allocation2 + $0x268] sm:$0xff] }
0x1f47   :  { %v15128_v52 = vpop.f32.mrb[66].mxu0  ;;  %13388 = vmatpush3.bf16.msra.mxu0 %v13387_v23 }
0x1f48   :  { %v12450_v31 = vpop.f32.mrb[67].mxu0  ;;  %13389 = vmatprep.subr.bf16.mxu0 %v14434_v0 }
0x1f49   :  { %v4470_v31 = vld [vmem:[#allocation2 + $0x298] sm:$0xff] }
0x1fcc   :  { %v3995_v19 = vpop.xlane.xlu0 %3994 }
0x1fcd   :  { %v3997_v17 = vsub.f32 %v3989_v11, %v3995_v19  ;;  %v3992_v20 = vpop.xlane.xlu1 %3991  ;;  %v13390_v19 = vpack.c.bf16 %v4470_v31, %v4469_v53  ;;  %v4372_v53 = vld [vmem:[#allocation2 + $0x270] sm:$0xff] }
0x1fce   :  { %v3996_v22 = vsub.f32 %v3988_v62, %v3992_v20  ;;  %v13384_v23 = vpack.c.bf16 %v4372_v53, %v4371_v14 }
0x1fcf   :  { %v4000_v37 = vmul.f32 1.442695, %v3997_v17  ;;  %13391 = vmatpush3.bf16.msra.mxu0 %v13390_v19 }
0x1fd0   :  { %v3998_v25 = vmul.f32 1.442695, %v3996_v22 }
0x1fd1   :  { %14179 = vpow2.f32 %v4000_v37 }
0x1fd2   :  { %14181 = vpow2.f32 %v3998_v25 }
0x1fdb   :  { %v14180_v10 = vpop.eup %14179 }
0x1fdc   :  { %v14182_v50 = vpop.eup %14181  ;;  %v4005_v26 = vsel %vm417_vm11, %v14180_v10, 0.0 }
0x1fdd   :  { %4006 = vadd.xlane.f32.xlu1 %v4005_v26  ;;  %v4002_v32 = vsel %vm413_vm12, %v14182_v50, 0.0 }
0x1fde   :  { %4003 = vadd.xlane.f32.xlu0 %v4002_v32 }
0x1fe1   :  { %3088 = vadd.xlane.f32.xlu1 %v3087_v36 }
0x1fe5   :  { %3091 = vadd.xlane.f32.xlu1 %v3090_v41 }
0x1fe9   :  { %3094 = vadd.xlane.f32.xlu1 %v3093_v40 }
0x1ff4   :  { %13929 = vrot.lane.b32.xlu0 %v15013_v39, %s14442_s6 }
0x206a   :  { %v4007_v58 = vpop.xlane.xlu1 %4006 }
0x206b   :  { %14183 = vrcp.f32 %v4007_v58  ;;  %v4004_v42 = vpop.xlane.xlu0 %4003 }
0x206c   :  { %14185 = vrcp.f32 %v4004_v42 }
0x206e   :  { %v3089_v43 = vpop.xlane.xlu1 %3088 }
0x206f   :  { %v3096_v47 = vmul.f32 0.03125, %v3089_v43  ;;  %v13930_v49 = vpop.permute.xlu0 %13929 }
0x2070   :  { %v13932_v60 = vunpack.i.h.bf16 %v13930_v49  ;;  %v13931_v44 = vunpack.i.l.bf16 %v13930_v49 }
0x2071   :  { %v3099_v51 = vsub.f32 %v3082_v5, %v3096_v47 }
0x2072   :  { %v13368_v45 = vpack.c.bf16 %v13932_v60, %v13931_v44  ;;  %v3092_v48 = vpop.xlane.xlu1 %3091 }
0x2073   :  { %v3097_v54 = vmul.f32 0.03125, %v3092_v48  ;;  %v3102_v55 = vmul.f32 %v3099_v51, %v3099_v51 }
0x2074   :  { %13370 = vmatprep.subr.msk.bf16.mxu1 %vm14608_vm14, %v13368_v45 }
0x2075   :  { %v14184_v39 = vpop.eup %14183  ;;  %v15145_v29 = vsub.f32 %v3083_v33, %v3097_v54  ;;  %13373 = vmatpush3.bf16.msk.msra.mxu1 %vm14608_vm14, %v13368_v45  ;;  %v3105_v35 = vsel %vm142_vm3, %v3102_v55, 0.0 }
0x2076   :  { %v14186_v56 = vpop.eup %14185  ;;  %3106 = vadd.xlane.f32.xlu0 %v3105_v35  ;;  %v3095_v27 = vpop.xlane.xlu1 %3094  ;;  %13374 = vmatprep.subr.bf16.mxu1 %v14434_v0  ;;  %v4011_v11 = vmul.f32 %v14184_v39, %v14180_v10  ;;  %v3148_v10 = vmul.f32 %v11239_v61, %v3099_v51 }
0x2077   :  { %v15152_v63 = vmul.f32 %v11239_v61, %v15145_v29  ;;  %v3098_v3 = vmul.f32 0.03125, %v3095_v27  ;;  %v4010_v8 = vmul.f32 %v14186_v56, %v14182_v50 }
0x2079   :  { %v15154_v12 = vsub.f32 %v3084_v28, %v3098_v3  ;;  %12422 = vmatprep.mubr.msk.f32.mxu1 %vm413_vm12, %v4010_v8  ;;  %v11281_v28 = vld [vmem:[#allocation2 + $0x240] ss:$0 sm:$0xff] }
0x207a   :  { %12423 = vmatmul.mubr.msk.f32.vlgmr.msra.gmra.mrb[56].mxu1 %vm413_vm12, %v4011_v11  ;;  %v4370_v11 = vld [vmem:[#allocation2 + $0x260] sm:$0xff] }
0x207b   :  { %v15159_v62 = vmul.f32 %v11239_v61, %v15154_v12  ;;  %13376 = vmatpush3.bf16.msra.mxu1 %v13375_v9  ;;  %12429 = vmatprep.mubr.msk.f32.mxu1 %vm14435_vm0, %v14436_v1  ;;  %v3104_v3 = vmul.f32 %v15154_v12, %v15154_v12 }
0x207c   :  { %13380 = vmatprep.subr.bf16.mxu1 %v14434_v0 }
0x207e   :  { %12430 = vmatmul.mubr.msk.f32.vlgmr.msra.gmra.mrb[58].mxu1 %vm45_vm1, %v15120_v7 }
0x207f   :  { %12432 = vmatprep.mubr.msk.f32.mxu1 %vm14435_vm0, %v14436_v1 }
0x2103   :  { %v3107_v17 = vpop.xlane.xlu0 %3106 }
0x2104   :  { %v3114_v20 = vmul.f32 0.032258064, %v3107_v17 }
0x2106   :  { %14187 = vrsqrt.f32 %v3114_v20  ;;  %vm3119_vm7 = vcmp.eq.f32.partialorder %v3114_v20, inf  ;;  %v3122_v7 = vand.u32 2147483648, %v3114_v20  ;;  %vm3121_vm8 = vcmp.eq.f32.partialorder %v3114_v20, 0.0 }
0x2110   :  { %v14188_v22 = vpop.eup %14187 }
0x2111   :  { %v3118_v37 = vmul.f32 %v14188_v22, %v3114_v20 }
0x2113   :  { %v3120_v25 = vsel %vm3119_vm7, %v3114_v20, %v3118_v37 }
0x2114   :  { %v3123_v46 = vsel %vm3121_vm8, %v3122_v7, %v3120_v25 }
0x2115   :  { %v3138_v15 = vadd.f32 1e-06, %v3123_v46 }
0x2117   :  { %14189 = vrcp.f32 %v3138_v15 }
0x2121   :  { %v14190_v50 = vpop.eup %14189 }
0x2122   :  { %v3151_v26 = vmul.f32 %v14190_v50, %v3148_v10 }
0x2124   :  { %v15172_v5 = vadd.f32 %v15169_v21, %v3151_v26 }
0x2126   :  { %12477 = vmatmul.mubr.msk.f32.vlgmr.msra.gmra.mrb[68].mxu0 %vm142_vm3, %v15172_v5 }
0x2127   :  { %12479 = vmatprep.mubr.msk.f32.mxu0 %vm14435_vm0, %v14436_v1 }
0x214d   :  { %v12424_v32 = vpop.f32.mrb[56].mxu1 }
0x214e   :  { %v4103_v33 = vrot.slane %v12424_v32, 4  ;;  %v4091_v34 = vpop.f32.mrb[57].mxu1 }
0x214f   :  { %v4102_v36 = vrot.slane %v4091_v34, 4 }
0x2151   :  { %v4181_v41 = vpop.f32.mrb[58].mxu1  ;;  %v4106_v40 = vsel %vm32_vm2, %v15118_v6, %v4102_v36  ;;  %v4104_v58 = vsel %vm32_vm2, %v4102_v36, %v4103_v33 }
0x2152   :  { %v4270_v42 = vadd.f32 %v15123_v13, %v4181_v41  ;;  %v12431_v43 = vpop.f32.mrb[59].mxu1  ;;  %12433 = vmatmul.mubr.msk.f32.gmra.mrb[60].mxu1 %vm45_vm1, %v4106_v40 }
0x2153   :  { %12435 = vmatprep.mubr.msk.f32.mxu1 %vm14435_vm0, %v14436_v1 }
0x2154   :  { %v4287_v47 = vadd.f32 %v11281_v28, %v4270_v42 }
0x2156   :  { %v15186_v49 = vadd.f32 %v4287_v47, %v14500_v18  ;;  %12436 = vmatmul.mubr.msk.f32.gmra.mrb[62].mxu1 %vm45_vm1, %v4104_v58 }
0x2157   :  { %12459 = vmatprep.mubr.msk.f32.mxu1 %vm14435_vm0, %v14436_v1 }
0x2158   :  { %v4295_v6 = vsel %vm142_vm3, %v15186_v49, 0.0 }
0x2159   :  { %4296 = vadd.xlane.f32.xlu1 %v4295_v6 }
0x21e6   :  { %v4297_v35 = vpop.xlane.xlu1 %4296 }
0x21e7   :  { %v4304_v61 = vmul.f32 0.03125, %v4297_v35 }
0x21f9   :  { %v15193_v13 = vpop.f32.mrb[68].mxu0 }
0x21fa   :  { %v12478_v60 = vpop.f32.mrb[69].mxu0 }
0x2225   :  { %v4186_v44 = vpop.f32.mrb[60].mxu1 }
0x2226   :  { %v4275_v51 = vadd.f32 %v15126_v16, %v4186_v44  ;;  %v12434_v45 = vpop.f32.mrb[61].mxu1 }
0x2228   :  { %v4288_v48 = vadd.f32 %v11281_v28, %v4275_v51 }
0x2229   :  { %v4191_v54 = vpop.f32.mrb[62].mxu1 }
0x222a   :  { %v15197_v18 = vadd.f32 %v4288_v48, %v14504_v24  ;;  %v4280_v55 = vadd.f32 %v15128_v52, %v4191_v54  ;;  %v12437_v2 = vpop.f32.mrb[63].mxu1  ;;  %v3103_v24 = vmul.f32 %v15145_v29, %v15145_v29  ;;  %v15210_v52 = vsub.f32 %v15186_v49, %v4304_v61  ;;  %v4369_v29 = vld [vmem:[#allocation2 + $0x258] sm:$0xff] }
0x222b   :  { %v13381_v4 = vpack.c.bf16 %v4370_v11, %v4369_v29 }
0x222c   :  { %v4289_v38 = vadd.f32 %v11281_v28, %v4280_v55  ;;  %v4298_v39 = vsel %vm142_vm3, %v15197_v18, 0.0  ;;  %v3108_v27 = vsel %vm142_vm3, %v3103_v24, 0.0  ;;  %v4310_v8 = vmul.f32 %v15210_v52, %v15210_v52 }
0x222d   :  { %4299 = vadd.xlane.f32.xlu1 %v4298_v39  ;;  %13382 = vmatpush3.bf16.msra.mxu1 %v13381_v4 }
0x222e   :  { %v15203_v56 = vadd.f32 %v4289_v38, %v14508_v30  ;;  %v3111_v30 = vsel %vm142_vm3, %v3104_v3, 0.0  ;;  %v4313_v9 = vsel %vm142_vm3, %v4310_v8, 0.0  ;;  %13383 = vmatprep.subr.bf16.mxu1 %v14434_v0 }
0x2230   :  { %v4301_v16 = vsel %vm142_vm3, %v15203_v56, 0.0 }
0x2231   :  { %4302 = vadd.xlane.f32.xlu1 %v4301_v16  ;;  %13385 = vmatpush3.bf16.msra.mxu1 %v13384_v23  ;;  %v11282_v16 = vld [vmem:[#allocation2 + $0x248] ss:$0 sm:$0xff] }
0x2235   :  { %3109 = vadd.xlane.f32.xlu1 %v3108_v27  ;;  %v4356_v27 = vmul.f32 %v11282_v16, %v15210_v52 }
0x2239   :  { %3112 = vadd.xlane.f32.xlu1 %v3111_v30 }
0x223d   :  { %4314 = vadd.xlane.f32.xlu1 %v4313_v9 }
0x22ba   :  { %v4300_v12 = vpop.xlane.xlu1 %4299 }
0x22bb   :  { %v4305_v31 = vmul.f32 0.03125, %v4300_v12 }
0x22bd   :  { %v15221_v19 = vsub.f32 %v15197_v18, %v4305_v31 }
0x22be   :  { %v4303_v17 = vpop.xlane.xlu1 %4302 }
0x22bf   :  { %v4306_v20 = vmul.f32 0.03125, %v4303_v17  ;;  %v4311_v22 = vmul.f32 %v15221_v19, %v15221_v19 }
0x22c1   :  { %v15226_v37 = vsub.f32 %v15203_v56, %v4306_v20  ;;  %v4316_v7 = vsel %vm142_vm3, %v4311_v22, 0.0 }
0x22c2   :  { %4317 = vadd.xlane.f32.xlu1 %v4316_v7  ;;  %v3110_v25 = vpop.xlane.xlu1 %3109 }
0x22c3   :  { %v3115_v46 = vmul.f32 0.032258064, %v3110_v25  ;;  %v4312_v15 = vmul.f32 %v15226_v37, %v15226_v37 }
0x22c5   :  { %14191 = vrsqrt.f32 %v3115_v46  ;;  %v4319_v10 = vsel %vm142_vm3, %v4312_v15, 0.0  ;;  %vm3126_vm9 = vcmp.eq.f32.partialorder %v3115_v46, inf  ;;  %v3129_v28 = vand.u32 2147483648, %v3115_v46 }
0x22c6   :  { %v3113_v50 = vpop.xlane.xlu1 %3112  ;;  %4320 = vadd.xlane.f32.xlu1 %v4319_v10  ;;  %vm3128_vm15 = vcmp.eq.f32.partialorder %v3115_v46, 0.0 }
0x22c7   :  { %v3116_v26 = vmul.f32 0.032258064, %v3113_v50 }
0x22c9   :  { %14193 = vrsqrt.f32 %v3116_v26  ;;  %vm3133_vm4 = vcmp.eq.f32.partialorder %v3116_v26, inf  ;;  %v3136_v47 = vand.u32 2147483648, %v3116_v26  ;;  %vm3135_vm5 = vcmp.eq.f32.partialorder %v3116_v26, 0.0 }
0x22ca   :  { %v4315_v32 = vpop.xlane.xlu1 %4314 }
0x22cb   :  { %v4322_v33 = vmul.f32 0.032258064, %v4315_v32 }
0x22cd   :  { %14195 = vrsqrt.f32 %v4322_v33  ;;  %vm4327_vm6 = vcmp.eq.f32.partialorder %v4322_v33, inf  ;;  %v4330_v48 = vand.u32 2147483648, %v4322_v33  ;;  %vm4329_vm7 = vcmp.eq.f32.partialorder %v4322_v33, 0.0 }
0x22cf   :  { %v14192_v34 = vpop.eup %14191 }
0x22d0   :  { %v3125_v36 = vmul.f32 %v14192_v34, %v3115_v46 }
0x22d2   :  { %v3127_v41 = vsel %vm3126_vm9, %v3115_v46, %v3125_v36  ;;  %v4357_v46 = vmul.f32 %v11282_v16, %v15221_v19  ;;  %v11288_v36 = vld [vmem:[#allocation2 + $0x2a0] ss:$0 sm:$0xff] }
0x22d3   :  { %v14194_v40 = vpop.eup %14193  ;;  %v3130_v58 = vsel %vm3128_vm15, %v3129_v28, %v3127_v41  ;;  %v4552_v41 = vadd.f32 %v11288_v36, %v15193_v13 }
0x22d4   :  { %v3132_v42 = vmul.f32 %v14194_v40, %v3116_v26  ;;  %v3139_v43 = vadd.f32 1e-06, %v3130_v58 }
0x22d6   :  { %v3134_v6 = vsel %vm3133_vm4, %v3116_v26, %v3132_v42  ;;  %14197 = vrcp.f32 %v3139_v43  ;;  %v4358_v26 = vmul.f32 %v11282_v16, %v15226_v37 }
0x22d7   :  { %v14196_v60 = vpop.eup %14195  ;;  %v3137_v44 = vsel %vm3135_vm5, %v3136_v47, %v3134_v6  ;;  %v11284_v6 = vld [vmem:[#allocation2 + $0x278] ss:$0 sm:$0xff] }
0x22d8   :  { %v4326_v51 = vmul.f32 %v14196_v60, %v4322_v33  ;;  %v3140_v45 = vadd.f32 1e-06, %v3137_v44 }
0x22da   :  { %v4328_v54 = vsel %vm4327_vm6, %v4322_v33, %v4326_v51  ;;  %14199 = vrcp.f32 %v3140_v45 }
0x22db   :  { %v4331_v55 = vsel %vm4329_vm7, %v4330_v48, %v4328_v54 }
0x22dc   :  { %v4346_v2 = vadd.f32 1e-06, %v4331_v55 }
0x22de   :  { %14201 = vrcp.f32 %v4346_v2 }
0x22e0   :  { %v14198_v38 = vpop.eup %14197 }
0x22e1   :  { %v3152_v39 = vmul.f32 %v14198_v38, %v15152_v63  ;;  %v11283_v63 = vld [vmem:[#allocation2 + $0x250] ss:$0 sm:$0xff] }
0x22e3   :  { %v15234_v35 = vadd.f32 %v15169_v21, %v3152_v39 }
0x22e4   :  { %v14200_v61 = vpop.eup %14199 }
0x22e5   :  { %12480 = vmatmul.mubr.msk.f32.gmra.mrb[70].mxu0 %vm142_vm3, %v15234_v35  ;;  %v3153_v24 = vmul.f32 %v14200_v61, %v15159_v62 }
0x22e6   :  { %12482 = vmatprep.mubr.msk.f32.mxu0 %vm14435_vm0, %v14436_v1 }
0x22e7   :  { %v15243_v3 = vadd.f32 %v15169_v21, %v3153_v24 }
0x22e8   :  { %v14202_v30 = vpop.eup %14201 }
0x22e9   :  { %12483 = vmatmul.mubr.msk.f32.gmra.mrb[72].mxu0 %vm142_vm3, %v15243_v3  ;;  %v4359_v8 = vmul.f32 %v14202_v30, %v4356_v27 }
0x22eb   :  { %v4366_v9 = vadd.f32 %v11283_v63, %v4359_v8 }
0x22ed   :  { %12460 = vmatmul.mubr.msk.f32.vlgmr.msra.gmra.mrb[64].mxu1 %vm142_vm3, %v4366_v9 }
0x22ee   :  { %12462 = vmatprep.mubr.msk.f32.mxu1 %vm14435_vm0, %v14436_v1 }
0x234f   :  { %v4318_v62 = vpop.xlane.xlu1 %4317 }
0x2350   :  { %v4323_v29 = vmul.f32 0.032258064, %v4318_v62 }
0x2352   :  { %14203 = vrsqrt.f32 %v4323_v29  ;;  %vm4334_vm8 = vcmp.eq.f32.partialorder %v4323_v29, inf  ;;  %v4337_v14 = vand.u32 2147483648, %v4323_v29  ;;  %vm4336_vm9 = vcmp.eq.f32.partialorder %v4323_v29, 0.0 }
0x2353   :  { %v4321_v11 = vpop.xlane.xlu1 %4320 }
0x2354   :  { %v4324_v52 = vmul.f32 0.032258064, %v4321_v11 }
0x2356   :  { %14205 = vrsqrt.f32 %v4324_v52  ;;  %vm4341_vm15 = vcmp.eq.f32.partialorder %v4324_v52, inf  ;;  %v4344_v20 = vand.u32 2147483648, %v4324_v52  ;;  %vm4343_vm4 = vcmp.eq.f32.partialorder %v4324_v52, 0.0 }
0x235c   :  { %v14204_v21 = vpop.eup %14203 }
0x235d   :  { %v4333_v4 = vmul.f32 %v14204_v21, %v4323_v29 }
0x235f   :  { %v4335_v53 = vsel %vm4334_vm8, %v4323_v29, %v4333_v4 }
0x2360   :  { %v4338_v23 = vsel %vm4336_vm9, %v4337_v14, %v4335_v53  ;;  %v14206_v12 = vpop.eup %14205 }
0x2361   :  { %v4347_v31 = vadd.f32 1e-06, %v4338_v23  ;;  %v4340_v17 = vmul.f32 %v14206_v12, %v4324_v52 }
0x2363   :  { %14207 = vrcp.f32 %v4347_v31  ;;  %v4342_v22 = vsel %vm4341_vm15, %v4324_v52, %v4340_v17 }
0x2364   :  { %v4345_v7 = vsel %vm4343_vm4, %v4344_v20, %v4342_v22 }
0x2365   :  { %v4348_v25 = vadd.f32 1e-06, %v4345_v7 }
0x2367   :  { %14209 = vrcp.f32 %v4348_v25 }
0x236d   :  { %v14208_v15 = vpop.eup %14207 }
0x236e   :  { %v4360_v10 = vmul.f32 %v14208_v15, %v4357_v46 }
0x2370   :  { %v4367_v50 = vadd.f32 %v11283_v63, %v4360_v10 }
0x2371   :  { %v14210_v32 = vpop.eup %14209 }
0x2372   :  { %12463 = vmatmul.mubr.msk.f32.gmra.mrb[66].mxu1 %vm142_vm3, %v4367_v50  ;;  %v4361_v33 = vmul.f32 %v14210_v32, %v4358_v26 }
0x2373   :  { %12465 = vmatprep.mubr.msk.f32.mxu1 %vm14435_vm0, %v14436_v1 }
0x2374   :  { %v4368_v34 = vadd.f32 %v11283_v63, %v4361_v33 }
0x2376   :  { %12466 = vmatmul.mubr.msk.f32.gmra.mrb[68].mxu1 %vm142_vm3, %v4368_v34 }
0x23b8   :  { %v4556_v28 = vpop.f32.mrb[70].mxu0 }
0x23b9   :  { %v4557_v19 = vadd.f32 %v11288_v36, %v4556_v28  ;;  %v12481_v40 = vpop.f32.mrb[71].mxu0 }
0x23bb   :  { %v13392_v58 = vpack.c.bf16 %v4557_v19, %v4552_v41  ;;  %v15257_v42 = vpack.i.bf16 %v4557_v19, %v4552_v41  ;;  %v4774_v60 = vrot.slane %v4557_v19, 4 }
0x23bc   :  { %v4561_v37 = vpop.f32.mrb[72].mxu0 }
0x23bd   :  { %v4562_v43 = vadd.f32 %v11288_v36, %v4561_v37  ;;  %v12484_v47 = vpop.f32.mrb[73].mxu0  ;;  %13394 = vmatprep.subr.msk.bf16.mxu1 %vm14575_vm10, %v13392_v58 }
0x23be   :  { %13397 = vmatpush3.bf16.xpose.msk.msra.mxu1 %vm14575_vm10, %v13392_v58 }
0x23bf   :  { %v4775_v44 = vrot.slane %v4562_v43, 4 }
0x23c0   :  { %v4453_v51 = vpop.f32.mrb[64].mxu1 }
0x23c1   :  { %v15263_v45 = vadd.f32 %v11284_v6, %v4453_v51  ;;  %v12461_v13 = vpop.f32.mrb[65].mxu1  ;;  %v4776_v48 = vsel %vm32_vm2, %v4774_v60, %v4775_v44 }
0x23c2   :  { %v13404_v54 = vpack.c.bf16 %v4775_v44, %v4776_v48  ;;  %v15266_v55 = vpack.i.bf16 %v4775_v44, %v4776_v48 }
0x23c3   :  { %12489 = vmatprep.mubr.msk.f32.mxu1 %vm45_vm1, %v15263_v45 }
0x23c4   :  { %13406 = vmatprep.subr.msk.bf16.mxu1 %vm14575_vm10, %v13404_v54 }
0x2445   :  { %v4458_v2 = vpop.f32.mrb[66].mxu1 }
0x2446   :  { %v4459_v38 = vadd.f32 %v11284_v6, %v4458_v2  ;;  %v12464_v39 = vpop.f32.mrb[67].mxu1 }
0x2448   :  { %12490 = vmatmul.mubr.msk.f32.vlgmr.msra.gmra.mrb[70].mxu1 %vm45_vm1, %v4459_v38  ;;  %v4770_v27 = vrot.slane %v4459_v38, 4 }
0x2449   :  { %13409 = vmatpush3.bf16.xpose.msk.msra.mxu1 %vm14575_vm10, %v13404_v54  ;;  %v4463_v61 = vpop.f32.mrb[68].mxu1 }
0x244a   :  { %v4464_v16 = vadd.f32 %v11284_v6, %v4463_v61  ;;  %v12467_v24 = vpop.f32.mrb[69].mxu1 }
0x244c   :  { %v15275_v30 = vrot.slane %v4464_v16, 4 }
0x244e   :  { %v15279_v63 = vsel %vm32_vm2, %v4770_v27, %v15275_v30 }
0x244f   :  { %12503 = vmatprep.mubr.msk.f32.mxu1 %vm45_vm1, %v15279_v63 }
0x2450   :  { %12504 = vmatmul.mubr.msk.f32.vlgmr.msra.gmra.mrb[72].mxu1 %vm45_vm1, %v15275_v30 }
0x251b   :  { %v12491_v8 = vpop.f32.mrb[70].mxu1 }
0x251c   :  { %v4648_v9 = vpop.f32.mrb[71].mxu1  ;;  %v4658_v29 = vmul.f32 0.25, %v12491_v8 }
0x251d   :  { %v4657_v62 = vmul.f32 0.25, %v4648_v9 }
0x251e   :  { %v4662_v52 = vsel %vm417_vm11, %v4658_v29, -inf }
0x251f   :  { %v4659_v11 = vsel %vm413_vm12, %v4657_v62, -inf }
0x2520   :  { %4660 = vmax.xlane.f32.xlu1 %v4659_v11 }
0x2523   :  { %v12505_v21 = vpop.f32.mrb[72].mxu1 }
0x2524   :  { %4663 = vmax.xlane.f32.xlu1 %v4662_v52  ;;  %v4861_v4 = vmul.f32 0.25, %v12505_v21  ;;  %v4851_v14 = vpop.f32.mrb[73].mxu1 }
0x2525   :  { %v4860_v53 = vmul.f32 0.25, %v4851_v14 }
0x2526   :  { %v4865_v23 = vsel %vm417_vm11, %v4861_v4, -inf }
0x2527   :  { %v4862_v12 = vsel %vm413_vm12, %v4860_v53, -inf }
0x2528   :  { %4866 = vmax.xlane.f32.xlu1 %v4865_v23  ;;  %4863 = vmax.xlane.f32.xlu0 %v4862_v12 }
0x25ad   :  { %v4661_v31 = vpop.xlane.xlu1 %4660 }
0x25ae   :  { %v4665_v17 = vsub.f32 %v4657_v62, %v4661_v31 }
0x25b0   :  { %v4667_v20 = vmul.f32 1.442695, %v4665_v17 }
0x25b1   :  { %v4664_v22 = vpop.xlane.xlu1 %4663 }
0x25b2   :  { %14211 = vpow2.f32 %v4667_v20  ;;  %v4666_v7 = vsub.f32 %v4658_v29, %v4664_v22 }
0x25b4   :  { %v4669_v25 = vmul.f32 1.442695, %v4666_v7 }
0x25b5   :  { %v4867_v46 = vpop.xlane.xlu1 %4866  ;;  %v4864_v10 = vpop.xlane.xlu0 %4863 }
0x25b6   :  { %14213 = vpow2.f32 %v4669_v25  ;;  %v4869_v15 = vsub.f32 %v4861_v4, %v4867_v46  ;;  %v4868_v50 = vsub.f32 %v4860_v53, %v4864_v10 }
0x25b8   :  { %v4872_v26 = vmul.f32 1.442695, %v4869_v15  ;;  %v4870_v32 = vmul.f32 1.442695, %v4868_v50 }
0x25ba   :  { %14215 = vpow2.f32 %v4872_v26 }
0x25bb   :  { %14217 = vpow2.f32 %v4870_v32 }
0x25bc   :  { %v14212_v33 = vpop.eup %14211 }
0x25bd   :  { %v4671_v34 = vsel %vm413_vm12, %v14212_v33, 0.0 }
0x25be   :  { %4672 = vadd.xlane.f32.xlu0 %v4671_v34 }
0x25c0   :  { %v14214_v36 = vpop.eup %14213 }
0x25c1   :  { %v4674_v28 = vsel %vm417_vm11, %v14214_v36, 0.0 }
0x25c2   :  { %4675 = vadd.xlane.f32.xlu1 %v4674_v28 }
0x25c4   :  { %v14216_v41 = vpop.eup %14215 }
0x25c5   :  { %v14218_v19 = vpop.eup %14217  ;;  %v4877_v40 = vsel %vm417_vm11, %v14216_v41, 0.0 }
0x25c6   :  { %4878 = vadd.xlane.f32.xlu1 %v4877_v40  ;;  %v4874_v58 = vsel %vm413_vm12, %v14218_v19, 0.0 }
0x25c7   :  { %4875 = vadd.xlane.f32.xlu0 %v4874_v58 }
0x25d7   :  { %13939 = vrot.lane.b32.xlu1 %v15266_v55, %s14437_s30 }
0x25db   :  { %13944 = vrot.lane.b32.xlu1 %v15257_v42, %s14438_s3 }
0x25dd   :  { %13934 = vrot.lane.b32.xlu0 %v15257_v42, %s14437_s30 }
0x25df   :  { %4979 = vrot.lane.b32.xlu1 %v15263_v45, %s14438_s3 }
0x25e1   :  { %4981 = vrot.lane.b32.xlu0 %v4459_v38, %s14438_s3 }
0x264b   :  { %v4673_v37 = vpop.xlane.xlu0 %4672 }
0x264c   :  { %14219 = vrcp.f32 %v4673_v37 }
0x264f   :  { %v4676_v43 = vpop.xlane.xlu1 %4675 }
0x2650   :  { %14221 = vrcp.f32 %v4676_v43 }
0x2653   :  { %v4879_v47 = vpop.xlane.xlu1 %4878 }
0x2654   :  { %v4876_v6 = vpop.xlane.xlu0 %4875 }
0x2655   :  { %14223 = vrcp.f32 %v4876_v6 }
0x2656   :  { %v14220_v60 = vpop.eup %14219  ;;  %14225 = vrcp.f32 %v4879_v47 }
0x2657   :  { %v13940_v44 = vpop.permute.xlu1 %13939  ;;  %v4679_v51 = vmul.f32 %v14220_v60, %v14212_v33 }
0x2658   :  { %v13935_v13 = vpop.permute.xlu0 %13934  ;;  %v13942_v48 = vunpack.i.h.bf16 %v13940_v44  ;;  %v13941_v54 = vunpack.i.l.bf16 %v13940_v44 }
0x2659   :  { %v13937_v2 = vunpack.i.h.bf16 %v13935_v13  ;;  %v13936_v39 = vunpack.i.l.bf16 %v13935_v13  ;;  %12496 = vmatprep.mubr.msk.f32.mxu0 %vm413_vm12, %v4679_v51 }
0x265a   :  { %v14222_v61 = vpop.eup %14221  ;;  %v13410_v16 = vpack.c.bf16 %v13942_v48, %v13941_v54 }
0x265b   :  { %v13398_v45 = vpack.c.bf16 %v13937_v2, %v13936_v39  ;;  %v13945_v38 = vpop.permute.xlu1 %13944  ;;  %v4680_v9 = vmul.f32 %v14222_v61, %v14214_v36 }
0x265c   :  { %v13947_v24 = vunpack.i.h.bf16 %v13945_v38  ;;  %v13946_v27 = vunpack.i.l.bf16 %v13945_v38  ;;  %v4982_v4 = vpop.permute.xlu0 %4981  ;;  %v4566_v38 = vld [vmem:[#allocation2 + $0x2b0] sm:$0xff] }
0x265d   :  { %13400 = vmatprep.subr.msk.bf16.mxu0 %vm14608_vm14, %v13398_v45 }
0x265e   :  { %13403 = vmatpush3.bf16.msk.msra.mxu0 %vm14608_vm14, %v13398_v45  ;;  %v13416_v11 = vpack.c.bf16 %v13947_v24, %v13946_v27  ;;  %v4565_v45 = vld [vmem:[#allocation2 + $0x2a8] sm:$0xff] }
0x265f   :  { %v14224_v8 = vpop.eup %14223  ;;  %13412 = vmatprep.subr.msk.bf16.mxu0 %vm14608_vm14, %v13410_v16  ;;  %v4980_v21 = vpop.permute.xlu1 %4979  ;;  %v13444_v61 = vpack.c.bf16 %v4566_v38, %v4565_v45 }
0x2660   :  { %v14226_v62 = vpop.eup %14225  ;;  %v4882_v29 = vmul.f32 %v14224_v8, %v14218_v19 }
0x2661   :  { %12497 = vmatmul.mubr.msk.f32.vlgmr.msra.gmra.mrb[74].mxu0 %vm413_vm12, %v4680_v9  ;;  %v4883_v52 = vmul.f32 %v14226_v62, %v14216_v41 }
0x2662   :  { %13415 = vmatpush3.bf16.msk.msra.mxu0 %vm14608_vm14, %v13410_v16  ;;  %12510 = vmatprep.mubr.msk.f32.mxu0 %vm413_vm12, %v4882_v29 }
0x2663   :  { %13418 = vmatprep.subr.msk.bf16.mxu0 %vm14575_vm10, %v13416_v11 }
0x2665   :  { %12511 = vmatmul.mubr.msk.f32.vlgmr.msra.gmra.mrb[76].mxu0 %vm413_vm12, %v4883_v52 }
0x2666   :  { %12517 = vmatprep.mubr.msk.f32.mxu0 %vm45_vm1, %v4980_v21 }
0x266b   :  { %13421 = vmatpush3.bf16.xpose.msk.msra.mxu0 %vm14575_vm10, %v13416_v11 }
0x2672   :  { %12518 = vmatmul.mubr.msk.f32.vlgmr.msra.gmra.mrb[78].mxu0 %vm45_vm1, %v4982_v4 }
0x2734   :  { %v12498_v14 = vpop.f32.mrb[74].mxu0 }
0x2735   :  { %v15320_v53 = vpop.f32.mrb[75].mxu0 }
0x2738   :  { %v12512_v23 = vpop.f32.mrb[76].mxu0 }
0x2739   :  { %v4975_v12 = vrot.slane %v12512_v23, 4  ;;  %v4963_v31 = vpop.f32.mrb[77].mxu0 }
0x273a   :  { %v4974_v17 = vrot.slane %v4963_v31, 4 }
0x273c   :  { %v15323_v20 = vsel %vm32_vm2, %v12498_v14, %v4974_v17  ;;  %v15326_v22 = vsel %vm32_vm2, %v4974_v17, %v4975_v12 }
0x2745   :  { %v12519_v7 = vpop.f32.mrb[78].mxu0 }
0x2746   :  { %v5071_v25 = vmul.f32 0.25, %v12519_v7  ;;  %v5061_v46 = vpop.f32.mrb[79].mxu0 }
0x2747   :  { %v5070_v15 = vmul.f32 0.25, %v5061_v46 }
0x2748   :  { %v5075_v10 = vsel %vm417_vm11, %v5071_v25, -inf }
0x2749   :  { %5076 = vmax.xlane.f32.xlu0 %v5075_v10  ;;  %v5072_v50 = vsel %vm413_vm12, %v5070_v15, -inf }
0x274a   :  { %5073 = vmax.xlane.f32.xlu1 %v5072_v50 }
0x275b   :  { %13949 = vrot.lane.b32.xlu1 %v15257_v42, %s14439_s4 }
0x275f   :  { %5182 = vrot.lane.b32.xlu1 %v15279_v63, %s14438_s3 }
0x2763   :  { %5184 = vrot.lane.b32.xlu1 %v15275_v30, %s14438_s3 }
0x27d6   :  { %v5077_v26 = vpop.xlane.xlu0 %5076 }
0x27d7   :  { %v5079_v32 = vsub.f32 %v5071_v25, %v5077_v26  ;;  %v5074_v33 = vpop.xlane.xlu1 %5073 }
0x27d8   :  { %v5078_v34 = vsub.f32 %v5070_v15, %v5074_v33 }
0x27d9   :  { %v5082_v36 = vmul.f32 1.442695, %v5079_v32 }
0x27da   :  { %v5080_v28 = vmul.f32 1.442695, %v5078_v34 }
0x27db   :  { %14227 = vpow2.f32 %v5082_v36  ;;  %v13950_v41 = vpop.permute.xlu1 %13949 }
0x27dc   :  { %v13952_v19 = vunpack.i.h.bf16 %v13950_v41  ;;  %v13951_v40 = vunpack.i.l.bf16 %v13950_v41  ;;  %14229 = vpow2.f32 %v5080_v28 }
0x27de   :  { %v13422_v58 = vpack.c.bf16 %v13952_v19, %v13951_v40  ;;  %v4567_v19 = vld [vmem:[#allocation2 + $0x2b8] sm:$0xff]  ;;  %v4568_v40 = vld [vmem:[#allocation2 + $0x2c0] sm:$0xff] }
0x27df   :  { %v5183_v39 = vpop.permute.xlu1 %5182 }
0x27e0   :  { %13424 = vmatprep.subr.msk.bf16.mxu1 %vm14608_vm14, %v13422_v58 }
0x27e1   :  { %13427 = vmatpush3.bf16.msk.msra.mxu1 %vm14608_vm14, %v13422_v58 }
0x27e3   :  { %v5185_v16 = vpop.permute.xlu1 %5184 }
0x27e5   :  { %v14228_v42 = vpop.eup %14227 }
0x27e6   :  { %v5087_v30 = vsel %vm417_vm11, %v14228_v42, 0.0  ;;  %v14230_v63 = vpop.eup %14229 }
0x27e7   :  { %5088 = vadd.xlane.f32.xlu0 %v5087_v30  ;;  %v5084_v37 = vsel %vm413_vm12, %v14230_v63, 0.0 }
0x27eb   :  { %5085 = vadd.xlane.f32.xlu0 %v5084_v37 }
0x2801   :  { %13954 = vrot.lane.b32.xlu0 %v15266_v55, %s14438_s3 }
0x2874   :  { %v5089_v43 = vpop.xlane.xlu0 %5088 }
0x2875   :  { %14231 = vrcp.f32 %v5089_v43 }
0x2878   :  { %v5086_v47 = vpop.xlane.xlu0 %5085 }
0x2879   :  { %14233 = vrcp.f32 %v5086_v47 }
0x287c   :  { %v13955_v6 = vpop.permute.xlu0 %13954 }
0x287d   :  { %v13957_v60 = vunpack.i.h.bf16 %v13955_v6  ;;  %v13956_v44 = vunpack.i.l.bf16 %v13955_v6  ;;  %v11326_v6 = vld [vmem:[#allocation2 + $0x2c8] ss:$0 sm:$0xff] }
0x287f   :  { %v13428_v51 = vpack.c.bf16 %v13957_v60, %v13956_v44  ;;  %v14232_v13 = vpop.eup %14231 }
0x2880   :  { %v5093_v2 = vmul.f32 %v14232_v13, %v14228_v42  ;;  %v13441_v42 = vpack.c.bf16 %v4568_v40, %v4567_v19 }
0x2881   :  { %13430 = vmatprep.subr.msk.bf16.mxu1 %vm14575_vm10, %v13428_v51 }
0x2883   :  { %v14234_v48 = vpop.eup %14233 }
0x2884   :  { %v5092_v54 = vmul.f32 %v14234_v48, %v14230_v63 }
0x2886   :  { %12524 = vmatprep.mubr.msk.f32.mxu1 %vm413_vm12, %v5092_v54 }
0x2887   :  { %12525 = vmatmul.mubr.msk.f32.vlgmr.msra.gmra.mrb[74].mxu1 %vm413_vm12, %v5093_v2 }
0x2888   :  { %13433 = vmatpush3.bf16.xpose.msk.msra.mxu1 %vm14575_vm10, %v13428_v51  ;;  %12531 = vmatprep.mubr.msk.f32.mxu1 %vm45_vm1, %v5183_v39 }
0x2889   :  { %13443 = vmatprep.subr.bf16.mxu1 %v14434_v0 }
0x288f   :  { %12532 = vmatmul.mubr.msk.f32.vlgmr.msra.gmra.mrb[76].mxu1 %vm45_vm1, %v5185_v16 }
0x2890   :  { %13445 = vmatpush3.bf16.msra.mxu1 %v13444_v61  ;;  %12558 = vmatprep.mubr.msk.f32.mxu1 %vm14435_vm0, %v14436_v1 }
0x2891   :  { %13452 = vmatprep.subr.bf16.mxu1 %v14434_v0 }
0x2893   :  { %12559 = vmatmul.mubr.msk.f32.vlgmr.msra.gmra.mrb[78].mxu1 %vm45_vm1, %v15320_v53 }
0x2894   :  { %12561 = vmatprep.mubr.msk.f32.mxu1 %vm14435_vm0, %v14436_v1 }
0x2897   :  { %12562 = vmatmul.mubr.msk.f32.gmra.mrb[80].mxu1 %vm45_vm1, %v15323_v20 }
0x2898   :  { %12564 = vmatprep.mubr.msk.f32.mxu1 %vm14435_vm0, %v14436_v1 }
0x289b   :  { %12565 = vmatmul.mubr.msk.f32.gmra.mrb[82].mxu1 %vm45_vm1, %v15326_v22 }
0x289c   :  { %12592 = vmatprep.mubr.msk.f32.mxu1 %vm14435_vm0, %v14436_v1 }
0x295a   :  { %v15368_v24 = vpop.f32.mrb[74].mxu1 }
0x295b   :  { %v5173_v27 = vpop.f32.mrb[75].mxu1 }
0x2962   :  { %v12533_v8 = vpop.f32.mrb[76].mxu1 }
0x2963   :  { %v5274_v9 = vmul.f32 0.25, %v12533_v8  ;;  %v5264_v62 = vpop.f32.mrb[77].mxu1 }
0x2964   :  { %v5273_v29 = vmul.f32 0.25, %v5264_v62 }
0x2965   :  { %v5278_v11 = vsel %vm417_vm11, %v5274_v9, -inf }
0x2966   :  { %5279 = vmax.xlane.f32.xlu0 %v5278_v11  ;;  %v5554_v52 = vpop.f32.mrb[78].mxu1  ;;  %v5275_v21 = vsel %vm413_vm12, %v5273_v29, -inf }
0x2967   :  { %v12560_v4 = vpop.f32.mrb[79].mxu1  ;;  %5276 = vmax.xlane.f32.xlu1 %v5275_v21 }
0x296a   :  { %v15372_v14 = vpop.f32.mrb[80].mxu1 }
0x296b   :  { %v12563_v53 = vpop.f32.mrb[81].mxu1 }
0x296c   :  { %v5654_v53 = vld [vmem:[#allocation2 + $0x2e0] sm:$0xff] }
0x296e   :  { %v15374_v23 = vpop.f32.mrb[82].mxu1 }
0x296f   :  { %v12566_v12 = vpop.f32.mrb[83].mxu1 }
0x2970   :  { %v5656_v12 = vld [vmem:[#allocation2 + $0x2f0] sm:$0xff] }
0x2978   :  { %13959 = vrot.lane.b32.xlu1 %v15266_v55, %s14439_s4 }
0x29f3   :  { %v5280_v31 = vpop.xlane.xlu0 %5279 }
0x29f4   :  { %v5282_v17 = vsub.f32 %v5274_v9, %v5280_v31  ;;  %v5277_v20 = vpop.xlane.xlu1 %5276 }
0x29f5   :  { %v5281_v22 = vsub.f32 %v5273_v29, %v5277_v20 }
0x29f6   :  { %v5285_v7 = vmul.f32 1.442695, %v5282_v17  ;;  %v5657_v17 = vld [vmem:[#allocation2 + $0x2f8] sm:$0xff] }
0x29f7   :  { %v5283_v25 = vmul.f32 1.442695, %v5281_v22  ;;  %v13450_v20 = vpack.c.bf16 %v5657_v17, %v5656_v12 }
0x29f8   :  { %v13960_v46 = vpop.permute.xlu1 %13959 }
0x29f9   :  { %14235 = vpow2.f32 %v5283_v25  ;;  %v13962_v15 = vunpack.i.h.bf16 %v13960_v46  ;;  %v13961_v10 = vunpack.i.l.bf16 %v13960_v46 }
0x29fa   :  { %14237 = vpow2.f32 %v5285_v7 }
0x29fb   :  { %v13434_v50 = vpack.c.bf16 %v13962_v15, %v13961_v10 }
0x29fd   :  { %13436 = vmatprep.subr.msk.bf16.mxu0 %vm14608_vm14, %v13434_v50 }
0x29fe   :  { %13439 = vmatpush3.bf16.msk.msra.mxu0 %vm14608_vm14, %v13434_v50 }
0x29ff   :  { %13440 = vmatprep.subr.bf16.mxu0 %v14434_v0 }
0x2a03   :  { %v14236_v55 = vpop.eup %14235 }
0x2a04   :  { %v5287_v26 = vsel %vm413_vm12, %v14236_v55, 0.0  ;;  %v14238_v32 = vpop.eup %14237 }
0x2a05   :  { %5288 = vadd.xlane.f32.xlu0 %v5287_v26  ;;  %v5290_v33 = vsel %vm417_vm11, %v14238_v32, 0.0 }
0x2a09   :  { %5291 = vadd.xlane.f32.xlu0 %v5290_v33 }
0x2a92   :  { %v5289_v34 = vpop.xlane.xlu0 %5288 }
0x2a93   :  { %14239 = vrcp.f32 %v5289_v34 }
0x2a96   :  { %v5292_v36 = vpop.xlane.xlu0 %5291 }
0x2a97   :  { %14241 = vrcp.f32 %v5292_v36 }
0x2a9d   :  { %v14240_v28 = vpop.eup %14239 }
0x2a9e   :  { %v5295_v41 = vmul.f32 %v14240_v28, %v14236_v55 }
0x2aa0   :  { %12538 = vmatprep.mubr.msk.f32.mxu0 %vm413_vm12, %v5295_v41 }
0x2aa1   :  { %v14242_v58 = vpop.eup %14241 }
0x2aa2   :  { %v5296_v30 = vmul.f32 %v14242_v58, %v14238_v32  ;;  %v11327_v58 = vld [vmem:[#allocation2 + $0x2d0] ss:$0 sm:$0xff] }
0x2aa4   :  { %12539 = vmatmul.mubr.msk.f32.vlgmr.msra.gmra.mrb[80].mxu0 %vm413_vm12, %v5296_v30 }
0x2aa5   :  { %13442 = vmatpush3.bf16.msra.mxu0 %v13441_v42  ;;  %12545 = vmatprep.mubr.msk.f32.mxu0 %vm14435_vm0, %v14436_v1 }
0x2aa6   :  { %13446 = vmatprep.subr.bf16.mxu0 %v14434_v0 }
0x2aa8   :  { %12546 = vmatmul.mubr.msk.f32.vlgmr.msra.gmra.mrb[82].mxu0 %vm45_vm1, %v5173_v27 }
0x2aa9   :  { %12548 = vmatprep.mubr.msk.f32.mxu0 %vm14435_vm0, %v14436_v1 }
0x2b77   :  { %v12540_v63 = vpop.f32.mrb[80].mxu0 }
0x2b78   :  { %v5388_v37 = vrot.slane %v12540_v63, 4  ;;  %v5376_v43 = vpop.f32.mrb[81].mxu0  ;;  %v11328_v63 = vld [vmem:[#allocation2 + $0x2d8] ss:$0 sm:$0xff] }
0x2b79   :  { %v5387_v47 = vrot.slane %v5376_v43, 4 }
0x2b7b   :  { %v5466_v60 = vpop.f32.mrb[82].mxu0  ;;  %v5391_v44 = vsel %vm32_vm2, %v15368_v24, %v5387_v47  ;;  %v5389_v51 = vsel %vm32_vm2, %v5387_v47, %v5388_v37  ;;  %v5755_v47 = vld [vmem:[#allocation2 + $0x308] sm:$0xff] }
0x2b7c   :  { %v5555_v13 = vadd.f32 %v5554_v52, %v5466_v60  ;;  %v12547_v48 = vpop.f32.mrb[83].mxu0  ;;  %12549 = vmatmul.mubr.msk.f32.gmra.mrb[84].mxu0 %vm45_vm1, %v5391_v44  ;;  %v5757_v44 = vld [vmem:[#allocation2 + $0x318] sm:$0xff] }
0x2b7d   :  { %12551 = vmatprep.mubr.msk.f32.mxu0 %vm14435_vm0, %v14436_v1 }
0x2b7e   :  { %v5572_v54 = vadd.f32 %v11326_v6, %v5555_v13 }
0x2b80   :  { %v15400_v2 = vadd.f32 %v5572_v54, %v15186_v49  ;;  %12552 = vmatmul.mubr.msk.f32.gmra.mrb[86].mxu0 %vm45_vm1, %v5389_v51  ;;  %v5758_v51 = vld [vmem:[#allocation2 + $0x320] sm:$0xff] }
0x2b81   :  { %12575 = vmatprep.mubr.msk.f32.mxu0 %vm14435_vm0, %v14436_v1  ;;  %v13456_v13 = vpack.c.bf16 %v5758_v51, %v5757_v44 }
0x2b82   :  { %v5580_v39 = vsel %vm142_vm3, %v15400_v2, 0.0 }
0x2b83   :  { %5581 = vadd.xlane.f32.xlu0 %v5580_v39 }
0x2c10   :  { %v5582_v45 = vpop.xlane.xlu0 %5581 }
0x2c11   :  { %v5589_v24 = vmul.f32 0.03125, %v5582_v45 }
0x2c13   :  { %v5592_v29 = vsub.f32 %v15400_v2, %v5589_v24 }
0x2c15   :  { %v5641_v42 = vmul.f32 %v11327_v58, %v5592_v29 }
0x2c4f   :  { %v5471_v38 = vpop.f32.mrb[84].mxu0 }
0x2c50   :  { %v5560_v61 = vadd.f32 %v15372_v14, %v5471_v38  ;;  %v12550_v16 = vpop.f32.mrb[85].mxu0  ;;  %v5595_v14 = vmul.f32 %v5592_v29, %v5592_v29 }
0x2c52   :  { %v5573_v27 = vadd.f32 %v11326_v6, %v5560_v61 }
0x2c53   :  { %v5476_v8 = vpop.f32.mrb[86].mxu0 }
0x2c54   :  { %v15409_v49 = vadd.f32 %v5573_v27, %v15197_v18  ;;  %v5565_v9 = vadd.f32 %v15374_v23, %v5476_v8  ;;  %v12553_v62 = vpop.f32.mrb[87].mxu0  ;;  %v5598_v18 = vsel %vm142_vm3, %v5595_v14, 0.0  ;;  %v5655_v23 = vld [vmem:[#allocation2 + $0x2e8] sm:$0xff] }
0x2c55   :  { %v13447_v31 = vpack.c.bf16 %v5655_v23, %v5654_v53 }
0x2c56   :  { %v5574_v11 = vadd.f32 %v11326_v6, %v5565_v9  ;;  %v5583_v52 = vsel %vm142_vm3, %v15409_v49, 0.0  ;;  %v5756_v6 = vld [vmem:[#allocation2 + $0x310] sm:$0xff] }
0x2c57   :  { %5584 = vadd.xlane.f32.xlu0 %v5583_v52  ;;  %13448 = vmatpush3.bf16.msra.mxu0 %v13447_v31  ;;  %v13453_v60 = vpack.c.bf16 %v5756_v6, %v5755_v47 }
0x2c58   :  { %v15416_v21 = vadd.f32 %v5574_v11, %v15203_v56  ;;  %13449 = vmatprep.subr.bf16.mxu0 %v14434_v0 }
0x2c59   :  { %13454 = vmatpush3.bf16.msra.mxu1 %v13453_v60 }
0x2c5a   :  { %v5586_v4 = vsel %vm142_vm3, %v15416_v21, 0.0  ;;  %13455 = vmatprep.subr.bf16.mxu1 %v14434_v0 }
0x2c5b   :  { %5587 = vadd.xlane.f32.xlu0 %v5586_v4  ;;  %13451 = vmatpush3.bf16.msra.mxu0 %v13450_v20 }
0x2c5c   :  { %13458 = vmatprep.subr.bf16.mxu0 %v14434_v0 }
0x2c5d   :  { %13457 = vmatpush3.bf16.msra.mxu1 %v13456_v13 }
0x2c5f   :  { %5599 = vadd.xlane.f32.xlu0 %v5598_v18 }
0x2ce4   :  { %v5585_v56 = vpop.xlane.xlu0 %5584 }
0x2ce5   :  { %v5590_v22 = vmul.f32 0.03125, %v5585_v56  ;;  %v11329_v56 = vld [vmem:[#allocation2 + $0x300] ss:$0 sm:$0xff] }
0x2ce7   :  { %v15424_v7 = vsub.f32 %v15409_v49, %v5590_v22 }
0x2ce8   :  { %v5588_v25 = vpop.xlane.xlu0 %5587 }
0x2ce9   :  { %v5591_v46 = vmul.f32 0.03125, %v5588_v25  ;;  %v5596_v15 = vmul.f32 %v15424_v7, %v15424_v7  ;;  %v5642_v14 = vmul.f32 %v11327_v58, %v15424_v7 }
0x2ceb   :  { %v15429_v10 = vsub.f32 %v15416_v21, %v5591_v46  ;;  %v5601_v50 = vsel %vm142_vm3, %v5596_v15, 0.0 }
0x2cec   :  { %5602 = vadd.xlane.f32.xlu1 %v5601_v50  ;;  %v5600_v55 = vpop.xlane.xlu0 %5599 }
0x2ced   :  { %v5607_v26 = vmul.f32 0.032258064, %v5600_v55  ;;  %v5597_v32 = vmul.f32 %v15429_v10, %v15429_v10  ;;  %v5643_v12 = vmul.f32 %v11327_v58, %v15429_v10 }
0x2cef   :  { %14243 = vrsqrt.f32 %v5607_v26  ;;  %v5604_v33 = vsel %vm142_vm3, %v5597_v32, 0.0  ;;  %vm5612_vm5 = vcmp.eq.f32.partialorder %v5607_v26, inf  ;;  %v5615_v28 = vand.u32 2147483648, %v5607_v26 }
0x2cf0   :  { %5605 = vadd.xlane.f32.xlu0 %v5604_v33  ;;  %vm5614_vm6 = vcmp.eq.f32.partialorder %v5607_v26, 0.0 }
0x2cf9   :  { %v14244_v34 = vpop.eup %14243 }
0x2cfa   :  { %v5611_v36 = vmul.f32 %v14244_v34, %v5607_v26 }
0x2cfc   :  { %v5613_v41 = vsel %vm5612_vm5, %v5607_v26, %v5611_v36 }
0x2cfd   :  { %v5616_v19 = vsel %vm5614_vm6, %v5615_v28, %v5613_v41  ;;  %v11336_v28 = vld [vmem:[#allocation2 + $0x328] ss:$0 sm:$0xff] }
0x2cfe   :  { %v5631_v40 = vadd.f32 1e-06, %v5616_v19 }
0x2d00   :  { %14245 = vrcp.f32 %v5631_v40 }
0x2d0a   :  { %v14246_v30 = vpop.eup %14245 }
0x2d0b   :  { %v5644_v37 = vmul.f32 %v14246_v30, %v5641_v42 }
0x2d0d   :  { %v5651_v43 = vadd.f32 %v11328_v63, %v5644_v37 }
0x2d0f   :  { %12576 = vmatmul.mubr.msk.f32.vlgmr.msra.gmra.mrb[88].mxu0 %vm142_vm3, %v5651_v43 }
0x2d10   :  { %12578 = vmatprep.mubr.msk.f32.mxu0 %vm14435_vm0, %v14436_v1 }
0x2d79   :  { %v5603_v48 = vpop.xlane.xlu1 %5602 }
0x2d7a   :  { %v5608_v54 = vmul.f32 0.032258064, %v5603_v48 }
0x2d7c   :  { %14247 = vrsqrt.f32 %v5608_v54  ;;  %vm5619_vm7 = vcmp.eq.f32.partialorder %v5608_v54, inf  ;;  %v5622_v16 = vand.u32 2147483648, %v5608_v54  ;;  %vm5621_vm8 = vcmp.eq.f32.partialorder %v5608_v54, 0.0 }
0x2d7d   :  { %v5606_v39 = vpop.xlane.xlu0 %5605 }
0x2d7e   :  { %v5609_v45 = vmul.f32 0.032258064, %v5606_v39  ;;  %v5935_v39 = vld [vmem:[#allocation2 + $0x340] sm:$0xff] }
0x2d80   :  { %14249 = vrsqrt.f32 %v5609_v45  ;;  %vm5626_vm9 = vcmp.eq.f32.partialorder %v5609_v45, inf  ;;  %v5629_v29 = vand.u32 2147483648, %v5609_v45  ;;  %vm5628_vm15 = vcmp.eq.f32.partialorder %v5609_v45, 0.0 }
0x2d86   :  { %v14248_v38 = vpop.eup %14247 }
0x2d87   :  { %v5618_v61 = vmul.f32 %v14248_v38, %v5608_v54  ;;  %v5937_v38 = vld [vmem:[#allocation2 + $0x350] sm:$0xff] }
0x2d89   :  { %v5620_v24 = vsel %vm5619_vm7, %v5608_v54, %v5618_v61  ;;  %v5938_v61 = vld [vmem:[#allocation2 + $0x358] sm:$0xff] }
0x2d8a   :  { %v5623_v27 = vsel %vm5621_vm8, %v5622_v16, %v5620_v24  ;;  %v14250_v8 = vpop.eup %14249  ;;  %v13462_v16 = vpack.c.bf16 %v5938_v61, %v5937_v38 }
0x2d8b   :  { %v5632_v9 = vadd.f32 1e-06, %v5623_v27  ;;  %v5625_v62 = vmul.f32 %v14250_v8, %v5609_v45 }
0x2d8d   :  { %14251 = vrcp.f32 %v5632_v9  ;;  %v5627_v11 = vsel %vm5626_vm9, %v5609_v45, %v5625_v62  ;;  %v5936_v45 = vld [vmem:[#allocation2 + $0x348] sm:$0xff] }
0x2d8e   :  { %v5630_v52 = vsel %vm5628_vm15, %v5629_v29, %v5627_v11 }
0x2d8f   :  { %v5633_v4 = vadd.f32 1e-06, %v5630_v52 }
0x2d91   :  { %14253 = vrcp.f32 %v5633_v4 }
0x2d97   :  { %v14252_v18 = vpop.eup %14251 }
0x2d98   :  { %v5645_v53 = vmul.f32 %v14252_v18, %v5642_v14 }
0x2d9a   :  { %v5652_v23 = vadd.f32 %v11328_v63, %v5645_v53 }
0x2d9b   :  { %v14254_v31 = vpop.eup %14253 }
0x2d9c   :  { %12579 = vmatmul.mubr.msk.f32.gmra.mrb[90].mxu0 %vm142_vm3, %v5652_v23  ;;  %v5646_v17 = vmul.f32 %v14254_v31, %v5643_v12 }
0x2d9d   :  { %12581 = vmatprep.mubr.msk.f32.mxu0 %vm14435_vm0, %v14436_v1 }
0x2d9e   :  { %v5653_v20 = vadd.f32 %v11328_v63, %v5646_v17 }
0x2da0   :  { %12582 = vmatmul.mubr.msk.f32.gmra.mrb[92].mxu0 %vm142_vm3, %v5653_v20 }
0x2da1   :  { %12609 = vmatprep.mubr.msk.f32.mxu0 %vm14435_vm0, %v14436_v1 }
0x2de2   :  { %v5738_v22 = vpop.f32.mrb[88].mxu0 }
0x2de3   :  { %v5739_v7 = vadd.f32 %v11329_v56, %v5738_v22  ;;  %v12577_v25 = vpop.f32.mrb[89].mxu0  ;;  %v11337_v22 = vld [vmem:[#allocation2 + $0x330] ss:$0 sm:$0xff] }
0x2de5   :  { %v5752_v46 = vmax.f32 %v5739_v7, 0.0 }
0x2de7   :  { %12593 = vmatmul.mubr.msk.f32.vlgmr.msra.gmra.mrb[84].mxu1 %vm142_vm3, %v5752_v46  ;;  %v11338_v46 = vld [vmem:[#allocation2 + $0x338] ss:$0 sm:$0xff] }
0x2de8   :  { %12595 = vmatprep.mubr.msk.f32.mxu1 %vm14435_vm0, %v14436_v1 }
0x2e6f   :  { %v5743_v15 = vpop.f32.mrb[90].mxu0 }
0x2e70   :  { %v5744_v10 = vadd.f32 %v11329_v56, %v5743_v15  ;;  %v12580_v50 = vpop.f32.mrb[91].mxu0 }
0x2e72   :  { %v5753_v55 = vmax.f32 %v5744_v10, 0.0 }
0x2e73   :  { %v5748_v26 = vpop.f32.mrb[92].mxu0 }
0x2e74   :  { %12596 = vmatmul.mubr.msk.f32.gmra.mrb[86].mxu1 %vm142_vm3, %v5753_v55  ;;  %v5749_v32 = vadd.f32 %v11329_v56, %v5748_v26  ;;  %v12583_v33 = vpop.f32.mrb[93].mxu0 }
0x2e75   :  { %12598 = vmatprep.mubr.msk.f32.mxu1 %vm14435_vm0, %v14436_v1 }
0x2e76   :  { %v5754_v34 = vmax.f32 %v5749_v32, 0.0 }
0x2e78   :  { %12599 = vmatmul.mubr.msk.f32.gmra.mrb[88].mxu1 %vm142_vm3, %v5754_v34 }
0x2eba   :  { %v5834_v36 = vpop.f32.mrb[84].mxu1 }
0x2ebb   :  { %v5848_v41 = vadd.f32 %v5834_v36, %v15400_v2  ;;  %v12594_v19 = vpop.f32.mrb[85].mxu1 }
0x2ebd   :  { %v15455_v40 = vadd.f32 %v11336_v28, %v5848_v41 }
0x2ebf   :  { %v5861_v58 = vsel %vm142_vm3, %v15455_v40, 0.0 }
0x2ec0   :  { %5862 = vadd.xlane.f32.xlu0 %v5861_v58 }
0x2f47   :  { %v5839_v42 = vpop.f32.mrb[86].mxu1 }
0x2f48   :  { %v5849_v30 = vadd.f32 %v5839_v42, %v15409_v49  ;;  %v12597_v63 = vpop.f32.mrb[87].mxu1 }
0x2f4a   :  { %v15460_v37 = vadd.f32 %v11336_v28, %v5849_v30 }
0x2f4b   :  { %v5844_v43 = vpop.f32.mrb[88].mxu1 }
0x2f4c   :  { %v5864_v47 = vsel %vm142_vm3, %v15460_v37, 0.0  ;;  %v5850_v6 = vadd.f32 %v5844_v43, %v15416_v21  ;;  %v12600_v2 = vpop.f32.mrb[89].mxu1  ;;  %v13459_v21 = vpack.c.bf16 %v5936_v45, %v5935_v39  ;;  %v11339_v39 = vld [vmem:[#allocation2 + $0x360] ss:$0 sm:$0xff] }
0x2f4d   :  { %v5863_v60 = vpop.xlane.xlu0 %5862  ;;  %5865 = vadd.xlane.f32.xlu0 %v5864_v47 }
0x2f4e   :  { %v5870_v44 = vmul.f32 0.03125, %v5863_v60  ;;  %v15465_v51 = vadd.f32 %v11336_v28, %v5850_v6  ;;  %13460 = vmatpush3.bf16.msra.mxu0 %v13459_v21 }
0x2f4f   :  { %13461 = vmatprep.subr.bf16.mxu0 %v14434_v0 }
0x2f50   :  { %v5873_v13 = vsub.f32 %v15455_v40, %v5870_v44  ;;  %v5867_v49 = vsel %vm142_vm3, %v15465_v51, 0.0 }
0x2f51   :  { %5868 = vadd.xlane.f32.xlu0 %v5867_v49 }
0x2f52   :  { %v5876_v48 = vmul.f32 %v5873_v13, %v5873_v13  ;;  %13463 = vmatpush3.bf16.msra.mxu0 %v13462_v16  ;;  %v5922_v7 = vmul.f32 %v11337_v22, %v5873_v13 }
0x2f54   :  { %v5879_v54 = vsel %vm142_vm3, %v5876_v48, 0.0 }
0x2f55   :  { %5880 = vadd.xlane.f32.xlu0 %v5879_v54 }
0x2fda   :  { %v5866_v24 = vpop.xlane.xlu0 %5865 }
0x2fdb   :  { %v5871_v27 = vmul.f32 0.03125, %v5866_v24 }
0x2fdd   :  { %v5874_v8 = vsub.f32 %v15460_v37, %v5871_v27 }
0x2fde   :  { %v5869_v9 = vpop.xlane.xlu0 %5868 }
0x2fdf   :  { %v5877_v62 = vmul.f32 %v5874_v8, %v5874_v8  ;;  %v5872_v29 = vmul.f32 0.03125, %v5869_v9  ;;  %v5923_v6 = vmul.f32 %v11337_v22, %v5874_v8 }
0x2fe1   :  { %v5882_v11 = vsel %vm142_vm3, %v5877_v62, 0.0  ;;  %v5875_v52 = vsub.f32 %v15465_v51, %v5872_v29 }
0x2fe2   :  { %5883 = vadd.xlane.f32.xlu0 %v5882_v11  ;;  %v5881_v4 = vpop.xlane.xlu0 %5880 }
0x2fe3   :  { %v5888_v14 = vmul.f32 0.032258064, %v5881_v4  ;;  %v5878_v18 = vmul.f32 %v5875_v52, %v5875_v52  ;;  %v5924_v13 = vmul.f32 %v11337_v22, %v5875_v52 }
0x2fe5   :  { %14255 = vrsqrt.f32 %v5888_v14  ;;  %v5885_v53 = vsel %vm142_vm3, %v5878_v18, 0.0  ;;  %vm5893_vm4 = vcmp.eq.f32.partialorder %v5888_v14, inf  ;;  %v5896_v31 = vand.u32 2147483648, %v5888_v14 }
0x2fe6   :  { %5886 = vadd.xlane.f32.xlu0 %v5885_v53  ;;  %vm5895_vm5 = vcmp.eq.f32.partialorder %v5888_v14, 0.0 }
0x2fef   :  { %v14256_v23 = vpop.eup %14255 }
0x2ff0   :  { %v5892_v12 = vmul.f32 %v14256_v23, %v5888_v14 }
0x2ff2   :  { %v5894_v17 = vsel %vm5893_vm4, %v5888_v14, %v5892_v12 }
0x2ff3   :  { %v5897_v20 = vsel %vm5895_vm5, %v5896_v31, %v5894_v17 }
0x2ff4   :  { %v5912_v56 = vadd.f32 1e-06, %v5897_v20 }
0x2ff6   :  { %14257 = vrcp.f32 %v5912_v56 }
0x3000   :  { %v14258_v25 = vpop.eup %14257 }
0x3001   :  { %v5925_v15 = vmul.f32 %v14258_v25, %v5922_v7 }
0x3003   :  { %v5932_v10 = vadd.f32 %v11338_v46, %v5925_v15 }
0x3005   :  { %12610 = vmatmul.mubr.msk.f32.vlgmr.msra.gmra.mrb[94].mxu0 %vm142_vm3, %v5932_v10 }
0x3006   :  { %12612 = vmatprep.mubr.msk.f32.mxu0 %vm14435_vm0, %v14436_v1 }
0x306f   :  { %v5884_v50 = vpop.xlane.xlu0 %5883 }
0x3070   :  { %v5889_v55 = vmul.f32 0.032258064, %v5884_v50 }
0x3072   :  { %14259 = vrsqrt.f32 %v5889_v55  ;;  %vm5900_vm6 = vcmp.eq.f32.partialorder %v5889_v55, inf  ;;  %v5903_v36 = vand.u32 2147483648, %v5889_v55  ;;  %vm5902_vm7 = vcmp.eq.f32.partialorder %v5889_v55, 0.0 }
0x3073   :  { %v5887_v26 = vpop.xlane.xlu0 %5886 }
0x3074   :  { %v5890_v32 = vmul.f32 0.032258064, %v5887_v26 }
0x3076   :  { %14261 = vrsqrt.f32 %v5890_v32  ;;  %vm5907_vm8 = vcmp.eq.f32.partialorder %v5890_v32, inf  ;;  %v5910_v30 = vand.u32 2147483648, %v5890_v32  ;;  %vm5909_vm9 = vcmp.eq.f32.partialorder %v5890_v32, 0.0 }
0x307c   :  { %v14260_v33 = vpop.eup %14259 }
0x307d   :  { %v5899_v34 = vmul.f32 %v14260_v33, %v5889_v55 }
0x307f   :  { %v5901_v28 = vsel %vm5900_vm6, %v5889_v55, %v5899_v34 }
0x3080   :  { %v5904_v41 = vsel %vm5902_vm7, %v5903_v36, %v5901_v28  ;;  %v14262_v58 = vpop.eup %14261 }
0x3081   :  { %v5913_v19 = vadd.f32 1e-06, %v5904_v41  ;;  %v5906_v42 = vmul.f32 %v14262_v58, %v5890_v32 }
0x3083   :  { %14263 = vrcp.f32 %v5913_v19  ;;  %v5908_v63 = vsel %vm5907_vm8, %v5890_v32, %v5906_v42 }
0x3084   :  { %v5911_v43 = vsel %vm5909_vm9, %v5910_v30, %v5908_v63 }
0x3085   :  { %v5914_v47 = vadd.f32 1e-06, %v5911_v43 }
0x3087   :  { %14265 = vrcp.f32 %v5914_v47 }
0x308d   :  { %v14264_v2 = vpop.eup %14263 }
0x308e   :  { %v5926_v60 = vmul.f32 %v14264_v2, %v5923_v6 }
0x3090   :  { %v5933_v44 = vadd.f32 %v11338_v46, %v5926_v60 }
0x3091   :  { %v14266_v49 = vpop.eup %14265 }
0x3092   :  { %12613 = vmatmul.mubr.msk.f32.gmra.mrb[96].mxu0 %vm142_vm3, %v5933_v44  ;;  %v5927_v48 = vmul.f32 %v14266_v49, %v5924_v13 }
0x3093   :  { %12615 = vmatprep.mubr.msk.f32.mxu0 %vm14435_vm0, %v14436_v1 }
0x3094   :  { %v5934_v54 = vadd.f32 %v11338_v46, %v5927_v48 }
0x3096   :  { %12616 = vmatmul.mubr.msk.f32.gmra.mrb[98].mxu0 %vm142_vm3, %v5934_v54 }
0x30d8   :  { %v6019_v45 = vpop.f32.mrb[94].mxu0 }
0x30d9   :  { %v15483_v38 = vadd.f32 %v11339_v39, %v6019_v45  ;;  %v12611_v21 = vpop.f32.mrb[95].mxu0 }
0x30db   :  { %12622 = vmatprep.mubr.msk.f32.mxu1 %vm45_vm1, %v15483_v38 }
0x3165   :  { %v6024_v61 = vpop.f32.mrb[96].mxu0 }
0x3166   :  { %v15487_v16 = vadd.f32 %v11339_v39, %v6024_v61  ;;  %v12614_v24 = vpop.f32.mrb[97].mxu0 }
0x3168   :  { %v15491_v27 = vpack.i.bf16 %v15487_v16, %v15483_v38  ;;  %v6240_v11 = vrot.slane %v15487_v16, 4 }
0x3169   :  { %v6029_v8 = vpop.f32.mrb[98].mxu0 }
0x316a   :  { %13964 = vrot.lane.b32.xlu0 %v15491_v27, %s14437_s30  ;;  %v6030_v9 = vadd.f32 %v11339_v39, %v6029_v8  ;;  %v12617_v62 = vpop.f32.mrb[99].mxu0 }
0x316c   :  { %v15495_v29 = vrot.slane %v6030_v9, 4 }
0x316e   :  { %v15500_v52 = vsel %vm32_vm2, %v6240_v11, %v15495_v29 }
0x316f   :  { %12636 = vmatprep.mubr.msk.f32.mxu0 %vm45_vm1, %v15500_v52  ;;  %v15506_v4 = vpack.i.bf16 %v15495_v29, %v15500_v52 }
0x3171   :  { %13969 = vrot.lane.b32.xlu1 %v15506_v4, %s14437_s30 }
0x31dc   :  { %v13965_v14 = vpop.permute.xlu0 %13964 }
0x31dd   :  { %v13967_v18 = vunpack.i.h.bf16 %v13965_v14  ;;  %v13966_v53 = vunpack.i.l.bf16 %v13965_v14 }
0x31df   :  { %v13464_v23 = vpack.c.bf16 %v13967_v18, %v13966_v53 }
0x31e1   :  { %13466 = vmatprep.subr.msk.bf16.mxu1 %vm14575_vm10, %v13464_v23 }
0x31e2   :  { %13469 = vmatpush3.bf16.xpose.msk.msra.mxu1 %vm14575_vm10, %v13464_v23 }
0x31e3   :  { %v13970_v12 = vpop.permute.xlu1 %13969 }
0x31e4   :  { %v13972_v31 = vunpack.i.h.bf16 %v13970_v12  ;;  %v13971_v17 = vunpack.i.l.bf16 %v13970_v12 }
0x31e6   :  { %v13476_v20 = vpack.c.bf16 %v13972_v31, %v13971_v17 }
0x31e8   :  { %13478 = vmatprep.subr.msk.bf16.mxu0 %vm14575_vm10, %v13476_v20 }
0x31e9   :  { %12623 = vmatmul.mubr.msk.f32.vlgmr.msra.gmra.mrb[90].mxu1 %vm45_vm1, %v15487_v16  ;;  %13481 = vmatpush3.bf16.xpose.msk.msra.mxu0 %vm14575_vm10, %v13476_v20 }
0x31f0   :  { %12637 = vmatmul.mubr.msk.f32.vlgmr.msra.gmra.mrb[100].mxu0 %vm45_vm1, %v15495_v29 }
0x32bc   :  { %v12624_v56 = vpop.f32.mrb[90].mxu1 }
0x32bd   :  { %v6128_v22 = vmul.f32 0.25, %v12624_v56  ;;  %v6118_v7 = vpop.f32.mrb[91].mxu1 }
0x32be   :  { %v6127_v25 = vmul.f32 0.25, %v6118_v7 }
0x32bf   :  { %v6132_v46 = vsel %vm417_vm11, %v6128_v22, -inf }
0x32c0   :  { %6133 = vmax.xlane.f32.xlu1 %v6132_v46  ;;  %v6129_v15 = vsel %vm413_vm12, %v6127_v25, -inf }
0x32c1   :  { %6130 = vmax.xlane.f32.xlu0 %v6129_v15 }
0x32c3   :  { %v12638_v10 = vpop.f32.mrb[100].mxu0 }
0x32c4   :  { %v6321_v50 = vpop.f32.mrb[101].mxu0  ;;  %v6331_v26 = vmul.f32 0.25, %v12638_v10 }
0x32c5   :  { %v6330_v55 = vmul.f32 0.25, %v6321_v50 }
0x32c6   :  { %v6335_v33 = vsel %vm417_vm11, %v6331_v26, -inf }
0x32c7   :  { %v6332_v32 = vsel %vm413_vm12, %v6330_v55, -inf }
0x32c8   :  { %6333 = vmax.xlane.f32.xlu0 %v6332_v32 }
0x32cc   :  { %6336 = vmax.xlane.f32.xlu0 %v6335_v33 }
0x32d1   :  { %13974 = vrot.lane.b32.xlu1 %v15491_v27, %s14440_s5 }
0x334d   :  { %v6134_v34 = vpop.xlane.xlu1 %6133 }
0x334e   :  { %v6136_v36 = vsub.f32 %v6128_v22, %v6134_v34  ;;  %v6131_v28 = vpop.xlane.xlu0 %6130 }
0x334f   :  { %v6135_v41 = vsub.f32 %v6127_v25, %v6131_v28 }
0x3350   :  { %v6139_v19 = vmul.f32 1.442695, %v6136_v36 }
0x3351   :  { %v6137_v58 = vmul.f32 1.442695, %v6135_v41  ;;  %v13975_v42 = vpop.permute.xlu1 %13974 }
0x3352   :  { %14267 = vpow2.f32 %v6139_v19  ;;  %v13977_v30 = vunpack.i.h.bf16 %v13975_v42  ;;  %v13976_v63 = vunpack.i.l.bf16 %v13975_v42 }
0x3353   :  { %14269 = vpow2.f32 %v6137_v58 }
0x3354   :  { %v13470_v43 = vpack.c.bf16 %v13977_v30, %v13976_v63 }
0x3355   :  { %v6334_v47 = vpop.xlane.xlu0 %6333 }
0x3356   :  { %13472 = vmatprep.subr.msk.bf16.mxu1 %vm14608_vm14, %v13470_v43  ;;  %v6338_v45 = vsub.f32 %v6330_v55, %v6334_v47 }
0x3357   :  { %13475 = vmatpush3.bf16.msk.msra.mxu1 %vm14608_vm14, %v13470_v43 }
0x3358   :  { %v6340_v21 = vmul.f32 1.442695, %v6338_v45 }
0x3359   :  { %v6337_v6 = vpop.xlane.xlu0 %6336 }
0x335a   :  { %v6339_v60 = vsub.f32 %v6331_v26, %v6337_v6 }
0x335c   :  { %v14268_v2 = vpop.eup %14267  ;;  %v6342_v49 = vmul.f32 1.442695, %v6339_v60 }
0x335d   :  { %v14270_v44 = vpop.eup %14269  ;;  %v6144_v13 = vsel %vm417_vm11, %v14268_v2, 0.0 }
0x335e   :  { %6145 = vadd.xlane.f32.xlu0 %v6144_v13  ;;  %v6141_v48 = vsel %vm413_vm12, %v14270_v44, 0.0  ;;  %14271 = vpow2.f32 %v6342_v49 }
0x335f   :  { %6142 = vadd.xlane.f32.xlu1 %v6141_v48  ;;  %14273 = vpow2.f32 %v6340_v21 }
0x3368   :  { %v14272_v54 = vpop.eup %14271 }
0x3369   :  { %v6347_v39 = vsel %vm417_vm11, %v14272_v54, 0.0  ;;  %v14274_v61 = vpop.eup %14273 }
0x336a   :  { %6348 = vadd.xlane.f32.xlu0 %v6347_v39  ;;  %v6344_v24 = vsel %vm413_vm12, %v14274_v61, 0.0 }
0x3370   :  { %13984 = vrot.lane.b32.xlu1 %v15491_v27, %s14439_s4 }
0x3380   :  { %13979 = vrot.lane.b32.xlu0 %v15506_v4, %s14440_s5 }
0x3384   :  { %6451 = vrot.lane.b32.xlu0 %v15487_v16, %s14438_s3 }
0x3394   :  { %6345 = vadd.xlane.f32.xlu1 %v6344_v24 }
0x33a5   :  { %6449 = vrot.lane.b32.xlu1 %v15483_v38, %s14438_s3 }
0x33eb   :  { %v6146_v8 = vpop.xlane.xlu0 %6145 }
0x33ec   :  { %14275 = vrcp.f32 %v6146_v8  ;;  %v6143_v9 = vpop.xlane.xlu1 %6142 }
0x33ed   :  { %14277 = vrcp.f32 %v6143_v9 }
0x33f0   :  { %v13985_v23 = vpop.permute.xlu1 %13984 }
0x33f1   :  { %v13987_v12 = vunpack.i.h.bf16 %v13985_v23  ;;  %v13986_v31 = vunpack.i.l.bf16 %v13985_v23 }
0x33f3   :  { %v13488_v56 = vpack.c.bf16 %v13987_v12, %v13986_v31  ;;  %v6034_v12 = vld [vmem:[#allocation2 + $0x370] sm:$0xff] }
0x33f6   :  { %v14276_v62 = vpop.eup %14275 }
0x33f7   :  { %v14278_v11 = vpop.eup %14277  ;;  %v6150_v18 = vmul.f32 %v14276_v62, %v14268_v2  ;;  %v6349_v53 = vpop.xlane.xlu0 %6348 }
0x33f8   :  { %v6149_v14 = vmul.f32 %v14278_v11, %v14270_v44  ;;  %14279 = vrcp.f32 %v6349_v53 }
0x33fa   :  { %12629 = vmatprep.mubr.msk.f32.mxu1 %vm413_vm12, %v6149_v14 }
0x33fb   :  { %12630 = vmatmul.mubr.msk.f32.vlgmr.msra.gmra.mrb[92].mxu1 %vm413_vm12, %v6150_v18  ;;  %v13980_v16 = vpop.permute.xlu0 %13979 }
0x33fc   :  { %v13982_v17 = vunpack.i.h.bf16 %v13980_v16  ;;  %v13981_v20 = vunpack.i.l.bf16 %v13980_v16  ;;  %v6033_v16 = vld [vmem:[#allocation2 + $0x368] sm:$0xff] }
0x33fd   :  { %v13516_v31 = vpack.c.bf16 %v6034_v12, %v6033_v16  ;;  %v6035_v12 = vld [vmem:[#allocation2 + $0x378] sm:$0xff] }
0x33fe   :  { %v13482_v38 = vpack.c.bf16 %v13982_v17, %v13981_v20  ;;  %v7222_v17 = vld [vmem:[#allocation2 + $0x3c8] sm:$0xff]  ;;  %v7223_v20 = vld [vmem:[#allocation2 + $0x3d0] sm:$0xff] }
0x33ff   :  { %v6452_v50 = vpop.permute.xlu0 %6451 }
0x3400   :  { %13484 = vmatprep.subr.msk.bf16.mxu1 %vm14608_vm14, %v13482_v38 }
0x3401   :  { %13487 = vmatpush3.bf16.msk.msra.mxu1 %vm14608_vm14, %v13482_v38 }
0x3402   :  { %13490 = vmatprep.subr.msk.bf16.mxu1 %vm14575_vm10, %v13488_v56  ;;  %v14280_v7 = vpop.eup %14279 }
0x3403   :  { %v6353_v15 = vmul.f32 %v14280_v7, %v14272_v54  ;;  %v7225_v7 = vld [vmem:[#allocation2 + $0x3e0] sm:$0xff] }
0x3421   :  { %v6346_v22 = vpop.xlane.xlu1 %6345 }
0x3422   :  { %14281 = vrcp.f32 %v6346_v22  ;;  %v7224_v22 = vld [vmem:[#allocation2 + $0x3d8] sm:$0xff] }
0x3425   :  { %v6450_v10 = vpop.permute.xlu1 %6449 }
0x342c   :  { %v14282_v25 = vpop.eup %14281 }
0x342d   :  { %v6352_v46 = vmul.f32 %v14282_v25, %v14274_v61  ;;  %v13528_v25 = vpack.c.bf16 %v7225_v7, %v7224_v22  ;;  %v7124_v22 = vld [vmem:[#allocation2 + $0x3a0] sm:$0xff]  ;;  %v7125_v7 = vld [vmem:[#allocation2 + $0x3a8] sm:$0xff] }
0x342f   :  { %12643 = vmatprep.mubr.msk.f32.mxu1 %vm413_vm12, %v6352_v46 }
0x3430   :  { %12644 = vmatmul.mubr.msk.f32.vlgmr.msra.gmra.mrb[94].mxu1 %vm413_vm12, %v6353_v15 }
0x3431   :  { %13493 = vmatpush3.bf16.xpose.msk.msra.mxu1 %vm14575_vm10, %v13488_v56  ;;  %12650 = vmatprep.mubr.msk.f32.mxu1 %vm45_vm1, %v6450_v10  ;;  %v13525_v56 = vpack.c.bf16 %v7223_v20, %v7222_v17 }
0x3438   :  { %12651 = vmatmul.mubr.msk.f32.vlgmr.msra.gmra.mrb[96].mxu1 %vm45_vm1, %v6452_v50 }
0x34ce   :  { %v12631_v55 = vpop.f32.mrb[92].mxu1 }
0x34cf   :  { %v15558_v26 = vpop.f32.mrb[93].mxu1 }
0x3503   :  { %v12645_v32 = vpop.f32.mrb[94].mxu1 }
0x3504   :  { %v6445_v33 = vrot.slane %v12645_v32, 4  ;;  %v6433_v34 = vpop.f32.mrb[95].mxu1 }
0x3505   :  { %v6444_v36 = vrot.slane %v6433_v34, 4 }
0x3507   :  { %v15561_v28 = vsel %vm32_vm2, %v12631_v55, %v6444_v36  ;;  %v15564_v41 = vsel %vm32_vm2, %v6444_v36, %v6445_v33 }
0x350b   :  { %v12652_v19 = vpop.f32.mrb[96].mxu1 }
0x350c   :  { %v6541_v58 = vmul.f32 0.25, %v12652_v19  ;;  %v6531_v42 = vpop.f32.mrb[97].mxu1 }
0x350d   :  { %v6540_v30 = vmul.f32 0.25, %v6531_v42 }
0x350e   :  { %v6545_v63 = vsel %vm417_vm11, %v6541_v58, -inf }
0x350f   :  { %6546 = vmax.xlane.f32.xlu0 %v6545_v63  ;;  %v6542_v43 = vsel %vm413_vm12, %v6540_v30, -inf }
0x3510   :  { %6543 = vmax.xlane.f32.xlu1 %v6542_v43 }
0x359c   :  { %v6547_v47 = vpop.xlane.xlu0 %6546 }
0x359d   :  { %v6549_v6 = vsub.f32 %v6541_v58, %v6547_v47  ;;  %v6544_v2 = vpop.xlane.xlu1 %6543  ;;  %v11384_v58 = vld [vmem:[#allocation2 + $0x3e8] ss:$0 sm:$0xff] }
0x359e   :  { %v6548_v60 = vsub.f32 %v6540_v30, %v6544_v2 }
0x359f   :  { %v6552_v44 = vmul.f32 1.442695, %v6549_v6 }
0x35a0   :  { %v6550_v13 = vmul.f32 1.442695, %v6548_v60 }
0x35a1   :  { %14283 = vpow2.f32 %v6552_v44 }
0x35a2   :  { %14285 = vpow2.f32 %v6550_v13 }
0x35ab   :  { %v14284_v49 = vpop.eup %14283 }
0x35ac   :  { %v14286_v48 = vpop.eup %14285  ;;  %v6557_v54 = vsel %vm417_vm11, %v14284_v49, 0.0 }
0x35ad   :  { %6558 = vadd.xlane.f32.xlu1 %v6557_v54  ;;  %v6554_v39 = vsel %vm413_vm12, %v14286_v48, 0.0 }
0x35ae   :  { %6555 = vadd.xlane.f32.xlu0 %v6554_v39 }
0x35be   :  { %13994 = vrot.lane.b32.xlu1 %v15506_v4, %s14439_s4 }
0x35c2   :  { %6652 = vrot.lane.b32.xlu1 %v15500_v52, %s14438_s3 }
0x35c4   :  { %13989 = vrot.lane.b32.xlu0 %v15491_v27, %s14442_s6 }
0x35c8   :  { %6654 = vrot.lane.b32.xlu0 %v15495_v29, %s14438_s3 }
0x363a   :  { %v6559_v45 = vpop.xlane.xlu1 %6558 }
0x363b   :  { %14287 = vrcp.f32 %v6559_v45  ;;  %v6556_v21 = vpop.xlane.xlu0 %6555 }
0x363c   :  { %14289 = vrcp.f32 %v6556_v21 }
0x363e   :  { %v13995_v61 = vpop.permute.xlu1 %13994 }
0x363f   :  { %v13990_v24 = vpop.permute.xlu0 %13989  ;;  %v13997_v8 = vunpack.i.h.bf16 %v13995_v61  ;;  %v13996_v9 = vunpack.i.l.bf16 %v13995_v61 }
0x3640   :  { %v13992_v62 = vunpack.i.h.bf16 %v13990_v24  ;;  %v13991_v11 = vunpack.i.l.bf16 %v13990_v24 }
0x3641   :  { %v13500_v18 = vpack.c.bf16 %v13997_v8, %v13996_v9 }
0x3642   :  { %v13494_v14 = vpack.c.bf16 %v13992_v62, %v13991_v11  ;;  %v6653_v23 = vpop.permute.xlu1 %6652 }
0x3643   :  { %v6655_v38 = vpop.permute.xlu0 %6654 }
0x3644   :  { %13496 = vmatprep.subr.msk.bf16.mxu0 %vm14608_vm14, %v13494_v14 }
0x3645   :  { %v14288_v52 = vpop.eup %14287  ;;  %13499 = vmatpush3.bf16.msk.msra.mxu0 %vm14608_vm14, %v13494_v14 }
0x3646   :  { %v14290_v27 = vpop.eup %14289  ;;  %13502 = vmatprep.subr.msk.bf16.mxu0 %vm14575_vm10, %v13500_v18  ;;  %v6563_v53 = vmul.f32 %v14288_v52, %v14284_v49 }
0x3647   :  { %v6562_v29 = vmul.f32 %v14290_v27, %v14286_v48 }
0x3649   :  { %12657 = vmatprep.mubr.msk.f32.mxu0 %vm413_vm12, %v6562_v29 }
0x364a   :  { %12658 = vmatmul.mubr.msk.f32.vlgmr.msra.gmra.mrb[102].mxu0 %vm413_vm12, %v6563_v53 }
0x364b   :  { %12664 = vmatprep.mubr.msk.f32.mxu0 %vm45_vm1, %v6653_v23 }
0x364e   :  { %13505 = vmatpush3.bf16.xpose.msk.msra.mxu0 %vm14575_vm10, %v13500_v18 }
0x364f   :  { %13515 = vmatprep.subr.bf16.mxu0 %v14434_v0 }
0x3655   :  { %12665 = vmatmul.mubr.msk.f32.vlgmr.msra.gmra.mrb[104].mxu0 %vm45_vm1, %v6655_v38 }
0x3656   :  { %13517 = vmatpush3.bf16.msra.mxu0 %v13516_v31  ;;  %12691 = vmatprep.mubr.msk.f32.mxu0 %vm14435_vm0, %v14436_v1  ;;  %v6036_v31 = vld [vmem:[#allocation2 + $0x380] sm:$0xff] }
0x3657   :  { %13524 = vmatprep.subr.bf16.mxu0 %v14434_v0  ;;  %v13513_v38 = vpack.c.bf16 %v6036_v31, %v6035_v12 }
0x3659   :  { %12692 = vmatmul.mubr.msk.f32.vlgmr.msra.gmra.mrb[106].mxu0 %vm45_vm1, %v15558_v26 }
0x365a   :  { %12694 = vmatprep.mubr.msk.f32.mxu0 %vm14435_vm0, %v14436_v1  ;;  %13526 = vmatpush3.bf16.msra.mxu0 %v13525_v56 }
0x365b   :  { %13527 = vmatprep.subr.bf16.mxu0 %v14434_v0 }
0x365d   :  { %12695 = vmatmul.mubr.msk.f32.gmra.mrb[108].mxu0 %vm45_vm1, %v15561_v28 }
0x365e   :  { %12697 = vmatprep.mubr.msk.f32.mxu0 %vm14435_vm0, %v14436_v1  ;;  %13529 = vmatpush3.bf16.msra.mxu0 %v13528_v25  ;;  %v13519_v25 = vpack.c.bf16 %v7125_v7, %v7124_v22  ;;  %v11379_v7 = vld [vmem:[#allocation2 + $0x398] ss:$0 sm:$0xff] }
0x3661   :  { %12698 = vmatmul.mubr.msk.f32.gmra.mrb[110].mxu0 %vm45_vm1, %v15564_v41 }
0x3662   :  { %12725 = vmatprep.mubr.msk.f32.mxu0 %vm14435_vm0, %v14436_v1 }
0x3665   :  { %12726 = vmatmul.mubr.msk.f32.vlgmr.msra.gmra.mrb[112].mxu0 %vm142_vm3, %v15172_v5 }
0x3666   :  { %12728 = vmatprep.mubr.msk.f32.mxu0 %vm14435_vm0, %v14436_v1 }
0x3669   :  { %12729 = vmatmul.mubr.msk.f32.gmra.mrb[114].mxu0 %vm142_vm3, %v15234_v35 }
0x366a   :  { %12731 = vmatprep.mubr.msk.f32.mxu0 %vm14435_vm0, %v14436_v1 }
0x366d   :  { %12732 = vmatmul.mubr.msk.f32.gmra.mrb[116].mxu0 %vm142_vm3, %v15243_v3 }
0x371d   :  { %v15617_v46 = vpop.f32.mrb[102].mxu0 }
0x371e   :  { %v15619_v15 = vpop.f32.mrb[103].mxu0 }
0x3728   :  { %v12666_v10 = vpop.f32.mrb[104].mxu0 }
0x3729   :  { %v6744_v50 = vmul.f32 0.25, %v12666_v10  ;;  %v6734_v55 = vpop.f32.mrb[105].mxu0  ;;  %v7126_v10 = vld [vmem:[#allocation2 + $0x3b0] sm:$0xff] }
0x372a   :  { %v6743_v5 = vmul.f32 0.25, %v6734_v55 }
0x372b   :  { %v6748_v26 = vsel %vm417_vm11, %v6744_v50, -inf }
0x372c   :  { %6749 = vmax.xlane.f32.xlu0 %v6748_v26  ;;  %v15622_v32 = vpop.f32.mrb[106].mxu0  ;;  %v6745_v35 = vsel %vm413_vm12, %v6743_v5, -inf }
0x372d   :  { %v12693_v33 = vpop.f32.mrb[107].mxu0  ;;  %6746 = vmax.xlane.f32.xlu1 %v6745_v35 }
0x3730   :  { %v15625_v34 = vpop.f32.mrb[108].mxu0 }
0x3731   :  { %v12696_v3 = vpop.f32.mrb[109].mxu0 }
0x3732   :  { %v11377_v3 = vld [vmem:[#allocation2 + $0x388] ss:$0 sm:$0xff] }
0x3734   :  { %v15627_v36 = vpop.f32.mrb[110].mxu0 }
0x3735   :  { %v12699_v28 = vpop.f32.mrb[111].mxu0 }
0x3738   :  { %v7297_v41 = vpop.f32.mrb[112].mxu0 }
0x3739   :  { %v12727_v19 = vpop.f32.mrb[113].mxu0  ;;  %v7298_v30 = vadd.f32 %v11384_v58, %v7297_v41 }
0x373c   :  { %v7302_v42 = vpop.f32.mrb[114].mxu0 }
0x373d   :  { %v7303_v63 = vadd.f32 %v11384_v58, %v7302_v42  ;;  %v12730_v43 = vpop.f32.mrb[115].mxu0 }
0x373f   :  { %v15629_v47 = vpack.c.bf16 %v7303_v63, %v7298_v30  ;;  %v15631_v6 = vpack.i.bf16 %v7303_v63, %v7298_v30  ;;  %v7520_v13 = vrot.slane %v7303_v63, 4 }
0x3740   :  { %v7307_v2 = vpop.f32.mrb[116].mxu0 }
0x3741   :  { %v7308_v60 = vadd.f32 %v11384_v58, %v7307_v2  ;;  %v12733_v44 = vpop.f32.mrb[117].mxu0 }
0x3743   :  { %v7521_v49 = vrot.slane %v7308_v60, 4 }
0x3745   :  { %v7522_v48 = vsel %vm32_vm2, %v7520_v13, %v7521_v49 }
0x3746   :  { %v15634_v54 = vpack.c.bf16 %v7521_v49, %v7522_v48  ;;  %v15636_v39 = vpack.i.bf16 %v7521_v49, %v7522_v48 }
0x37b9   :  { %v6750_v45 = vpop.xlane.xlu0 %6749 }
0x37ba   :  { %v6752_v21 = vsub.f32 %v6744_v50, %v6750_v45  ;;  %v6747_v61 = vpop.xlane.xlu1 %6746  ;;  %v7127_v50 = vld [vmem:[#allocation2 + $0x3b8] sm:$0xff] }
0x37bb   :  { %v6751_v24 = vsub.f32 %v6743_v5, %v6747_v61  ;;  %v13522_v55 = vpack.c.bf16 %v7127_v50, %v7126_v10 }
0x37bc   :  { %v6755_v8 = vmul.f32 1.442695, %v6752_v21 }
0x37bd   :  { %v6753_v9 = vmul.f32 1.442695, %v6751_v24 }
0x37be   :  { %14291 = vpow2.f32 %v6755_v8 }
0x37bf   :  { %14293 = vpow2.f32 %v6753_v9 }
0x37c8   :  { %v14292_v62 = vpop.eup %14291 }
0x37c9   :  { %v14294_v11 = vpop.eup %14293  ;;  %v6760_v14 = vsel %vm417_vm11, %v14292_v62, 0.0 }
0x37ca   :  { %6761 = vadd.xlane.f32.xlu1 %v6760_v14  ;;  %v6757_v18 = vsel %vm413_vm12, %v14294_v11, 0.0 }
0x37cb   :  { %6758 = vadd.xlane.f32.xlu0 %v6757_v18 }
0x37e1   :  { %13999 = vrot.lane.b32.xlu0 %v15506_v4, %s14442_s6 }
0x3857   :  { %v6762_v52 = vpop.xlane.xlu1 %6761 }
0x3858   :  { %14295 = vrcp.f32 %v6762_v52  ;;  %v6759_v27 = vpop.xlane.xlu0 %6758 }
0x3859   :  { %14297 = vrcp.f32 %v6759_v27 }
0x385c   :  { %v14000_v29 = vpop.permute.xlu0 %13999 }
0x385d   :  { %v14002_v53 = vunpack.i.h.bf16 %v14000_v29  ;;  %v14001_v23 = vunpack.i.l.bf16 %v14000_v29 }
0x385f   :  { %v13506_v16 = vpack.c.bf16 %v14002_v53, %v14001_v23 }
0x3861   :  { %13508 = vmatprep.subr.msk.bf16.mxu1 %vm14608_vm14, %v13506_v16 }
0x3862   :  { %v14296_v17 = vpop.eup %14295  ;;  %13511 = vmatpush3.bf16.msk.msra.mxu1 %vm14608_vm14, %v13506_v16 }
0x3863   :  { %v14298_v20 = vpop.eup %14297  ;;  %13512 = vmatprep.subr.bf16.mxu1 %v14434_v0  ;;  %v6766_v56 = vmul.f32 %v14296_v17, %v14292_v62 }
0x3864   :  { %v6765_v4 = vmul.f32 %v14298_v20, %v14294_v11 }
0x3866   :  { %12671 = vmatprep.mubr.msk.f32.mxu1 %vm413_vm12, %v6765_v4 }
0x3867   :  { %12672 = vmatmul.mubr.msk.f32.vlgmr.msra.gmra.mrb[98].mxu1 %vm413_vm12, %v6766_v56 }
0x3868   :  { %13514 = vmatpush3.bf16.msra.mxu1 %v13513_v38  ;;  %12678 = vmatprep.mubr.msk.f32.mxu1 %vm14435_vm0, %v14436_v1  ;;  %v11378_v38 = vld [vmem:[#allocation2 + $0x390] ss:$0 sm:$0xff] }
0x3869   :  { %13518 = vmatprep.subr.bf16.mxu1 %v14434_v0 }
0x386b   :  { %12679 = vmatmul.mubr.msk.f32.vlgmr.msra.gmra.mrb[100].mxu1 %vm45_vm1, %v15619_v15 }
0x386c   :  { %13520 = vmatpush3.bf16.msra.mxu1 %v13519_v25  ;;  %12681 = vmatprep.mubr.msk.f32.mxu1 %vm14435_vm0, %v14436_v1 }
0x386d   :  { %13521 = vmatprep.subr.bf16.mxu1 %v14434_v0 }
0x3870   :  { %13523 = vmatpush3.bf16.msra.mxu1 %v13522_v55 }
0x3871   :  { %13532 = vmatprep.subr.msk.bf16.mxu1 %vm14575_vm10, %v15629_v47 }
0x393a   :  { %v12673_v5 = vpop.f32.mrb[98].mxu1 }
0x393b   :  { %v6858_v26 = vrot.slane %v12673_v5, 4  ;;  %v6846_v35 = vpop.f32.mrb[99].mxu1 }
0x393c   :  { %v6857_v33 = vrot.slane %v6846_v35, 4 }
0x393e   :  { %v6936_v28 = vpop.f32.mrb[100].mxu1  ;;  %v6861_v15 = vsel %vm32_vm2, %v15617_v46, %v6857_v33  ;;  %v6859_v41 = vsel %vm32_vm2, %v6857_v33, %v6858_v26 }
0x393f   :  { %v7025_v19 = vadd.f32 %v15622_v32, %v6936_v28  ;;  %v12680_v58 = vpop.f32.mrb[101].mxu1  ;;  %12682 = vmatmul.mubr.msk.f32.gmra.mrb[102].mxu1 %vm45_vm1, %v6861_v15 }
0x3940   :  { %12684 = vmatprep.mubr.msk.f32.mxu1 %vm14435_vm0, %v14436_v1 }
0x3941   :  { %v7042_v42 = vadd.f32 %v11377_v3, %v7025_v19 }
0x3943   :  { %v15668_v30 = vadd.f32 %v7042_v42, %v15455_v40  ;;  %12685 = vmatmul.mubr.msk.f32.gmra.mrb[104].mxu1 %vm45_vm1, %v6859_v41 }
0x3944   :  { %12708 = vmatprep.mubr.msk.f32.mxu1 %vm14435_vm0, %v14436_v1 }
0x3945   :  { %v7050_v46 = vsel %vm142_vm3, %v15668_v30, 0.0 }
0x3946   :  { %7051 = vadd.xlane.f32.xlu1 %v7050_v46 }
0x39d3   :  { %v7052_v32 = vpop.xlane.xlu1 %7051 }
0x39d4   :  { %v7059_v60 = vmul.f32 0.03125, %v7052_v32 }
0x39d6   :  { %v7062_v45 = vsub.f32 %v15668_v30, %v7059_v60 }
0x39d8   :  { %v7065_v8 = vmul.f32 %v7062_v45, %v7062_v45  ;;  %v7111_v56 = vmul.f32 %v11378_v38, %v7062_v45  ;;  %v11380_v45 = vld [vmem:[#allocation2 + $0x3c0] ss:$0 sm:$0xff] }
0x3a12   :  { %v6941_v63 = vpop.f32.mrb[102].mxu1 }
0x3a13   :  { %v7030_v43 = vadd.f32 %v15625_v34, %v6941_v63  ;;  %v12683_v2 = vpop.f32.mrb[103].mxu1 }
0x3a15   :  { %v7043_v44 = vadd.f32 %v11377_v3, %v7030_v43 }
0x3a16   :  { %v6946_v13 = vpop.f32.mrb[104].mxu1 }
0x3a17   :  { %v15677_v40 = vadd.f32 %v7043_v44, %v15460_v37  ;;  %v7035_v49 = vadd.f32 %v15627_v36, %v6946_v13  ;;  %v12686_v48 = vpop.f32.mrb[105].mxu1  ;;  %v7068_v37 = vsel %vm142_vm3, %v7065_v8, 0.0 }
0x3a19   :  { %v7044_v21 = vadd.f32 %v11377_v3, %v7035_v49  ;;  %v7053_v61 = vsel %vm142_vm3, %v15677_v40, 0.0 }
0x3a1a   :  { %7054 = vadd.xlane.f32.xlu1 %v7053_v61 }
0x3a1b   :  { %v15684_v24 = vadd.f32 %v7044_v21, %v15465_v51 }
0x3a1d   :  { %v7056_v34 = vsel %vm142_vm3, %v15684_v24, 0.0 }
0x3a1e   :  { %7057 = vadd.xlane.f32.xlu1 %v7056_v34 }
0x3a22   :  { %7069 = vadd.xlane.f32.xlu1 %v7068_v37 }
0x3aa7   :  { %v7055_v36 = vpop.xlane.xlu1 %7054 }
0x3aa8   :  { %v7060_v9 = vmul.f32 0.03125, %v7055_v36 }
0x3aaa   :  { %v7063_v62 = vsub.f32 %v15677_v40, %v7060_v9 }
0x3aab   :  { %v7058_v11 = vpop.xlane.xlu1 %7057 }
0x3aac   :  { %v7061_v14 = vmul.f32 0.03125, %v7058_v11  ;;  %v7066_v18 = vmul.f32 %v7063_v62, %v7063_v62  ;;  %v7112_v63 = vmul.f32 %v11378_v38, %v7063_v62 }
0x3aae   :  { %v7064_v52 = vsub.f32 %v15684_v24, %v7061_v14  ;;  %v7071_v51 = vsel %vm142_vm3, %v7066_v18, 0.0 }
0x3aaf   :  { %7072 = vadd.xlane.f32.xlu1 %v7071_v51  ;;  %v7070_v27 = vpop.xlane.xlu1 %7069 }
0x3ab0   :  { %v7077_v29 = vmul.f32 0.032258064, %v7070_v27  ;;  %v7067_v53 = vmul.f32 %v7064_v52, %v7064_v52  ;;  %v7113_v44 = vmul.f32 %v11378_v38, %v7064_v52 }
0x3ab2   :  { %14299 = vrsqrt.f32 %v7077_v29  ;;  %v7074_v23 = vsel %vm142_vm3, %v7067_v53, 0.0  ;;  %vm7082_vm15 = vcmp.eq.f32.partialorder %v7077_v29, inf  ;;  %v7085_v31 = vand.u32 2147483648, %v7077_v29 }
0x3ab3   :  { %7075 = vadd.xlane.f32.xlu1 %v7074_v23  ;;  %vm7084_vm4 = vcmp.eq.f32.partialorder %v7077_v29, 0.0 }
0x3abc   :  { %v14300_v16 = vpop.eup %14299 }
0x3abd   :  { %v7081_v12 = vmul.f32 %v14300_v16, %v7077_v29 }
0x3abf   :  { %v7083_v17 = vsel %vm7082_vm15, %v7077_v29, %v7081_v12 }
0x3ac0   :  { %v7086_v20 = vsel %vm7084_vm4, %v7085_v31, %v7083_v17 }
0x3ac1   :  { %v7101_v4 = vadd.f32 1e-06, %v7086_v20 }
0x3ac3   :  { %14301 = vrcp.f32 %v7101_v4 }
0x3acd   :  { %v14302_v22 = vpop.eup %14301 }
0x3ace   :  { %v7114_v25 = vmul.f32 %v14302_v22, %v7111_v56 }
0x3ad0   :  { %v7121_v10 = vadd.f32 %v11379_v7, %v7114_v25 }
0x3ad2   :  { %12709 = vmatmul.mubr.msk.f32.vlgmr.msra.gmra.mrb[106].mxu1 %vm142_vm3, %v7121_v10 }
0x3ad3   :  { %13535 = vmatpush3.bf16.xpose.msk.msra.mxu1 %vm14575_vm10, %v15629_v47  ;;  %12711 = vmatprep.mubr.msk.f32.mxu1 %vm14435_vm0, %v14436_v1 }
0x3ad4   :  { %13544 = vmatprep.subr.msk.bf16.mxu1 %vm14575_vm10, %v15634_v54 }
0x3b3c   :  { %v7073_v50 = vpop.xlane.xlu1 %7072 }
0x3b3d   :  { %v7078_v55 = vmul.f32 0.032258064, %v7073_v50 }
0x3b3f   :  { %14303 = vrsqrt.f32 %v7078_v55  ;;  %vm7089_vm5 = vcmp.eq.f32.partialorder %v7078_v55, inf  ;;  %v7092_v3 = vand.u32 2147483648, %v7078_v55  ;;  %vm7091_vm6 = vcmp.eq.f32.partialorder %v7078_v55, 0.0 }
0x3b40   :  { %v7076_v5 = vpop.xlane.xlu1 %7075 }
0x3b41   :  { %v7079_v26 = vmul.f32 0.032258064, %v7076_v5 }
0x3b43   :  { %14305 = vrsqrt.f32 %v7079_v26  ;;  %vm7096_vm7 = vcmp.eq.f32.partialorder %v7079_v26, inf  ;;  %v7099_v58 = vand.u32 2147483648, %v7079_v26  ;;  %vm7098_vm8 = vcmp.eq.f32.partialorder %v7079_v26, 0.0 }
0x3b49   :  { %v14304_v35 = vpop.eup %14303 }
0x3b4a   :  { %v7088_v33 = vmul.f32 %v14304_v35, %v7078_v55 }
0x3b4c   :  { %v7090_v28 = vsel %vm7089_vm5, %v7078_v55, %v7088_v33 }
0x3b4d   :  { %v7093_v47 = vsel %vm7091_vm6, %v7092_v3, %v7090_v28  ;;  %v14306_v15 = vpop.eup %14305 }
0x3b4e   :  { %v7102_v41 = vadd.f32 1e-06, %v7093_v47  ;;  %v7095_v19 = vmul.f32 %v14306_v15, %v7079_v26 }
0x3b50   :  { %14307 = vrcp.f32 %v7102_v41  ;;  %v7097_v42 = vsel %vm7096_vm7, %v7079_v26, %v7095_v19 }
0x3b51   :  { %v7100_v46 = vsel %vm7098_vm8, %v7099_v58, %v7097_v42  ;;  %vm8800_vm8 = vcmask 1046528  }
0x3b52   :  { %v7103_v32 = vadd.f32 1e-06, %v7100_v46 }
0x3b54   :  { %14309 = vrcp.f32 %v7103_v32 }
0x3b5a   :  { %v14308_v43 = vpop.eup %14307 }
0x3b5b   :  { %v7115_v2 = vmul.f32 %v14308_v43, %v7112_v63 }
0x3b5d   :  { %v7122_v60 = vadd.f32 %v11379_v7, %v7115_v2 }
0x3b5e   :  { %v14310_v13 = vpop.eup %14309 }
0x3b5f   :  { %12712 = vmatmul.mubr.msk.f32.gmra.mrb[108].mxu1 %vm142_vm3, %v7122_v60  ;;  %v7116_v49 = vmul.f32 %v14310_v13, %v7113_v44 }
0x3b60   :  { %12714 = vmatprep.mubr.msk.f32.mxu1 %vm14435_vm0, %v14436_v1 }
0x3b61   :  { %v7123_v48 = vadd.f32 %v11379_v7, %v7116_v49 }
0x3b63   :  { %12715 = vmatmul.mubr.msk.f32.gmra.mrb[110].mxu1 %vm142_vm3, %v7123_v48 }
0x3ba5   :  { %v7208_v21 = vpop.f32.mrb[106].mxu1 }
0x3ba6   :  { %v15706_v61 = vadd.f32 %v11380_v45, %v7208_v21  ;;  %v12710_v34 = vpop.f32.mrb[107].mxu1 }
0x3ba8   :  { %12738 = vmatprep.mubr.msk.f32.mxu1 %vm45_vm1, %v15706_v61 }
0x3c32   :  { %v7213_v8 = vpop.f32.mrb[108].mxu1 }
0x3c33   :  { %v7214_v37 = vadd.f32 %v11380_v45, %v7213_v8  ;;  %v12713_v36 = vpop.f32.mrb[109].mxu1 }
0x3c35   :  { %12739 = vmatmul.mubr.msk.f32.vlgmr.msra.gmra.mrb[112].mxu1 %vm45_vm1, %v7214_v37  ;;  %v7516_v14 = vrot.slane %v7214_v37, 4 }
0x3c36   :  { %13547 = vmatpush3.bf16.xpose.msk.msra.mxu1 %vm14575_vm10, %v15634_v54  ;;  %v7218_v9 = vpop.f32.mrb[110].mxu1 }
0x3c37   :  { %v7219_v62 = vadd.f32 %v11380_v45, %v7218_v9  ;;  %v12716_v11 = vpop.f32.mrb[111].mxu1 }
0x3c39   :  { %v15714_v18 = vrot.slane %v7219_v62, 4 }
0x3c3b   :  { %v15718_v52 = vsel %vm32_vm2, %v7516_v14, %v15714_v18 }
0x3c3c   :  { %12752 = vmatprep.mubr.msk.f32.mxu1 %vm45_vm1, %v15718_v52 }
0x3c3d   :  { %12753 = vmatmul.mubr.msk.f32.vlgmr.msra.gmra.mrb[114].mxu1 %vm45_vm1, %v15714_v18 }
0x3d08   :  { %v12740_v51 = vpop.f32.mrb[112].mxu1 }
0x3d09   :  { %v7404_v27 = vmul.f32 0.25, %v12740_v51  ;;  %v7394_v29 = vpop.f32.mrb[113].mxu1 }
0x3d0a   :  { %v7403_v54 = vmul.f32 0.25, %v7394_v29 }
0x3d0b   :  { %v7408_v53 = vsel %vm417_vm11, %v7404_v27, -inf }
0x3d0c   :  { %7409 = vmax.xlane.f32.xlu1 %v7408_v53  ;;  %v7405_v23 = vsel %vm413_vm12, %v7403_v54, -inf }
0x3d0d   :  { %7406 = vmax.xlane.f32.xlu0 %v7405_v23 }
0x3d10   :  { %v12754_v16 = vpop.f32.mrb[114].mxu1 }
0x3d11   :  { %v7597_v12 = vpop.f32.mrb[115].mxu1  ;;  %v7607_v17 = vmul.f32 0.25, %v12754_v16 }
0x3d12   :  { %v7606_v31 = vmul.f32 0.25, %v7597_v12 }
0x3d13   :  { %v7611_v4 = vsel %vm417_vm11, %v7607_v17, -inf }
0x3d14   :  { %v7608_v20 = vsel %vm413_vm12, %v7606_v31, -inf }
0x3d15   :  { %7609 = vmax.xlane.f32.xlu1 %v7608_v20 }
0x3d19   :  { %7612 = vmax.xlane.f32.xlu1 %v7611_v4 }
0x3d23   :  { %14004 = vrot.lane.b32.xlu0 %v15631_v6, %s14437_s30 }
0x3d27   :  { %7727 = vrot.lane.b32.xlu0 %v7214_v37, %s14438_s3 }
0x3d2a   :  { %14009 = vrot.lane.b32.xlu1 %v15636_v39, %s14437_s30 }
0x3d2e   :  { %14014 = vrot.lane.b32.xlu1 %v15631_v6, %s14438_s3 }
0x3d99   :  { %v7410_v38 = vpop.xlane.xlu1 %7409 }
0x3d9a   :  { %v7412_v56 = vsub.f32 %v7404_v27, %v7410_v38  ;;  %v7407_v22 = vpop.xlane.xlu0 %7406 }
0x3d9b   :  { %v7411_v7 = vsub.f32 %v7403_v54, %v7407_v22 }
0x3d9c   :  { %v7415_v25 = vmul.f32 1.442695, %v7412_v56 }
0x3d9d   :  { %v7413_v10 = vmul.f32 1.442695, %v7411_v7 }
0x3d9e   :  { %14311 = vpow2.f32 %v7415_v25  ;;  %v14005_v50 = vpop.permute.xlu0 %14004 }
0x3d9f   :  { %v14007_v55 = vunpack.i.h.bf16 %v14005_v50  ;;  %v14006_v5 = vunpack.i.l.bf16 %v14005_v50  ;;  %14313 = vpow2.f32 %v7413_v10 }
0x3da1   :  { %v13536_v26 = vpack.c.bf16 %v14007_v55, %v14006_v5 }
0x3da2   :  { %v7610_v35 = vpop.xlane.xlu1 %7609  ;;  %v7728_v53 = vpop.permute.xlu0 %7727 }
0x3da3   :  { %13538 = vmatprep.subr.msk.bf16.mxu0 %vm14608_vm14, %v13536_v26  ;;  %v7614_v33 = vsub.f32 %v7606_v31, %v7610_v35 }
0x3da4   :  { %13541 = vmatpush3.bf16.msk.msra.mxu0 %vm14608_vm14, %v13536_v26 }
0x3da5   :  { %v7616_v19 = vmul.f32 1.442695, %v7614_v33 }
0x3da6   :  { %v7613_v3 = vpop.xlane.xlu1 %7612 }
0x3da7   :  { %v7615_v47 = vsub.f32 %v7607_v17, %v7613_v3 }
0x3da8   :  { %v14312_v28 = vpop.eup %14311 }
0x3da9   :  { %v7420_v15 = vsel %vm417_vm11, %v14312_v28, 0.0  ;;  %v14314_v41 = vpop.eup %14313  ;;  %v7618_v58 = vmul.f32 1.442695, %v7615_v47 }
0x3daa   :  { %7421 = vadd.xlane.f32.xlu1 %v7420_v15  ;;  %v14010_v42 = vpop.permute.xlu1 %14009  ;;  %v7417_v63 = vsel %vm413_vm12, %v14314_v41, 0.0 }
0x3dab   :  { %14315 = vpow2.f32 %v7618_v58  ;;  %v14012_v46 = vunpack.i.h.bf16 %v14010_v42  ;;  %v14011_v32 = vunpack.i.l.bf16 %v14010_v42 }
0x3dac   :  { %14317 = vpow2.f32 %v7616_v19 }
0x3dad   :  { %v13548_v43 = vpack.c.bf16 %v14012_v46, %v14011_v32 }
0x3dae   :  { %7418 = vadd.xlane.f32.xlu1 %v7417_v63  ;;  %v14015_v49 = vpop.permute.xlu1 %14014 }
0x3daf   :  { %13550 = vmatprep.subr.msk.bf16.mxu0 %vm14608_vm14, %v13548_v43  ;;  %v14017_v37 = vunpack.i.h.bf16 %v14015_v49  ;;  %v14016_v36 = vunpack.i.l.bf16 %v14015_v49 }
0x3db1   :  { %v13554_v14 = vpack.c.bf16 %v14017_v37, %v14016_v36 }
0x3db5   :  { %v14316_v2 = vpop.eup %14315 }
0x3db6   :  { %v7623_v60 = vsel %vm417_vm11, %v14316_v2, 0.0  ;;  %v14318_v44 = vpop.eup %14317 }
0x3db7   :  { %7624 = vadd.xlane.f32.xlu1 %v7623_v60  ;;  %v7620_v13 = vsel %vm413_vm12, %v14318_v44, 0.0 }
0x3dbb   :  { %7621 = vadd.xlane.f32.xlu1 %v7620_v13 }
0x3dcc   :  { %7725 = vrot.lane.b32.xlu1 %v15706_v61, %s14438_s3 }
0x3e37   :  { %v7422_v48 = vpop.xlane.xlu1 %7421 }
0x3e38   :  { %14319 = vrcp.f32 %v7422_v48  ;;  %v7311_v48 = vld [vmem:[#allocation2 + $0x3f0] sm:$0xff] }
0x3e3b   :  { %v7419_v45 = vpop.xlane.xlu1 %7418 }
0x3e3c   :  { %14321 = vrcp.f32 %v7419_v45  ;;  %v7312_v45 = vld [vmem:[#allocation2 + $0x3f8] sm:$0xff] }
0x3e42   :  { %v14320_v21 = vpop.eup %14319 }
0x3e43   :  { %v7426_v62 = vmul.f32 %v14320_v21, %v14312_v28  ;;  %v13582_v21 = vpack.c.bf16 %v7312_v45, %v7311_v48 }
0x3e44   :  { %v7625_v34 = vpop.xlane.xlu1 %7624 }
0x3e45   :  { %14323 = vrcp.f32 %v7625_v34 }
0x3e46   :  { %v14322_v8 = vpop.eup %14321 }
0x3e47   :  { %v7425_v9 = vmul.f32 %v14322_v8, %v14314_v41 }
0x3e48   :  { %v7622_v11 = vpop.xlane.xlu1 %7621 }
0x3e49   :  { %12745 = vmatprep.mubr.msk.f32.mxu0 %vm413_vm12, %v7425_v9  ;;  %14325 = vrcp.f32 %v7622_v11 }
0x3e4a   :  { %12746 = vmatmul.mubr.msk.f32.vlgmr.msra.gmra.mrb[118].mxu0 %vm413_vm12, %v7426_v62 }
0x3e4b   :  { %13553 = vmatpush3.bf16.msk.msra.mxu0 %vm14608_vm14, %v13548_v43 }
0x3e4c   :  { %13556 = vmatprep.subr.msk.bf16.mxu0 %vm14575_vm10, %v13554_v14  ;;  %v7726_v54 = vpop.permute.xlu1 %7725 }
0x3e4f   :  { %v14324_v61 = vpop.eup %14323 }
0x3e50   :  { %v7629_v29 = vmul.f32 %v14324_v61, %v14316_v2 }
0x3e53   :  { %v14326_v51 = vpop.eup %14325 }
0x3e54   :  { %v7628_v27 = vmul.f32 %v14326_v51, %v14318_v44 }
0x3e56   :  { %12759 = vmatprep.mubr.msk.f32.mxu0 %vm413_vm12, %v7628_v27 }
0x3e57   :  { %12760 = vmatmul.mubr.msk.f32.vlgmr.msra.gmra.mrb[120].mxu0 %vm413_vm12, %v7629_v29 }
0x3e58   :  { %13559 = vmatpush3.bf16.xpose.msk.msra.mxu0 %vm14575_vm10, %v13554_v14  ;;  %12766 = vmatprep.mubr.msk.f32.mxu0 %vm45_vm1, %v7726_v54 }
0x3e5f   :  { %12767 = vmatmul.mubr.msk.f32.vlgmr.msra.gmra.mrb[122].mxu0 %vm45_vm1, %v7728_v53 }
0x3f1d   :  { %v12747_v23 = vpop.f32.mrb[118].mxu0 }
0x3f1e   :  { %v15759_v16 = vpop.f32.mrb[119].mxu0 }
0x3f2a   :  { %v12761_v12 = vpop.f32.mrb[120].mxu0 }
0x3f2b   :  { %v7721_v31 = vrot.slane %v12761_v12, 4  ;;  %v7709_v17 = vpop.f32.mrb[121].mxu0 }
0x3f2c   :  { %v7720_v20 = vrot.slane %v7709_v17, 4 }
0x3f2e   :  { %v15762_v4 = vsel %vm32_vm2, %v12747_v23, %v7720_v20  ;;  %v15765_v38 = vsel %vm32_vm2, %v7720_v20, %v7721_v31 }
0x3f32   :  { %v12768_v56 = vpop.f32.mrb[122].mxu0 }
0x3f33   :  { %v7817_v22 = vmul.f32 0.25, %v12768_v56  ;;  %v7807_v7 = vpop.f32.mrb[123].mxu0 }
0x3f34   :  { %v7816_v25 = vmul.f32 0.25, %v7807_v7 }
0x3f35   :  { %v7821_v10 = vsel %vm417_vm11, %v7817_v22, -inf }
0x3f36   :  { %7822 = vmax.xlane.f32.xlu0 %v7821_v10  ;;  %v7818_v50 = vsel %vm413_vm12, %v7816_v25, -inf }
0x3f37   :  { %7819 = vmax.xlane.f32.xlu1 %v7818_v50 }
0x3f48   :  { %14019 = vrot.lane.b32.xlu1 %v15631_v6, %s14439_s4 }
0x3f4c   :  { %7928 = vrot.lane.b32.xlu1 %v15718_v52, %s14438_s3 }
0x3f50   :  { %7930 = vrot.lane.b32.xlu1 %v15714_v18, %s14438_s3 }
0x3fc3   :  { %v7823_v55 = vpop.xlane.xlu0 %7822 }
0x3fc4   :  { %v7825_v5 = vsub.f32 %v7817_v22, %v7823_v55  ;;  %v7820_v26 = vpop.xlane.xlu1 %7819 }
0x3fc5   :  { %v7824_v35 = vsub.f32 %v7816_v25, %v7820_v26 }
0x3fc6   :  { %v7828_v33 = vmul.f32 1.442695, %v7825_v5 }
0x3fc7   :  { %v7826_v3 = vmul.f32 1.442695, %v7824_v35  ;;  %v7313_v35 = vld [vmem:[#allocation2 + $0x400] sm:$0xff] }
0x3fc8   :  { %14327 = vpow2.f32 %v7828_v33  ;;  %v14020_v28 = vpop.permute.xlu1 %14019  ;;  %v7314_v33 = vld [vmem:[#allocation2 + $0x408] sm:$0xff] }
0x3fc9   :  { %v14022_v47 = vunpack.i.h.bf16 %v14020_v28  ;;  %v14021_v15 = vunpack.i.l.bf16 %v14020_v28  ;;  %14329 = vpow2.f32 %v7826_v3  ;;  %v13579_v3 = vpack.c.bf16 %v7314_v33, %v7313_v35  ;;  %v8503_v33 = vld [vmem:[#allocation2 + $0x460] sm:$0xff] }
0x3fcb   :  { %v13560_v41 = vpack.c.bf16 %v14022_v47, %v14021_v15 }
0x3fcc   :  { %v7929_v49 = vpop.permute.xlu1 %7928 }
0x3fcd   :  { %13562 = vmatprep.subr.msk.bf16.mxu1 %vm14608_vm14, %v13560_v41 }
0x3fce   :  { %13565 = vmatpush3.bf16.msk.msra.mxu1 %vm14608_vm14, %v13560_v41 }
0x3fd0   :  { %v7931_v34 = vpop.permute.xlu1 %7930 }
0x3fd2   :  { %v14328_v6 = vpop.eup %14327 }
0x3fd3   :  { %v7833_v18 = vsel %vm417_vm11, %v14328_v6, 0.0  ;;  %v14330_v52 = vpop.eup %14329 }
0x3fd4   :  { %7834 = vadd.xlane.f32.xlu0 %v7833_v18  ;;  %v7830_v19 = vsel %vm413_vm12, %v14330_v52, 0.0  ;;  %v11422_v18 = vld [vmem:[#allocation2 + $0x410] ss:$0 sm:$0xff] }
0x3fd8   :  { %7831 = vadd.xlane.f32.xlu0 %v7830_v19 }
0x3fee   :  { %14024 = vrot.lane.b32.xlu0 %v15636_v39, %s14438_s3 }
0x4061   :  { %v7835_v58 = vpop.xlane.xlu0 %7834 }
0x4062   :  { %14331 = vrcp.f32 %v7835_v58 }
0x4065   :  { %v7832_v42 = vpop.xlane.xlu0 %7831 }
0x4066   :  { %14333 = vrcp.f32 %v7832_v42 }
0x4069   :  { %v14025_v46 = vpop.permute.xlu0 %14024 }
0x406a   :  { %v14027_v32 = vunpack.i.h.bf16 %v14025_v46  ;;  %v14026_v63 = vunpack.i.l.bf16 %v14025_v46 }
0x406c   :  { %v13566_v43 = vpack.c.bf16 %v14027_v32, %v14026_v63  ;;  %v14332_v2 = vpop.eup %14331 }
0x406d   :  { %v7839_v13 = vmul.f32 %v14332_v2, %v14328_v6 }
0x406e   :  { %13568 = vmatprep.subr.msk.bf16.mxu1 %vm14575_vm10, %v13566_v43 }
0x4070   :  { %v14334_v60 = vpop.eup %14333 }
0x4071   :  { %v7838_v44 = vmul.f32 %v14334_v60, %v14330_v52 }
0x4073   :  { %12773 = vmatprep.mubr.msk.f32.mxu1 %vm413_vm12, %v7838_v44 }
0x4074   :  { %12774 = vmatmul.mubr.msk.f32.vlgmr.msra.gmra.mrb[116].mxu1 %vm413_vm12, %v7839_v13 }
0x4075   :  { %13571 = vmatpush3.bf16.xpose.msk.msra.mxu1 %vm14575_vm10, %v13566_v43  ;;  %12780 = vmatprep.mubr.msk.f32.mxu1 %vm45_vm1, %v7929_v49 }
0x4076   :  { %13581 = vmatprep.subr.bf16.mxu1 %v14434_v0 }
0x407c   :  { %12781 = vmatmul.mubr.msk.f32.vlgmr.msra.gmra.mrb[118].mxu1 %vm45_vm1, %v7931_v34 }
0x407d   :  { %13583 = vmatpush3.bf16.msra.mxu1 %v13582_v21  ;;  %12807 = vmatprep.mubr.msk.f32.mxu1 %vm14435_vm0, %v14436_v1 }
0x407e   :  { %13590 = vmatprep.subr.bf16.mxu1 %v14434_v0 }
0x4080   :  { %12808 = vmatmul.mubr.msk.f32.vlgmr.msra.gmra.mrb[120].mxu1 %vm45_vm1, %v15759_v16 }
0x4081   :  { %12810 = vmatprep.mubr.msk.f32.mxu1 %vm14435_vm0, %v14436_v1 }
0x4084   :  { %12811 = vmatmul.mubr.msk.f32.gmra.mrb[122].mxu1 %vm45_vm1, %v15762_v4 }
0x4085   :  { %12813 = vmatprep.mubr.msk.f32.mxu1 %vm14435_vm0, %v14436_v1 }
0x4088   :  { %12814 = vmatmul.mubr.msk.f32.gmra.mrb[124].mxu1 %vm45_vm1, %v15765_v38 }
0x4089   :  { %12841 = vmatprep.mubr.msk.f32.mxu1 %vm14435_vm0, %v14436_v1 }
0x4147   :  { %v15807_v57 = vpop.f32.mrb[116].mxu1 }
0x4148   :  { %v7919_v8 = vpop.f32.mrb[117].mxu1 }
0x414f   :  { %v12782_v37 = vpop.f32.mrb[118].mxu1 }
0x4150   :  { %v8020_v36 = vmul.f32 0.25, %v12782_v37  ;;  %v8010_v9 = vpop.f32.mrb[119].mxu1 }
0x4151   :  { %v8019_v62 = vmul.f32 0.25, %v8010_v9 }
0x4152   :  { %v8024_v11 = vsel %vm417_vm11, %v8020_v36, -inf }
0x4153   :  { %8025 = vmax.xlane.f32.xlu0 %v8024_v11  ;;  %v8300_v14 = vpop.f32.mrb[120].mxu1  ;;  %v8021_v61 = vsel %vm413_vm12, %v8019_v62, -inf }
0x4154   :  { %v12809_v51 = vpop.f32.mrb[121].mxu1  ;;  %8022 = vmax.xlane.f32.xlu1 %v8021_v61  ;;  %v8402_v61 = vld [vmem:[#allocation2 + $0x438] sm:$0xff] }
0x4157   :  { %v15811_v27 = vpop.f32.mrb[122].mxu1 }
0x4158   :  { %v12812_v29 = vpop.f32.mrb[123].mxu1 }
0x415b   :  { %v15813_v54 = vpop.f32.mrb[124].mxu1 }
0x415c   :  { %v12815_v53 = vpop.f32.mrb[125].mxu1 }
0x4165   :  { %14029 = vrot.lane.b32.xlu1 %v15636_v39, %s14439_s4 }
0x41e0   :  { %v8026_v23 = vpop.xlane.xlu0 %8025 }
0x41e1   :  { %v8028_v16 = vsub.f32 %v8020_v36, %v8026_v23  ;;  %v8023_v12 = vpop.xlane.xlu1 %8022 }
0x41e2   :  { %v8027_v31 = vsub.f32 %v8019_v62, %v8023_v12 }
0x41e3   :  { %v8031_v17 = vmul.f32 1.442695, %v8028_v16 }
0x41e4   :  { %v8029_v20 = vmul.f32 1.442695, %v8027_v31 }
0x41e5   :  { %v14030_v4 = vpop.permute.xlu1 %14029 }
0x41e6   :  { %14335 = vpow2.f32 %v8029_v20  ;;  %v14032_v38 = vunpack.i.h.bf16 %v14030_v4  ;;  %v14031_v56 = vunpack.i.l.bf16 %v14030_v4 }
0x41e7   :  { %14337 = vpow2.f32 %v8031_v17 }
0x41e8   :  { %v13572_v22 = vpack.c.bf16 %v14032_v38, %v14031_v56 }
0x41ea   :  { %13574 = vmatprep.subr.msk.bf16.mxu0 %vm14608_vm14, %v13572_v22 }
0x41eb   :  { %13577 = vmatpush3.bf16.msk.msra.mxu0 %vm14608_vm14, %v13572_v22 }
0x41ec   :  { %13578 = vmatprep.subr.bf16.mxu0 %v14434_v0 }
0x41f0   :  { %v14336_v39 = vpop.eup %14335 }
0x41f1   :  { %v8033_v7 = vsel %vm413_vm12, %v14336_v39, 0.0  ;;  %v14338_v25 = vpop.eup %14337 }
0x41f2   :  { %8034 = vadd.xlane.f32.xlu0 %v8033_v7  ;;  %v8036_v10 = vsel %vm417_vm11, %v14338_v25, 0.0 }
0x41f6   :  { %8037 = vadd.xlane.f32.xlu0 %v8036_v10  ;;  %v15867_v10 = vld [vmem:[#allocation2 + $0x420] ss:$0 sm:$0xff] }
0x427f   :  { %v8035_v50 = vpop.xlane.xlu0 %8034 }
0x4280   :  { %14339 = vrcp.f32 %v8035_v50 }
0x4283   :  { %v8038_v55 = vpop.xlane.xlu0 %8037 }
0x4284   :  { %14341 = vrcp.f32 %v8038_v55 }
0x428a   :  { %v14340_v5 = vpop.eup %14339 }
0x428b   :  { %v8041_v26 = vmul.f32 %v14340_v5, %v14336_v39  ;;  %v15864_v39 = vld [vmem:[#allocation2 + $0x418] ss:$0 sm:$0xff]  ;;  %v8501_v5 = vld [vmem:[#allocation2 + $0x450] sm:$0xff] }
0x428d   :  { %12787 = vmatprep.mubr.msk.f32.mxu0 %vm413_vm12, %v8041_v26  ;;  %v8502_v26 = vld [vmem:[#allocation2 + $0x458] sm:$0xff] }
0x428e   :  { %v14342_v59 = vpop.eup %14341  ;;  %v13591_v35 = vpack.c.bf16 %v8502_v26, %v8501_v5 }
0x428f   :  { %v8042_v28 = vmul.f32 %v14342_v59, %v14338_v25  ;;  %v8504_v59 = vld [vmem:[#allocation2 + $0x468] sm:$0xff] }
0x4290   :  { %13592 = vmatpush3.bf16.msra.mxu1 %v13591_v35 }
0x4291   :  { %12788 = vmatmul.mubr.msk.f32.vlgmr.msra.gmra.mrb[124].mxu0 %vm413_vm12, %v8042_v28  ;;  %13593 = vmatprep.subr.bf16.mxu1 %v14434_v0 }
0x4292   :  { %13580 = vmatpush3.bf16.msra.mxu0 %v13579_v3  ;;  %12794 = vmatprep.mubr.msk.f32.mxu0 %vm14435_vm0, %v14436_v1  ;;  %v13594_v3 = vpack.c.bf16 %v8504_v59, %v8503_v33 }
0x4293   :  { %13584 = vmatprep.subr.bf16.mxu0 %v14434_v0 }
0x4294   :  { %13595 = vmatpush3.bf16.msra.mxu1 %v13594_v3 }
0x4295   :  { %12795 = vmatmul.mubr.msk.f32.vlgmr.msra.gmra.mrb[126].mxu0 %vm45_vm1, %v7919_v8 }
0x4296   :  { %12797 = vmatprep.mubr.msk.f32.mxu0 %vm14435_vm0, %v14436_v1 }
0x4364   :  { %v12789_v47 = vpop.f32.mrb[124].mxu0 }
0x4365   :  { %v8134_v15 = vrot.slane %v12789_v47, 4  ;;  %v8122_v41 = vpop.f32.mrb[125].mxu0 }
0x4366   :  { %v8133_v6 = vrot.slane %v8122_v41, 4 }
0x4368   :  { %v8212_v52 = vpop.f32.mrb[126].mxu0  ;;  %v8137_v19 = vsel %vm32_vm2, %v15807_v57, %v8133_v6  ;;  %v8135_v58 = vsel %vm32_vm2, %v8133_v6, %v8134_v15 }
0x4369   :  { %v8301_v42 = vadd.f32 %v8300_v14, %v8212_v52  ;;  %v12796_v46 = vpop.f32.mrb[127].mxu0  ;;  %12798 = vmatmul.mubr.msk.f32.gmra.mrb[128].mxu0 %vm45_vm1, %v8137_v19  ;;  %v8401_v14 = vld [vmem:[#allocation2 + $0x430] sm:$0xff] }
0x436a   :  { %12800 = vmatprep.mubr.msk.f32.mxu0 %vm14435_vm0, %v14436_v1 }
0x436b   :  { %v8318_v32 = vadd.f32 %v11422_v18, %v8301_v42 }
0x436d   :  { %v15839_v63 = vadd.f32 %v8318_v32, %v15668_v30  ;;  %12801 = vmatmul.mubr.msk.f32.gmra.mrb[130].mxu0 %vm45_vm1, %v8135_v58 }
0x436e   :  { %12824 = vmatprep.mubr.msk.f32.mxu0 %vm14435_vm0, %v14436_v1 }
0x436f   :  { %v8326_v43 = vsel %vm142_vm3, %v15839_v63, 0.0 }
0x4370   :  { %8327 = vadd.xlane.f32.xlu0 %v8326_v43  ;;  %v15879_v43 = vld [vmem:[#allocation2 + $0x448] ss:$0 sm:$0xff] }
0x43fd   :  { %v8328_v2 = vpop.xlane.xlu0 %8327 }
0x43fe   :  { %v8335_v60 = vmul.f32 0.03125, %v8328_v2 }
0x4400   :  { %v8338_v48 = vsub.f32 %v15839_v63, %v8335_v60 }
0x4402   :  { %v8341_v36 = vmul.f32 %v8338_v48, %v8338_v48  ;;  %v8387_v7 = vmul.f32 %v15864_v39, %v8338_v48 }
0x4404   :  { %v8344_v62 = vsel %vm142_vm3, %v8341_v36, 0.0 }
0x443c   :  { %v8217_v44 = vpop.f32.mrb[128].mxu0 }
0x443d   :  { %v8306_v13 = vadd.f32 %v15811_v27, %v8217_v44  ;;  %v12799_v49 = vpop.f32.mrb[129].mxu0  ;;  %v8403_v27 = vld [vmem:[#allocation2 + $0x440] sm:$0xff] }
0x443e   :  { %v13588_v29 = vpack.c.bf16 %v8403_v27, %v8402_v61 }
0x443f   :  { %v8319_v45 = vadd.f32 %v11422_v18, %v8306_v13 }
0x4440   :  { %v8222_v30 = vpop.f32.mrb[130].mxu0 }
0x4441   :  { %v15849_v21 = vadd.f32 %v8319_v45, %v15677_v40  ;;  %v8311_v34 = vadd.f32 %v15813_v54, %v8222_v30  ;;  %v12802_v57 = vpop.f32.mrb[131].mxu0  ;;  %v8400_v40 = vld [vmem:[#allocation2 + $0x428] sm:$0xff] }
0x4442   :  { %v13585_v51 = vpack.c.bf16 %v8401_v14, %v8400_v40  ;;  %v15889_v57 = vld [vmem:[#allocation2 + $0x470] ss:$0 sm:$0xff] }
0x4443   :  { %v8320_v8 = vadd.f32 %v11422_v18, %v8311_v34  ;;  %v8329_v37 = vsel %vm142_vm3, %v15849_v21, 0.0 }
0x4444   :  { %8330 = vadd.xlane.f32.xlu0 %v8329_v37  ;;  %13586 = vmatpush3.bf16.msra.mxu0 %v13585_v51 }
0x4445   :  { %v15855_v9 = vadd.f32 %v8320_v8, %v15684_v24  ;;  %13587 = vmatprep.subr.bf16.mxu0 %v14434_v0 }
0x4447   :  { %v8332_v11 = vsel %vm142_vm3, %v15855_v9, 0.0 }
0x4448   :  { %8345 = vadd.xlane.f32.xlu0 %v8344_v62  ;;  %8333 = vadd.xlane.f32.xlu1 %v8332_v11 }
0x4449   :  { %13589 = vmatpush3.bf16.msra.mxu0 %v13588_v29 }
0x444a   :  { %13596 = vmatprep.subr.bf16.mxu0 %v14434_v0 }
0x44d1   :  { %v8331_v24 = vpop.xlane.xlu0 %8330 }
0x44d2   :  { %v8336_v54 = vmul.f32 0.03125, %v8331_v24 }
0x44d4   :  { %v8339_v53 = vsub.f32 %v15849_v21, %v8336_v54 }
0x44d5   :  { %v8346_v23 = vpop.xlane.xlu0 %8345  ;;  %v8334_v11 = vpop.xlane.xlu1 %8333 }
0x44d6   :  { %v8353_v16 = vmul.f32 0.032258064, %v8346_v23  ;;  %v8342_v12 = vmul.f32 %v8339_v53, %v8339_v53  ;;  %v8388_v58 = vmul.f32 %v15864_v39, %v8339_v53  ;;  %v8337_v40 = vmul.f32 0.03125, %v8334_v11 }
0x44d8   :  { %14343 = vrsqrt.f32 %v8353_v16  ;;  %v8347_v31 = vsel %vm142_vm3, %v8342_v12, 0.0  ;;  %vm8358_vm10 = vcmp.eq.f32.partialorder %v8353_v16, inf  ;;  %v8361_v4 = vand.u32 2147483648, %v8353_v16 }
0x44d9   :  { %8348 = vadd.xlane.f32.xlu0 %v8347_v31  ;;  %vm8360_vm11 = vcmp.eq.f32.partialorder %v8353_v16, 0.0  ;;  %v8340_v61 = vsub.f32 %v15855_v9, %v8337_v40 }
0x44db   :  { %v8343_v23 = vmul.f32 %v8340_v61, %v8340_v61 }
0x44e2   :  { %v14344_v17 = vpop.eup %14343 }
0x44e3   :  { %v8357_v20 = vmul.f32 %v14344_v17, %v8353_v16  ;;  %v8681_v17 = vld [vmem:[#allocation2 + $0x30] sm:$0xff] }
0x44e5   :  { %v8359_v38 = vsel %vm8358_vm10, %v8353_v16, %v8357_v20  ;;  %v8350_v16 = vsel %vm142_vm3, %v8343_v23, 0.0  ;;  %v8682_v20 = vld [vmem:[#allocation2 + $0x38] sm:$0xff]  ;;  %v8779_v23 = vld [vmem:[#allocation2 + $0x488] sm:$0xff]  ;;  %vm8810_vm10 = vcmask 1045504  }
0x44e6   :  { %v8362_v56 = vsel %vm8360_vm11, %v8361_v4, %v8359_v38  ;;  %v8683_v4 = vld [vmem:[#allocation2 + $0x40] sm:$0xff]  ;;  %v8684_v38 = vld [vmem:[#allocation2 + $0x48] sm:$0xff]  ;;  %vm8828_vm11 = vcmask 392192  }
0x44e7   :  { %v8377_v22 = vadd.f32 1e-06, %v8362_v56  ;;  %v13600_v56 = vpack.c.bf16 %v8684_v38, %v8683_v4  ;;  %v15931_v4 = vld [vmem:[#allocation2 + $0x50] ss:$0 sm:$0xff] }
0x44e9   :  { %14345 = vrcp.f32 %v8377_v22 }
0x44f3   :  { %v14346_v25 = vpop.eup %14345 }
0x44f4   :  { %v8390_v50 = vmul.f32 %v14346_v25, %v8387_v7 }
0x44f6   :  { %v8397_v55 = vadd.f32 %v15867_v10, %v8390_v50 }
0x44f8   :  { %12825 = vmatmul.mubr.msk.f32.vlgmr.msra.gmra.mrb[132].mxu0 %vm142_vm3, %v8397_v55 }
0x44f9   :  { %12827 = vmatprep.mubr.msk.f32.mxu0 %vm14435_vm0, %v14436_v1 }
0x4566   :  { %v8349_v28 = vpop.xlane.xlu0 %8348 }
0x4567   :  { %v8354_v47 = vmul.f32 0.032258064, %v8349_v28 }
0x4569   :  { %14347 = vrsqrt.f32 %v8354_v47  ;;  %vm8365_vm12 = vcmp.eq.f32.partialorder %v8354_v47, inf  ;;  %v8368_v6 = vand.u32 2147483648, %v8354_v47  ;;  %vm8367_vm14 = vcmp.eq.f32.partialorder %v8354_v47, 0.0 }
0x4573   :  { %v14348_v15 = vpop.eup %14347 }
0x4574   :  { %v8364_v41 = vmul.f32 %v14348_v15, %v8354_v47 }
0x4576   :  { %v8366_v18 = vsel %vm8365_vm12, %v8354_v47, %v8364_v41  ;;  %vm8914_vm12 = vcmask 1040384  }
0x4577   :  { %v8369_v52 = vsel %vm8367_vm14, %v8368_v6, %v8366_v18  ;;  %vm8921_vm14 = vcmask 1042432  }
0x4578   :  { %v8378_v19 = vadd.f32 1e-06, %v8369_v52 }
0x457a   :  { %14349 = vrcp.f32 %v8378_v19 }
0x4584   :  { %v14350_v42 = vpop.eup %14349 }
0x4585   :  { %v8391_v46 = vmul.f32 %v14350_v42, %v8388_v58 }
0x4587   :  { %v8398_v32 = vadd.f32 %v15867_v10, %v8391_v46  ;;  %v8389_v46 = vmul.f32 %v15864_v39, %v8340_v61 }
0x4589   :  { %12828 = vmatmul.mubr.msk.f32.gmra.mrb[134].mxu0 %vm142_vm3, %v8398_v32 }
0x458a   :  { %12830 = vmatprep.mubr.msk.f32.mxu0 %vm14435_vm0, %v14436_v1 }
0x45cb   :  { %v8484_v2 = vpop.f32.mrb[132].mxu0 }
0x45cc   :  { %v8485_v60 = vadd.f32 %v15879_v43, %v8484_v2  ;;  %v12826_v44 = vpop.f32.mrb[133].mxu0  ;;  %v15903_v2 = vld [vmem:[#allocation2 + $0x478] ss:$0 sm:$0xff] }
0x45ce   :  { %v8498_v13 = vmax.f32 %v8485_v60, 0.0 }
0x45d0   :  { %12842 = vmatmul.mubr.msk.f32.vlgmr.msra.gmra.mrb[126].mxu1 %vm142_vm3, %v8498_v13 }
0x45d1   :  { %12844 = vmatprep.mubr.msk.f32.mxu1 %vm14435_vm0, %v14436_v1 }
0x465c   :  { %v8489_v49 = vpop.f32.mrb[134].mxu0 }
0x465d   :  { %v8490_v48 = vadd.f32 %v15879_v43, %v8489_v49  ;;  %v12829_v45 = vpop.f32.mrb[135].mxu0 }
0x465f   :  { %v8499_v30 = vmax.f32 %v8490_v48, 0.0  ;;  %v15907_v48 = vld [vmem:[#allocation2 + $0x480] ss:$0 sm:$0xff] }
0x4661   :  { %12845 = vmatmul.mubr.msk.f32.gmra.mrb[128].mxu1 %vm142_vm3, %v8499_v30 }
0x4662   :  { %12847 = vmatprep.mubr.msk.f32.mxu1 %vm14435_vm0, %v14436_v1 }
0x46a3   :  { %v8580_v34 = vpop.f32.mrb[126].mxu1 }
0x46a4   :  { %v8594_v8 = vadd.f32 %v8580_v34, %v15839_v63  ;;  %v12843_v37 = vpop.f32.mrb[127].mxu1 }
0x46a6   :  { %v8602_v36 = vadd.f32 %v15889_v57, %v8594_v8 }
0x46a8   :  { %v8607_v62 = vsel %vm142_vm3, %v8602_v36, 0.0 }
0x46a9   :  { %8608 = vadd.xlane.f32.xlu0 %v8607_v62 }
0x4734   :  { %v8585_v14 = vpop.f32.mrb[128].mxu1 }
0x4735   :  { %v8595_v51 = vadd.f32 %v8585_v14, %v15849_v21  ;;  %v12846_v27 = vpop.f32.mrb[129].mxu1  ;;  %v13597_v21 = vpack.c.bf16 %v8682_v20, %v8681_v17  ;;  %v8782_v17 = vld [vmem:[#allocation2 + $0x4a0] sm:$0xff] }
0x4736   :  { %v8609_v29 = vpop.xlane.xlu0 %8608 }
0x4737   :  { %v8616_v24 = vmul.f32 0.03125, %v8609_v29  ;;  %v8603_v54 = vadd.f32 %v15889_v57, %v8595_v51  ;;  %13598 = vmatpush3.bf16.msra.mxu0 %v13597_v21  ;;  %v8784_v21 = vld [vmem:[#allocation2 + $0x4b0] sm:$0xff] }
0x4738   :  { %13599 = vmatprep.subr.bf16.mxu0 %v14434_v0 }
0x4739   :  { %v8619_v53 = vsub.f32 %v8602_v36, %v8616_v24  ;;  %v8610_v63 = vsel %vm142_vm3, %v8603_v54, 0.0 }
0x473a   :  { %8611 = vadd.xlane.f32.xlu0 %v8610_v63 }
0x473b   :  { %v8622_v12 = vmul.f32 %v8619_v53, %v8619_v53  ;;  %13601 = vmatpush3.bf16.msra.mxu0 %v13600_v56  ;;  %v8668_v44 = vmul.f32 %v15903_v2, %v8619_v53 }
0x473d   :  { %v8625_v31 = vsel %vm142_vm3, %v8622_v12, 0.0 }
0x473e   :  { %8351 = vadd.xlane.f32.xlu0 %v8350_v16  ;;  %v8780_v16 = vld [vmem:[#allocation2 + $0x490] sm:$0xff] }
0x473f   :  { %v15923_v12 = vpack.c.bf16 %v8780_v16, %v8779_v23 }
0x4741   :  { %13603 = vmatprep.subr.bf16.mxu1 %v15923_v12 }
0x4742   :  { %8626 = vadd.xlane.f32.xlu0 %v8625_v31  ;;  %13605 = vmatpush3.bf16.msra.mxu1 %v15923_v12  ;;  %v8781_v31 = vld [vmem:[#allocation2 + $0x498] sm:$0xff] }
0x4743   :  { %v15927_v20 = vpack.c.bf16 %v8782_v17, %v8781_v31 }
0x4745   :  { %13607 = vmatprep.subr.bf16.mxu1 %v15927_v20 }
0x4746   :  { %13609 = vmatpush3.bf16.msra.mxu1 %v15927_v20 }
0x47c7   :  { %v8612_v22 = vpop.xlane.xlu0 %8611 }
0x47c8   :  { %v8617_v7 = vmul.f32 0.03125, %v8612_v22 }
0x47ca   :  { %v8620_v25 = vsub.f32 %v8603_v54, %v8617_v7 }
0x47cb   :  { %v8352_v50 = vpop.xlane.xlu0 %8351 }
0x47cc   :  { %v8355_v55 = vmul.f32 0.032258064, %v8352_v50  ;;  %v8623_v5 = vmul.f32 %v8620_v25, %v8620_v25  ;;  %v8669_v40 = vmul.f32 %v15903_v2, %v8620_v25 }
0x47ce   :  { %14351 = vrsqrt.f32 %v8355_v55  ;;  %v8628_v26 = vsel %vm142_vm3, %v8623_v5, 0.0  ;;  %vm8372_vm9 = vcmp.eq.f32.partialorder %v8355_v55, inf  ;;  %v8375_v28 = vand.u32 2147483648, %v8355_v55 }
0x47cf   :  { %v8627_v35 = vpop.xlane.xlu0 %8626  ;;  %8629 = vadd.xlane.f32.xlu0 %v8628_v26  ;;  %vm8374_vm15 = vcmp.eq.f32.partialorder %v8355_v55, 0.0 }
0x47d0   :  { %v8634_v33 = vmul.f32 0.032258064, %v8627_v35 }
0x47d2   :  { %14353 = vrsqrt.f32 %v8634_v33  ;;  %vm8639_vm4 = vcmp.eq.f32.partialorder %v8634_v33, inf  ;;  %v8642_v52 = vand.u32 2147483648, %v8634_v33  ;;  %vm8641_vm5 = vcmp.eq.f32.partialorder %v8634_v33, 0.0 }
0x47d8   :  { %v14352_v59 = vpop.eup %14351 }
0x47d9   :  { %v8371_v3 = vmul.f32 %v14352_v59, %v8355_v55 }
0x47db   :  { %v8373_v47 = vsel %vm8372_vm9, %v8355_v55, %v8371_v3 }
0x47dc   :  { %v14354_v15 = vpop.eup %14353  ;;  %v8376_v41 = vsel %vm8374_vm15, %v8375_v28, %v8373_v47 }
0x47dd   :  { %v8638_v6 = vmul.f32 %v14354_v15, %v8634_v33  ;;  %v8379_v18 = vadd.f32 1e-06, %v8376_v41 }
0x47df   :  { %v8640_v19 = vsel %vm8639_vm4, %v8634_v33, %v8638_v6  ;;  %14355 = vrcp.f32 %v8379_v18  ;;  %vm9058_vm4 = vcmask 1041408  }
0x47e0   :  { %v8643_v58 = vsel %vm8641_vm5, %v8642_v52, %v8640_v19  ;;  %vm16045_vm5 = vmpackc.low %vm9058_vm4, %vm14441_vm13  ;;  %vm9874_vm13 = vcmask 523264  }
0x47e1   :  { %v8658_v42 = vadd.f32 1e-06, %v8643_v58 }
0x47e3   :  { %14357 = vrcp.f32 %v8658_v42 }
0x47e9   :  { %v14356_v32 = vpop.eup %14355 }
0x47ea   :  { %v8392_v60 = vmul.f32 %v14356_v32, %v8389_v46 }
0x47ec   :  { %v8399_v13 = vadd.f32 %v15867_v10, %v8392_v60 }
0x47ed   :  { %v14358_v49 = vpop.eup %14357 }
0x47ee   :  { %12831 = vmatmul.mubr.msk.f32.gmra.mrb[136].mxu0 %vm142_vm3, %v8399_v13  ;;  %v8671_v45 = vmul.f32 %v14358_v49, %v8668_v44  ;;  %v8786_v13 = vld [vmem:[#allocation2 + $0x4c0] sm:$0xff]  ;;  %v8787_v49 = vld [vmem:[#allocation2 + $0x4c8] sm:$0xff] }
0x47ef   :  { %12858 = vmatprep.mubr.msk.f32.mxu0 %vm14435_vm0, %v14436_v1 }
0x47f0   :  { %v8678_v30 = vadd.f32 %v15907_v48, %v8671_v45  ;;  %v8788_v45 = vld [vmem:[#allocation2 + $0x4d0] sm:$0xff] }
0x47f2   :  { %12859 = vmatmul.mubr.msk.f32.vlgmr.msra.gmra.mrb[138].mxu0 %vm142_vm3, %v8678_v30  ;;  %v15971_v30 = vpack.c.bf16 %v8787_v49, %v8786_v13 }
0x47f3   :  { %12861 = vmatprep.mubr.msk.f32.mxu0 %vm14435_vm0, %v14436_v1 }
0x47f4   :  { %13615 = vmatprep.subr.bf16.mxu0 %v15971_v30 }
0x47f5   :  { %13617 = vmatpush3.bf16.msra.mxu0 %v15971_v30 }
0x485c   :  { %v8630_v39 = vpop.xlane.xlu0 %8629 }
0x485d   :  { %v8635_v34 = vmul.f32 0.032258064, %v8630_v39  ;;  %v8789_v39 = vld [vmem:[#allocation2 + $0x4d8] sm:$0xff] }
0x485f   :  { %14359 = vrsqrt.f32 %v8635_v34  ;;  %vm8646_vm6 = vcmp.eq.f32.partialorder %v8635_v34, inf  ;;  %v8649_v37 = vand.u32 2147483648, %v8635_v34  ;;  %vm8648_vm7 = vcmp.eq.f32.partialorder %v8635_v34, 0.0 }
0x4869   :  { %v14360_v10 = vpop.eup %14359 }
0x486a   :  { %v8645_v8 = vmul.f32 %v14360_v10, %v8635_v34  ;;  %v15979_v10 = vld [vmem:[#allocation2 + $0x4b8] ss:$0 sm:$0xff] }
0x486c   :  { %v8647_v36 = vsel %vm8646_vm6, %v8635_v34, %v8645_v8  ;;  %v15973_v34 = vpack.c.bf16 %v8789_v39, %v8788_v45  ;;  %v8790_v8 = vld [vmem:[#allocation2 + $0x4e0] sm:$0xff]  ;;  %vm9054_vm6 = vcmask 80896  }
0x486d   :  { %v8650_v62 = vsel %vm8648_vm7, %v8649_v37, %v8647_v36  ;;  %v8791_v37 = vld [vmem:[#allocation2 + $0x4e8] sm:$0xff]  ;;  %vm11040_vm7 = vcmask 123904  }
0x486e   :  { %v8659_v11 = vadd.f32 1e-06, %v8650_v62  ;;  %13619 = vmatprep.subr.bf16.mxu0 %v15973_v34  ;;  %v13622_v62 = vpack.c.bf16 %v8791_v37, %v8790_v8 }
0x486f   :  { %13621 = vmatpush3.bf16.msra.mxu0 %v15973_v34 }
0x4870   :  { %14361 = vrcp.f32 %v8659_v11  ;;  %13623 = vmatprep.subr.bf16.mxu0 %v13622_v62 }
0x4873   :  { %13625 = vmatpush3.bf16.msra.mxu0 %v13622_v62 }
0x4874   :  { %13643 = vmatprep.subr.bf16.mxu0 %v15971_v30 }
0x487a   :  { %v14362_v14 = vpop.eup %14361 }
0x487b   :  { %v8672_v61 = vmul.f32 %v14362_v14, %v8669_v40 }
0x487d   :  { %v8679_v51 = vadd.f32 %v15907_v48, %v8672_v61 }
0x487f   :  { %12862 = vmatmul.mubr.msk.f32.gmra.mrb[140].mxu0 %vm142_vm3, %v8679_v51 }
0x4880   :  { %12864 = vmatprep.mubr.msk.f32.mxu0 %vm14435_vm0, %v14436_v1 }
0x48c1   :  { %v8494_v27 = vpop.f32.mrb[136].mxu0 }
0x48c2   :  { %v8495_v29 = vadd.f32 %v15879_v43, %v8494_v27  ;;  %v12832_v24 = vpop.f32.mrb[137].mxu0  ;;  %v8783_v43 = vld [vmem:[#allocation2 + $0x4a8] sm:$0xff] }
0x48c3   :  { %v15933_v38 = vpack.c.bf16 %v8784_v21, %v8783_v43 }
0x48c4   :  { %v8500_v54 = vmax.f32 %v8495_v29, 0.0 }
0x48c5   :  { %v8765_v53 = vpop.f32.mrb[138].mxu0  ;;  %13611 = vmatprep.subr.bf16.mxu1 %v15933_v38 }
0x48c6   :  { %12848 = vmatmul.mubr.msk.f32.gmra.mrb[130].mxu1 %vm142_vm3, %v8500_v54  ;;  %v12860_v63 = vpop.f32.mrb[139].mxu0  ;;  %v8766_v56 = vadd.f32 %v15931_v4, %v8765_v53 }
0x48c7   :  { %13613 = vmatpush3.bf16.msra.mxu1 %v15933_v38 }
0x48c8   :  { %13626 = vmatprep.subr.bf16.mxu1 %v14434_v0  ;;  %v8801_v50 = vrot.slane %v8766_v56, 1  ;;  %v8811_v35 = vrot.slane %v8766_v56, 2 }
0x4952   :  { %v8770_v22 = vpop.f32.mrb[140].mxu0 }
0x4953   :  { %v15940_v7 = vadd.f32 %v15931_v4, %v8770_v22  ;;  %v12863_v25 = vpop.f32.mrb[141].mxu0 }
0x4955   :  { %v15943_v55 = vrot.slane %v15940_v7, 1  ;;  %v15950_v26 = vrot.slane %v15940_v7, 2 }
0x4957   :  { %8806 = vrot.lane.b32.xlu1 %v15943_v55, %s14443_s7  ;;  %v8803_v5 = vsel %vm8800_vm8, %v8801_v50, %v15943_v55  ;;  %v8813_v33 = vsel %vm8810_vm10, %v8811_v35, %v15950_v26 }
0x4958   :  { %8804 = vrot.lane.b32.xlu0 %v8803_v5, %s14443_s7 }
0x495c   :  { %8814 = vrot.lane.b32.xlu0 %v8813_v33, %s14444_s8 }
0x4960   :  { %8816 = vrot.lane.b32.xlu0 %v15950_v26, %s14444_s8 }
0x4999   :  { %v8590_v59 = vpop.f32.mrb[130].mxu1 }
0x499a   :  { %v8596_v3 = vadd.f32 %v8590_v59, %v15855_v9  ;;  %v12849_v28 = vpop.f32.mrb[131].mxu1 }
0x499c   :  { %v8604_v47 = vadd.f32 %v15889_v57, %v8596_v3 }
0x499e   :  { %v8613_v15 = vsel %vm142_vm3, %v8604_v47, 0.0 }
0x499f   :  { %8614 = vadd.xlane.f32.xlu0 %v8613_v15 }
0x49c9   :  { %v8807_v52 = vpop.permute.xlu1 %8806 }
0x49ca   :  { %v8805_v41 = vpop.permute.xlu0 %8804  ;;  %v8821_v58 = vsel %vm45_vm1, %v15940_v7, %v8807_v52 }
0x49cb   :  { %v8820_v6 = vsel %vm45_vm1, %v8766_v56, %v8805_v41 }
0x49ce   :  { %v8815_v18 = vpop.permute.xlu0 %8814 }
0x49cf   :  { %v8822_v19 = vsel %vm142_vm3, %v8820_v6, %v8815_v18 }
0x49d0   :  { %12879 = vmatprep.mubr.msk.f32.mxu1 %vm8828_vm11, %v8822_v19 }
0x49d2   :  { %v8817_v9 = vpop.permute.xlu0 %8816 }
0x49d3   :  { %v8823_v42 = vsel %vm142_vm3, %v8821_v58, %v8817_v9 }
0x49d4   :  { %12880 = vmatmul.mubr.msk.f32.vlgmr.msra.gmra.mrb[132].mxu1 %vm8828_vm11, %v8823_v42 }
0x49d5   :  { %12901 = vmatprep.mubr.msk.f32.mxu1 %vm14435_vm0, %v14436_v1 }
0x4a2c   :  { %v8615_v57 = vpop.xlane.xlu0 %8614 }
0x4a2d   :  { %v8618_v46 = vmul.f32 0.03125, %v8615_v57 }
0x4a2f   :  { %v8621_v32 = vsub.f32 %v8604_v47, %v8618_v46 }
0x4a31   :  { %v8624_v60 = vmul.f32 %v8621_v32, %v8621_v32  ;;  %v8670_v59 = vmul.f32 %v15903_v2, %v8621_v32 }
0x4a33   :  { %v8631_v44 = vsel %vm142_vm3, %v8624_v60, 0.0 }
0x4a34   :  { %8632 = vadd.xlane.f32.xlu1 %v8631_v44  ;;  %v9037_v44 = vlaneseq }
0x4a36   :  { %v16022_v13 = vshrl.u32 %v9037_v44, 7 }
0x4a38   :  { %v9039_v49 = vsub.s32 3, %v16022_v13 }
0x4aa7   :  { %v12881_v36 = vpop.f32.mrb[132].mxu1 }
0x4aa8   :  { %v15982_v11 = vadd.f32 %v12881_v36, %v15979_v10  ;;  %v8901_v40 = vpop.f32.mrb[133].mxu1 }
0x4aa9   :  { %v15985_v14 = vadd.f32 %v15979_v10, %v8901_v40 }
0x4aaa   :  { %v8911_v61 = vmax.f32 %v15982_v11, 0.0 }
0x4aab   :  { %v8910_v51 = vmax.f32 %v15985_v14, 0.0 }
0x4aac   :  { %v8916_v27 = vrot.slane %v8911_v61, 7 }
0x4aad   :  { %v8915_v29 = vrot.slane %v8910_v51, 7 }
0x4aaf   :  { %v8917_v24 = vsel %vm8914_vm12, %v8915_v29, %v8916_v27  ;;  %v8920_v54 = vsel %vm8914_vm12, 0.0, %v8915_v29 }
0x4ab0   :  { %v8922_v53 = vsel %vm8921_vm14, %v8917_v24, 0.0  ;;  %v8925_v63 = vrot.slane %v8920_v54, 1  ;;  %v8934_v16 = vrot.slane %v8920_v54, 2 }
0x4ab1   :  { %v8926_v23 = vrot.slane %v8922_v53, 1  ;;  %v8935_v17 = vrot.slane %v8922_v53, 2 }
0x4ab3   :  { %8930 = vrot.lane.b32.xlu1 %v8926_v23, %s14443_s7  ;;  %v8927_v31 = vsel %vm8800_vm8, %v8925_v63, %v8926_v23  ;;  %v8936_v43 = vsel %vm8810_vm10, %v8934_v16, %v8935_v17  ;;  %v16055_v63 = vld [vmem:[#allocation2 + $0x510] sm:$0xff] }
0x4ab4   :  { %8928 = vrot.lane.b32.xlu0 %v8927_v31, %s14443_s7 }
0x4ab7   :  { %8939 = vrot.lane.b32.xlu1 %v8935_v17, %s14444_s8 }
0x4ab8   :  { %8937 = vrot.lane.b32.xlu0 %v8936_v43, %s14444_s8 }
0x4ac1   :  { %v8633_v21 = vpop.xlane.xlu1 %8632 }
0x4ac2   :  { %v8636_v56 = vmul.f32 0.032258064, %v8633_v21 }
0x4ac4   :  { %14363 = vrsqrt.f32 %v8636_v56  ;;  %vm8653_vm9 = vcmp.eq.f32.partialorder %v8636_v56, inf  ;;  %v8656_v50 = vand.u32 2147483648, %v8636_v56  ;;  %vm8655_vm15 = vcmp.eq.f32.partialorder %v8636_v56, 0.0 }
0x4ace   :  { %v14364_v22 = vpop.eup %14363 }
0x4acf   :  { %v8652_v25 = vmul.f32 %v14364_v22, %v8636_v56 }
0x4ad1   :  { %v8654_v5 = vsel %vm8653_vm9, %v8636_v56, %v8652_v25  ;;  %v16063_v25 = vld [vmem:[#allocation2 + $0x518] sm:$0xff] }
0x4ad2   :  { %v8657_v35 = vsel %vm8655_vm15, %v8656_v50, %v8654_v5  ;;  %v16068_v5 = vld [vmem:[#allocation2 + $0x520] sm:$0xff] }
0x4ad3   :  { %v8660_v33 = vadd.f32 1e-06, %v8657_v35 }
0x4ad5   :  { %14365 = vrcp.f32 %v8660_v33 }
0x4adf   :  { %v14366_v3 = vpop.eup %14365 }
0x4ae0   :  { %v8673_v28 = vmul.f32 %v14366_v3, %v8670_v59  ;;  %v16076_v59 = vld [vmem:[#allocation2 + $0x528] sm:$0xff] }
0x4ae2   :  { %v8680_v47 = vadd.f32 %v15907_v48, %v8673_v28 }
0x4ae4   :  { %12865 = vmatmul.mubr.msk.f32.gmra.mrb[142].mxu0 %vm142_vm3, %v8680_v47 }
0x4b25   :  { %v8931_v15 = vpop.permute.xlu1 %8930 }
0x4b26   :  { %v8929_v41 = vpop.permute.xlu0 %8928  ;;  %v8944_v19 = vsel %vm45_vm1, %v8922_v53, %v8931_v15  ;;  %v16051_v53 = vld [vmem:[#allocation2 + $0x4f8] sm:$0xf] }
0x4b27   :  { %v8943_v18 = vsel %vm45_vm1, %v8920_v54, %v8929_v41 }
0x4b29   :  { %v8940_v6 = vpop.permute.xlu1 %8939 }
0x4b2a   :  { %v8938_v52 = vpop.permute.xlu0 %8937  ;;  %v8946_v9 = vsel %vm142_vm3, %v8944_v19, %v8940_v6 }
0x4b2b   :  { %v8945_v58 = vsel %vm142_vm3, %v8943_v18, %v8938_v52 }
0x4b2c   :  { %12894 = vmatprep.mubr.msk.f32.mxu0 %vm8828_vm11, %v8945_v58 }
0x4b2d   :  { %12895 = vmatmul.mubr.msk.f32.vlgmr.msra.gmra.mrb[144].mxu0 %vm8828_vm11, %v8946_v9 }
0x4b2e   :  { %13645 = vmatpush3.bf16.msra.mxu0 %v15971_v30 }
0x4b2f   :  { %13647 = vmatprep.subr.bf16.mxu0 %v15973_v34 }
0x4b32   :  { %13649 = vmatpush3.bf16.msra.mxu0 %v15973_v34 }
0x4b33   :  { %13651 = vmatprep.subr.bf16.mxu0 %v13622_v62 }
0x4b36   :  { %13653 = vmatpush3.bf16.msra.mxu0 %v13622_v62 }
0x4bb7   :  { %v8775_v2 = vpop.f32.mrb[142].mxu0 }
0x4bb8   :  { %v8776_v48 = vadd.f32 %v15931_v4, %v8775_v2  ;;  %v12866_v42 = vpop.f32.mrb[143].mxu0  ;;  %v9036_v4 = vld [vmem:[%s16262_s0 + $0x8] sm:$0xf] }
0x4bb9   :  { %v9040_v45 = vrot.slane %v9036_v4, %v9039_v49 }
0x4bba   :  { %v9244_v57 = vrot.slane %v8776_v48, 1  ;;  %v9252_v46 = vrot.slane %v8776_v48, 2 }
0x4bbb   :  { %v9041_v37 = vsel %vm32_vm2, %v9036_v4, %v9040_v45 }
0x4bbc   :  { %v9245_v32 = vsel %vm8800_vm8, %v15943_v55, %v9244_v57  ;;  %v9253_v60 = vsel %vm8810_vm10, %v15950_v26, %v9252_v46  ;;  %v16030_v55 = vld [vmem:[#allocation2 + $0x4f0] ss:$0 sm:$0xff] }
0x4bbd   :  { %9246 = vrot.lane.b32.xlu1 %v9245_v32, %s14443_s7 }
0x4bc1   :  { %9254 = vrot.lane.b32.xlu1 %v9253_v60, %s14444_s8 }
0x4c00   :  { %v12896_v30 = vpop.f32.mrb[144].mxu0 }
0x4c01   :  { %v9029_v26 = vadd.f32 %v12896_v30, %v8911_v61  ;;  %v9019_v39 = vpop.f32.mrb[145].mxu0 }
0x4c02   :  { %v9028_v34 = vadd.f32 %v9019_v39, %v8910_v51 }
0x4c03   :  { %v9035_v8 = vadd.f32 %v16030_v55, %v9029_v26 }
0x4c04   :  { %v9034_v36 = vadd.f32 %v16030_v55, %v9028_v34  ;;  %v11456_v34 = vld [vmem:[%s16262_s0 + $0x18] sm:$0xf] }
0x4c05   :  { %v9043_v62 = vadd.f32 %v9040_v45, %v9035_v8  ;;  %v9472_v8 = vrot.slane %v11456_v34, %v9039_v49 }
0x4c06   :  { %v9042_v40 = vadd.f32 %v9041_v37, %v9034_v36 }
0x4c08   :  { %v14033_v27 = vpack.i.bf16 %v9043_v62, %v9042_v40 }
0x4c0a   :  { %14034 = vrot.lane.b32.xlu0 %v14033_v27, %s14443_s7 }
0x4c0e   :  { %9248 = vrot.lane.b32.xlu0 %v9244_v57, %s14443_s7 }
0x4c12   :  { %9256 = vrot.lane.b32.xlu0 %v9252_v46, %s14444_s8 }
0x4c2f   :  { %v9247_v16 = vpop.permute.xlu1 %9246 }
0x4c30   :  { %v9260_v50 = vsel %vm45_vm1, %v15940_v7, %v9247_v16 }
0x4c33   :  { %v9255_v43 = vpop.permute.xlu1 %9254 }
0x4c34   :  { %v9262_v35 = vsel %vm142_vm3, %v9260_v50, %v9255_v43 }
0x4c35   :  { %v9266_v3 = vrot.slane %v9262_v35, 4 }
0x4c7c   :  { %v14035_v11 = vpop.permute.xlu0 %14034 }
0x4c7d   :  { %v14037_v61 = vunpack.i.h.bf16 %v14035_v11  ;;  %v14036_v14 = vunpack.i.l.bf16 %v14035_v11  ;;  %v9473_v11 = vsel %vm32_vm2, %v11456_v34, %v9472_v8 }
0x4c7f   :  { %v9053_v51 = vsel %vm45_vm1, %v9040_v45, %v14037_v61  ;;  %v9052_v29 = vsel %vm45_vm1, %v9041_v37, %v14036_v14 }
0x4c80   :  { %v13627_v54 = vpack.c.bf16 %v9053_v51, %v9052_v29  ;;  %v9249_v23 = vpop.permute.xlu0 %9248 }
0x4c81   :  { %v9261_v21 = vsel %vm45_vm1, %v8776_v48, %v9249_v23 }
0x4c82   :  { %13629 = vmatpush3.bf16.msk.msra.mxu1 %vm16045_vm5, %v13627_v54 }
0x4c84   :  { %v9257_v31 = vpop.permute.xlu0 %9256 }
0x4c85   :  { %12902 = vmatmul.mubr.msk.f32.vlgmr.msra.gmra.mrb[134].mxu1 %vm9054_vm6, %v16051_v53  ;;  %v9263_v22 = vsel %vm142_vm3, %v9261_v21, %v9257_v31  ;;  %v9657_v31 = vld [vmem:[#allocation2 + $0x530] sm:$0xff] }
0x4c86   :  { %12906 = vmatprep.mubr.msk.f32.mxu1 %vm142_vm3, %v16055_v63  ;;  %v9267_v33 = vrot.slane %v9263_v22, 4 }
0x4c88   :  { %v9268_v7 = vsel %vm32_vm2, %v9266_v3, %v9267_v33  ;;  %vm9658_vm2 = vcmask 64512  }
0x4d58   :  { %v9128_v17 = vpop.f32.mrb[134].mxu1 }
0x4d59   :  { %12904 = vmatprep.subr.msk.mxu1 %vm142_vm3, %v9128_v17  ;;  %v12903_v56 = vpop.f32.mrb[135].mxu1 }
0x4d5a   :  { %12905 = vmatpush3.xpose.msk.msra.mxu1 %vm142_vm3, %v9128_v17 }
0x4d5b   :  { %13631 = vmatprep.subr.bf16.mxu1 %v15923_v12 }
0x4d5d   :  { %12907 = vmatmul.mubr.msk.f32.vlgmr.msra.gmra.mrb[136].mxu1 %vm142_vm3, %v16063_v25 }
0x4d5e   :  { %13633 = vmatpush3.bf16.msra.mxu1 %v15923_v12  ;;  %12909 = vmatprep.mubr.msk.f32.mxu1 %vm142_vm3, %v16068_v5 }
0x4d5f   :  { %13635 = vmatprep.subr.bf16.mxu1 %v15927_v20 }
0x4d61   :  { %12910 = vmatmul.mubr.msk.f32.gmra.mrb[138].mxu1 %vm142_vm3, %v16076_v59 }
0x4d62   :  { %13637 = vmatpush3.bf16.msra.mxu1 %v15927_v20  ;;  %12924 = vmatprep.mubr.msk.f32.mxu1 %vm8828_vm11, %v9268_v7 }
0x4d63   :  { %13639 = vmatprep.subr.bf16.mxu1 %v15933_v38 }
0x4d66   :  { %13641 = vmatpush3.bf16.msra.mxu1 %v15933_v38 }
0x4d67   :  { %13654 = vmatprep.subr.bf16.mxu1 %v14434_v0 }
0x4d69   :  { %12925 = vmatmul.mubr.msk.f32.vlgmr.msra.gmra.mrb[140].mxu1 %vm8828_vm11, %v9267_v33 }
0x4d6a   :  { %12946 = vmatprep.mubr.msk.f32.mxu1 %vm14435_vm0, %v14436_v1  ;;  %vm9240_vm0 = vcmask 31744  }
0x4e30   :  { %v16090_v12 = vpop.f32.mrb[136].mxu1 }
0x4e31   :  { %v16092_v28 = vpop.f32.mrb[137].mxu1 }
0x4e34   :  { %v12911_v47 = vpop.f32.mrb[138].mxu1 }
0x4e35   :  { %v9223_v15 = vpop.f32.mrb[139].mxu1 }
0x4e3c   :  { %v12926_v20 = vpop.f32.mrb[140].mxu1 }
0x4e3d   :  { %v9345_v41 = vadd.f32 %v12926_v20, %v15979_v10  ;;  %v9339_v6 = vpop.f32.mrb[141].mxu1 }
0x4e3e   :  { %v9340_v18 = vadd.f32 %v15979_v10, %v9339_v6  ;;  %v9758_v6 = vld [vmem:[#allocation2 + $0x548] sm:$0xff] }
0x4e3f   :  { %v9349_v38 = vmax.f32 %v9345_v41, 0.0  ;;  %v9757_v41 = vld [vmem:[#allocation2 + $0x540] sm:$0xff] }
0x4e40   :  { %v9348_v52 = vmax.f32 %v9340_v18, 0.0  ;;  %v9759_v18 = vld [vmem:[#allocation2 + $0x550] sm:$0xff] }
0x4e41   :  { %v9353_v0 = vrot.slane %v9349_v38, 7 }
0x4e42   :  { %v9352_v19 = vrot.slane %v9348_v52, 7 }
0x4e44   :  { %v9354_v58 = vsel %vm8914_vm12, %v9352_v19, %v9353_v0  ;;  %v9357_v1 = vsel %vm8914_vm12, 0.0, %v9352_v19  ;;  %v9868_v19 = vld [vmem:[#allocation2 + $0x570] sm:$0xff] }
0x4e45   :  { %v9358_v9 = vsel %vm8921_vm14, %v9354_v58, 0.0  ;;  %v9361_v2 = vrot.slane %v9357_v1, 1  ;;  %v9370_v42 = vrot.slane %v9357_v1, 2  ;;  %v9869_v58 = vld [vmem:[#allocation2 + $0x578] sm:$0xff] }
0x4e46   :  { %v9362_v48 = vrot.slane %v9358_v9, 1  ;;  %v9371_v46 = vrot.slane %v9358_v9, 2 }
0x4e48   :  { %9366 = vrot.lane.b32.xlu0 %v9362_v48, %s14443_s7  ;;  %v9363_v57 = vsel %vm8800_vm8, %v9361_v2, %v9362_v48  ;;  %v9372_v10 = vsel %vm8810_vm10, %v9370_v42, %v9371_v46  ;;  %v9871_v2 = vld [vmem:[#allocation2 + $0x588] sm:$0xff]  ;;  %v9872_v42 = vld [vmem:[#allocation2 + $0x590] sm:$0xff] }
0x4e49   :  { %9364 = vrot.lane.b32.xlu1 %v9363_v57, %s14443_s7  ;;  %v9873_v57 = vld [vmem:[#allocation2 + $0x598] sm:$0xff] }
0x4e4c   :  { %9375 = vrot.lane.b32.xlu0 %v9371_v46, %s14444_s8  ;;  %v13678_v46 = vpack.c.bf16 %v9873_v57, %v9872_v42  ;;  %v10190_v42 = vld [vmem:[#allocation2 + $0x620] sm:$0xff]  ;;  %v10301_v57 = vld [vmem:[#allocation2 + $0x630] sm:$0xff] }
0x4e4d   :  { %9373 = vrot.lane.b32.xlu1 %v9372_v10, %s14444_s8  ;;  %v11468_v10 = vld [vmem:[#allocation2 + $0x558] ss:$0 sm:$0xff] }
0x4e50   :  { %9234 = vrot.lane.b32.xlu0 %v9223_v15, %s14445_s11 }
0x4eba   :  { %v9367_v32 = vpop.permute.xlu0 %9366 }
0x4ebb   :  { %v9365_v60 = vpop.permute.xlu1 %9364  ;;  %v9380_v30 = vsel %vm45_vm1, %v9358_v9, %v9367_v32  ;;  %v9870_v9 = vld [vmem:[#allocation2 + $0x580] sm:$0xff] }
0x4ebc   :  { %v9379_v4 = vsel %vm45_vm1, %v9357_v1, %v9365_v60  ;;  %v13670_v1 = vpack.c.bf16 %v9869_v58, %v9868_v19  ;;  %v13674_v48 = vpack.c.bf16 %v9871_v2, %v9870_v9  ;;  %v10188_v2 = vld [vmem:[#allocation2 + $0x610] sm:$0xff] }
0x4ebe   :  { %v9376_v44 = vpop.permute.xlu0 %9375 }
0x4ebf   :  { %v9374_v45 = vpop.permute.xlu1 %9373  ;;  %v9382_v39 = vsel %vm142_vm3, %v9380_v30, %v9376_v44 }
0x4ec0   :  { %v9381_v26 = vsel %vm142_vm3, %v9379_v4, %v9374_v45 }
0x4ec1   :  { %12939 = vmatprep.mubr.msk.f32.mxu0 %vm8828_vm11, %v9381_v26 }
0x4ec2   :  { %12940 = vmatmul.mubr.msk.f32.vlgmr.msra.gmra.mrb[146].mxu0 %vm8828_vm11, %v9382_v39  ;;  %v9235_v17 = vpop.permute.xlu0 %9234 }
0x4ec3   :  { %12951 = vmatprep.mubr.msk.f32.mxu0 %vm142_vm3, %v16055_v63 }
0x4f95   :  { %v12941_v37 = vpop.f32.mrb[146].mxu0 }
0x4f96   :  { %v9465_v36 = vadd.f32 %v12941_v37, %v9349_v38  ;;  %v9455_v62 = vpop.f32.mrb[147].mxu0  ;;  %v9866_v38 = vld [vmem:[#allocation2 + $0x560] sm:$0xff] }
0x4f97   :  { %v9464_v40 = vadd.f32 %v9455_v62, %v9348_v52  ;;  %v9867_v52 = vld [vmem:[#allocation2 + $0x568] sm:$0xff]  ;;  %v9972_v62 = vld [vmem:[#allocation2 + $0x5a0] sm:$0xff] }
0x4f98   :  { %v9467_v27 = vadd.f32 %v16030_v55, %v9465_v36  ;;  %v13666_v0 = vpack.c.bf16 %v9867_v52, %v9866_v38  ;;  %v10187_v38 = vld [vmem:[#allocation2 + $0x608] sm:$0xff] }
0x4f99   :  { %v9466_v61 = vadd.f32 %v16030_v55, %v9464_v40  ;;  %v16130_v55 = vsel %vm9240_vm0, %v16092_v28, %v9235_v17 }
0x4f9a   :  { %v9475_v14 = vadd.f32 %v9472_v8, %v9467_v27 }
0x4f9b   :  { %v9474_v51 = vadd.f32 %v9473_v11, %v9466_v61 }
0x4f9d   :  { %v14038_v29 = vpack.i.bf16 %v9475_v14, %v9474_v51 }
0x4f9f   :  { %14039 = vrot.lane.b32.xlu1 %v14038_v29, %s14443_s7  ;;  %v9973_v29 = vld [vmem:[#allocation2 + $0x5a8] sm:$0xff] }
0x4fa3   :  { %9236 = vrot.lane.b32.xlu1 %v12911_v47, %s14445_s11 }
0x5011   :  { %v14040_v54 = vpop.permute.xlu1 %14039 }
0x5012   :  { %v14042_v13 = vunpack.i.h.bf16 %v14040_v54  ;;  %v14041_v49 = vunpack.i.l.bf16 %v14040_v54  ;;  %v9974_v54 = vld [vmem:[#allocation2 + $0x5b0] sm:$0xff] }
0x5014   :  { %v9485_v63 = vsel %vm45_vm1, %v9472_v8, %v14042_v13  ;;  %v9484_v23 = vsel %vm45_vm1, %v9473_v11, %v14041_v49  ;;  %v9975_v13 = vld [vmem:[#allocation2 + $0x5b8] sm:$0xff]  ;;  %v10082_v49 = vld [vmem:[#allocation2 + $0x5c8] sm:$0xff] }
0x5015   :  { %v13655_v16 = vpack.c.bf16 %v9485_v63, %v9484_v23  ;;  %v9237_v43 = vpop.permute.xlu1 %9236  ;;  %v10083_v63 = vld [vmem:[#allocation2 + $0x5d0] sm:$0xff] }
0x5016   :  { %v16138_v21 = vsel %vm9240_vm0, %v16090_v12, %v9237_v43  ;;  %v13690_v23 = vpack.c.bf16 %v10083_v63, %v10082_v49  ;;  %v10086_v43 = vld [vmem:[#allocation2 + $0x5e8] sm:$0xff] }
0x5017   :  { %13657 = vmatpush3.bf16.msk.msra.mxu1 %vm16045_vm5, %v13655_v16  ;;  %v10084_v16 = vld [vmem:[#allocation2 + $0x5d8] sm:$0xff] }
0x5018   :  { %12957 = vmatprep.subr.mxu1 %v9657_v31 }
0x501a   :  { %12947 = vmatmul.mubr.msk.f32.vlgmr.msra.gmra.mrb[142].mxu1 %vm9054_vm6, %v16051_v53 }
0x501b   :  { %12959 = vmatprep.mubr.msk.f32.mxu1 %vm9658_vm2, %v16130_v55  ;;  %12958 = vmatpush3.msra.mxu1 %v9657_v31  ;;  %v10085_v31 = vld [vmem:[#allocation2 + $0x5e0] sm:$0xff] }
0x501c   :  { %13667 = vmatprep.subr.bf16.mxu1 %v13666_v0  ;;  %v13694_v17 = vpack.c.bf16 %v10085_v31, %v10084_v16 }
0x501e   :  { %12960 = vmatmul.mubr.msk.f32.vlgmr.msra.gmra.mrb[144].mxu1 %vm9658_vm2, %v16138_v21 }
0x501f   :  { %13669 = vmatpush3.bf16.msra.mxu1 %v13666_v0 }
0x5020   :  { %13671 = vmatprep.subr.bf16.mxu1 %v13670_v1 }
0x5023   :  { %13673 = vmatpush3.bf16.msra.mxu1 %v13670_v1 }
0x5024   :  { %13675 = vmatprep.subr.bf16.mxu1 %v13674_v48 }
0x5027   :  { %13677 = vmatpush3.bf16.msra.mxu1 %v13674_v48  ;;  %v10189_v48 = vld [vmem:[#allocation2 + $0x618] sm:$0xff] }
0x5028   :  { %13679 = vmatprep.subr.bf16.mxu1 %v13678_v46 }
0x502b   :  { %13681 = vmatpush3.bf16.msra.mxu1 %v13678_v46  ;;  %v10302_v46 = vld [vmem:[#allocation2 + $0x638] sm:$0xff] }
0x50ed   :  { %v9555_v24 = vpop.f32.mrb[142].mxu1 }
0x50ee   :  { %12949 = vmatprep.subr.msk.mxu0 %vm142_vm3, %v9555_v24  ;;  %v12948_v56 = vpop.f32.mrb[143].mxu1 }
0x50ef   :  { %12950 = vmatpush3.xpose.msk.msra.mxu0 %vm142_vm3, %v9555_v24  ;;  %v10087_v24 = vld [vmem:[#allocation2 + $0x5f0] sm:$0xff] }
0x50f0   :  { %v13698_v56 = vpack.c.bf16 %v10087_v24, %v10086_v43 }
0x50f1   :  { %v12961_v22 = vpop.f32.mrb[144].mxu1 }
0x50f2   :  { %12952 = vmatmul.mubr.msk.f32.vlgmr.msra.gmra.mrb[148].mxu0 %vm142_vm3, %v16063_v25  ;;  %v9737_v53 = vpop.f32.mrb[145].mxu1 }
0x50f3   :  { %v13658_v50 = vpack.c.bf16 %v12961_v22, %v9737_v53  ;;  %12954 = vmatprep.mubr.msk.f32.mxu0 %vm142_vm3, %v16068_v5  ;;  %v10088_v22 = vld [vmem:[#allocation2 + $0x5f8] sm:$0xff]  ;;  %v10089_v53 = vld [vmem:[#allocation2 + $0x600] sm:$0xff] }
0x50f5   :  { %13659 = vmatprep.subr.bf16.mxu0 %v13658_v50 }
0x50f6   :  { %12955 = vmatmul.mubr.msk.f32.gmra.mrb[150].mxu0 %vm142_vm3, %v16076_v59  ;;  %v9756_v59 = vld [vmem:[#allocation2 + $0x538] sm:$0xff] }
0x50f7   :  { %13661 = vmatpush3.bf16.msra.mxu0 %v13658_v50  ;;  %12973 = vmatprep.mubr.msk.f32.mxu0 %vm142_vm3, %v9756_v59  ;;  %v13702_v50 = vpack.c.bf16 %v10089_v53, %v10088_v22 }
0x51c5   :  { %v12953_v35 = vpop.f32.mrb[148].mxu0 }
0x51c6   :  { %v9628_v33 = vpop.f32.mrb[149].mxu0 }
0x51c9   :  { %v12956_v3 = vpop.f32.mrb[150].mxu0 }
0x51ca   :  { %9651 = vrot.lane.b32.xlu1 %v12956_v3, %s14445_s11  ;;  %v9638_v7 = vpop.f32.mrb[151].mxu0 }
0x51cb   :  { %9649 = vrot.lane.b32.xlu0 %v9638_v7, %s14445_s11 }
0x523c   :  { %v9652_v12 = vpop.permute.xlu1 %9651 }
0x523d   :  { %v9650_v25 = vpop.permute.xlu0 %9649  ;;  %v16156_v5 = vsel %vm9240_vm0, %v12953_v35, %v9652_v12  ;;  %v11477_v35 = vld [vmem:[#allocation2 + $0x5c0] ss:$0 sm:$0xff] }
0x523e   :  { %v16153_v28 = vsel %vm9240_vm0, %v9628_v33, %v9650_v25 }
0x523f   :  { %12962 = vmatprep.mubr.msk.f32.mxu1 %vm9658_vm2, %v16153_v28 }
0x5240   :  { %12963 = vmatmul.mubr.msk.f32.gmra.mrb[146].mxu1 %vm9658_vm2, %v16156_v5 }
0x5313   :  { %v12964_v47 = vpop.f32.mrb[146].mxu1 }
0x5314   :  { %v9747_v15 = vpop.f32.mrb[147].mxu1 }
0x5315   :  { %v13662_v20 = vpack.c.bf16 %v12964_v47, %v9747_v15 }
0x5317   :  { %13663 = vmatprep.subr.bf16.mxu0 %v13662_v20 }
0x5318   :  { %13665 = vmatpush3.bf16.msra.mxu0 %v13662_v20 }
0x531b   :  { %12974 = vmatmul.mubr.msk.f32.vlgmr.msra.gmra.mrb[152].mxu0 %vm142_vm3, %v9757_v41 }
0x531c   :  { %12976 = vmatprep.mubr.msk.f32.mxu0 %vm142_vm3, %v9758_v6 }
0x531f   :  { %12977 = vmatmul.mubr.msk.f32.gmra.mrb[154].mxu0 %vm142_vm3, %v9759_v18 }
0x5320   :  { %13009 = vmatprep.mubr.msk.f32.mxu0 %vm142_vm3, %v9972_v62 }
0x53ee   :  { %v12975_v32 = vpop.f32.mrb[152].mxu0 }
0x53ef   :  { %v9849_v60 = vadd.f32 %v12975_v32, %v11468_v10  ;;  %v9843_v44 = vpop.f32.mrb[153].mxu0  ;;  %v10303_v32 = vld [vmem:[#allocation2 + $0x640] sm:$0xff] }
0x53f0   :  { %v9844_v4 = vadd.f32 %v11468_v10, %v9843_v44 }
0x53f2   :  { %14367 = vtanh.f32 %v9844_v4  ;;  %v12978_v45 = vpop.f32.mrb[154].mxu0  ;;  %v10305_v4 = vld [vmem:[#allocation2 + $0x650] sm:$0xff] }
0x53f3   :  { %14369 = vtanh.f32 %v9849_v60  ;;  %v9859_v30 = vadd.f32 %v12978_v45, %v11468_v10  ;;  %v9853_v26 = vpop.f32.mrb[155].mxu0  ;;  %v10304_v60 = vld [vmem:[#allocation2 + $0x648] sm:$0xff]  ;;  %v10306_v45 = vld [vmem:[#allocation2 + $0x658] sm:$0xff] }
0x53f4   :  { %v9854_v39 = vadd.f32 %v11468_v10, %v9853_v26  ;;  %v13714_v10 = vpack.c.bf16 %v10302_v46, %v10301_v57  ;;  %v13718_v44 = vpack.c.bf16 %v10304_v60, %v10303_v32  ;;  %v10307_v26 = vld [vmem:[#allocation2 + $0x660] sm:$0xff]  ;;  %v10621_v60 = vld [vmem:[#allocation2 + $0x6d8] sm:$0xff] }
0x53f6   :  { %14371 = vtanh.f32 %v9854_v39  ;;  %v10308_v39 = vld [vmem:[#allocation2 + $0x668] sm:$0xff] }
0x53f7   :  { %14373 = vtanh.f32 %v9859_v30  ;;  %v13722_v30 = vpack.c.bf16 %v10306_v45, %v10305_v4  ;;  %v13726_v62 = vpack.c.bf16 %v10308_v39, %v10307_v26 }
0x53fc   :  { %v16166_v34 = vpop.eup %14367 }
0x53fd   :  { %v16168_v8 = vpop.eup %14369  ;;  %12995 = vmatprep.mubr.msk.f32.mxu1 %vm9874_vm13, %v16166_v34 }
0x53fe   :  { %12996 = vmatmul.mubr.msk.f32.vlgmr.msra.gmra.mrb[148].mxu1 %vm9874_vm13, %v16168_v8 }
0x5400   :  { %v16174_v37 = vpop.eup %14371 }
0x5401   :  { %v16176_v36 = vpop.eup %14373  ;;  %12998 = vmatprep.mubr.msk.f32.mxu1 %vm9874_vm13, %v16174_v37 }
0x5402   :  { %12999 = vmatmul.mubr.msk.f32.gmra.mrb[150].mxu1 %vm9874_vm13, %v16176_v36 }
0x5403   :  { %13045 = vmatprep.mubr.msk.f32.mxu1 %vm142_vm3, %v10187_v38 }
0x54d1   :  { %v12997_v40 = vpop.f32.mrb[148].mxu1 }
0x54d2   :  { %v9953_v27 = vpop.f32.mrb[149].mxu1 }
0x54d3   :  { %v13682_v11 = vpack.c.bf16 %v12997_v40, %v9953_v27  ;;  %v11486_v40 = vld [vmem:[#allocation2 + $0x628] ss:$0 sm:$0xff] }
0x54d5   :  { %v13000_v61 = vpop.f32.mrb[150].mxu1  ;;  %13683 = vmatprep.subr.bf16.mxu0 %v13682_v11 }
0x54d6   :  { %v9963_v14 = vpop.f32.mrb[151].mxu1  ;;  %13685 = vmatpush3.bf16.msra.mxu0 %v13682_v11 }
0x54d7   :  { %v13686_v51 = vpack.c.bf16 %v13000_v61, %v9963_v14 }
0x54d9   :  { %13687 = vmatprep.subr.bf16.mxu0 %v13686_v51 }
0x54da   :  { %13689 = vmatpush3.bf16.msra.mxu0 %v13686_v51 }
0x54db   :  { %13691 = vmatprep.subr.bf16.mxu0 %v13690_v23 }
0x54dd   :  { %13010 = vmatmul.mubr.msk.f32.vlgmr.msra.gmra.mrb[156].mxu0 %vm142_vm3, %v9973_v29 }
0x54de   :  { %13012 = vmatprep.mubr.msk.f32.mxu0 %vm142_vm3, %v9974_v54  ;;  %13693 = vmatpush3.bf16.msra.mxu0 %v13690_v23 }
0x54df   :  { %13695 = vmatprep.subr.bf16.mxu0 %v13694_v17 }
0x54e1   :  { %13013 = vmatmul.mubr.msk.f32.gmra.mrb[158].mxu0 %vm142_vm3, %v9975_v13 }
0x54e2   :  { %13697 = vmatpush3.bf16.msra.mxu0 %v13694_v17 }
0x54e3   :  { %13699 = vmatprep.subr.bf16.mxu0 %v13698_v56 }
0x54e6   :  { %13701 = vmatpush3.bf16.msra.mxu0 %v13698_v56 }
0x54e7   :  { %13703 = vmatprep.subr.bf16.mxu0 %v13702_v50 }
0x54ea   :  { %13705 = vmatpush3.bf16.msra.mxu0 %v13702_v50 }
0x55b0   :  { %v13011_v33 = vpop.f32.mrb[156].mxu0 }
0x55b1   :  { %v10065_v3 = vadd.f32 %v13011_v33, %v11477_v35  ;;  %v10059_v7 = vpop.f32.mrb[157].mxu0  ;;  %v10409_v33 = vld [vmem:[#allocation2 + $0x688] sm:$0xff] }
0x55b2   :  { %v10060_v12 = vadd.f32 %v11477_v35, %v10059_v7  ;;  %v10517_v7 = vld [vmem:[#allocation2 + $0x6a0] sm:$0xff] }
0x55b4   :  { %14375 = vtanh.f32 %v10060_v12  ;;  %v13014_v25 = vpop.f32.mrb[158].mxu0 }
0x55b5   :  { %14377 = vtanh.f32 %v10065_v3  ;;  %v10075_v59 = vadd.f32 %v13014_v25, %v11477_v35  ;;  %v10069_v47 = vpop.f32.mrb[159].mxu0  ;;  %v10516_v3 = vld [vmem:[#allocation2 + $0x698] sm:$0xff]  ;;  %v10518_v25 = vld [vmem:[#allocation2 + $0x6a8] sm:$0xff] }
0x55b6   :  { %v10070_v15 = vadd.f32 %v11477_v35, %v10069_v47  ;;  %v10408_v35 = vld [vmem:[#allocation2 + $0x680] sm:$0xff]  ;;  %v13738_v12 = vpack.c.bf16 %v10517_v7, %v10516_v3 }
0x55b8   :  { %14379 = vtanh.f32 %v10070_v15  ;;  %v10520_v15 = vld [vmem:[#allocation2 + $0x6b8] sm:$0xff] }
0x55b9   :  { %14381 = vtanh.f32 %v10075_v59  ;;  %v10519_v59 = vld [vmem:[#allocation2 + $0x6b0] sm:$0xff] }
0x55ba   :  { %v13742_v47 = vpack.c.bf16 %v10519_v59, %v10518_v25 }
0x55be   :  { %v14376_v20 = vpop.eup %14375 }
0x55bf   :  { %v14378_v41 = vpop.eup %14377  ;;  %13031 = vmatprep.mubr.msk.f32.mxu0 %vm9874_vm13, %v14376_v20  ;;  %v10521_v20 = vld [vmem:[#allocation2 + $0x6c0] sm:$0xff] }
0x55c0   :  { %13032 = vmatmul.mubr.msk.f32.vlgmr.msra.gmra.mrb[160].mxu0 %vm9874_vm13, %v14378_v41  ;;  %v13746_v41 = vpack.c.bf16 %v10521_v20, %v10520_v15 }
0x55c2   :  { %v14380_v6 = vpop.eup %14379 }
0x55c3   :  { %v14382_v18 = vpop.eup %14381  ;;  %13034 = vmatprep.mubr.msk.f32.mxu0 %vm9874_vm13, %v14380_v6  ;;  %v10522_v6 = vld [vmem:[#allocation2 + $0x6c8] sm:$0xff] }
0x55c4   :  { %13035 = vmatmul.mubr.msk.f32.gmra.mrb[162].mxu0 %vm9874_vm13, %v14382_v18  ;;  %v10523_v18 = vld [vmem:[#allocation2 + $0x6d0] sm:$0xff] }
0x55c5   :  { %v13750_v38 = vpack.c.bf16 %v10523_v18, %v10522_v6 }
0x5693   :  { %v13033_v52 = vpop.f32.mrb[160].mxu0 }
0x5694   :  { %v10168_v0 = vpop.f32.mrb[161].mxu0 }
0x5695   :  { %v13706_v19 = vpack.c.bf16 %v13033_v52, %v10168_v0  ;;  %v11495_v52 = vld [vmem:[#allocation2 + $0x690] ss:$0 sm:$0xff] }
0x5697   :  { %v13036_v58 = vpop.f32.mrb[162].mxu0  ;;  %13707 = vmatprep.subr.bf16.mxu1 %v13706_v19 }
0x5698   :  { %v10178_v1 = vpop.f32.mrb[163].mxu0  ;;  %13709 = vmatpush3.bf16.msra.mxu1 %v13706_v19 }
0x5699   :  { %v13710_v9 = vpack.c.bf16 %v13036_v58, %v10178_v1 }
0x569b   :  { %13711 = vmatprep.subr.bf16.mxu1 %v13710_v9 }
0x569c   :  { %13713 = vmatpush3.bf16.msra.mxu1 %v13710_v9 }
0x569d   :  { %13715 = vmatprep.subr.bf16.mxu1 %v13714_v10 }
0x569f   :  { %13046 = vmatmul.mubr.msk.f32.vlgmr.msra.gmra.mrb[152].mxu1 %vm142_vm3, %v10188_v2 }
0x56a0   :  { %13048 = vmatprep.mubr.msk.f32.mxu1 %vm142_vm3, %v10189_v48  ;;  %13717 = vmatpush3.bf16.msra.mxu1 %v13714_v10 }
0x56a1   :  { %13719 = vmatprep.subr.bf16.mxu1 %v13718_v44 }
0x56a3   :  { %13049 = vmatmul.mubr.msk.f32.gmra.mrb[154].mxu1 %vm142_vm3, %v10190_v42 }
0x56a4   :  { %13721 = vmatpush3.bf16.msra.mxu1 %v13718_v44 }
0x56a5   :  { %13723 = vmatprep.subr.bf16.mxu1 %v13722_v30 }
0x56a8   :  { %13725 = vmatpush3.bf16.msra.mxu1 %v13722_v30 }
0x56a9   :  { %13727 = vmatprep.subr.bf16.mxu1 %v13726_v62 }
0x56ac   :  { %13729 = vmatpush3.bf16.msra.mxu1 %v13726_v62  ;;  %v10622_v62 = vld [vmem:[#allocation2 + $0x6e0] sm:$0xff] }
0x5772   :  { %v13047_v27 = vpop.f32.mrb[152].mxu1 }
0x5773   :  { %v10280_v11 = vadd.f32 %v13047_v27, %v11486_v40  ;;  %v10274_v61 = vpop.f32.mrb[153].mxu1  ;;  %v10624_v27 = vld [vmem:[#allocation2 + $0x6f0] sm:$0xff] }
0x5774   :  { %v10275_v14 = vadd.f32 %v11486_v40, %v10274_v61  ;;  %v10736_v61 = vld [vmem:[#allocation2 + $0x708] sm:$0xff] }
0x5775   :  { %14383 = vtanh.f32 %v10280_v11  ;;  %v10735_v11 = vld [vmem:[#allocation2 + $0x700] sm:$0xff] }
0x5776   :  { %14385 = vtanh.f32 %v10275_v14  ;;  %v13050_v51 = vpop.f32.mrb[154].mxu1  ;;  %v13762_v14 = vpack.c.bf16 %v10736_v61, %v10735_v11 }
0x5777   :  { %v10290_v29 = vadd.f32 %v13050_v51, %v11486_v40  ;;  %v10284_v54 = vpop.f32.mrb[155].mxu1  ;;  %v10737_v51 = vld [vmem:[#allocation2 + $0x710] sm:$0xff] }
0x5778   :  { %v10285_v13 = vadd.f32 %v11486_v40, %v10284_v54  ;;  %v10623_v40 = vld [vmem:[#allocation2 + $0x6e8] sm:$0xff] }
0x5779   :  { %14387 = vtanh.f32 %v10290_v29  ;;  %v10738_v29 = vld [vmem:[#allocation2 + $0x718] sm:$0xff] }
0x577a   :  { %14389 = vtanh.f32 %v10285_v13  ;;  %v13766_v54 = vpack.c.bf16 %v10738_v29, %v10737_v51  ;;  %v10739_v13 = vld [vmem:[#allocation2 + $0x720] sm:$0xff] }
0x577f   :  { %v14384_v49 = vpop.eup %14383 }
0x5780   :  { %v14386_v63 = vpop.eup %14385  ;;  %v16198_v16 = vadd.f32 %v14384_v49, %v16168_v8  ;;  %v10740_v49 = vld [vmem:[#allocation2 + $0x728] sm:$0xff] }
0x5781   :  { %v16195_v23 = vadd.f32 %v14386_v63, %v16166_v34  ;;  %v10406_v34 = vld [vmem:[#allocation2 + $0x670] sm:$0xff]  ;;  %v13770_v63 = vpack.c.bf16 %v10740_v49, %v10739_v13 }
0x5782   :  { %13081 = vmatprep.mubr.msk.f32.mxu0 %vm142_vm3, %v10406_v34 }
0x5783   :  { %v14388_v31 = vpop.eup %14387  ;;  %13067 = vmatprep.mubr.msk.f32.mxu1 %vm9874_vm13, %v16195_v23 }
0x5784   :  { %v14390_v17 = vpop.eup %14389  ;;  %13068 = vmatmul.mubr.msk.f32.vlgmr.msra.gmra.mrb[156].mxu1 %vm9874_vm13, %v16198_v16  ;;  %v16208_v24 = vadd.f32 %v14388_v31, %v16176_v36  ;;  %v10407_v36 = vld [vmem:[#allocation2 + $0x678] sm:$0xff]  ;;  %v10741_v31 = vld [vmem:[#allocation2 + $0x730] sm:$0xff] }
0x5785   :  { %v16205_v43 = vadd.f32 %v14390_v17, %v16174_v37  ;;  %v10742_v17 = vld [vmem:[#allocation2 + $0x738] sm:$0xff] }
0x5786   :  { %v13774_v34 = vpack.c.bf16 %v10742_v17, %v10741_v31 }
0x5787   :  { %13070 = vmatprep.mubr.msk.f32.mxu1 %vm9874_vm13, %v16205_v43 }
0x5788   :  { %13071 = vmatmul.mubr.msk.f32.gmra.mrb[158].mxu1 %vm9874_vm13, %v16208_v24 }
0x5789   :  { %13117 = vmatprep.mubr.msk.f32.mxu1 %vm142_vm3, %v10621_v60 }
0x5857   :  { %v13069_v8 = vpop.f32.mrb[156].mxu1 }
0x5858   :  { %v10387_v56 = vpop.f32.mrb[157].mxu1 }
0x5859   :  { %v13730_v22 = vpack.c.bf16 %v13069_v8, %v10387_v56  ;;  %v11504_v8 = vld [vmem:[#allocation2 + $0x6f8] ss:$0 sm:$0xff] }
0x585b   :  { %v13072_v53 = vpop.f32.mrb[158].mxu1  ;;  %13731 = vmatprep.subr.bf16.mxu0 %v13730_v22 }
0x585c   :  { %v10397_v50 = vpop.f32.mrb[159].mxu1  ;;  %13733 = vmatpush3.bf16.msra.mxu0 %v13730_v22 }
0x585d   :  { %v13734_v37 = vpack.c.bf16 %v13072_v53, %v10397_v50 }
0x585f   :  { %13735 = vmatprep.subr.bf16.mxu0 %v13734_v37 }
0x5860   :  { %13737 = vmatpush3.bf16.msra.mxu0 %v13734_v37 }
0x5861   :  { %13739 = vmatprep.subr.bf16.mxu0 %v13738_v12 }
0x5863   :  { %13082 = vmatmul.mubr.msk.f32.vlgmr.msra.gmra.mrb[164].mxu0 %vm142_vm3, %v10407_v36 }
0x5864   :  { %13084 = vmatprep.mubr.msk.f32.mxu0 %vm142_vm3, %v10408_v35  ;;  %13741 = vmatpush3.bf16.msra.mxu0 %v13738_v12 }
0x5865   :  { %13743 = vmatprep.subr.bf16.mxu0 %v13742_v47 }
0x5867   :  { %13085 = vmatmul.mubr.msk.f32.gmra.mrb[166].mxu0 %vm142_vm3, %v10409_v33 }
0x5868   :  { %13745 = vmatpush3.bf16.msra.mxu0 %v13742_v47 }
0x5869   :  { %13747 = vmatprep.subr.bf16.mxu0 %v13746_v41 }
0x586c   :  { %13749 = vmatpush3.bf16.msra.mxu0 %v13746_v41  ;;  %v10840_v41 = vld [vmem:[#allocation2 + $0x740] sm:$0xff] }
0x586d   :  { %13751 = vmatprep.subr.bf16.mxu0 %v13750_v38 }
0x5870   :  { %13753 = vmatpush3.bf16.msra.mxu0 %v13750_v38 }
0x5936   :  { %v13083_v0 = vpop.f32.mrb[164].mxu0 }
0x5937   :  { %v10499_v19 = vadd.f32 %v13083_v0, %v11495_v52  ;;  %v10493_v58 = vpop.f32.mrb[165].mxu0  ;;  %v10842_v0 = vld [vmem:[#allocation2 + $0x750] sm:$0xff] }
0x5938   :  { %v10494_v1 = vadd.f32 %v11495_v52, %v10493_v58  ;;  %v11513_v58 = vld [vmem:[#allocation2 + $0x760] ss:$0 sm:$0xff] }
0x593a   :  { %14391 = vtanh.f32 %v10494_v1  ;;  %v13086_v9 = vpop.f32.mrb[166].mxu0 }
0x593b   :  { %14393 = vtanh.f32 %v10499_v19  ;;  %v10509_v2 = vadd.f32 %v13086_v9, %v11495_v52  ;;  %v10503_v48 = vpop.f32.mrb[167].mxu0  ;;  %v10950_v19 = vld [vmem:[#allocation2 + $0x500] sm:$0xff] }
0x593c   :  { %v10504_v42 = vadd.f32 %v11495_v52, %v10503_v48 }
0x593e   :  { %14395 = vtanh.f32 %v10504_v42 }
0x593f   :  { %14397 = vtanh.f32 %v10509_v2 }
0x5944   :  { %v14392_v57 = vpop.eup %14391 }
0x5945   :  { %v14394_v46 = vpop.eup %14393  ;;  %13103 = vmatprep.mubr.msk.f32.mxu0 %vm9874_vm13, %v14392_v57 }
0x5946   :  { %13104 = vmatmul.mubr.msk.f32.vlgmr.msra.gmra.mrb[168].mxu0 %vm9874_vm13, %v14394_v46 }
0x5948   :  { %v14396_v10 = vpop.eup %14395 }
0x5949   :  { %v14398_v32 = vpop.eup %14397  ;;  %13106 = vmatprep.mubr.msk.f32.mxu0 %vm9874_vm13, %v14396_v10 }
0x594a   :  { %13107 = vmatmul.mubr.msk.f32.gmra.mrb[170].mxu0 %vm9874_vm13, %v14398_v32 }
0x594b   :  { %13153 = vmatprep.mubr.msk.f32.mxu0 %vm142_vm3, %v10840_v41 }
0x5a19   :  { %v13105_v44 = vpop.f32.mrb[168].mxu0 }
0x5a1a   :  { %v10602_v4 = vpop.f32.mrb[169].mxu0 }
0x5a1b   :  { %v13754_v45 = vpack.c.bf16 %v13105_v44, %v10602_v4 }
0x5a1d   :  { %v13108_v30 = vpop.f32.mrb[170].mxu0  ;;  %13755 = vmatprep.subr.bf16.mxu1 %v13754_v45 }
0x5a1e   :  { %v10612_v26 = vpop.f32.mrb[171].mxu0  ;;  %13757 = vmatpush3.bf16.msra.mxu1 %v13754_v45 }
0x5a1f   :  { %v13758_v39 = vpack.c.bf16 %v13108_v30, %v10612_v26 }
0x5a21   :  { %13759 = vmatprep.subr.bf16.mxu1 %v13758_v39 }
0x5a22   :  { %13761 = vmatpush3.bf16.msra.mxu1 %v13758_v39 }
0x5a23   :  { %13763 = vmatprep.subr.bf16.mxu1 %v13762_v14 }
0x5a25   :  { %13118 = vmatmul.mubr.msk.f32.vlgmr.msra.gmra.mrb[160].mxu1 %vm142_vm3, %v10622_v62 }
0x5a26   :  { %13120 = vmatprep.mubr.msk.f32.mxu1 %vm142_vm3, %v10623_v40  ;;  %13765 = vmatpush3.bf16.msra.mxu1 %v13762_v14 }
0x5a27   :  { %13767 = vmatprep.subr.bf16.mxu1 %v13766_v54 }
0x5a29   :  { %13121 = vmatmul.mubr.msk.f32.gmra.mrb[162].mxu1 %vm142_vm3, %v10624_v27 }
0x5a2a   :  { %13769 = vmatpush3.bf16.msra.mxu1 %v13766_v54 }
0x5a2b   :  { %13771 = vmatprep.subr.bf16.mxu1 %v13770_v63 }
0x5a2e   :  { %13773 = vmatpush3.bf16.msra.mxu1 %v13770_v63 }
0x5a2f   :  { %13775 = vmatprep.subr.bf16.mxu1 %v13774_v34 }
0x5a32   :  { %13777 = vmatpush3.bf16.msra.mxu1 %v13774_v34 }
0x5af8   :  { %v13119_v56 = vpop.f32.mrb[160].mxu1 }
0x5af9   :  { %v10714_v22 = vadd.f32 %v13119_v56, %v11504_v8  ;;  %v10708_v53 = vpop.f32.mrb[161].mxu1 }
0x5afa   :  { %v10709_v50 = vadd.f32 %v11504_v8, %v10708_v53 }
0x5afb   :  { %14399 = vtanh.f32 %v10714_v22 }
0x5afc   :  { %14401 = vtanh.f32 %v10709_v50  ;;  %v13122_v37 = vpop.f32.mrb[162].mxu1 }
0x5afd   :  { %v10724_v36 = vadd.f32 %v13122_v37, %v11504_v8  ;;  %v10718_v35 = vpop.f32.mrb[163].mxu1 }
0x5afe   :  { %v10719_v33 = vadd.f32 %v11504_v8, %v10718_v35 }
0x5aff   :  { %14403 = vtanh.f32 %v10724_v36 }
0x5b00   :  { %14405 = vtanh.f32 %v10719_v33 }
0x5b05   :  { %v14400_v3 = vpop.eup %14399 }
0x5b06   :  { %v14402_v7 = vpop.eup %14401  ;;  %v10732_v25 = vadd.f32 %v14400_v3, %v16198_v16 }
0x5b07   :  { %v10731_v12 = vadd.f32 %v14402_v7, %v16195_v23 }
0x5b09   :  { %v14404_v59 = vpop.eup %14403  ;;  %13139 = vmatprep.mubr.msk.f32.mxu1 %vm9874_vm13, %v10731_v12 }
0x5b0a   :  { %v14406_v47 = vpop.eup %14405  ;;  %13140 = vmatmul.mubr.msk.f32.vlgmr.msra.gmra.mrb[164].mxu1 %vm9874_vm13, %v10732_v25  ;;  %v10734_v20 = vadd.f32 %v14404_v59, %v16208_v24  ;;  %v10843_v24 = vld [vmem:[#allocation2 + $0x758] sm:$0xff] }
0x5b0b   :  { %v10733_v15 = vadd.f32 %v14406_v47, %v16205_v43  ;;  %v10841_v43 = vld [vmem:[#allocation2 + $0x748] sm:$0xff] }
0x5b0d   :  { %13142 = vmatprep.mubr.msk.f32.mxu1 %vm9874_vm13, %v10733_v15 }
0x5b0e   :  { %13143 = vmatmul.mubr.msk.f32.gmra.mrb[166].mxu1 %vm9874_vm13, %v10734_v20 }
0x5b0f   :  { %13170 = vmatprep.mubr.msk.f32.mxu1 %vm9240_vm0, %v10950_v19 }
0x5bdd   :  { %v13141_v23 = vpop.f32.mrb[164].mxu1 }
0x5bde   :  { %v10821_v6 = vpop.f32.mrb[165].mxu1 }
0x5bdf   :  { %v13778_v16 = vpack.c.bf16 %v13141_v23, %v10821_v6 }
0x5be1   :  { %v13144_v18 = vpop.f32.mrb[166].mxu1  ;;  %13779 = vmatprep.subr.bf16.mxu0 %v13778_v16 }
0x5be2   :  { %v10831_v38 = vpop.f32.mrb[167].mxu1  ;;  %13781 = vmatpush3.bf16.msra.mxu0 %v13778_v16 }
0x5be3   :  { %v13782_v52 = vpack.c.bf16 %v13144_v18, %v10831_v38 }
0x5be5   :  { %13783 = vmatprep.subr.bf16.mxu0 %v13782_v52 }
0x5be6   :  { %13785 = vmatpush3.bf16.msra.mxu0 %v13782_v52 }
0x5be9   :  { %13154 = vmatmul.mubr.msk.f32.vlgmr.msra.gmra.mrb[172].mxu0 %vm142_vm3, %v10841_v43 }
0x5bea   :  { %13156 = vmatprep.mubr.msk.f32.mxu0 %vm142_vm3, %v10842_v0 }
0x5bed   :  { %13157 = vmatmul.mubr.msk.f32.gmra.mrb[174].mxu0 %vm142_vm3, %v10843_v24  ;;  %vm13787_vm3 = vmpackc.low %vm9240_vm0, %vm9240_vm0 }
0x5bee   :  { %13163 = vmatprep.mubr.msk.f32.mxu0 %vm9240_vm0, %v10950_v19 }
0x5cbc   :  { %v13155_v1 = vpop.f32.mrb[172].mxu0 }
0x5cbd   :  { %v10933_v9 = vadd.f32 %v13155_v1, %v11513_v58  ;;  %v10927_v2 = vpop.f32.mrb[173].mxu0 }
0x5cbe   :  { %v10928_v48 = vadd.f32 %v11513_v58, %v10927_v2 }
0x5cbf   :  { %v10947_v42 = vadd.f32 %v10933_v9, %v16138_v21  ;;  %v10951_v21 = vld [vmem:[#allocation2 + $0x508] sm:$0x3] }
0x5cc0   :  { %v10946_v57 = vadd.f32 %v10928_v48, %v16130_v55  ;;  %v13158_v46 = vpop.f32.mrb[174].mxu0 }
0x5cc1   :  { %v10943_v10 = vadd.f32 %v13158_v46, %v11513_v58  ;;  %v10937_v32 = vpop.f32.mrb[175].mxu0 }
0x5cc2   :  { %v13786_v60 = vpack.c.bf16 %v10947_v42, %v10946_v57  ;;  %v10938_v44 = vadd.f32 %v11513_v58, %v10937_v32 }
0x5cc3   :  { %v10949_v4 = vadd.f32 %v10943_v10, %v16156_v5 }
0x5cc4   :  { %v10948_v45 = vadd.f32 %v10938_v44, %v16153_v28  ;;  %13788 = vmatprep.subr.msk.bf16.mxu0 %vm13787_vm3, %v13786_v60 }
0x5cc5   :  { %13791 = vmatpush3.bf16.xpose.msk.msra.mxu0 %vm13787_vm3, %v13786_v60 }
0x5cc6   :  { %v13792_v30 = vpack.c.bf16 %v10949_v4, %v10948_v45 }
0x5cc8   :  { %13794 = vmatprep.subr.msk.bf16.mxu1 %vm13787_vm3, %v13792_v30 }
0x5cc9   :  { %13797 = vmatpush3.bf16.xpose.msk.msra.mxu1 %vm13787_vm3, %v13792_v30 }
0x5ccc   :  { %13164 = vmatmul.mubr.msk.f32.vlgmr.msra.gmra.mrb[176].mxu0 %vm9240_vm0, %v10951_v21 }
0x5cd0   :  { %13171 = vmatmul.mubr.msk.f32.vlgmr.msra.gmra.mrb[168].mxu1 %vm9240_vm0, %v10951_v21 }
0x5d9f   :  { %v13165_v55 = vpop.f32.mrb[176].mxu0 }
0x5da0   :  { %11041 = vst.msk [vmem:[%s16264_s2 + $0x8] sm:$0x3] %vm11040_vm7, %v13165_v55  ;;  %v11030_v26 = vpop.f32.mrb[177].mxu0 }
0x5da1   :  { %11039 = vst.msk [vmem:[%s16264_s2] sm:$0xff] %vm45_vm1, %v11030_v26 }
0x5da3   :  { %v13172_v28 = vpop.f32.mrb[168].mxu1 }
0x5da4   :  { %11527 = vst.msk [vmem:[%s16264_s2 + $0x18] sm:$0x3] %vm11040_vm7, %v13172_v28  ;;  %v11114_v5 = vpop.f32.mrb[169].mxu1 }
0x5da5   :  { %11526 = vst.msk [vmem:[%s16264_s2 + $0x10] sm:$0xff] %vm45_vm1, %v11114_v5 }
0x5da6   :  { %11130 = vsyncpa [#allocation3], 1 }

</bundles_post_ra>
